<compile_context>
chip_gen: v6e
topology: v6e:2x2x1
jax: 0.10.0
libtpu: 0.0.40
codegen_flags: <defaults>
</compile_context>

<pallas_src>
import functools

import numpy as np
import jax
import jax.numpy as jnp
from jax.experimental import pallas as pl
from jax.experimental.pallas import tpu as pltpu


def _is_multi_tc():
    # v7x has 2 TensorCores per chip; v5e/v6e have 1.  Grid splits only pay
    # off when a second core exists, otherwise they are pure per-step
    # overhead (~0.35 us each) — so gate on the chip generation.
    try:
        kind = jax.devices()[0].device_kind.lower()
    except Exception:
        return False
    return ("v7" in kind) or ("tpu7" in kind)


_MULTI_TC = _is_multi_tc()


# ----------------------------------------------------------------------------
# Pallas kernels (all GEMMs: bf16 operands on the MXU, f32 accumulation)
# ----------------------------------------------------------------------------

def _gemm_bn_relu_kernel(a_ref, w_ref, s_ref, b_ref, o_ref):
    # Stem: (im2col'd patches, bf16) @ W, then fused eval-BN + ReLU epilogue.
    z = jnp.dot(a_ref[...], w_ref[...], preferred_element_type=jnp.float32)
    o_ref[...] = jnp.maximum(z * s_ref[...] + b_ref[...], 0.0).astype(o_ref.dtype)


def _dense_layer_kernel(H, W, x_ref, s1_ref, b1_ref, w1_ref, s2_ref, b2_ref,
                        w2_ref, o_ref, pad_ref, patch_ref):
    # Whole _DenseLayer in one kernel:
    #   norm1 -> relu1 -> conv1(1x1) -> norm2 -> relu2 -> pad -> conv2(3x3)
    #   -> torch.cat([x, new], channel)
    Mb, Cin = x_ref.shape                     # Mb = nb * H * W (rows = pixels)
    Cmid = w1_ref.shape[1]
    g = w2_ref.shape[1]
    nb = Mb // (H * W)

    x = x_ref[...]                                               # bf16 (Mb, Cin)

    # norm1 + relu1 (f32 math), 1x1 conv on the MXU.
    a = jnp.maximum(x.astype(jnp.float32) * s1_ref[...] + b1_ref[...], 0.0)
    z = jnp.dot(a.astype(jnp.bfloat16), w1_ref[...],
                preferred_element_type=jnp.float32)              # (Mb, Cmid)

    # norm2 + relu2, then zero-pad AFTER the ReLU (matches conv2 padding=1).
    u = jnp.maximum(z * s2_ref[...] + b2_ref[...], 0.0).astype(jnp.bfloat16)
    pad_ref[...] = jnp.zeros_like(pad_ref)
    pad_ref[:, 1:H + 1, 1:W + 1, :] = u.reshape(nb, H, W, Cmid)

    # im2col into a VMEM scratch, then ONE K = 9*Cmid dot (the 3x3 conv).
    t = 0
    for dy in range(3):
        for dx in range(3):
            patch_ref[:, :, :, t * Cmid:(t + 1) * Cmid] = \
                pad_ref[:, dy:dy + H, dx:dx + W, :]
            t += 1
    patches = patch_ref[...].reshape(Mb, 9 * Cmid)
    new = jnp.dot(patches, w2_ref[...],
                  preferred_element_type=jnp.float32)            # (Mb, g)

    # Fused torch.cat([x, new_features], dim=1).
    o_ref[:, 0:Cin] = x
    o_ref[:, Cin:Cin + g] = new.astype(o_ref.dtype)


def _transition_kernel(HW, x_ref, s_ref, b_ref, pool_ref, w_ref, o_ref):
    # Transition: norm -> relu -> (avg-pool) -> conv1x1.
    # avg-pool and the bias-free 1x1 conv are both linear, so pooling first is
    # mathematically identical to PyTorch's conv-then-pool and does 4x less
    # MXU work.  The pool itself is a tiny (HW/4, HW) matmul.
    Mb, Cin = x_ref.shape
    Cout = w_ref.shape[1]
    HWq = pool_ref.shape[0]
    nb = Mb // HW
    a = jnp.maximum(x_ref[...].astype(jnp.float32) * s_ref[...] + b_ref[...],
                    0.0).astype(jnp.bfloat16)
    for n in range(nb):
        an = a[n * HW:(n + 1) * HW, :]                           # (HW, Cin)
        pn = jnp.dot(pool_ref[...], an,
                     preferred_element_type=jnp.float32)         # (HWq, Cin)
        yn = jnp.dot(pn.astype(jnp.bfloat16), w_ref[...],
                     preferred_element_type=jnp.float32)         # (HWq, Cout)
        o_ref[n * HWq:(n + 1) * HWq, :] = yn.astype(o_ref.dtype)


def _head_kernel(x_ref, s_ref, b_ref, w_ref, cb_ref, o_ref):
    # norm5 + F.relu + adaptive global average pool + Linear, fused.
    hw = x_ref.shape[1]
    a = jnp.maximum(x_ref[...].astype(jnp.float32) * s_ref[...] + b_ref[...],
                    0.0)                                         # (N, HW, C)
    pooled = jnp.sum(a, axis=1) * (1.0 / hw)                     # (N, C)
    o_ref[...] = jnp.dot(pooled.astype(jnp.bfloat16), w_ref[...],
                         preferred_element_type=jnp.float32) + cb_ref[...]


# ----------------------------------------------------------------------------
# Kernel wrappers (full-extent channel blocks; batch / M split only on v7x)
# ----------------------------------------------------------------------------

def fused_gemm_bn_relu(a_bf16, w_bf16, scale, bias):
    M, K = a_bf16.shape
    N = w_bf16.shape[1]
    tm = M // 2 if (_MULTI_TC and M % 2 == 0 and (M // 2) % 8 == 0) else M
    grid = (M // tm,)
    return pl.pallas_call(
        _gemm_bn_relu_kernel,
        out_shape=jax.ShapeDtypeStruct((M, N), jnp.bfloat16),
        grid=grid,
        in_specs=[
            pl.BlockSpec((tm, K), lambda i: (i, 0)),
            pl.BlockSpec((K, N), lambda i: (0, 0)),
            pl.BlockSpec((1, N), lambda i: (0, 0)),
            pl.BlockSpec((1, N), lambda i: (0, 0)),
        ],
        out_specs=pl.BlockSpec((tm, N), lambda i: (i, 0)),
        compiler_params=pltpu.CompilerParams(
            dimension_semantics=("parallel",) if grid[0] > 1 else ("arbitrary",)),
        cost_estimate=pl.CostEstimate(
            flops=2 * M * K * N, transcendentals=0,
            bytes_accessed=2 * (M * K + K * N + M * N)),
    )(a_bf16, w_bf16, scale, bias)


def fused_dense_layer(x_nhwc, p):
    N, H, W, Cin = x_nhwc.shape
    s1, b1 = p['norm1']
    s2, b2 = p['norm2']
    w1, w2 = p['conv1'], p['conv2']
    Cmid, g = w1.shape[1], w2.shape[1]
    Cout = Cin + g
    progs = 2 if (_MULTI_TC and N % 2 == 0) else 1
    nb = N // progs
    Mb = nb * H * W
    M = N * H * W
    x2 = x_nhwc.reshape(M, Cin)                     # free row-major reshape
    out = pl.pallas_call(
        functools.partial(_dense_layer_kernel, H, W),
        out_shape=jax.ShapeDtypeStruct((M, Cout), jnp.bfloat16),
        grid=(progs,),
        in_specs=[
            pl.BlockSpec((Mb, Cin), lambda i: (i, 0)),
            pl.BlockSpec((1, Cin), lambda i: (0, 0)),
            pl.BlockSpec((1, Cin), lambda i: (0, 0)),
            pl.BlockSpec((Cin, Cmid), lambda i: (0, 0)),
            pl.BlockSpec((1, Cmid), lambda i: (0, 0)),
            pl.BlockSpec((1, Cmid), lambda i: (0, 0)),
            pl.BlockSpec((9 * Cmid, g), lambda i: (0, 0)),
        ],
        out_specs=pl.BlockSpec((Mb, Cout), lambda i: (i, 0)),
        scratch_shapes=[
            pltpu.VMEM((nb, H + 2, W + 2, Cmid), jnp.bfloat16),   # padded act
            pltpu.VMEM((nb, H, W, 9 * Cmid), jnp.bfloat16),       # im2col
        ],
        compiler_params=pltpu.CompilerParams(
            dimension_semantics=("parallel",) if progs > 1 else ("arbitrary",)),
        cost_estimate=pl.CostEstimate(
            flops=2 * M * Cin * Cmid + 2 * M * 9 * Cmid * g,
            transcendentals=0,
            bytes_accessed=2 * (M * Cin + M * Cout + int(w1.size) + int(w2.size))),
    )(x2, s1, b1, w1, s2, b2, w2)
    return out.reshape(N, H, W, Cout)


def _make_pool_matrix(H, W):
    # 2x2 / stride-2 average pool as a (H*W/4, H*W) matrix (exact 0.25 in bf16).
    HWq = (H // 2) * (W // 2)
    m = np.zeros((HWq, H * W), np.float32)
    for hq in range(H // 2):
        for wq in range(W // 2):
            q = hq * (W // 2) + wq
            for dh in range(2):
                for dw in range(2):
                    m[q, (2 * hq + dh) * W + (2 * wq + dw)] = 0.25
    return jnp.asarray(m, jnp.bfloat16)


def fused_transition(x_nhwc, p):
    N, H, W, Cin = x_nhwc.shape
    scale, bias = p['norm']
    w = p['conv']
    Cout = w.shape[1]
    HW, HWq = H * W, (H // 2) * (W // 2)
    progs = 2 if (_MULTI_TC and N % 2 == 0) else 1
    nb = N // progs
    pool = _make_pool_matrix(H, W)
    x2 = x_nhwc.reshape(N * HW, Cin)
    out = pl.pallas_call(
        functools.partial(_transition_kernel, HW),
        out_shape=jax.ShapeDtypeStruct((N * HWq, Cout), jnp.bfloat16),
        grid=(progs,),
        in_specs=[
            pl.BlockSpec((nb * HW, Cin), lambda i: (i, 0)),
            pl.BlockSpec((1, Cin), lambda i: (0, 0)),
            pl.BlockSpec((1, Cin), lambda i: (0, 0)),
            pl.BlockSpec((HWq, HW), lambda i: (0, 0)),
            pl.BlockSpec((Cin, Cout), lambda i: (0, 0)),
        ],
        out_specs=pl.BlockSpec((nb * HWq, Cout), lambda i: (i, 0)),
        compiler_params=pltpu.CompilerParams(
            dimension_semantics=("parallel",) if progs > 1 else ("arbitrary",)),
        cost_estimate=pl.CostEstimate(
            flops=2 * N * HWq * HW * Cin + 2 * N * HWq * Cin * Cout,
            transcendentals=0,
            bytes_accessed=2 * (N * HW * Cin + N * HWq * Cout
                                + int(pool.size) + int(w.size))),
    )(x2, scale, bias, pool, w)
    return out.reshape(N, H // 2, W // 2, Cout)


def fused_head(x_nhwc, norm5, w_bf16, cbias):
    scale, bias = norm5
    N, H, W, C = x_nhwc.shape
    nc = w_bf16.shape[1]
    x3 = x_nhwc.reshape(N, H * W, C)
    return pl.pallas_call(
        _head_kernel,
        out_shape=jax.ShapeDtypeStruct((N, nc), jnp.float32),
        grid=(1,),
        in_specs=[
            pl.BlockSpec((N, H * W, C), lambda i: (0, 0, 0)),
            pl.BlockSpec((1, C), lambda i: (0, 0)),
            pl.BlockSpec((1, C), lambda i: (0, 0)),
            pl.BlockSpec((C, nc), lambda i: (0, 0)),
            pl.BlockSpec((1, nc), lambda i: (0, 0)),
        ],
        out_specs=pl.BlockSpec((N, nc), lambda i: (0, 0)),
        compiler_params=pltpu.CompilerParams(dimension_semantics=("arbitrary",)),
        cost_estimate=pl.CostEstimate(
            flops=3 * N * H * W * C + 2 * N * C * nc, transcendentals=0,
            bytes_accessed=2 * (N * H * W * C + C * nc) + 4 * N * nc),
    )(x3, scale, bias, w_bf16, cbias)


# ----------------------------------------------------------------------------
# Small JAX glue (stem im2col in bf16, maxpool windows)
# ----------------------------------------------------------------------------

def conv0_stem(x_nhwc, w_mat_bf16, norm0):
    # 5x5 / stride-2 / pad-2 stem conv with fused BN0+ReLU epilogue (bf16 out).
    # TODO(synk): the one-time strided 25-tap im2col stays in JAX glue — a
    # strided window cannot be expressed by a BlockSpec index_map; done in
    # bf16 to halve the HBM traffic of this shuffle.
    N, H, W, C = x_nhwc.shape
    kh = kw = 5
    stride, pad = 2, 2
    Ho = (H + 2 * pad - kh) // stride + 1
    Wo = (W + 2 * pad - kw) // stride + 1
    xp = jnp.pad(x_nhwc.astype(jnp.bfloat16),
                 ((0, 0), (pad, pad), (pad, pad), (0, 0)))
    patches = []
    for dy in range(kh):
        for dx in range(kw):
            patches.append(
                xp[:, dy:dy + stride * Ho:stride, dx:dx + stride * Wo:stride, :])
    cols = jnp.concatenate(patches, axis=-1).reshape(N * Ho * Wo, kh * kw * C)
    out = fused_gemm_bn_relu(cols, w_mat_bf16, norm0[0], norm0[1])
    return out.reshape(N, Ho, Wo, -1)


def maxpool_3x3_s2_p1(x):
    # TODO(synk): pooling window extraction kept in plain JAX glue (one-time,
    # tiny vs the convs).  Padding with finfo.min is valid because the input
    # is post-ReLU (>= 0).
    N, H, W, C = x.shape
    neg = jnp.finfo(x.dtype).min
    xp = jnp.pad(x, ((0, 0), (1, 1), (1, 1), (0, 0)), constant_values=neg)
    Ho = (H + 2 - 3) // 2 + 1
    Wo = (W + 2 - 3) // 2 + 1
    out = None
    for dy in range(3):
        for dx in range(3):
            p = xp[:, dy:dy + 2 * Ho:2, dx:dx + 2 * Wo:2, :]
            out = p if out is None else jnp.maximum(out, p)
    return out


# ----------------------------------------------------------------------------
# Parameter construction (deterministic, synthetic; weights stored in GEMM
# layout + bf16 at init so no per-forward transposes/reshapes/casts)
# ----------------------------------------------------------------------------

def init_bn(key, c, eps=1e-5):
    k1, k2, k3, k4 = jax.random.split(key, 4)
    gamma = jax.random.uniform(k1, (c,), minval=0.5, maxval=1.5)
    beta = jax.random.normal(k2, (c,)) * 0.1
    running_mean = jax.random.normal(k3, (c,)) * 0.1
    running_var = jax.random.uniform(k4, (c,), minval=0.5, maxval=1.5)
    scale = gamma / jnp.sqrt(running_var + eps)
    bias = beta - running_mean * scale
    return (scale.reshape(1, -1).astype(jnp.float32),
            bias.reshape(1, -1).astype(jnp.float32))


def init_conv(key, cout, cin, kh, kw):
    fan_in = cin * kh * kw
    return (jax.random.normal(key, (cout, cin, kh, kw)) /
            jnp.sqrt(fan_in)).astype(jnp.float32)


def conv_w_to_gemm(w_oihw):
    # (Cout, Cin, kh, kw) -> (kh*kw*Cin, Cout), patch order (ky, kx, cin), bf16.
    cout, cin, kh, kw = w_oihw.shape
    return jnp.transpose(w_oihw, (2, 3, 1, 0)).reshape(
        kh * kw * cin, cout).astype(jnp.bfloat16)


def build_params(key, growth_rate=8, block_config=(2, 2), num_init_features=16,
                 bn_size=2, num_classes=10, in_channels=3):
    keys = iter(jax.random.split(key, 256))
    params = {}
    params['conv0'] = conv_w_to_gemm(
        init_conv(next(keys), num_init_features, in_channels, 5, 5))
    params['norm0'] = init_bn(next(keys), num_init_features)
    num_features = num_init_features
    blocks = []
    for i, num_layers in enumerate(block_config):
        layers = []
        for j in range(num_layers):
            cin = num_features + j * growth_rate
            layers.append({
                'norm1': init_bn(next(keys), cin),
                'conv1': conv_w_to_gemm(
                    init_conv(next(keys), bn_size * growth_rate, cin, 1, 1)),
                'norm2': init_bn(next(keys), bn_size * growth_rate),
                'conv2': conv_w_to_gemm(
                    init_conv(next(keys), growth_rate, bn_size * growth_rate, 3, 3)),
            })
        num_features += num_layers * growth_rate
        transition = None
        if i != len(block_config) - 1:
            transition = {
                'norm': init_bn(next(keys), num_features),
                'conv': conv_w_to_gemm(
                    init_conv(next(keys), num_features // 2, num_features, 1, 1)),
            }
            num_features //= 2
        blocks.append({'layers': layers, 'transition': transition})
    params['blocks'] = blocks
    params['norm5'] = init_bn(next(keys), num_features)
    kw_, kb_ = jax.random.split(next(keys))
    params['classifier_w'] = (jax.random.normal(kw_, (num_features, num_classes))
                              * 0.1).astype(jnp.bfloat16)
    params['classifier_b'] = (jax.random.normal(kb_, (1, num_classes))
                              * 0.1).astype(jnp.float32)
    return params


# ----------------------------------------------------------------------------
# DenseNet forward
# ----------------------------------------------------------------------------

def densenet_forward(params, x_nchw):
    # layout: input is NCHW (PyTorch convention); converted to NHWC internally.
    x = jnp.transpose(x_nchw, (0, 2, 3, 1)).astype(jnp.float32)

    # features: conv0 -> norm0 -> relu0 (one kernel) -> pool0 (glue)
    x = conv0_stem(x, params['conv0'], params['norm0'])
    x = maxpool_3x3_s2_p1(x)

    # dense blocks (one kernel per _DenseLayer) + transitions (one kernel)
    for blk in params['blocks']:
        for lp in blk['layers']:
            x = fused_dense_layer(x, lp)
        if blk['transition'] is not None:
            x = fused_transition(x, blk['transition'])

    # norm5 + forward()'s F.relu + adaptive-avg-pool + Linear in one kernel.
    # TODO(synk): nn.Dropout(0.5) is identity in eval/inference mode; omitted.
    return fused_head(x, params['norm5'],
                      params['classifier_w'], params['classifier_b'])


if __name__ == "__main__":
    key = jax.random.PRNGKey(0)
    kp, kx = jax.random.split(key)
    params = build_params(kp)
    x = jax.random.normal(kx, (2, 3, 32, 32), dtype=jnp.float32)
    fwd = jax.jit(densenet_forward)
    out = fwd(params, x)
    jax.block_until_ready(out)
    assert out.shape == (2, 10), out.shape
    assert bool(jnp.all(jnp.isfinite(out)))
    print("KERNEL_OK")
</pallas_src>

<mosaic_0001>
module attributes {stable_mosaic.version = 11 : i64} {
  func.func @_gemm_bn_relu_kernel(%arg0: i32, %arg1: memref<512x75xbf16, #tpu.memory_space<vmem>>, %arg2: memref<75x16xbf16, #tpu.memory_space<vmem>>, %arg3: memref<1x16xf32, #tpu.memory_space<vmem>>, %arg4: memref<1x16xf32, #tpu.memory_space<vmem>>, %arg5: memref<512x16xbf16, #tpu.memory_space<vmem>>) attributes {dimension_semantics = [#tpu.dimension_semantics<arbitrary>], iteration_bounds = array<i64: 1>, scalar_prefetch = 0 : i64, scratch_operands = 0 : i64, tpu.core_type = #tpu.core_type<tc>, window_params = [{transform_indices = @transform_0, window_bounds = array<i64: 512, 75>}, {pipeline_mode = #tpu.pipeline_mode<synchronous>, transform_indices = @transform_1, window_bounds = array<i64: 75, 16>}, {pipeline_mode = #tpu.pipeline_mode<synchronous>, transform_indices = @transform_2, window_bounds = array<i64: 1, 16>}, {pipeline_mode = #tpu.pipeline_mode<synchronous>, transform_indices = @transform_3, window_bounds = array<i64: 1, 16>}, {transform_indices = @transform_4, window_bounds = array<i64: 512, 16>}]} {
    %c0 = arith.constant 0 : index
    %c0_0 = arith.constant 0 : index
    %0 = vector.load %arg1[%c0, %c0_0] : memref<512x75xbf16, #tpu.memory_space<vmem>>, vector<512x75xbf16>
    %c0_1 = arith.constant 0 : index
    %c0_2 = arith.constant 0 : index
    %1 = vector.load %arg2[%c0_1, %c0_2] : memref<75x16xbf16, #tpu.memory_space<vmem>>, vector<75x16xbf16>
    %cst = arith.constant dense<0.000000e+00> : vector<512x16xf32>
    %2 = tpu.matmul %0, %1, %cst {dimension_numbers = #tpu.dot_dimension_numbers<[1], [0], [0], [1], [0, 0, 1, 1], [], []>} : vector<512x75xbf16>, vector<75x16xbf16>, vector<512x16xf32> -> vector<512x16xf32>
    %c0_3 = arith.constant 0 : index
    %c0_4 = arith.constant 0 : index
    %3 = vector.load %arg3[%c0_3, %c0_4] : memref<1x16xf32, #tpu.memory_space<vmem>>, vector<1x16xf32>
    %4 = vector.broadcast %3 : vector<1x16xf32> to vector<512x16xf32>
    %5 = arith.mulf %2, %4 : vector<512x16xf32>
    %c0_5 = arith.constant 0 : index
    %c0_6 = arith.constant 0 : index
    %6 = vector.load %arg4[%c0_5, %c0_6] : memref<1x16xf32, #tpu.memory_space<vmem>>, vector<1x16xf32>
    %7 = vector.broadcast %6 : vector<1x16xf32> to vector<512x16xf32>
    %8 = arith.addf %5, %7 : vector<512x16xf32>
    %cst_7 = arith.constant 0.000000e+00 : f32
    %9 = vector.broadcast %cst_7 : f32 to vector<512x16xf32>
    %10 = arith.maximumf %8, %9 : vector<512x16xf32>
    %11 = arith.truncf %10 : vector<512x16xf32> to vector<512x16xbf16>
    %c0_8 = arith.constant 0 : index
    %c0_9 = arith.constant 0 : index
    %12 = vector.load %arg5[%c0_8, %c0_9] : memref<512x16xbf16, #tpu.memory_space<vmem>>, vector<512x16xbf16>
    tpu.vector_store %arg5[%c0_8, %c0_9], %11 {strides = array<i32>} : memref<512x16xbf16, #tpu.memory_space<vmem>>, vector<512x16xbf16>,
    return
  }
  func.func @transform_0(%arg0: i32) -> (i32, i32) {
    %c0_i32 = arith.constant 0 : i32
    %c0_i32_0 = arith.constant 0 : i32
    return %arg0, %c0_i32 : i32, i32
  }
  func.func @transform_1(%arg0: i32) -> (i32, i32) {
    %c0_i32 = arith.constant 0 : i32
    %c0_i32_0 = arith.constant 0 : i32
    %c0_i32_1 = arith.constant 0 : i32
    return %c0_i32, %c0_i32_0 : i32, i32
  }
  func.func @transform_2(%arg0: i32) -> (i32, i32) {
    %c0_i32 = arith.constant 0 : i32
    %c0_i32_0 = arith.constant 0 : i32
    %c0_i32_1 = arith.constant 0 : i32
    return %c0_i32, %c0_i32_0 : i32, i32
  }
  func.func @transform_3(%arg0: i32) -> (i32, i32) {
    %c0_i32 = arith.constant 0 : i32
    %c0_i32_0 = arith.constant 0 : i32
    %c0_i32_1 = arith.constant 0 : i32
    return %c0_i32, %c0_i32_0 : i32, i32
  }
  func.func @transform_4(%arg0: i32) -> (i32, i32) {
    %c0_i32 = arith.constant 0 : i32
    %c0_i32_0 = arith.constant 0 : i32
    return %arg0, %c0_i32 : i32, i32
  }
}

module attributes {stable_mosaic.version = 11 : i64} {
  func.func @_dense_layer_kernel(%arg0: i32, %arg1: memref<128x16xbf16, #tpu.memory_space<vmem>>, %arg2: memref<1x16xf32, #tpu.memory_space<vmem>>, %arg3: memref<1x16xf32, #tpu.memory_space<vmem>>, %arg4: memref<16x16xbf16, #tpu.memory_space<vmem>>, %arg5: memref<1x16xf32, #tpu.memory_space<vmem>>, %arg6: memref<1x16xf32, #tpu.memory_space<vmem>>, %arg7: memref<144x8xbf16, #tpu.memory_space<vmem>>, %arg8: memref<128x24xbf16, #tpu.memory_space<vmem>>, %arg9: memref<2x10x10x16xbf16, #tpu.memory_space<vmem>>, %arg10: memref<2x8x8x144xbf16, #tpu.memory_space<vmem>>) attributes {dimension_semantics = [#tpu.dimension_semantics<arbitrary>], iteration_bounds = array<i64: 1>, scalar_prefetch = 0 : i64, scratch_operands = 2 : i64, tpu.core_type = #tpu.core_type<tc>, window_params = [{transform_indices = @transform_0, window_bounds = array<i64: 128, 16>}, {pipeline_mode = #tpu.pipeline_mode<synchronous>, transform_indices = @transform_1, window_bounds = array<i64: 1, 16>}, {pipeline_mode = #tpu.pipeline_mode<synchronous>, transform_indices = @transform_2, window_bounds = array<i64: 1, 16>}, {pipeline_mode = #tpu.pipeline_mode<synchronous>, transform_indices = @transform_3, window_bounds = array<i64: 16, 16>}, {pipeline_mode = #tpu.pipeline_mode<synchronous>, transform_indices = @transform_4, window_bounds = array<i64: 1, 16>}, {pipeline_mode = #tpu.pipeline_mode<synchronous>, transform_indices = @transform_5, window_bounds = array<i64: 1, 16>}, {pipeline_mode = #tpu.pipeline_mode<synchronous>, transform_indices = @transform_6, window_bounds = array<i64: 144, 8>}, {transform_indices = @transform_7, window_bounds = array<i64: 128, 24>}]} {
    %c0 = arith.constant 0 : index
    %c0_0 = arith.constant 0 : index
    %0 = vector.load %arg1[%c0, %c0_0] : memref<128x16xbf16, #tpu.memory_space<vmem>>, vector<128x16xbf16>
    %1 = arith.extf %0 : vector<128x16xbf16> to vector<128x16xf32>
    %c0_1 = arith.constant 0 : index
    %c0_2 = arith.constant 0 : index
    %2 = vector.load %arg2[%c0_1, %c0_2] : memref<1x16xf32, #tpu.memory_space<vmem>>, vector<1x16xf32>
    %3 = vector.broadcast %2 : vector<1x16xf32> to vector<128x16xf32>
    %4 = arith.mulf %1, %3 : vector<128x16xf32>
    %c0_3 = arith.constant 0 : index
    %c0_4 = arith.constant 0 : index
    %5 = vector.load %arg3[%c0_3, %c0_4] : memref<1x16xf32, #tpu.memory_space<vmem>>, vector<1x16xf32>
    %6 = vector.broadcast %5 : vector<1x16xf32> to vector<128x16xf32>
    %7 = arith.addf %4, %6 : vector<128x16xf32>
    %cst = arith.constant 0.000000e+00 : f32
    %8 = vector.broadcast %cst : f32 to vector<128x16xf32>
    %9 = arith.maximumf %7, %8 : vector<128x16xf32>
    %10 = arith.truncf %9 : vector<128x16xf32> to vector<128x16xbf16>
    %c0_5 = arith.constant 0 : index
    %c0_6 = arith.constant 0 : index
    %11 = vector.load %arg4[%c0_5, %c0_6] : memref<16x16xbf16, #tpu.memory_space<vmem>>, vector<16x16xbf16>
    %cst_7 = arith.constant dense<0.000000e+00> : vector<128x16xf32>
    %12 = tpu.matmul %10, %11, %cst_7 {dimension_numbers = #tpu.dot_dimension_numbers<[1], [0], [0], [1], [0, 0, 1, 1], [], []>} : vector<128x16xbf16>, vector<16x16xbf16>, vector<128x16xf32> -> vector<128x16xf32>
    %c0_8 = arith.constant 0 : index
    %c0_9 = arith.constant 0 : index
    %13 = vector.load %arg5[%c0_8, %c0_9] : memref<1x16xf32, #tpu.memory_space<vmem>>, vector<1x16xf32>
    %14 = vector.broadcast %13 : vector<1x16xf32> to vector<128x16xf32>
    %15 = arith.mulf %12, %14 : vector<128x16xf32>
    %c0_10 = arith.constant 0 : index
    %c0_11 = arith.constant 0 : index
    %16 = vector.load %arg6[%c0_10, %c0_11] : memref<1x16xf32, #tpu.memory_space<vmem>>, vector<1x16xf32>
    %17 = vector.broadcast %16 : vector<1x16xf32> to vector<128x16xf32>
    %18 = arith.addf %15, %17 : vector<128x16xf32>
    %cst_12 = arith.constant 0.000000e+00 : f32
    %19 = vector.broadcast %cst_12 : f32 to vector<128x16xf32>
    %20 = arith.maximumf %18, %19 : vector<128x16xf32>
    %21 = arith.truncf %20 : vector<128x16xf32> to vector<128x16xbf16>
    %cst_13 = arith.constant 0.000000e+00 : bf16
    %22 = vector.broadcast %cst_13 : bf16 to vector<2x10x10x16xbf16>
    %c0_14 = arith.constant 0 : index
    %c0_15 = arith.constant 0 : index
    %c0_16 = arith.constant 0 : index
    %c0_17 = arith.constant 0 : index
    %23 = vector.load %arg9[%c0_14, %c0_15, %c0_16, %c0_17] : memref<2x10x10x16xbf16, #tpu.memory_space<vmem>>, vector<2x10x10x16xbf16>
    tpu.vector_store %arg9[%c0_14, %c0_15, %c0_16, %c0_17], %22 {strides = array<i32>} : memref<2x10x10x16xbf16, #tpu.memory_space<vmem>>, vector<2x10x10x16xbf16>,
    %24 = vector.shape_cast %21 : vector<128x16xbf16> to vector<2x8x8x16xbf16>
    %c0_18 = arith.constant 0 : index
    %c1 = arith.constant 1 : index
    %c1_19 = arith.constant 1 : index
    %c0_20 = arith.constant 0 : index
    %25 = vector.load %arg9[%c0_18, %c1, %c1_19, %c0_20] : memref<2x10x10x16xbf16, #tpu.memory_space<vmem>>, vector<2x8x8x16xbf16>
    tpu.vector_store %arg9[%c0_18, %c1, %c1_19, %c0_20], %24 {strides = array<i32>} : memref<2x10x10x16xbf16, #tpu.memory_space<vmem>>, vector<2x8x8x16xbf16>,
    %c0_21 = arith.constant 0 : index
    %c0_22 = arith.constant 0 : index
    %c0_23 = arith.constant 0 : index
    %c0_24 = arith.constant 0 : index
    %26 = vector.load %arg9[%c0_21, %c0_22, %c0_23, %c0_24] : memref<2x10x10x16xbf16, #tpu.memory_space<vmem>>, vector<2x8x8x16xbf16>
    %c0_25 = arith.constant 0 : index
    %c0_26 = arith.constant 0 : index
    %c0_27 = arith.constant 0 : index
    %c0_28 = arith.constant 0 : index
    %27 = vector.load %arg10[%c0_25, %c0_26, %c0_27, %c0_28] : memref<2x8x8x144xbf16, #tpu.memory_space<vmem>>, vector<2x8x8x16xbf16>
    tpu.vector_store %arg10[%c0_25, %c0_26, %c0_27, %c0_28], %26 {strides = array<i32>} : memref<2x8x8x144xbf16, #tpu.memory_space<vmem>>, vector<2x8x8x16xbf16>,
    %c0_29 = arith.constant 0 : index
    %c0_30 = arith.constant 0 : index
    %c1_31 = arith.constant 1 : index
    %c0_32 = arith.constant 0 : index
    %28 = vector.load %arg9[%c0_29, %c0_30, %c1_31, %c0_32] : memref<2x10x10x16xbf16, #tpu.memory_space<vmem>>, vector<2x8x8x16xbf16>
    %c0_33 = arith.constant 0 : index
    %c0_34 = arith.constant 0 : index
    %c0_35 = arith.constant 0 : index
    %c16 = arith.constant 16 : index
    %29 = vector.load %arg10[%c0_33, %c0_34, %c0_35, %c16] : memref<2x8x8x144xbf16, #tpu.memory_space<vmem>>, vector<2x8x8x16xbf16>
    tpu.vector_store %arg10[%c0_33, %c0_34, %c0_35, %c16], %28 {strides = array<i32>} : memref<2x8x8x144xbf16, #tpu.memory_space<vmem>>, vector<2x8x8x16xbf16>,
    %c0_36 = arith.constant 0 : index
    %c0_37 = arith.constant 0 : index
    %c2 = arith.constant 2 : index
    %c0_38 = arith.constant 0 : index
    %30 = vector.load %arg9[%c0_36, %c0_37, %c2, %c0_38] : memref<2x10x10x16xbf16, #tpu.memory_space<vmem>>, vector<2x8x8x16xbf16>
    %c0_39 = arith.constant 0 : index
    %c0_40 = arith.constant 0 : index
    %c0_41 = arith.constant 0 : index
    %c32 = arith.constant 32 : index
    %31 = vector.load %arg10[%c0_39, %c0_40, %c0_41, %c32] : memref<2x8x8x144xbf16, #tpu.memory_space<vmem>>, vector<2x8x8x16xbf16>
    tpu.vector_store %arg10[%c0_39, %c0_40, %c0_41, %c32], %30 {strides = array<i32>} : memref<2x8x8x144xbf16, #tpu.memory_space<vmem>>, vector<2x8x8x16xbf16>,
    %c0_42 = arith.constant 0 : index
    %c1_43 = arith.constant 1 : index
    %c0_44 = arith.constant 0 : index
    %c0_45 = arith.constant 0 : index
    %32 = vector.load %arg9[%c0_42, %c1_43, %c0_44, %c0_45] : memref<2x10x10x16xbf16, #tpu.memory_space<vmem>>, vector<2x8x8x16xbf16>
    %c0_46 = arith.constant 0 : index
    %c0_47 = arith.constant 0 : index
    %c0_48 = arith.constant 0 : index
    %c48 = arith.constant 48 : index
    %33 = vector.load %arg10[%c0_46, %c0_47, %c0_48, %c48] : memref<2x8x8x144xbf16, #tpu.memory_space<vmem>>, vector<2x8x8x16xbf16>
    tpu.vector_store %arg10[%c0_46, %c0_47, %c0_48, %c48], %32 {strides = array<i32>} : memref<2x8x8x144xbf16, #tpu.memory_space<vmem>>, vector<2x8x8x16xbf16>,
    %c0_49 = arith.constant 0 : index
    %c1_50 = arith.constant 1 : index
    %c1_51 = arith.constant 1 : index
    %c0_52 = arith.constant 0 : index
    %34 = vector.load %arg9[%c0_49, %c1_50, %c1_51, %c0_52] : memref<2x10x10x16xbf16, #tpu.memory_space<vmem>>, vector<2x8x8x16xbf16>
    %c0_53 = arith.constant 0 : index
    %c0_54 = arith.constant 0 : index
    %c0_55 = arith.constant 0 : index
    %c64 = arith.constant 64 : index
    %35 = vector.load %arg10[%c0_53, %c0_54, %c0_55, %c64] : memref<2x8x8x144xbf16, #tpu.memory_space<vmem>>, vector<2x8x8x16xbf16>
    tpu.vector_store %arg10[%c0_53, %c0_54, %c0_55, %c64], %34 {strides = array<i32>} : memref<2x8x8x144xbf16, #tpu.memory_space<vmem>>, vector<2x8x8x16xbf16>,
    %c0_56 = arith.constant 0 : index
    %c1_57 = arith.constant 1 : index
    %c2_58 = arith.constant 2 : index
    %c0_59 = arith.constant 0 : index
    %36 = vector.load %arg9[%c0_56, %c1_57, %c2_58, %c0_59] : memref<2x10x10x16xbf16, #tpu.memory_space<vmem>>, vector<2x8x8x16xbf16>
    %c0_60 = arith.constant 0 : index
    %c0_61 = arith.constant 0 : index
    %c0_62 = arith.constant 0 : index
    %c80 = arith.constant 80 : index
    %37 = vector.load %arg10[%c0_60, %c0_61, %c0_62, %c80] : memref<2x8x8x144xbf16, #tpu.memory_space<vmem>>, vector<2x8x8x16xbf16>
    tpu.vector_store %arg10[%c0_60, %c0_61, %c0_62, %c80], %36 {strides = array<i32>} : memref<2x8x8x144xbf16, #tpu.memory_space<vmem>>, vector<2x8x8x16xbf16>,
    %c0_63 = arith.constant 0 : index
    %c2_64 = arith.constant 2 : index
    %c0_65 = arith.constant 0 : index
    %c0_66 = arith.constant 0 : index
    %38 = vector.load %arg9[%c0_63, %c2_64, %c0_65, %c0_66] : memref<2x10x10x16xbf16, #tpu.memory_space<vmem>>, vector<2x8x8x16xbf16>
    %c0_67 = arith.constant 0 : index
    %c0_68 = arith.constant 0 : index
    %c0_69 = arith.constant 0 : index
    %c96 = arith.constant 96 : index
    %39 = vector.load %arg10[%c0_67, %c0_68, %c0_69, %c96] : memref<2x8x8x144xbf16, #tpu.memory_space<vmem>>, vector<2x8x8x16xbf16>
    tpu.vector_store %arg10[%c0_67, %c0_68, %c0_69, %c96], %38 {strides = array<i32>} : memref<2x8x8x144xbf16, #tpu.memory_space<vmem>>, vector<2x8x8x16xbf16>,
    %c0_70 = arith.constant 0 : index
    %c2_71 = arith.constant 2 : index
    %c1_72 = arith.constant 1 : index
    %c0_73 = arith.constant 0 : index
    %40 = vector.load %arg9[%c0_70, %c2_71, %c1_72, %c0_73] : memref<2x10x10x16xbf16, #tpu.memory_space<vmem>>, vector<2x8x8x16xbf16>
    %c0_74 = arith.constant 0 : index
    %c0_75 = arith.constant 0 : index
    %c0_76 = arith.constant 0 : index
    %c112 = arith.constant 112 : index
    %41 = vector.load %arg10[%c0_74, %c0_75, %c0_76, %c112] : memref<2x8x8x144xbf16, #tpu.memory_space<vmem>>, vector<2x8x8x16xbf16>
    tpu.vector_store %arg10[%c0_74, %c0_75, %c0_76, %c112], %40 {strides = array<i32>} : memref<2x8x8x144xbf16, #tpu.memory_space<vmem>>, vector<2x8x8x16xbf16>,
    %c0_77 = arith.constant 0 : index
    %c2_78 = arith.constant 2 : index
    %c2_79 = arith.constant 2 : index
    %c0_80 = arith.constant 0 : index
    %42 = vector.load %arg9[%c0_77, %c2_78, %c2_79, %c0_80] : memref<2x10x10x16xbf16, #tpu.memory_space<vmem>>, vector<2x8x8x16xbf16>
    %c0_81 = arith.constant 0 : index
    %c0_82 = arith.constant 0 : index
    %c0_83 = arith.constant 0 : index
    %c128 = arith.constant 128 : index
    %43 = vector.load %arg10[%c0_81, %c0_82, %c0_83, %c128] : memref<2x8x8x144xbf16, #tpu.memory_space<vmem>>, vector<2x8x8x16xbf16>
    tpu.vector_store %arg10[%c0_81, %c0_82, %c0_83, %c128], %42 {strides = array<i32>} : memref<2x8x8x144xbf16, #tpu.memory_space<vmem>>, vector<2x8x8x16xbf16>,
    %c0_84 = arith.constant 0 : index
    %c0_85 = arith.constant 0 : index
    %c0_86 = arith.constant 0 : index
    %c0_87 = arith.constant 0 : index
    %44 = vector.load %arg10[%c0_84, %c0_85, %c0_86, %c0_87] : memref<2x8x8x144xbf16, #tpu.memory_space<vmem>>, vector<2x8x8x144xbf16>
    %45 = vector.shape_cast %44 : vector<2x8x8x144xbf16> to vector<128x144xbf16>
    %c0_88 = arith.constant 0 : index
    %c0_89 = arith.constant 0 : index
    %46 = vector.load %arg7[%c0_88, %c0_89] : memref<144x8xbf16, #tpu.memory_space<vmem>>, vector<144x8xbf16>
    %cst_90 = arith.constant dense<0.000000e+00> : vector<128x8xf32>
    %47 = tpu.matmul %45, %46, %cst_90 {dimension_numbers = #tpu.dot_dimension_numbers<[1], [0], [0], [1], [0, 0, 1, 1], [], []>} : vector<128x144xbf16>, vector<144x8xbf16>, vector<128x8xf32> -> vector<128x8xf32>
    %c0_91 = arith.constant 0 : index
    %c0_92 = arith.constant 0 : index
    %48 = vector.load %arg8[%c0_91, %c0_92] : memref<128x24xbf16, #tpu.memory_space<vmem>>, vector<128x16xbf16>
    tpu.vector_store %arg8[%c0_91, %c0_92], %0 {strides = array<i32>} : memref<128x24xbf16, #tpu.memory_space<vmem>>, vector<128x16xbf16>,
    %49 = arith.truncf %47 : vector<128x8xf32> to vector<128x8xbf16>
    %c0_93 = arith.constant 0 : index
    %c16_94 = arith.constant 16 : index
    %50 = vector.load %arg8[%c0_93, %c16_94] : memref<128x24xbf16, #tpu.memory_space<vmem>>, vector<128x8xbf16>
    tpu.vector_store %arg8[%c0_93, %c16_94], %49 {strides = array<i32>} : memref<128x24xbf16, #tpu.memory_space<vmem>>, vector<128x8xbf16>,
    return
  }
  func.func @transform_0(%arg0: i32) -> (i32, i32) {
    %c0_i32 = arith.constant 0 : i32
    %c0_i32_0 = arith.constant 0 : i32
    return %arg0, %c0_i32 : i32, i32
  }
  func.func @transform_1(%arg0: i32) -> (i32, i32) {
    %c0_i32 = arith.constant 0 : i32
    %c0_i32_0 = arith.constant 0 : i32
    %c0_i32_1 = arith.constant 0 : i32
    return %c0_i32, %c0_i32_0 : i32, i32
  }
  func.func @transform_2(%arg0: i32) -> (i32, i32) {
    %c0_i32 = arith.constant 0 : i32
    %c0_i32_0 = arith.constant 0 : i32
    %c0_i32_1 = arith.constant 0 : i32
    return %c0_i32, %c0_i32_0 : i32, i32
  }
  func.func @transform_3(%arg0: i32) -> (i32, i32) {
    %c0_i32 = arith.constant 0 : i32
    %c0_i32_0 = arith.constant 0 : i32
    %c0_i32_1 = arith.constant 0 : i32
    return %c0_i32, %c0_i32_0 : i32, i32
  }
  func.func @transform_4(%arg0: i32) -> (i32, i32) {
    %c0_i32 = arith.constant 0 : i32
    %c0_i32_0 = arith.constant 0 : i32
    %c0_i32_1 = arith.constant 0 : i32
    return %c0_i32, %c0_i32_0 : i32, i32
  }
  func.func @transform_5(%arg0: i32) -> (i32, i32) {
    %c0_i32 = arith.constant 0 : i32
    %c0_i32_0 = arith.constant 0 : i32
    %c0_i32_1 = arith.constant 0 : i32
    return %c0_i32, %c0_i32_0 : i32, i32
  }
  func.func @transform_6(%arg0: i32) -> (i32, i32) {
    %c0_i32 = arith.constant 0 : i32
    %c0_i32_0 = arith.constant 0 : i32
    %c0_i32_1 = arith.constant 0 : i32
    return %c0_i32, %c0_i32_0 : i32, i32
  }
  func.func @transform_7(%arg0: i32) -> (i32, i32) {
    %c0_i32 = arith.constant 0 : i32
    %c0_i32_0 = arith.constant 0 : i32
    return %arg0, %c0_i32 : i32, i32
  }
}

module attributes {stable_mosaic.version = 11 : i64} {
  func.func @_dense_layer_kernel(%arg0: i32, %arg1: memref<128x24xbf16, #tpu.memory_space<vmem>>, %arg2: memref<1x24xf32, #tpu.memory_space<vmem>>, %arg3: memref<1x24xf32, #tpu.memory_space<vmem>>, %arg4: memref<24x16xbf16, #tpu.memory_space<vmem>>, %arg5: memref<1x16xf32, #tpu.memory_space<vmem>>, %arg6: memref<1x16xf32, #tpu.memory_space<vmem>>, %arg7: memref<144x8xbf16, #tpu.memory_space<vmem>>, %arg8: memref<128x32xbf16, #tpu.memory_space<vmem>>, %arg9: memref<2x10x10x16xbf16, #tpu.memory_space<vmem>>, %arg10: memref<2x8x8x144xbf16, #tpu.memory_space<vmem>>) attributes {dimension_semantics = [#tpu.dimension_semantics<arbitrary>], iteration_bounds = array<i64: 1>, scalar_prefetch = 0 : i64, scratch_operands = 2 : i64, tpu.core_type = #tpu.core_type<tc>, window_params = [{transform_indices = @transform_0, window_bounds = array<i64: 128, 24>}, {pipeline_mode = #tpu.pipeline_mode<synchronous>, transform_indices = @transform_1, window_bounds = array<i64: 1, 24>}, {pipeline_mode = #tpu.pipeline_mode<synchronous>, transform_indices = @transform_2, window_bounds = array<i64: 1, 24>}, {pipeline_mode = #tpu.pipeline_mode<synchronous>, transform_indices = @transform_3, window_bounds = array<i64: 24, 16>}, {pipeline_mode = #tpu.pipeline_mode<synchronous>, transform_indices = @transform_4, window_bounds = array<i64: 1, 16>}, {pipeline_mode = #tpu.pipeline_mode<synchronous>, transform_indices = @transform_5, window_bounds = array<i64: 1, 16>}, {pipeline_mode = #tpu.pipeline_mode<synchronous>, transform_indices = @transform_6, window_bounds = array<i64: 144, 8>}, {transform_indices = @transform_7, window_bounds = array<i64: 128, 32>}]} {
    %c0 = arith.constant 0 : index
    %c0_0 = arith.constant 0 : index
    %0 = vector.load %arg1[%c0, %c0_0] : memref<128x24xbf16, #tpu.memory_space<vmem>>, vector<128x24xbf16>
    %1 = arith.extf %0 : vector<128x24xbf16> to vector<128x24xf32>
    %c0_1 = arith.constant 0 : index
    %c0_2 = arith.constant 0 : index
    %2 = vector.load %arg2[%c0_1, %c0_2] : memref<1x24xf32, #tpu.memory_space<vmem>>, vector<1x24xf32>
    %3 = vector.broadcast %2 : vector<1x24xf32> to vector<128x24xf32>
    %4 = arith.mulf %1, %3 : vector<128x24xf32>
    %c0_3 = arith.constant 0 : index
    %c0_4 = arith.constant 0 : index
    %5 = vector.load %arg3[%c0_3, %c0_4] : memref<1x24xf32, #tpu.memory_space<vmem>>, vector<1x24xf32>
    %6 = vector.broadcast %5 : vector<1x24xf32> to vector<128x24xf32>
    %7 = arith.addf %4, %6 : vector<128x24xf32>
    %cst = arith.constant 0.000000e+00 : f32
    %8 = vector.broadcast %cst : f32 to vector<128x24xf32>
    %9 = arith.maximumf %7, %8 : vector<128x24xf32>
    %10 = arith.truncf %9 : vector<128x24xf32> to vector<128x24xbf16>
    %c0_5 = arith.constant 0 : index
    %c0_6 = arith.constant 0 : index
    %11 = vector.load %arg4[%c0_5, %c0_6] : memref<24x16xbf16, #tpu.memory_space<vmem>>, vector<24x16xbf16>
    %cst_7 = arith.constant dense<0.000000e+00> : vector<128x16xf32>
    %12 = tpu.matmul %10, %11, %cst_7 {dimension_numbers = #tpu.dot_dimension_numbers<[1], [0], [0], [1], [0, 0, 1, 1], [], []>} : vector<128x24xbf16>, vector<24x16xbf16>, vector<128x16xf32> -> vector<128x16xf32>
    %c0_8 = arith.constant 0 : index
    %c0_9 = arith.constant 0 : index
    %13 = vector.load %arg5[%c0_8, %c0_9] : memref<1x16xf32, #tpu.memory_space<vmem>>, vector<1x16xf32>
    %14 = vector.broadcast %13 : vector<1x16xf32> to vector<128x16xf32>
    %15 = arith.mulf %12, %14 : vector<128x16xf32>
    %c0_10 = arith.constant 0 : index
    %c0_11 = arith.constant 0 : index
    %16 = vector.load %arg6[%c0_10, %c0_11] : memref<1x16xf32, #tpu.memory_space<vmem>>, vector<1x16xf32>
    %17 = vector.broadcast %16 : vector<1x16xf32> to vector<128x16xf32>
    %18 = arith.addf %15, %17 : vector<128x16xf32>
    %cst_12 = arith.constant 0.000000e+00 : f32
    %19 = vector.broadcast %cst_12 : f32 to vector<128x16xf32>
    %20 = arith.maximumf %18, %19 : vector<128x16xf32>
    %21 = arith.truncf %20 : vector<128x16xf32> to vector<128x16xbf16>
    %cst_13 = arith.constant 0.000000e+00 : bf16
    %22 = vector.broadcast %cst_13 : bf16 to vector<2x10x10x16xbf16>
    %c0_14 = arith.constant 0 : index
    %c0_15 = arith.constant 0 : index
    %c0_16 = arith.constant 0 : index
    %c0_17 = arith.constant 0 : index
    %23 = vector.load %arg9[%c0_14, %c0_15, %c0_16, %c0_17] : memref<2x10x10x16xbf16, #tpu.memory_space<vmem>>, vector<2x10x10x16xbf16>
    tpu.vector_store %arg9[%c0_14, %c0_15, %c0_16, %c0_17], %22 {strides = array<i32>} : memref<2x10x10x16xbf16, #tpu.memory_space<vmem>>, vector<2x10x10x16xbf16>,
    %24 = vector.shape_cast %21 : vector<128x16xbf16> to vector<2x8x8x16xbf16>
    %c0_18 = arith.constant 0 : index
    %c1 = arith.constant 1 : index
    %c1_19 = arith.constant 1 : index
    %c0_20 = arith.constant 0 : index
    %25 = vector.load %arg9[%c0_18, %c1, %c1_19, %c0_20] : memref<2x10x10x16xbf16, #tpu.memory_space<vmem>>, vector<2x8x8x16xbf16>
    tpu.vector_store %arg9[%c0_18, %c1, %c1_19, %c0_20], %24 {strides = array<i32>} : memref<2x10x10x16xbf16, #tpu.memory_space<vmem>>, vector<2x8x8x16xbf16>,
    %c0_21 = arith.constant 0 : index
    %c0_22 = arith.constant 0 : index
    %c0_23 = arith.constant 0 : index
    %c0_24 = arith.constant 0 : index
    %26 = vector.load %arg9[%c0_21, %c0_22, %c0_23, %c0_24] : memref<2x10x10x16xbf16, #tpu.memory_space<vmem>>, vector<2x8x8x16xbf16>
    %c0_25 = arith.constant 0 : index
    %c0_26 = arith.constant 0 : index
    %c0_27 = arith.constant 0 : index
    %c0_28 = arith.constant 0 : index
    %27 = vector.load %arg10[%c0_25, %c0_26, %c0_27, %c0_28] : memref<2x8x8x144xbf16, #tpu.memory_space<vmem>>, vector<2x8x8x16xbf16>
    tpu.vector_store %arg10[%c0_25, %c0_26, %c0_27, %c0_28], %26 {strides = array<i32>} : memref<2x8x8x144xbf16, #tpu.memory_space<vmem>>, vector<2x8x8x16xbf16>,
    %c0_29 = arith.constant 0 : index
    %c0_30 = arith.constant 0 : index
    %c1_31 = arith.constant 1 : index
    %c0_32 = arith.constant 0 : index
    %28 = vector.load %arg9[%c0_29, %c0_30, %c1_31, %c0_32] : memref<2x10x10x16xbf16, #tpu.memory_space<vmem>>, vector<2x8x8x16xbf16>
    %c0_33 = arith.constant 0 : index
    %c0_34 = arith.constant 0 : index
    %c0_35 = arith.constant 0 : index
    %c16 = arith.constant 16 : index
    %29 = vector.load %arg10[%c0_33, %c0_34, %c0_35, %c16] : memref<2x8x8x144xbf16, #tpu.memory_space<vmem>>, vector<2x8x8x16xbf16>
    tpu.vector_store %arg10[%c0_33, %c0_34, %c0_35, %c16], %28 {strides = array<i32>} : memref<2x8x8x144xbf16, #tpu.memory_space<vmem>>, vector<2x8x8x16xbf16>,
    %c0_36 = arith.constant 0 : index
    %c0_37 = arith.constant 0 : index
    %c2 = arith.constant 2 : index
    %c0_38 = arith.constant 0 : index
    %30 = vector.load %arg9[%c0_36, %c0_37, %c2, %c0_38] : memref<2x10x10x16xbf16, #tpu.memory_space<vmem>>, vector<2x8x8x16xbf16>
    %c0_39 = arith.constant 0 : index
    %c0_40 = arith.constant 0 : index
    %c0_41 = arith.constant 0 : index
    %c32 = arith.constant 32 : index
    %31 = vector.load %arg10[%c0_39, %c0_40, %c0_41, %c32] : memref<2x8x8x144xbf16, #tpu.memory_space<vmem>>, vector<2x8x8x16xbf16>
    tpu.vector_store %arg10[%c0_39, %c0_40, %c0_41, %c32], %30 {strides = array<i32>} : memref<2x8x8x144xbf16, #tpu.memory_space<vmem>>, vector<2x8x8x16xbf16>,
    %c0_42 = arith.constant 0 : index
    %c1_43 = arith.constant 1 : index
    %c0_44 = arith.constant 0 : index
    %c0_45 = arith.constant 0 : index
    %32 = vector.load %arg9[%c0_42, %c1_43, %c0_44, %c0_45] : memref<2x10x10x16xbf16, #tpu.memory_space<vmem>>, vector<2x8x8x16xbf16>
    %c0_46 = arith.constant 0 : index
    %c0_47 = arith.constant 0 : index
    %c0_48 = arith.constant 0 : index
    %c48 = arith.constant 48 : index
    %33 = vector.load %arg10[%c0_46, %c0_47, %c0_48, %c48] : memref<2x8x8x144xbf16, #tpu.memory_space<vmem>>, vector<2x8x8x16xbf16>
    tpu.vector_store %arg10[%c0_46, %c0_47, %c0_48, %c48], %32 {strides = array<i32>} : memref<2x8x8x144xbf16, #tpu.memory_space<vmem>>, vector<2x8x8x16xbf16>,
    %c0_49 = arith.constant 0 : index
    %c1_50 = arith.constant 1 : index
    %c1_51 = arith.constant 1 : index
    %c0_52 = arith.constant 0 : index
    %34 = vector.load %arg9[%c0_49, %c1_50, %c1_51, %c0_52] : memref<2x10x10x16xbf16, #tpu.memory_space<vmem>>, vector<2x8x8x16xbf16>
    %c0_53 = arith.constant 0 : index
    %c0_54 = arith.constant 0 : index
    %c0_55 = arith.constant 0 : index
    %c64 = arith.constant 64 : index
    %35 = vector.load %arg10[%c0_53, %c0_54, %c0_55, %c64] : memref<2x8x8x144xbf16, #tpu.memory_space<vmem>>, vector<2x8x8x16xbf16>
    tpu.vector_store %arg10[%c0_53, %c0_54, %c0_55, %c64], %34 {strides = array<i32>} : memref<2x8x8x144xbf16, #tpu.memory_space<vmem>>, vector<2x8x8x16xbf16>,
    %c0_56 = arith.constant 0 : index
    %c1_57 = arith.constant 1 : index
    %c2_58 = arith.constant 2 : index
    %c0_59 = arith.constant 0 : index
    %36 = vector.load %arg9[%c0_56, %c1_57, %c2_58, %c0_59] : memref<2x10x10x16xbf16, #tpu.memory_space<vmem>>, vector<2x8x8x16xbf16>
    %c0_60 = arith.constant 0 : index
    %c0_61 = arith.constant 0 : index
    %c0_62 = arith.constant 0 : index
    %c80 = arith.constant 80 : index
    %37 = vector.load %arg10[%c0_60, %c0_61, %c0_62, %c80] : memref<2x8x8x144xbf16, #tpu.memory_space<vmem>>, vector<2x8x8x16xbf16>
    tpu.vector_store %arg10[%c0_60, %c0_61, %c0_62, %c80], %36 {strides = array<i32>} : memref<2x8x8x144xbf16, #tpu.memory_space<vmem>>, vector<2x8x8x16xbf16>,
    %c0_63 = arith.constant 0 : index
    %c2_64 = arith.constant 2 : index
    %c0_65 = arith.constant 0 : index
    %c0_66 = arith.constant 0 : index
    %38 = vector.load %arg9[%c0_63, %c2_64, %c0_65, %c0_66] : memref<2x10x10x16xbf16, #tpu.memory_space<vmem>>, vector<2x8x8x16xbf16>
    %c0_67 = arith.constant 0 : index
    %c0_68 = arith.constant 0 : index
    %c0_69 = arith.constant 0 : index
    %c96 = arith.constant 96 : index
    %39 = vector.load %arg10[%c0_67, %c0_68, %c0_69, %c96] : memref<2x8x8x144xbf16, #tpu.memory_space<vmem>>, vector<2x8x8x16xbf16>
    tpu.vector_store %arg10[%c0_67, %c0_68, %c0_69, %c96], %38 {strides = array<i32>} : memref<2x8x8x144xbf16, #tpu.memory_space<vmem>>, vector<2x8x8x16xbf16>,
    %c0_70 = arith.constant 0 : index
    %c2_71 = arith.constant 2 : index
    %c1_72 = arith.constant 1 : index
    %c0_73 = arith.constant 0 : index
    %40 = vector.load %arg9[%c0_70, %c2_71, %c1_72, %c0_73] : memref<2x10x10x16xbf16, #tpu.memory_space<vmem>>, vector<2x8x8x16xbf16>
    %c0_74 = arith.constant 0 : index
    %c0_75 = arith.constant 0 : index
    %c0_76 = arith.constant 0 : index
    %c112 = arith.constant 112 : index
    %41 = vector.load %arg10[%c0_74, %c0_75, %c0_76, %c112] : memref<2x8x8x144xbf16, #tpu.memory_space<vmem>>, vector<2x8x8x16xbf16>
    tpu.vector_store %arg10[%c0_74, %c0_75, %c0_76, %c112], %40 {strides = array<i32>} : memref<2x8x8x144xbf16, #tpu.memory_space<vmem>>, vector<2x8x8x16xbf16>,
    %c0_77 = arith.constant 0 : index
    %c2_78 = arith.constant 2 : index
    %c2_79 = arith.constant 2 : index
    %c0_80 = arith.constant 0 : index
    %42 = vector.load %arg9[%c0_77, %c2_78, %c2_79, %c0_80] : memref<2x10x10x16xbf16, #tpu.memory_space<vmem>>, vector<2x8x8x16xbf16>
    %c0_81 = arith.constant 0 : index
    %c0_82 = arith.constant 0 : index
    %c0_83 = arith.constant 0 : index
    %c128 = arith.constant 128 : index
    %43 = vector.load %arg10[%c0_81, %c0_82, %c0_83, %c128] : memref<2x8x8x144xbf16, #tpu.memory_space<vmem>>, vector<2x8x8x16xbf16>
    tpu.vector_store %arg10[%c0_81, %c0_82, %c0_83, %c128], %42 {strides = array<i32>} : memref<2x8x8x144xbf16, #tpu.memory_space<vmem>>, vector<2x8x8x16xbf16>,
    %c0_84 = arith.constant 0 : index
    %c0_85 = arith.constant 0 : index
    %c0_86 = arith.constant 0 : index
    %c0_87 = arith.constant 0 : index
    %44 = vector.load %arg10[%c0_84, %c0_85, %c0_86, %c0_87] : memref<2x8x8x144xbf16, #tpu.memory_space<vmem>>, vector<2x8x8x144xbf16>
    %45 = vector.shape_cast %44 : vector<2x8x8x144xbf16> to vector<128x144xbf16>
    %c0_88 = arith.constant 0 : index
    %c0_89 = arith.constant 0 : index
    %46 = vector.load %arg7[%c0_88, %c0_89] : memref<144x8xbf16, #tpu.memory_space<vmem>>, vector<144x8xbf16>
    %cst_90 = arith.constant dense<0.000000e+00> : vector<128x8xf32>
    %47 = tpu.matmul %45, %46, %cst_90 {dimension_numbers = #tpu.dot_dimension_numbers<[1], [0], [0], [1], [0, 0, 1, 1], [], []>} : vector<128x144xbf16>, vector<144x8xbf16>, vector<128x8xf32> -> vector<128x8xf32>
    %c0_91 = arith.constant 0 : index
    %c0_92 = arith.constant 0 : index
    %48 = vector.load %arg8[%c0_91, %c0_92] : memref<128x32xbf16, #tpu.memory_space<vmem>>, vector<128x24xbf16>
    tpu.vector_store %arg8[%c0_91, %c0_92], %0 {strides = array<i32>} : memref<128x32xbf16, #tpu.memory_space<vmem>>, vector<128x24xbf16>,
    %49 = arith.truncf %47 : vector<128x8xf32> to vector<128x8xbf16>
    %c0_93 = arith.constant 0 : index
    %c24 = arith.constant 24 : index
    %50 = vector.load %arg8[%c0_93, %c24] : memref<128x32xbf16, #tpu.memory_space<vmem>>, vector<128x8xbf16>
    tpu.vector_store %arg8[%c0_93, %c24], %49 {strides = array<i32>} : memref<128x32xbf16, #tpu.memory_space<vmem>>, vector<128x8xbf16>,
    return
  }
  func.func @transform_0(%arg0: i32) -> (i32, i32) {
    %c0_i32 = arith.constant 0 : i32
    %c0_i32_0 = arith.constant 0 : i32
    return %arg0, %c0_i32 : i32, i32
  }
  func.func @transform_1(%arg0: i32) -> (i32, i32) {
    %c0_i32 = arith.constant 0 : i32
    %c0_i32_0 = arith.constant 0 : i32
    %c0_i32_1 = arith.constant 0 : i32
    return %c0_i32, %c0_i32_0 : i32, i32
  }
  func.func @transform_2(%arg0: i32) -> (i32, i32) {
    %c0_i32 = arith.constant 0 : i32
    %c0_i32_0 = arith.constant 0 : i32
    %c0_i32_1 = arith.constant 0 : i32
    return %c0_i32, %c0_i32_0 : i32, i32
  }
  func.func @transform_3(%arg0: i32) -> (i32, i32) {
    %c0_i32 = arith.constant 0 : i32
    %c0_i32_0 = arith.constant 0 : i32
    %c0_i32_1 = arith.constant 0 : i32
    return %c0_i32, %c0_i32_0 : i32, i32
  }
  func.func @transform_4(%arg0: i32) -> (i32, i32) {
    %c0_i32 = arith.constant 0 : i32
    %c0_i32_0 = arith.constant 0 : i32
    %c0_i32_1 = arith.constant 0 : i32
    return %c0_i32, %c0_i32_0 : i32, i32
  }
  func.func @transform_5(%arg0: i32) -> (i32, i32) {
    %c0_i32 = arith.constant 0 : i32
    %c0_i32_0 = arith.constant 0 : i32
    %c0_i32_1 = arith.constant 0 : i32
    return %c0_i32, %c0_i32_0 : i32, i32
  }
  func.func @transform_6(%arg0: i32) -> (i32, i32) {
    %c0_i32 = arith.constant 0 : i32
    %c0_i32_0 = arith.constant 0 : i32
    %c0_i32_1 = arith.constant 0 : i32
    return %c0_i32, %c0_i32_0 : i32, i32
  }
  func.func @transform_7(%arg0: i32) -> (i32, i32) {
    %c0_i32 = arith.constant 0 : i32
    %c0_i32_0 = arith.constant 0 : i32
    return %arg0, %c0_i32 : i32, i32
  }
}

module attributes {stable_mosaic.version = 11 : i64} {
  func.func @_dense_layer_kernel(%arg0: i32, %arg1: memref<32x16xbf16, #tpu.memory_space<vmem>>, %arg2: memref<1x16xf32, #tpu.memory_space<vmem>>, %arg3: memref<1x16xf32, #tpu.memory_space<vmem>>, %arg4: memref<16x16xbf16, #tpu.memory_space<vmem>>, %arg5: memref<1x16xf32, #tpu.memory_space<vmem>>, %arg6: memref<1x16xf32, #tpu.memory_space<vmem>>, %arg7: memref<144x8xbf16, #tpu.memory_space<vmem>>, %arg8: memref<32x24xbf16, #tpu.memory_space<vmem>>, %arg9: memref<2x6x6x16xbf16, #tpu.memory_space<vmem>>, %arg10: memref<2x4x4x144xbf16, #tpu.memory_space<vmem>>) attributes {dimension_semantics = [#tpu.dimension_semantics<arbitrary>], iteration_bounds = array<i64: 1>, scalar_prefetch = 0 : i64, scratch_operands = 2 : i64, tpu.core_type = #tpu.core_type<tc>, window_params = [{transform_indices = @transform_0, window_bounds = array<i64: 32, 16>}, {pipeline_mode = #tpu.pipeline_mode<synchronous>, transform_indices = @transform_1, window_bounds = array<i64: 1, 16>}, {pipeline_mode = #tpu.pipeline_mode<synchronous>, transform_indices = @transform_2, window_bounds = array<i64: 1, 16>}, {pipeline_mode = #tpu.pipeline_mode<synchronous>, transform_indices = @transform_3, window_bounds = array<i64: 16, 16>}, {pipeline_mode = #tpu.pipeline_mode<synchronous>, transform_indices = @transform_4, window_bounds = array<i64: 1, 16>}, {pipeline_mode = #tpu.pipeline_mode<synchronous>, transform_indices = @transform_5, window_bounds = array<i64: 1, 16>}, {pipeline_mode = #tpu.pipeline_mode<synchronous>, transform_indices = @transform_6, window_bounds = array<i64: 144, 8>}, {transform_indices = @transform_7, window_bounds = array<i64: 32, 24>}]} {
    %c0 = arith.constant 0 : index
    %c0_0 = arith.constant 0 : index
    %0 = vector.load %arg1[%c0, %c0_0] : memref<32x16xbf16, #tpu.memory_space<vmem>>, vector<32x16xbf16>
    %1 = arith.extf %0 : vector<32x16xbf16> to vector<32x16xf32>
    %c0_1 = arith.constant 0 : index
    %c0_2 = arith.constant 0 : index
    %2 = vector.load %arg2[%c0_1, %c0_2] : memref<1x16xf32, #tpu.memory_space<vmem>>, vector<1x16xf32>
    %3 = vector.broadcast %2 : vector<1x16xf32> to vector<32x16xf32>
    %4 = arith.mulf %1, %3 : vector<32x16xf32>
    %c0_3 = arith.constant 0 : index
    %c0_4 = arith.constant 0 : index
    %5 = vector.load %arg3[%c0_3, %c0_4] : memref<1x16xf32, #tpu.memory_space<vmem>>, vector<1x16xf32>
    %6 = vector.broadcast %5 : vector<1x16xf32> to vector<32x16xf32>
    %7 = arith.addf %4, %6 : vector<32x16xf32>
    %cst = arith.constant 0.000000e+00 : f32
    %8 = vector.broadcast %cst : f32 to vector<32x16xf32>
    %9 = arith.maximumf %7, %8 : vector<32x16xf32>
    %10 = arith.truncf %9 : vector<32x16xf32> to vector<32x16xbf16>
    %c0_5 = arith.constant 0 : index
    %c0_6 = arith.constant 0 : index
    %11 = vector.load %arg4[%c0_5, %c0_6] : memref<16x16xbf16, #tpu.memory_space<vmem>>, vector<16x16xbf16>
    %cst_7 = arith.constant dense<0.000000e+00> : vector<32x16xf32>
    %12 = tpu.matmul %10, %11, %cst_7 {dimension_numbers = #tpu.dot_dimension_numbers<[1], [0], [0], [1], [0, 0, 1, 1], [], []>} : vector<32x16xbf16>, vector<16x16xbf16>, vector<32x16xf32> -> vector<32x16xf32>
    %c0_8 = arith.constant 0 : index
    %c0_9 = arith.constant 0 : index
    %13 = vector.load %arg5[%c0_8, %c0_9] : memref<1x16xf32, #tpu.memory_space<vmem>>, vector<1x16xf32>
    %14 = vector.broadcast %13 : vector<1x16xf32> to vector<32x16xf32>
    %15 = arith.mulf %12, %14 : vector<32x16xf32>
    %c0_10 = arith.constant 0 : index
    %c0_11 = arith.constant 0 : index
    %16 = vector.load %arg6[%c0_10, %c0_11] : memref<1x16xf32, #tpu.memory_space<vmem>>, vector<1x16xf32>
    %17 = vector.broadcast %16 : vector<1x16xf32> to vector<32x16xf32>
    %18 = arith.addf %15, %17 : vector<32x16xf32>
    %cst_12 = arith.constant 0.000000e+00 : f32
    %19 = vector.broadcast %cst_12 : f32 to vector<32x16xf32>
    %20 = arith.maximumf %18, %19 : vector<32x16xf32>
    %21 = arith.truncf %20 : vector<32x16xf32> to vector<32x16xbf16>
    %cst_13 = arith.constant 0.000000e+00 : bf16
    %22 = vector.broadcast %cst_13 : bf16 to vector<2x6x6x16xbf16>
    %c0_14 = arith.constant 0 : index
    %c0_15 = arith.constant 0 : index
    %c0_16 = arith.constant 0 : index
    %c0_17 = arith.constant 0 : index
    %23 = vector.load %arg9[%c0_14, %c0_15, %c0_16, %c0_17] : memref<2x6x6x16xbf16, #tpu.memory_space<vmem>>, vector<2x6x6x16xbf16>
    tpu.vector_store %arg9[%c0_14, %c0_15, %c0_16, %c0_17], %22 {strides = array<i32>} : memref<2x6x6x16xbf16, #tpu.memory_space<vmem>>, vector<2x6x6x16xbf16>,
    %24 = vector.shape_cast %21 : vector<32x16xbf16> to vector<2x4x4x16xbf16>
    %c0_18 = arith.constant 0 : index
    %c1 = arith.constant 1 : index
    %c1_19 = arith.constant 1 : index
    %c0_20 = arith.constant 0 : index
    %25 = vector.load %arg9[%c0_18, %c1, %c1_19, %c0_20] : memref<2x6x6x16xbf16, #tpu.memory_space<vmem>>, vector<2x4x4x16xbf16>
    tpu.vector_store %arg9[%c0_18, %c1, %c1_19, %c0_20], %24 {strides = array<i32>} : memref<2x6x6x16xbf16, #tpu.memory_space<vmem>>, vector<2x4x4x16xbf16>,
    %c0_21 = arith.constant 0 : index
    %c0_22 = arith.constant 0 : index
    %c0_23 = arith.constant 0 : index
    %c0_24 = arith.constant 0 : index
    %26 = vector.load %arg9[%c0_21, %c0_22, %c0_23, %c0_24] : memref<2x6x6x16xbf16, #tpu.memory_space<vmem>>, vector<2x4x4x16xbf16>
    %c0_25 = arith.constant 0 : index
    %c0_26 = arith.constant 0 : index
    %c0_27 = arith.constant 0 : index
    %c0_28 = arith.constant 0 : index
    %27 = vector.load %arg10[%c0_25, %c0_26, %c0_27, %c0_28] : memref<2x4x4x144xbf16, #tpu.memory_space<vmem>>, vector<2x4x4x16xbf16>
    tpu.vector_store %arg10[%c0_25, %c0_26, %c0_27, %c0_28], %26 {strides = array<i32>} : memref<2x4x4x144xbf16, #tpu.memory_space<vmem>>, vector<2x4x4x16xbf16>,
    %c0_29 = arith.constant 0 : index
    %c0_30 = arith.constant 0 : index
    %c1_31 = arith.constant 1 : index
    %c0_32 = arith.constant 0 : index
    %28 = vector.load %arg9[%c0_29, %c0_30, %c1_31, %c0_32] : memref<2x6x6x16xbf16, #tpu.memory_space<vmem>>, vector<2x4x4x16xbf16>
    %c0_33 = arith.constant 0 : index
    %c0_34 = arith.constant 0 : index
    %c0_35 = arith.constant 0 : index
    %c16 = arith.constant 16 : index
    %29 = vector.load %arg10[%c0_33, %c0_34, %c0_35, %c16] : memref<2x4x4x144xbf16, #tpu.memory_space<vmem>>, vector<2x4x4x16xbf16>
    tpu.vector_store %arg10[%c0_33, %c0_34, %c0_35, %c16], %28 {strides = array<i32>} : memref<2x4x4x144xbf16, #tpu.memory_space<vmem>>, vector<2x4x4x16xbf16>,
    %c0_36 = arith.constant 0 : index
    %c0_37 = arith.constant 0 : index
    %c2 = arith.constant 2 : index
    %c0_38 = arith.constant 0 : index
    %30 = vector.load %arg9[%c0_36, %c0_37, %c2, %c0_38] : memref<2x6x6x16xbf16, #tpu.memory_space<vmem>>, vector<2x4x4x16xbf16>
    %c0_39 = arith.constant 0 : index
    %c0_40 = arith.constant 0 : index
    %c0_41 = arith.constant 0 : index
    %c32 = arith.constant 32 : index
    %31 = vector.load %arg10[%c0_39, %c0_40, %c0_41, %c32] : memref<2x4x4x144xbf16, #tpu.memory_space<vmem>>, vector<2x4x4x16xbf16>
    tpu.vector_store %arg10[%c0_39, %c0_40, %c0_41, %c32], %30 {strides = array<i32>} : memref<2x4x4x144xbf16, #tpu.memory_space<vmem>>, vector<2x4x4x16xbf16>,
    %c0_42 = arith.constant 0 : index
    %c1_43 = arith.constant 1 : index
    %c0_44 = arith.constant 0 : index
    %c0_45 = arith.constant 0 : index
    %32 = vector.load %arg9[%c0_42, %c1_43, %c0_44, %c0_45] : memref<2x6x6x16xbf16, #tpu.memory_space<vmem>>, vector<2x4x4x16xbf16>
    %c0_46 = arith.constant 0 : index
    %c0_47 = arith.constant 0 : index
    %c0_48 = arith.constant 0 : index
    %c48 = arith.constant 48 : index
    %33 = vector.load %arg10[%c0_46, %c0_47, %c0_48, %c48] : memref<2x4x4x144xbf16, #tpu.memory_space<vmem>>, vector<2x4x4x16xbf16>
    tpu.vector_store %arg10[%c0_46, %c0_47, %c0_48, %c48], %32 {strides = array<i32>} : memref<2x4x4x144xbf16, #tpu.memory_space<vmem>>, vector<2x4x4x16xbf16>,
    %c0_49 = arith.constant 0 : index
    %c1_50 = arith.constant 1 : index
    %c1_51 = arith.constant 1 : index
    %c0_52 = arith.constant 0 : index
    %34 = vector.load %arg9[%c0_49, %c1_50, %c1_51, %c0_52] : memref<2x6x6x16xbf16, #tpu.memory_space<vmem>>, vector<2x4x4x16xbf16>
    %c0_53 = arith.constant 0 : index
    %c0_54 = arith.constant 0 : index
    %c0_55 = arith.constant 0 : index
    %c64 = arith.constant 64 : index
    %35 = vector.load %arg10[%c0_53, %c0_54, %c0_55, %c64] : memref<2x4x4x144xbf16, #tpu.memory_space<vmem>>, vector<2x4x4x16xbf16>
    tpu.vector_store %arg10[%c0_53, %c0_54, %c0_55, %c64], %34 {strides = array<i32>} : memref<2x4x4x144xbf16, #tpu.memory_space<vmem>>, vector<2x4x4x16xbf16>,
    %c0_56 = arith.constant 0 : index
    %c1_57 = arith.constant 1 : index
    %c2_58 = arith.constant 2 : index
    %c0_59 = arith.constant 0 : index
    %36 = vector.load %arg9[%c0_56, %c1_57, %c2_58, %c0_59] : memref<2x6x6x16xbf16, #tpu.memory_space<vmem>>, vector<2x4x4x16xbf16>
    %c0_60 = arith.constant 0 : index
    %c0_61 = arith.constant 0 : index
    %c0_62 = arith.constant 0 : index
    %c80 = arith.constant 80 : index
    %37 = vector.load %arg10[%c0_60, %c0_61, %c0_62, %c80] : memref<2x4x4x144xbf16, #tpu.memory_space<vmem>>, vector<2x4x4x16xbf16>
    tpu.vector_store %arg10[%c0_60, %c0_61, %c0_62, %c80], %36 {strides = array<i32>} : memref<2x4x4x144xbf16, #tpu.memory_space<vmem>>, vector<2x4x4x16xbf16>,
    %c0_63 = arith.constant 0 : index
    %c2_64 = arith.constant 2 : index
    %c0_65 = arith.constant 0 : index
    %c0_66 = arith.constant 0 : index
    %38 = vector.load %arg9[%c0_63, %c2_64, %c0_65, %c0_66] : memref<2x6x6x16xbf16, #tpu.memory_space<vmem>>, vector<2x4x4x16xbf16>
    %c0_67 = arith.constant 0 : index
    %c0_68 = arith.constant 0 : index
    %c0_69 = arith.constant 0 : index
    %c96 = arith.constant 96 : index
    %39 = vector.load %arg10[%c0_67, %c0_68, %c0_69, %c96] : memref<2x4x4x144xbf16, #tpu.memory_space<vmem>>, vector<2x4x4x16xbf16>
    tpu.vector_store %arg10[%c0_67, %c0_68, %c0_69, %c96], %38 {strides = array<i32>} : memref<2x4x4x144xbf16, #tpu.memory_space<vmem>>, vector<2x4x4x16xbf16>,
    %c0_70 = arith.constant 0 : index
    %c2_71 = arith.constant 2 : index
    %c1_72 = arith.constant 1 : index
    %c0_73 = arith.constant 0 : index
    %40 = vector.load %arg9[%c0_70, %c2_71, %c1_72, %c0_73] : memref<2x6x6x16xbf16, #tpu.memory_space<vmem>>, vector<2x4x4x16xbf16>
    %c0_74 = arith.constant 0 : index
    %c0_75 = arith.constant 0 : index
    %c0_76 = arith.constant 0 : index
    %c112 = arith.constant 112 : index
    %41 = vector.load %arg10[%c0_74, %c0_75, %c0_76, %c112] : memref<2x4x4x144xbf16, #tpu.memory_space<vmem>>, vector<2x4x4x16xbf16>
    tpu.vector_store %arg10[%c0_74, %c0_75, %c0_76, %c112], %40 {strides = array<i32>} : memref<2x4x4x144xbf16, #tpu.memory_space<vmem>>, vector<2x4x4x16xbf16>,
    %c0_77 = arith.constant 0 : index
    %c2_78 = arith.constant 2 : index
    %c2_79 = arith.constant 2 : index
    %c0_80 = arith.constant 0 : index
    %42 = vector.load %arg9[%c0_77, %c2_78, %c2_79, %c0_80] : memref<2x6x6x16xbf16, #tpu.memory_space<vmem>>, vector<2x4x4x16xbf16>
    %c0_81 = arith.constant 0 : index
    %c0_82 = arith.constant 0 : index
    %c0_83 = arith.constant 0 : index
    %c128 = arith.constant 128 : index
    %43 = vector.load %arg10[%c0_81, %c0_82, %c0_83, %c128] : memref<2x4x4x144xbf16, #tpu.memory_space<vmem>>, vector<2x4x4x16xbf16>
    tpu.vector_store %arg10[%c0_81, %c0_82, %c0_83, %c128], %42 {strides = array<i32>} : memref<2x4x4x144xbf16, #tpu.memory_space<vmem>>, vector<2x4x4x16xbf16>,
    %c0_84 = arith.constant 0 : index
    %c0_85 = arith.constant 0 : index
    %c0_86 = arith.constant 0 : index
    %c0_87 = arith.constant 0 : index
    %44 = vector.load %arg10[%c0_84, %c0_85, %c0_86, %c0_87] : memref<2x4x4x144xbf16, #tpu.memory_space<vmem>>, vector<2x4x4x144xbf16>
    %45 = vector.shape_cast %44 : vector<2x4x4x144xbf16> to vector<32x144xbf16>
    %c0_88 = arith.constant 0 : index
    %c0_89 = arith.constant 0 : index
    %46 = vector.load %arg7[%c0_88, %c0_89] : memref<144x8xbf16, #tpu.memory_space<vmem>>, vector<144x8xbf16>
    %cst_90 = arith.constant dense<0.000000e+00> : vector<32x8xf32>
    %47 = tpu.matmul %45, %46, %cst_90 {dimension_numbers = #tpu.dot_dimension_numbers<[1], [0], [0], [1], [0, 0, 1, 1], [], []>} : vector<32x144xbf16>, vector<144x8xbf16>, vector<32x8xf32> -> vector<32x8xf32>
    %c0_91 = arith.constant 0 : index
    %c0_92 = arith.constant 0 : index
    %48 = vector.load %arg8[%c0_91, %c0_92] : memref<32x24xbf16, #tpu.memory_space<vmem>>, vector<32x16xbf16>
    tpu.vector_store %arg8[%c0_91, %c0_92], %0 {strides = array<i32>} : memref<32x24xbf16, #tpu.memory_space<vmem>>, vector<32x16xbf16>,
    %49 = arith.truncf %47 : vector<32x8xf32> to vector<32x8xbf16>
    %c0_93 = arith.constant 0 : index
    %c16_94 = arith.constant 16 : index
    %50 = vector.load %arg8[%c0_93, %c16_94] : memref<32x24xbf16, #tpu.memory_space<vmem>>, vector<32x8xbf16>
    tpu.vector_store %arg8[%c0_93, %c16_94], %49 {strides = array<i32>} : memref<32x24xbf16, #tpu.memory_space<vmem>>, vector<32x8xbf16>,
    return
  }
  func.func @transform_0(%arg0: i32) -> (i32, i32) {
    %c0_i32 = arith.constant 0 : i32
    %c0_i32_0 = arith.constant 0 : i32
    return %arg0, %c0_i32 : i32, i32
  }
  func.func @transform_1(%arg0: i32) -> (i32, i32) {
    %c0_i32 = arith.constant 0 : i32
    %c0_i32_0 = arith.constant 0 : i32
    %c0_i32_1 = arith.constant 0 : i32
    return %c0_i32, %c0_i32_0 : i32, i32
  }
  func.func @transform_2(%arg0: i32) -> (i32, i32) {
    %c0_i32 = arith.constant 0 : i32
    %c0_i32_0 = arith.constant 0 : i32
    %c0_i32_1 = arith.constant 0 : i32
    return %c0_i32, %c0_i32_0 : i32, i32
  }
  func.func @transform_3(%arg0: i32) -> (i32, i32) {
    %c0_i32 = arith.constant 0 : i32
    %c0_i32_0 = arith.constant 0 : i32
    %c0_i32_1 = arith.constant 0 : i32
    return %c0_i32, %c0_i32_0 : i32, i32
  }
  func.func @transform_4(%arg0: i32) -> (i32, i32) {
    %c0_i32 = arith.constant 0 : i32
    %c0_i32_0 = arith.constant 0 : i32
    %c0_i32_1 = arith.constant 0 : i32
    return %c0_i32, %c0_i32_0 : i32, i32
  }
  func.func @transform_5(%arg0: i32) -> (i32, i32) {
    %c0_i32 = arith.constant 0 : i32
    %c0_i32_0 = arith.constant 0 : i32
    %c0_i32_1 = arith.constant 0 : i32
    return %c0_i32, %c0_i32_0 : i32, i32
  }
  func.func @transform_6(%arg0: i32) -> (i32, i32) {
    %c0_i32 = arith.constant 0 : i32
    %c0_i32_0 = arith.constant 0 : i32
    %c0_i32_1 = arith.constant 0 : i32
    return %c0_i32, %c0_i32_0 : i32, i32
  }
  func.func @transform_7(%arg0: i32) -> (i32, i32) {
    %c0_i32 = arith.constant 0 : i32
    %c0_i32_0 = arith.constant 0 : i32
    return %arg0, %c0_i32 : i32, i32
  }
}

module attributes {stable_mosaic.version = 11 : i64} {
  func.func @_transition_kernel(%arg0: i32, %arg1: memref<128x32xbf16, #tpu.memory_space<vmem>>, %arg2: memref<1x32xf32, #tpu.memory_space<vmem>>, %arg3: memref<1x32xf32, #tpu.memory_space<vmem>>, %arg4: memref<16x64xbf16, #tpu.memory_space<vmem>>, %arg5: memref<32x16xbf16, #tpu.memory_space<vmem>>, %arg6: memref<32x16xbf16, #tpu.memory_space<vmem>>) attributes {dimension_semantics = [#tpu.dimension_semantics<arbitrary>], iteration_bounds = array<i64: 1>, scalar_prefetch = 0 : i64, scratch_operands = 0 : i64, tpu.core_type = #tpu.core_type<tc>, window_params = [{transform_indices = @transform_0, window_bounds = array<i64: 128, 32>}, {pipeline_mode = #tpu.pipeline_mode<synchronous>, transform_indices = @transform_1, window_bounds = array<i64: 1, 32>}, {pipeline_mode = #tpu.pipeline_mode<synchronous>, transform_indices = @transform_2, window_bounds = array<i64: 1, 32>}, {pipeline_mode = #tpu.pipeline_mode<synchronous>, transform_indices = @transform_3, window_bounds = array<i64: 16, 64>}, {pipeline_mode = #tpu.pipeline_mode<synchronous>, transform_indices = @transform_4, window_bounds = array<i64: 32, 16>}, {transform_indices = @transform_5, window_bounds = array<i64: 32, 16>}]} {
    %c0 = arith.constant 0 : index
    %c0_0 = arith.constant 0 : index
    %0 = vector.load %arg1[%c0, %c0_0] : memref<128x32xbf16, #tpu.memory_space<vmem>>, vector<128x32xbf16>
    %1 = arith.extf %0 : vector<128x32xbf16> to vector<128x32xf32>
    %c0_1 = arith.constant 0 : index
    %c0_2 = arith.constant 0 : index
    %2 = vector.load %arg2[%c0_1, %c0_2] : memref<1x32xf32, #tpu.memory_space<vmem>>, vector<1x32xf32>
    %3 = vector.broadcast %2 : vector<1x32xf32> to vector<128x32xf32>
    %4 = arith.mulf %1, %3 : vector<128x32xf32>
    %c0_3 = arith.constant 0 : index
    %c0_4 = arith.constant 0 : index
    %5 = vector.load %arg3[%c0_3, %c0_4] : memref<1x32xf32, #tpu.memory_space<vmem>>, vector<1x32xf32>
    %6 = vector.broadcast %5 : vector<1x32xf32> to vector<128x32xf32>
    %7 = arith.addf %4, %6 : vector<128x32xf32>
    %cst = arith.constant 0.000000e+00 : f32
    %8 = vector.broadcast %cst : f32 to vector<128x32xf32>
    %9 = arith.maximumf %7, %8 : vector<128x32xf32>
    %10 = arith.truncf %9 : vector<128x32xf32> to vector<128x32xbf16>
    %11 = vector.extract_strided_slice %10 {offsets = [0, 0], sizes = [64, 32], strides = [1, 1]} : vector<128x32xbf16> to vector<64x32xbf16>
    %c0_5 = arith.constant 0 : index
    %c0_6 = arith.constant 0 : index
    %12 = vector.load %arg4[%c0_5, %c0_6] : memref<16x64xbf16, #tpu.memory_space<vmem>>, vector<16x64xbf16>
    %cst_7 = arith.constant dense<0.000000e+00> : vector<16x32xf32>
    %13 = tpu.matmul %12, %11, %cst_7 {dimension_numbers = #tpu.dot_dimension_numbers<[1], [0], [0], [1], [0, 0, 1, 1], [], []>} : vector<16x64xbf16>, vector<64x32xbf16>, vector<16x32xf32> -> vector<16x32xf32>
    %14 = arith.truncf %13 : vector<16x32xf32> to vector<16x32xbf16>
    %c0_8 = arith.constant 0 : index
    %c0_9 = arith.constant 0 : index
    %15 = vector.load %arg5[%c0_8, %c0_9] : memref<32x16xbf16, #tpu.memory_space<vmem>>, vector<32x16xbf16>
    %cst_10 = arith.constant dense<0.000000e+00> : vector<16x16xf32>
    %16 = tpu.matmul %14, %15, %cst_10 {dimension_numbers = #tpu.dot_dimension_numbers<[1], [0], [0], [1], [0, 0, 1, 1], [], []>} : vector<16x32xbf16>, vector<32x16xbf16>, vector<16x16xf32> -> vector<16x16xf32>
    %17 = arith.truncf %16 : vector<16x16xf32> to vector<16x16xbf16>
    %c0_11 = arith.constant 0 : index
    %c0_12 = arith.constant 0 : index
    %18 = vector.load %arg6[%c0_11, %c0_12] : memref<32x16xbf16, #tpu.memory_space<vmem>>, vector<16x16xbf16>
    tpu.vector_store %arg6[%c0_11, %c0_12], %17 {strides = array<i32>} : memref<32x16xbf16, #tpu.memory_space<vmem>>, vector<16x16xbf16>,
    %19 = vector.extract_strided_slice %10 {offsets = [64, 0], sizes = [64, 32], strides = [1, 1]} : vector<128x32xbf16> to vector<64x32xbf16>
    %c0_13 = arith.constant 0 : index
    %c0_14 = arith.constant 0 : index
    %20 = vector.load %arg4[%c0_13, %c0_14] : memref<16x64xbf16, #tpu.memory_space<vmem>>, vector<16x64xbf16>
    %cst_15 = arith.constant dense<0.000000e+00> : vector<16x32xf32>
    %21 = tpu.matmul %20, %19, %cst_15 {dimension_numbers = #tpu.dot_dimension_numbers<[1], [0], [0], [1], [0, 0, 1, 1], [], []>} : vector<16x64xbf16>, vector<64x32xbf16>, vector<16x32xf32> -> vector<16x32xf32>
    %22 = arith.truncf %21 : vector<16x32xf32> to vector<16x32xbf16>
    %c0_16 = arith.constant 0 : index
    %c0_17 = arith.constant 0 : index
    %23 = vector.load %arg5[%c0_16, %c0_17] : memref<32x16xbf16, #tpu.memory_space<vmem>>, vector<32x16xbf16>
    %cst_18 = arith.constant dense<0.000000e+00> : vector<16x16xf32>
    %24 = tpu.matmul %22, %23, %cst_18 {dimension_numbers = #tpu.dot_dimension_numbers<[1], [0], [0], [1], [0, 0, 1, 1], [], []>} : vector<16x32xbf16>, vector<32x16xbf16>, vector<16x16xf32> -> vector<16x16xf32>
    %25 = arith.truncf %24 : vector<16x16xf32> to vector<16x16xbf16>
    %c16 = arith.constant 16 : index
    %c0_19 = arith.constant 0 : index
    %26 = vector.load %arg6[%c16, %c0_19] : memref<32x16xbf16, #tpu.memory_space<vmem>>, vector<16x16xbf16>
    tpu.vector_store %arg6[%c16, %c0_19], %25 {strides = array<i32>} : memref<32x16xbf16, #tpu.memory_space<vmem>>, vector<16x16xbf16>,
    return
  }
  func.func @transform_0(%arg0: i32) -> (i32, i32) {
    %c0_i32 = arith.constant 0 : i32
    %c0_i32_0 = arith.constant 0 : i32
    return %arg0, %c0_i32 : i32, i32
  }
  func.func @transform_1(%arg0: i32) -> (i32, i32) {
    %c0_i32 = arith.constant 0 : i32
    %c0_i32_0 = arith.constant 0 : i32
    %c0_i32_1 = arith.constant 0 : i32
    return %c0_i32, %c0_i32_0 : i32, i32
  }
  func.func @transform_2(%arg0: i32) -> (i32, i32) {
    %c0_i32 = arith.constant 0 : i32
    %c0_i32_0 = arith.constant 0 : i32
    %c0_i32_1 = arith.constant 0 : i32
    return %c0_i32, %c0_i32_0 : i32, i32
  }
  func.func @transform_3(%arg0: i32) -> (i32, i32) {
    %c0_i32 = arith.constant 0 : i32
    %c0_i32_0 = arith.constant 0 : i32
    %c0_i32_1 = arith.constant 0 : i32
    return %c0_i32, %c0_i32_0 : i32, i32
  }
  func.func @transform_4(%arg0: i32) -> (i32, i32) {
    %c0_i32 = arith.constant 0 : i32
    %c0_i32_0 = arith.constant 0 : i32
    %c0_i32_1 = arith.constant 0 : i32
    return %c0_i32, %c0_i32_0 : i32, i32
  }
  func.func @transform_5(%arg0: i32) -> (i32, i32) {
    %c0_i32 = arith.constant 0 : i32
    %c0_i32_0 = arith.constant 0 : i32
    return %arg0, %c0_i32 : i32, i32
  }
}

module attributes {stable_mosaic.version = 11 : i64} {
  func.func @_dense_layer_kernel(%arg0: i32, %arg1: memref<32x24xbf16, #tpu.memory_space<vmem>>, %arg2: memref<1x24xf32, #tpu.memory_space<vmem>>, %arg3: memref<1x24xf32, #tpu.memory_space<vmem>>, %arg4: memref<24x16xbf16, #tpu.memory_space<vmem>>, %arg5: memref<1x16xf32, #tpu.memory_space<vmem>>, %arg6: memref<1x16xf32, #tpu.memory_space<vmem>>, %arg7: memref<144x8xbf16, #tpu.memory_space<vmem>>, %arg8: memref<32x32xbf16, #tpu.memory_space<vmem>>, %arg9: memref<2x6x6x16xbf16, #tpu.memory_space<vmem>>, %arg10: memref<2x4x4x144xbf16, #tpu.memory_space<vmem>>) attributes {dimension_semantics = [#tpu.dimension_semantics<arbitrary>], iteration_bounds = array<i64: 1>, scalar_prefetch = 0 : i64, scratch_operands = 2 : i64, tpu.core_type = #tpu.core_type<tc>, window_params = [{transform_indices = @transform_0, window_bounds = array<i64: 32, 24>}, {pipeline_mode = #tpu.pipeline_mode<synchronous>, transform_indices = @transform_1, window_bounds = array<i64: 1, 24>}, {pipeline_mode = #tpu.pipeline_mode<synchronous>, transform_indices = @transform_2, window_bounds = array<i64: 1, 24>}, {pipeline_mode = #tpu.pipeline_mode<synchronous>, transform_indices = @transform_3, window_bounds = array<i64: 24, 16>}, {pipeline_mode = #tpu.pipeline_mode<synchronous>, transform_indices = @transform_4, window_bounds = array<i64: 1, 16>}, {pipeline_mode = #tpu.pipeline_mode<synchronous>, transform_indices = @transform_5, window_bounds = array<i64: 1, 16>}, {pipeline_mode = #tpu.pipeline_mode<synchronous>, transform_indices = @transform_6, window_bounds = array<i64: 144, 8>}, {transform_indices = @transform_7, window_bounds = array<i64: 32, 32>}]} {
    %c0 = arith.constant 0 : index
    %c0_0 = arith.constant 0 : index
    %0 = vector.load %arg1[%c0, %c0_0] : memref<32x24xbf16, #tpu.memory_space<vmem>>, vector<32x24xbf16>
    %1 = arith.extf %0 : vector<32x24xbf16> to vector<32x24xf32>
    %c0_1 = arith.constant 0 : index
    %c0_2 = arith.constant 0 : index
    %2 = vector.load %arg2[%c0_1, %c0_2] : memref<1x24xf32, #tpu.memory_space<vmem>>, vector<1x24xf32>
    %3 = vector.broadcast %2 : vector<1x24xf32> to vector<32x24xf32>
    %4 = arith.mulf %1, %3 : vector<32x24xf32>
    %c0_3 = arith.constant 0 : index
    %c0_4 = arith.constant 0 : index
    %5 = vector.load %arg3[%c0_3, %c0_4] : memref<1x24xf32, #tpu.memory_space<vmem>>, vector<1x24xf32>
    %6 = vector.broadcast %5 : vector<1x24xf32> to vector<32x24xf32>
    %7 = arith.addf %4, %6 : vector<32x24xf32>
    %cst = arith.constant 0.000000e+00 : f32
    %8 = vector.broadcast %cst : f32 to vector<32x24xf32>
    %9 = arith.maximumf %7, %8 : vector<32x24xf32>
    %10 = arith.truncf %9 : vector<32x24xf32> to vector<32x24xbf16>
    %c0_5 = arith.constant 0 : index
    %c0_6 = arith.constant 0 : index
    %11 = vector.load %arg4[%c0_5, %c0_6] : memref<24x16xbf16, #tpu.memory_space<vmem>>, vector<24x16xbf16>
    %cst_7 = arith.constant dense<0.000000e+00> : vector<32x16xf32>
    %12 = tpu.matmul %10, %11, %cst_7 {dimension_numbers = #tpu.dot_dimension_numbers<[1], [0], [0], [1], [0, 0, 1, 1], [], []>} : vector<32x24xbf16>, vector<24x16xbf16>, vector<32x16xf32> -> vector<32x16xf32>
    %c0_8 = arith.constant 0 : index
    %c0_9 = arith.constant 0 : index
    %13 = vector.load %arg5[%c0_8, %c0_9] : memref<1x16xf32, #tpu.memory_space<vmem>>, vector<1x16xf32>
    %14 = vector.broadcast %13 : vector<1x16xf32> to vector<32x16xf32>
    %15 = arith.mulf %12, %14 : vector<32x16xf32>
    %c0_10 = arith.constant 0 : index
    %c0_11 = arith.constant 0 : index
    %16 = vector.load %arg6[%c0_10, %c0_11] : memref<1x16xf32, #tpu.memory_space<vmem>>, vector<1x16xf32>
    %17 = vector.broadcast %16 : vector<1x16xf32> to vector<32x16xf32>
    %18 = arith.addf %15, %17 : vector<32x16xf32>
    %cst_12 = arith.constant 0.000000e+00 : f32
    %19 = vector.broadcast %cst_12 : f32 to vector<32x16xf32>
    %20 = arith.maximumf %18, %19 : vector<32x16xf32>
    %21 = arith.truncf %20 : vector<32x16xf32> to vector<32x16xbf16>
    %cst_13 = arith.constant 0.000000e+00 : bf16
    %22 = vector.broadcast %cst_13 : bf16 to vector<2x6x6x16xbf16>
    %c0_14 = arith.constant 0 : index
    %c0_15 = arith.constant 0 : index
    %c0_16 = arith.constant 0 : index
    %c0_17 = arith.constant 0 : index
    %23 = vector.load %arg9[%c0_14, %c0_15, %c0_16, %c0_17] : memref<2x6x6x16xbf16, #tpu.memory_space<vmem>>, vector<2x6x6x16xbf16>
    tpu.vector_store %arg9[%c0_14, %c0_15, %c0_16, %c0_17], %22 {strides = array<i32>} : memref<2x6x6x16xbf16, #tpu.memory_space<vmem>>, vector<2x6x6x16xbf16>,
    %24 = vector.shape_cast %21 : vector<32x16xbf16> to vector<2x4x4x16xbf16>
    %c0_18 = arith.constant 0 : index
    %c1 = arith.constant 1 : index
    %c1_19 = arith.constant 1 : index
    %c0_20 = arith.constant 0 : index
    %25 = vector.load %arg9[%c0_18, %c1, %c1_19, %c0_20] : memref<2x6x6x16xbf16, #tpu.memory_space<vmem>>, vector<2x4x4x16xbf16>
    tpu.vector_store %arg9[%c0_18, %c1, %c1_19, %c0_20], %24 {strides = array<i32>} : memref<2x6x6x16xbf16, #tpu.memory_space<vmem>>, vector<2x4x4x16xbf16>,
    %c0_21 = arith.constant 0 : index
    %c0_22 = arith.constant 0 : index
    %c0_23 = arith.constant 0 : index
    %c0_24 = arith.constant 0 : index
    %26 = vector.load %arg9[%c0_21, %c0_22, %c0_23, %c0_24] : memref<2x6x6x16xbf16, #tpu.memory_space<vmem>>, vector<2x4x4x16xbf16>
    %c0_25 = arith.constant 0 : index
    %c0_26 = arith.constant 0 : index
    %c0_27 = arith.constant 0 : index
    %c0_28 = arith.constant 0 : index
    %27 = vector.load %arg10[%c0_25, %c0_26, %c0_27, %c0_28] : memref<2x4x4x144xbf16, #tpu.memory_space<vmem>>, vector<2x4x4x16xbf16>
    tpu.vector_store %arg10[%c0_25, %c0_26, %c0_27, %c0_28], %26 {strides = array<i32>} : memref<2x4x4x144xbf16, #tpu.memory_space<vmem>>, vector<2x4x4x16xbf16>,
    %c0_29 = arith.constant 0 : index
    %c0_30 = arith.constant 0 : index
    %c1_31 = arith.constant 1 : index
    %c0_32 = arith.constant 0 : index
    %28 = vector.load %arg9[%c0_29, %c0_30, %c1_31, %c0_32] : memref<2x6x6x16xbf16, #tpu.memory_space<vmem>>, vector<2x4x4x16xbf16>
    %c0_33 = arith.constant 0 : index
    %c0_34 = arith.constant 0 : index
    %c0_35 = arith.constant 0 : index
    %c16 = arith.constant 16 : index
    %29 = vector.load %arg10[%c0_33, %c0_34, %c0_35, %c16] : memref<2x4x4x144xbf16, #tpu.memory_space<vmem>>, vector<2x4x4x16xbf16>
    tpu.vector_store %arg10[%c0_33, %c0_34, %c0_35, %c16], %28 {strides = array<i32>} : memref<2x4x4x144xbf16, #tpu.memory_space<vmem>>, vector<2x4x4x16xbf16>,
    %c0_36 = arith.constant 0 : index
    %c0_37 = arith.constant 0 : index
    %c2 = arith.constant 2 : index
    %c0_38 = arith.constant 0 : index
    %30 = vector.load %arg9[%c0_36, %c0_37, %c2, %c0_38] : memref<2x6x6x16xbf16, #tpu.memory_space<vmem>>, vector<2x4x4x16xbf16>
    %c0_39 = arith.constant 0 : index
    %c0_40 = arith.constant 0 : index
    %c0_41 = arith.constant 0 : index
    %c32 = arith.constant 32 : index
    %31 = vector.load %arg10[%c0_39, %c0_40, %c0_41, %c32] : memref<2x4x4x144xbf16, #tpu.memory_space<vmem>>, vector<2x4x4x16xbf16>
    tpu.vector_store %arg10[%c0_39, %c0_40, %c0_41, %c32], %30 {strides = array<i32>} : memref<2x4x4x144xbf16, #tpu.memory_space<vmem>>, vector<2x4x4x16xbf16>,
    %c0_42 = arith.constant 0 : index
    %c1_43 = arith.constant 1 : index
    %c0_44 = arith.constant 0 : index
    %c0_45 = arith.constant 0 : index
    %32 = vector.load %arg9[%c0_42, %c1_43, %c0_44, %c0_45] : memref<2x6x6x16xbf16, #tpu.memory_space<vmem>>, vector<2x4x4x16xbf16>
    %c0_46 = arith.constant 0 : index
    %c0_47 = arith.constant 0 : index
    %c0_48 = arith.constant 0 : index
    %c48 = arith.constant 48 : index
    %33 = vector.load %arg10[%c0_46, %c0_47, %c0_48, %c48] : memref<2x4x4x144xbf16, #tpu.memory_space<vmem>>, vector<2x4x4x16xbf16>
    tpu.vector_store %arg10[%c0_46, %c0_47, %c0_48, %c48], %32 {strides = array<i32>} : memref<2x4x4x144xbf16, #tpu.memory_space<vmem>>, vector<2x4x4x16xbf16>,
    %c0_49 = arith.constant 0 : index
    %c1_50 = arith.constant 1 : index
    %c1_51 = arith.constant 1 : index
    %c0_52 = arith.constant 0 : index
    %34 = vector.load %arg9[%c0_49, %c1_50, %c1_51, %c0_52] : memref<2x6x6x16xbf16, #tpu.memory_space<vmem>>, vector<2x4x4x16xbf16>
    %c0_53 = arith.constant 0 : index
    %c0_54 = arith.constant 0 : index
    %c0_55 = arith.constant 0 : index
    %c64 = arith.constant 64 : index
    %35 = vector.load %arg10[%c0_53, %c0_54, %c0_55, %c64] : memref<2x4x4x144xbf16, #tpu.memory_space<vmem>>, vector<2x4x4x16xbf16>
    tpu.vector_store %arg10[%c0_53, %c0_54, %c0_55, %c64], %34 {strides = array<i32>} : memref<2x4x4x144xbf16, #tpu.memory_space<vmem>>, vector<2x4x4x16xbf16>,
    %c0_56 = arith.constant 0 : index
    %c1_57 = arith.constant 1 : index
    %c2_58 = arith.constant 2 : index
    %c0_59 = arith.constant 0 : index
    %36 = vector.load %arg9[%c0_56, %c1_57, %c2_58, %c0_59] : memref<2x6x6x16xbf16, #tpu.memory_space<vmem>>, vector<2x4x4x16xbf16>
    %c0_60 = arith.constant 0 : index
    %c0_61 = arith.constant 0 : index
    %c0_62 = arith.constant 0 : index
    %c80 = arith.constant 80 : index
    %37 = vector.load %arg10[%c0_60, %c0_61, %c0_62, %c80] : memref<2x4x4x144xbf16, #tpu.memory_space<vmem>>, vector<2x4x4x16xbf16>
    tpu.vector_store %arg10[%c0_60, %c0_61, %c0_62, %c80], %36 {strides = array<i32>} : memref<2x4x4x144xbf16, #tpu.memory_space<vmem>>, vector<2x4x4x16xbf16>,
    %c0_63 = arith.constant 0 : index
    %c2_64 = arith.constant 2 : index
    %c0_65 = arith.constant 0 : index
    %c0_66 = arith.constant 0 : index
    %38 = vector.load %arg9[%c0_63, %c2_64, %c0_65, %c0_66] : memref<2x6x6x16xbf16, #tpu.memory_space<vmem>>, vector<2x4x4x16xbf16>
    %c0_67 = arith.constant 0 : index
    %c0_68 = arith.constant 0 : index
    %c0_69 = arith.constant 0 : index
    %c96 = arith.constant 96 : index
    %39 = vector.load %arg10[%c0_67, %c0_68, %c0_69, %c96] : memref<2x4x4x144xbf16, #tpu.memory_space<vmem>>, vector<2x4x4x16xbf16>
    tpu.vector_store %arg10[%c0_67, %c0_68, %c0_69, %c96], %38 {strides = array<i32>} : memref<2x4x4x144xbf16, #tpu.memory_space<vmem>>, vector<2x4x4x16xbf16>,
    %c0_70 = arith.constant 0 : index
    %c2_71 = arith.constant 2 : index
    %c1_72 = arith.constant 1 : index
    %c0_73 = arith.constant 0 : index
    %40 = vector.load %arg9[%c0_70, %c2_71, %c1_72, %c0_73] : memref<2x6x6x16xbf16, #tpu.memory_space<vmem>>, vector<2x4x4x16xbf16>
    %c0_74 = arith.constant 0 : index
    %c0_75 = arith.constant 0 : index
    %c0_76 = arith.constant 0 : index
    %c112 = arith.constant 112 : index
    %41 = vector.load %arg10[%c0_74, %c0_75, %c0_76, %c112] : memref<2x4x4x144xbf16, #tpu.memory_space<vmem>>, vector<2x4x4x16xbf16>
    tpu.vector_store %arg10[%c0_74, %c0_75, %c0_76, %c112], %40 {strides = array<i32>} : memref<2x4x4x144xbf16, #tpu.memory_space<vmem>>, vector<2x4x4x16xbf16>,
    %c0_77 = arith.constant 0 : index
    %c2_78 = arith.constant 2 : index
    %c2_79 = arith.constant 2 : index
    %c0_80 = arith.constant 0 : index
    %42 = vector.load %arg9[%c0_77, %c2_78, %c2_79, %c0_80] : memref<2x6x6x16xbf16, #tpu.memory_space<vmem>>, vector<2x4x4x16xbf16>
    %c0_81 = arith.constant 0 : index
    %c0_82 = arith.constant 0 : index
    %c0_83 = arith.constant 0 : index
    %c128 = arith.constant 128 : index
    %43 = vector.load %arg10[%c0_81, %c0_82, %c0_83, %c128] : memref<2x4x4x144xbf16, #tpu.memory_space<vmem>>, vector<2x4x4x16xbf16>
    tpu.vector_store %arg10[%c0_81, %c0_82, %c0_83, %c128], %42 {strides = array<i32>} : memref<2x4x4x144xbf16, #tpu.memory_space<vmem>>, vector<2x4x4x16xbf16>,
    %c0_84 = arith.constant 0 : index
    %c0_85 = arith.constant 0 : index
    %c0_86 = arith.constant 0 : index
    %c0_87 = arith.constant 0 : index
    %44 = vector.load %arg10[%c0_84, %c0_85, %c0_86, %c0_87] : memref<2x4x4x144xbf16, #tpu.memory_space<vmem>>, vector<2x4x4x144xbf16>
    %45 = vector.shape_cast %44 : vector<2x4x4x144xbf16> to vector<32x144xbf16>
    %c0_88 = arith.constant 0 : index
    %c0_89 = arith.constant 0 : index
    %46 = vector.load %arg7[%c0_88, %c0_89] : memref<144x8xbf16, #tpu.memory_space<vmem>>, vector<144x8xbf16>
    %cst_90 = arith.constant dense<0.000000e+00> : vector<32x8xf32>
    %47 = tpu.matmul %45, %46, %cst_90 {dimension_numbers = #tpu.dot_dimension_numbers<[1], [0], [0], [1], [0, 0, 1, 1], [], []>} : vector<32x144xbf16>, vector<144x8xbf16>, vector<32x8xf32> -> vector<32x8xf32>
    %c0_91 = arith.constant 0 : index
    %c0_92 = arith.constant 0 : index
    %48 = vector.load %arg8[%c0_91, %c0_92] : memref<32x32xbf16, #tpu.memory_space<vmem>>, vector<32x24xbf16>
    tpu.vector_store %arg8[%c0_91, %c0_92], %0 {strides = array<i32>} : memref<32x32xbf16, #tpu.memory_space<vmem>>, vector<32x24xbf16>,
    %49 = arith.truncf %47 : vector<32x8xf32> to vector<32x8xbf16>
    %c0_93 = arith.constant 0 : index
    %c24 = arith.constant 24 : index
    %50 = vector.load %arg8[%c0_93, %c24] : memref<32x32xbf16, #tpu.memory_space<vmem>>, vector<32x8xbf16>
    tpu.vector_store %arg8[%c0_93, %c24], %49 {strides = array<i32>} : memref<32x32xbf16, #tpu.memory_space<vmem>>, vector<32x8xbf16>,
    return
  }
  func.func @transform_0(%arg0: i32) -> (i32, i32) {
    %c0_i32 = arith.constant 0 : i32
    %c0_i32_0 = arith.constant 0 : i32
    return %arg0, %c0_i32 : i32, i32
  }
  func.func @transform_1(%arg0: i32) -> (i32, i32) {
    %c0_i32 = arith.constant 0 : i32
    %c0_i32_0 = arith.constant 0 : i32
    %c0_i32_1 = arith.constant 0 : i32
    return %c0_i32, %c0_i32_0 : i32, i32
  }
  func.func @transform_2(%arg0: i32) -> (i32, i32) {
    %c0_i32 = arith.constant 0 : i32
    %c0_i32_0 = arith.constant 0 : i32
    %c0_i32_1 = arith.constant 0 : i32
    return %c0_i32, %c0_i32_0 : i32, i32
  }
  func.func @transform_3(%arg0: i32) -> (i32, i32) {
    %c0_i32 = arith.constant 0 : i32
    %c0_i32_0 = arith.constant 0 : i32
    %c0_i32_1 = arith.constant 0 : i32
    return %c0_i32, %c0_i32_0 : i32, i32
  }
  func.func @transform_4(%arg0: i32) -> (i32, i32) {
    %c0_i32 = arith.constant 0 : i32
    %c0_i32_0 = arith.constant 0 : i32
    %c0_i32_1 = arith.constant 0 : i32
    return %c0_i32, %c0_i32_0 : i32, i32
  }
  func.func @transform_5(%arg0: i32) -> (i32, i32) {
    %c0_i32 = arith.constant 0 : i32
    %c0_i32_0 = arith.constant 0 : i32
    %c0_i32_1 = arith.constant 0 : i32
    return %c0_i32, %c0_i32_0 : i32, i32
  }
  func.func @transform_6(%arg0: i32) -> (i32, i32) {
    %c0_i32 = arith.constant 0 : i32
    %c0_i32_0 = arith.constant 0 : i32
    %c0_i32_1 = arith.constant 0 : i32
    return %c0_i32, %c0_i32_0 : i32, i32
  }
  func.func @transform_7(%arg0: i32) -> (i32, i32) {
    %c0_i32 = arith.constant 0 : i32
    %c0_i32_0 = arith.constant 0 : i32
    return %arg0, %c0_i32 : i32, i32
  }
}

module attributes {stable_mosaic.version = 11 : i64} {
  func.func @_head_kernel(%arg0: i32, %arg1: memref<2x16x32xbf16, #tpu.memory_space<vmem>>, %arg2: memref<1x32xf32, #tpu.memory_space<vmem>>, %arg3: memref<1x32xf32, #tpu.memory_space<vmem>>, %arg4: memref<32x10xbf16, #tpu.memory_space<vmem>>, %arg5: memref<1x10xf32, #tpu.memory_space<vmem>>, %arg6: memref<2x10xf32, #tpu.memory_space<vmem>>) attributes {dimension_semantics = [#tpu.dimension_semantics<arbitrary>], iteration_bounds = array<i64: 1>, scalar_prefetch = 0 : i64, scratch_operands = 0 : i64, tpu.core_type = #tpu.core_type<tc>, window_params = [{pipeline_mode = #tpu.pipeline_mode<synchronous>, transform_indices = @transform_0, window_bounds = array<i64: 2, 16, 32>}, {pipeline_mode = #tpu.pipeline_mode<synchronous>, transform_indices = @transform_1, window_bounds = array<i64: 1, 32>}, {pipeline_mode = #tpu.pipeline_mode<synchronous>, transform_indices = @transform_2, window_bounds = array<i64: 1, 32>}, {pipeline_mode = #tpu.pipeline_mode<synchronous>, transform_indices = @transform_3, window_bounds = array<i64: 32, 10>}, {pipeline_mode = #tpu.pipeline_mode<synchronous>, transform_indices = @transform_4, window_bounds = array<i64: 1, 10>}, {pipeline_mode = #tpu.pipeline_mode<synchronous>, transform_indices = @transform_5, window_bounds = array<i64: 2, 10>}]} {
    %c0 = arith.constant 0 : index
    %c0_0 = arith.constant 0 : index
    %c0_1 = arith.constant 0 : index
    %0 = vector.load %arg1[%c0, %c0_0, %c0_1] : memref<2x16x32xbf16, #tpu.memory_space<vmem>>, vector<2x16x32xbf16>
    %1 = arith.extf %0 : vector<2x16x32xbf16> to vector<2x16x32xf32>
    %c0_2 = arith.constant 0 : index
    %c0_3 = arith.constant 0 : index
    %2 = vector.load %arg2[%c0_2, %c0_3] : memref<1x32xf32, #tpu.memory_space<vmem>>, vector<1x32xf32>
    %3 = vector.shape_cast %2 : vector<1x32xf32> to vector<1x1x32xf32>
    %4 = vector.broadcast %3 : vector<1x1x32xf32> to vector<2x16x32xf32>
    %5 = arith.mulf %1, %4 : vector<2x16x32xf32>
    %c0_4 = arith.constant 0 : index
    %c0_5 = arith.constant 0 : index
    %6 = vector.load %arg3[%c0_4, %c0_5] : memref<1x32xf32, #tpu.memory_space<vmem>>, vector<1x32xf32>
    %7 = vector.shape_cast %6 : vector<1x32xf32> to vector<1x1x32xf32>
    %8 = vector.broadcast %7 : vector<1x1x32xf32> to vector<2x16x32xf32>
    %9 = arith.addf %5, %8 : vector<2x16x32xf32>
    %cst = arith.constant 0.000000e+00 : f32
    %10 = vector.broadcast %cst : f32 to vector<2x16x32xf32>
    %11 = arith.maximumf %9, %10 : vector<2x16x32xf32>
    %cst_6 = arith.constant dense<0.000000e+00> : vector<2x32xf32>
    %12 = vector.multi_reduction <add>, %11, %cst_6 [1] : vector<2x16x32xf32> to vector<2x32xf32>
    %cst_7 = arith.constant 6.250000e-02 : f32
    %13 = vector.broadcast %cst_7 : f32 to vector<2x32xf32>
    %14 = arith.mulf %12, %13 : vector<2x32xf32>
    %15 = arith.truncf %14 : vector<2x32xf32> to vector<2x32xbf16>
    %c0_8 = arith.constant 0 : index
    %c0_9 = arith.constant 0 : index
    %16 = vector.load %arg4[%c0_8, %c0_9] : memref<32x10xbf16, #tpu.memory_space<vmem>>, vector<32x10xbf16>
    %cst_10 = arith.constant dense<0.000000e+00> : vector<2x10xf32>
    %17 = tpu.matmul %15, %16, %cst_10 {dimension_numbers = #tpu.dot_dimension_numbers<[1], [0], [0], [1], [0, 0, 1, 1], [], []>} : vector<2x32xbf16>, vector<32x10xbf16>, vector<2x10xf32> -> vector<2x10xf32>
    %c0_11 = arith.constant 0 : index
    %c0_12 = arith.constant 0 : index
    %18 = vector.load %arg5[%c0_11, %c0_12] : memref<1x10xf32, #tpu.memory_space<vmem>>, vector<1x10xf32>
    %19 = vector.broadcast %18 : vector<1x10xf32> to vector<2x10xf32>
    %20 = arith.addf %17, %19 : vector<2x10xf32>
    %c0_13 = arith.constant 0 : index
    %c0_14 = arith.constant 0 : index
    %21 = vector.load %arg6[%c0_13, %c0_14] : memref<2x10xf32, #tpu.memory_space<vmem>>, vector<2x10xf32>
    tpu.vector_store %arg6[%c0_13, %c0_14], %20 {strides = array<i32>} : memref<2x10xf32, #tpu.memory_space<vmem>>, vector<2x10xf32>,
    return
  }
  func.func @transform_0(%arg0: i32) -> (i32, i32, i32) {
    %c0_i32 = arith.constant 0 : i32
    %c0_i32_0 = arith.constant 0 : i32
    %c0_i32_1 = arith.constant 0 : i32
    %c0_i32_2 = arith.constant 0 : i32
    return %c0_i32, %c0_i32_0, %c0_i32_1 : i32, i32, i32
  }
  func.func @transform_1(%arg0: i32) -> (i32, i32) {
    %c0_i32 = arith.constant 0 : i32
    %c0_i32_0 = arith.constant 0 : i32
    %c0_i32_1 = arith.constant 0 : i32
    return %c0_i32, %c0_i32_0 : i32, i32
  }
  func.func @transform_2(%arg0: i32) -> (i32, i32) {
    %c0_i32 = arith.constant 0 : i32
    %c0_i32_0 = arith.constant 0 : i32
    %c0_i32_1 = arith.constant 0 : i32
    return %c0_i32, %c0_i32_0 : i32, i32
  }
  func.func @transform_3(%arg0: i32) -> (i32, i32) {
    %c0_i32 = arith.constant 0 : i32
    %c0_i32_0 = arith.constant 0 : i32
    %c0_i32_1 = arith.constant 0 : i32
    return %c0_i32, %c0_i32_0 : i32, i32
  }
  func.func @transform_4(%arg0: i32) -> (i32, i32) {
    %c0_i32 = arith.constant 0 : i32
    %c0_i32_0 = arith.constant 0 : i32
    %c0_i32_1 = arith.constant 0 : i32
    return %c0_i32, %c0_i32_0 : i32, i32
  }
  func.func @transform_5(%arg0: i32) -> (i32, i32) {
    %c0_i32 = arith.constant 0 : i32
    %c0_i32_0 = arith.constant 0 : i32
    %c0_i32_1 = arith.constant 0 : i32
    return %c0_i32, %c0_i32_0 : i32, i32
  }
}

</mosaic_0001>

<bundles_post_ra>
// kernel: densenet_forward.7
= control target key start
LH: loop header
LB: loop body
LE: loop exit
PB: predicated region body
PF: predicated region fallthrough
CT: control target
= control target key end

     0   :  { %vm378_vm0 = vcmask 1044480   ;;  %vm379_vm1 = vcmask 1045504   ;;  %v1563_v1 = vmov 65535   ;;  %vm281_vm2 = vcmask 613376   ;;  %s2126_s1 = inlined_call_operand.vmem [shape: bf16[75,16], index: 1, kind: input, shape index: {}]   ;;  %s2127_s0 = inlined_call_operand.vmem [shape: bf16[512,75], index: 0, kind: input, shape index: {}]   ;;  %s2128_s2 = inlined_call_operand.vmem [shape: f32[1,16], index: 2, kind: input, shape index: {}]   ;;  %s2129_s3 = inlined_call_operand.vmem [shape: f32[1,16], index: 3, kind: input, shape index: {}]   ;;  %s2130_s4 = inlined_call_operand.vmem [shape: bf16[512,16], index: 4, kind: output, shape index: {}]  }
   0x1   :  { %v1526_v0 = vld [vmem:[%s2126_s1 + $0x20] sm:$0x3f]   ;;  %v380_v2 = vsel %vm378_vm0, 4294967295, %v1563_v1  ;;  %v1527_v5 = vld [vmem:[%s2126_s1 + $0x18] sm:$0xff]   ;;  %v1528_v8 = vld [vmem:[%s2126_s1 + $0x10] sm:$0xff]   ;;  %vm1136_vm3 = vcmask 125952  }
   0x2   :  { %v381_v3 = vsel %vm379_vm1, %v380_v2, 0  ;;  %v1531_v6 = vld [vmem:[%s2127_s0] sm:$0xff]   ;;  %v1529_v9 = vld [vmem:[%s2126_s1 + $0x8] sm:$0xff]   ;;  %v1535_v13 = vld [vmem:[%s2127_s0 + $0x10] sm:$0xff]  }
   0x3   :  { %v383_v4 = vand.u32 %v1526_v0, %v381_v3  ;;  %v1532_v7 = vld [vmem:[%s2127_s0 + $0x80] sm:$0xff]   ;;  %1451 = vmatprep.mubr.msk.bf16.mxu0 %vm281_vm2, %v1531_v6  ;;  %v1533_v11 = vld [vmem:[%s2127_s0 + $0x8] sm:$0xff]   ;;  %v1536_v14 = vld [vmem:[%s2127_s0 + $0x90] sm:$0xff]  }
   0x4   :  { %1483 = vmatprep.mubr.msk.bf16.mxu1 %vm281_vm2, %v1532_v7  ;;  %v1530_v10 = vld [vmem:[%s2126_s1] sm:$0xff]   ;;  %v1534_v12 = vld [vmem:[%s2127_s0 + $0x88] sm:$0xff]   ;;  %v1537_v15 = vld [vmem:[%s2127_s0 + $0x18] sm:$0xff]  }
   0x5   :  { %1441 = vmatprep.subr.bf16.mxu0 %v383_v4  ;;  %1515 = vmatprep.subr.bf16.mxu1 %v383_v4  ;;  %v1538_v16 = vld [vmem:[%s2127_s0 + $0x98] sm:$0xff]   ;;  %v1539_v17 = vld [vmem:[%s2127_s0 + $0x20] sm:$0xff]   ;;  %v1541_v19 = vld [vmem:[%s2127_s0 + $0x28] sm:$0xff]  }
   0x6   :  { %1442 = vmatpush3.bf16.msra.mxu0 %v383_v4  ;;  %1520 = vmatpush3.bf16.msra.mxu1 %v383_v4  ;;  %v1540_v18 = vld [vmem:[%s2127_s0 + $0xa0] sm:$0xff]   ;;  %v1542_v20 = vld [vmem:[%s2127_s0 + $0xa8] sm:$0xff]   ;;  %v1543_v21 = vld [vmem:[%s2127_s0 + $0x30] sm:$0xff]  }
   0x7   :  { %1443 = vmatprep.subr.bf16.mxu0 %v1527_v5  ;;  %1516 = vmatprep.subr.bf16.mxu1 %v1527_v5  ;;  %v1544_v22 = vld [vmem:[%s2127_s0 + $0xb0] sm:$0xff]   ;;  %v1545_v23 = vld [vmem:[%s2127_s0 + $0x38] sm:$0xff]   ;;  %v1547_v25 = vld [vmem:[%s2127_s0 + $0x40] sm:$0xff]  }
   0x8   :  { %v1546_v24 = vld [vmem:[%s2127_s0 + $0xb8] sm:$0xff]   ;;  %v1548_v26 = vld [vmem:[%s2127_s0 + $0xc0] sm:$0xff]   ;;  %v1549_v27 = vld [vmem:[%s2127_s0 + $0x48] sm:$0xff]  }
   0x9   :  { %v1550_v28 = vld [vmem:[%s2127_s0 + $0xc8] sm:$0xff]   ;;  %v1551_v29 = vld [vmem:[%s2127_s0 + $0x50] sm:$0xff]   ;;  %v1553_v31 = vld [vmem:[%s2127_s0 + $0x58] sm:$0xff]  }
   0xa   :  { %1444 = vmatpush3.bf16.msra.mxu0 %v1527_v5  ;;  %1521 = vmatpush3.bf16.msra.mxu1 %v1527_v5  ;;  %v1552_v30 = vld [vmem:[%s2127_s0 + $0xd0] sm:$0xff]   ;;  %v1554_v32 = vld [vmem:[%s2127_s0 + $0xd8] sm:$0xff]   ;;  %v1555_v33 = vld [vmem:[%s2127_s0 + $0x60] sm:$0xff]  }
   0xb   :  { %1445 = vmatprep.subr.bf16.mxu0 %v1528_v8  ;;  %1517 = vmatprep.subr.bf16.mxu1 %v1528_v8  ;;  %v1556_v34 = vld [vmem:[%s2127_s0 + $0xe0] sm:$0xff]   ;;  %v1557_v35 = vld [vmem:[%s2127_s0 + $0x68] sm:$0xff]   ;;  %v1559_v37 = vld [vmem:[%s2127_s0 + $0x70] sm:$0xff]  }
   0xc   :  { %v1558_v36 = vld [vmem:[%s2127_s0 + $0xe8] sm:$0xff]   ;;  %v1560_v38 = vld [vmem:[%s2127_s0 + $0xf0] sm:$0xff]   ;;  %v1561_v39 = vld [vmem:[%s2127_s0 + $0x78] sm:$0xff]  }
   0xd   :  { %v1562_v40 = vld [vmem:[%s2127_s0 + $0xf8] sm:$0xff]   ;;  %v1735_v41 = vld [vmem:[%s2128_s2] ss:$0 sm:$0xff] }
   0xe   :  { %1446 = vmatpush3.bf16.msra.mxu0 %v1528_v8  ;;  %1522 = vmatpush3.bf16.msra.mxu1 %v1528_v8  ;;  %v1740_v43 = vld [vmem:[%s2129_s3] ss:$0 sm:$0xff] }
   0xf   :  { %1447 = vmatprep.subr.bf16.mxu0 %v1529_v9  ;;  %1518 = vmatprep.subr.bf16.mxu1 %v1529_v9 }
  0x12   :  { %1448 = vmatpush3.bf16.msra.mxu0 %v1529_v9  ;;  %1523 = vmatpush3.bf16.msra.mxu1 %v1529_v9 }
  0x13   :  { %1449 = vmatprep.subr.bf16.mxu0 %v1530_v10  ;;  %1519 = vmatprep.subr.bf16.mxu1 %v1530_v10 }
  0x16   :  { %1450 = vmatpush3.bf16.msra.mxu0 %v1530_v10  ;;  %1524 = vmatpush3.bf16.msra.mxu1 %v1530_v10 }
  0x19   :  { %1452 = vmatmul.mubr.msk.bf16.vlgmr.msra.gmra.mxu0 %vm281_vm2, %v1533_v11  ;;  %1484 = vmatmul.mubr.msk.bf16.vlgmr.msra.gmra.mxu1 %vm281_vm2, %v1534_v12 }
  0x1a   :  { %1455 = vmatprep.mubr.msk.bf16.mxu0 %vm281_vm2, %v1535_v13  ;;  %1487 = vmatprep.mubr.msk.bf16.mxu1 %vm281_vm2, %v1536_v14 }
  0x21   :  { %1456 = vmatmul.mubr.msk.bf16.gmra.mxu0 %vm281_vm2, %v1537_v15  ;;  %1488 = vmatmul.mubr.msk.bf16.gmra.mxu1 %vm281_vm2, %v1538_v16 }
  0x22   :  { %1459 = vmatprep.mubr.msk.bf16.mxu0 %vm281_vm2, %v1539_v17  ;;  %1491 = vmatprep.mubr.msk.bf16.mxu1 %vm281_vm2, %v1540_v18 }
  0x29   :  { %1460 = vmatmul.mubr.msk.bf16.gmra.mxu0 %vm281_vm2, %v1541_v19  ;;  %1492 = vmatmul.mubr.msk.bf16.gmra.mxu1 %vm281_vm2, %v1542_v20 }
  0x2a   :  { %1463 = vmatprep.mubr.msk.bf16.mxu0 %vm281_vm2, %v1543_v21  ;;  %1495 = vmatprep.mubr.msk.bf16.mxu1 %vm281_vm2, %v1544_v22 }
  0x31   :  { %1464 = vmatmul.mubr.msk.bf16.gmra.mxu0 %vm281_vm2, %v1545_v23  ;;  %1496 = vmatmul.mubr.msk.bf16.gmra.mxu1 %vm281_vm2, %v1546_v24 }
  0x32   :  { %1467 = vmatprep.mubr.msk.bf16.mxu0 %vm281_vm2, %v1547_v25  ;;  %1499 = vmatprep.mubr.msk.bf16.mxu1 %vm281_vm2, %v1548_v26 }
  0x39   :  { %1468 = vmatmul.mubr.msk.bf16.gmra.mxu0 %vm281_vm2, %v1549_v27  ;;  %1500 = vmatmul.mubr.msk.bf16.gmra.mxu1 %vm281_vm2, %v1550_v28 }
  0x3a   :  { %1471 = vmatprep.mubr.msk.bf16.mxu0 %vm281_vm2, %v1551_v29  ;;  %1503 = vmatprep.mubr.msk.bf16.mxu1 %vm281_vm2, %v1552_v30 }
  0x41   :  { %1472 = vmatmul.mubr.msk.bf16.gmra.mxu0 %vm281_vm2, %v1553_v31  ;;  %1504 = vmatmul.mubr.msk.bf16.gmra.mxu1 %vm281_vm2, %v1554_v32 }
  0x42   :  { %1475 = vmatprep.mubr.msk.bf16.mxu0 %vm281_vm2, %v1555_v33  ;;  %1507 = vmatprep.mubr.msk.bf16.mxu1 %vm281_vm2, %v1556_v34 }
  0x49   :  { %1476 = vmatmul.mubr.msk.bf16.gmra.mxu0 %vm281_vm2, %v1557_v35  ;;  %1508 = vmatmul.mubr.msk.bf16.gmra.mxu1 %vm281_vm2, %v1558_v36 }
  0x4a   :  { %1479 = vmatprep.mubr.msk.bf16.mxu0 %vm281_vm2, %v1559_v37  ;;  %1511 = vmatprep.mubr.msk.bf16.mxu1 %vm281_vm2, %v1560_v38 }
  0x51   :  { %1480 = vmatmul.mubr.msk.bf16.gmra.mxu0 %vm281_vm2, %v1561_v39  ;;  %1512 = vmatmul.mubr.msk.bf16.gmra.mxu1 %vm281_vm2, %v1562_v40 }
  0xd9   :  { %v1453_v42 = vpop.f32.mrf.mxu0  ;;  %v1485_v44 = vpop.f32.mrf.mxu1 }
  0xda   :  { %v683_v45 = vmul.f32 %v1453_v42, %v1735_v41  ;;  %v715_v46 = vmul.f32 %v1485_v44, %v1735_v41 }
  0xdb   :  { %v419_v47 = vpop.f32.mrf.mxu0  ;;  %v547_v48 = vpop.f32.mrf.mxu1 }
  0xdc   :  { %v754_v49 = vadd.f32 %v1740_v43, %v683_v45  ;;  %v786_v50 = vadd.f32 %v1740_v43, %v715_v46  ;;  %v681_v51 = vmul.f32 %v1735_v41, %v419_v47  ;;  %v713_v52 = vmul.f32 %v1735_v41, %v547_v48 }
  0xdd   :  { %v1454_v53 = vpop.f32.mrf.mxu0  ;;  %v1486_v54 = vpop.f32.mrf.mxu1 }
  0xde   :  { %v818_v55 = vmax.f32 %v754_v49, 0.0  ;;  %v850_v56 = vmax.f32 %v786_v50, 0.0  ;;  %v752_v57 = vadd.f32 %v1740_v43, %v681_v51  ;;  %v784_v58 = vadd.f32 %v1740_v43, %v713_v52 }
  0xdf   :  { %v684_v59 = vmul.f32 %v1454_v53, %v1735_v41  ;;  %v716_v60 = vmul.f32 %v1486_v54, %v1735_v41  ;;  %v422_v61 = vpop.f32.mrf.mxu0  ;;  %v550_v62 = vpop.f32.mrf.mxu1 }
  0xe0   :  { %v1342_v63 = vpack.c.bf16 %v818_v55, %v818_v55  ;;  %v1374_v0 = vpack.c.bf16 %v850_v56, %v850_v56  ;;  %v816_v1 = vmax.f32 %v752_v57, 0.0  ;;  %v848_v2 = vmax.f32 %v784_v58, 0.0 }
  0xe1   :  { %v755_v3 = vadd.f32 %v1740_v43, %v684_v59  ;;  %v787_v4 = vadd.f32 %v1740_v43, %v716_v60  ;;  %v682_v5 = vmul.f32 %v1735_v41, %v422_v61  ;;  %v714_v6 = vmul.f32 %v1735_v41, %v550_v62  ;;  %v1457_v7 = vpop.f32.mrf.mxu0  ;;  %v1489_v8 = vpop.f32.mrf.mxu1 }
  0xe2   :  { %1139 = vst.msk [vmem:[%s2130_s4 + $0x8] sm:$0xf] %vm1136_vm3, %v1342_v63  ;;  %1171 = vst.msk [vmem:[%s2130_s4 + $0x88] sm:$0xf] %vm1136_vm3, %v1374_v0  ;;  %v1340_v9 = vpack.c.bf16 %v816_v1, %v816_v1  ;;  %v1372_v10 = vpack.c.bf16 %v848_v2, %v848_v2  ;;  %v687_v11 = vmul.f32 %v1457_v7, %v1735_v41 }
  0xe3   :  { %v719_v12 = vmul.f32 %v1489_v8, %v1735_v41  ;;  %v819_v13 = vmax.f32 %v755_v3, 0.0  ;;  %v851_v14 = vmax.f32 %v787_v4, 0.0  ;;  %v753_v15 = vadd.f32 %v1740_v43, %v682_v5  ;;  %v435_v17 = vpop.f32.mrf.mxu0  ;;  %v563_v18 = vpop.f32.mrf.mxu1 }
  0xe4   :  { %v785_v16 = vadd.f32 %v1740_v43, %v714_v6  ;;  %1137 = vst.msk [vmem:[%s2130_s4] sm:$0xf] %vm1136_vm3, %v1340_v9  ;;  %1169 = vst.msk [vmem:[%s2130_s4 + $0x80] sm:$0xf] %vm1136_vm3, %v1372_v10  ;;  %v758_v19 = vadd.f32 %v1740_v43, %v687_v11  ;;  %v685_v21 = vmul.f32 %v1735_v41, %v435_v17 }
  0xe5   :  { %v790_v20 = vadd.f32 %v1740_v43, %v719_v12  ;;  %v717_v22 = vmul.f32 %v1735_v41, %v563_v18  ;;  %v1343_v23 = vpack.c.bf16 %v819_v13, %v819_v13  ;;  %v1375_v24 = vpack.c.bf16 %v851_v14, %v851_v14  ;;  %v1458_v27 = vpop.f32.mrf.mxu0  ;;  %v1490_v28 = vpop.f32.mrf.mxu1 }
  0xe6   :  { %v817_v25 = vmax.f32 %v753_v15, 0.0  ;;  %v849_v26 = vmax.f32 %v785_v16, 0.0  ;;  %v822_v29 = vmax.f32 %v758_v19, 0.0  ;;  %v756_v31 = vadd.f32 %v1740_v43, %v685_v21 }
  0xe7   :  { %v854_v30 = vmax.f32 %v790_v20, 0.0  ;;  %v788_v32 = vadd.f32 %v1740_v43, %v717_v22  ;;  %1140 = vst.msk [vmem:[%s2130_s4 + $0xc] sm:$0xf] %vm1136_vm3, %v1343_v23  ;;  %1172 = vst.msk [vmem:[%s2130_s4 + $0x8c] sm:$0xf] %vm1136_vm3, %v1375_v24  ;;  %v688_v35 = vmul.f32 %v1458_v27, %v1735_v41  ;;  %v720_v36 = vmul.f32 %v1490_v28, %v1735_v41  ;;  %v438_v37 = vpop.f32.mrf.mxu0  ;;  %v566_v38 = vpop.f32.mrf.mxu1 }
  0xe8   :  { %v1341_v33 = vpack.c.bf16 %v817_v25, %v817_v25  ;;  %v1373_v34 = vpack.c.bf16 %v849_v26, %v849_v26  ;;  %v1346_v39 = vpack.c.bf16 %v822_v29, %v822_v29  ;;  %v820_v42 = vmax.f32 %v756_v31, 0.0 }
  0xe9   :  { %v1378_v40 = vpack.c.bf16 %v854_v30, %v854_v30  ;;  %v852_v44 = vmax.f32 %v788_v32, 0.0  ;;  %v759_v45 = vadd.f32 %v1740_v43, %v688_v35  ;;  %v791_v46 = vadd.f32 %v1740_v43, %v720_v36  ;;  %v1461_v49 = vpop.f32.mrf.mxu0  ;;  %v1493_v50 = vpop.f32.mrf.mxu1 }
  0xea   :  { %1138 = vst.msk [vmem:[%s2130_s4 + $0x4] sm:$0xf] %vm1136_vm3, %v1341_v33  ;;  %1170 = vst.msk [vmem:[%s2130_s4 + $0x84] sm:$0xf] %vm1136_vm3, %v1373_v34  ;;  %v686_v47 = vmul.f32 %v1735_v41, %v438_v37  ;;  %v718_v48 = vmul.f32 %v1735_v41, %v566_v38  ;;  %v1344_v51 = vpack.c.bf16 %v820_v42, %v820_v42 }
  0xeb   :  { %1143 = vst.msk [vmem:[%s2130_s4 + $0x18] sm:$0xf] %vm1136_vm3, %v1346_v39  ;;  %1175 = vst.msk [vmem:[%s2130_s4 + $0x98] sm:$0xf] %vm1136_vm3, %v1378_v40  ;;  %v1376_v52 = vpack.c.bf16 %v852_v44, %v852_v44  ;;  %v691_v53 = vmul.f32 %v1461_v49, %v1735_v41  ;;  %v723_v54 = vmul.f32 %v1493_v50, %v1735_v41  ;;  %v823_v55 = vmax.f32 %v759_v45, 0.0  ;;  %v451_v59 = vpop.f32.mrf.mxu0  ;;  %v579_v60 = vpop.f32.mrf.mxu1 }
  0xec   :  { %v855_v56 = vmax.f32 %v791_v46, 0.0  ;;  %v757_v57 = vadd.f32 %v1740_v43, %v686_v47  ;;  %v789_v58 = vadd.f32 %v1740_v43, %v718_v48  ;;  %1141 = vst.msk [vmem:[%s2130_s4 + $0x10] sm:$0xf] %vm1136_vm3, %v1344_v51  ;;  %v689_v63 = vmul.f32 %v1735_v41, %v451_v59 }
  0xed   :  { %1173 = vst.msk [vmem:[%s2130_s4 + $0x90] sm:$0xf] %vm1136_vm3, %v1376_v52  ;;  %v762_v61 = vadd.f32 %v1740_v43, %v691_v53  ;;  %v794_v62 = vadd.f32 %v1740_v43, %v723_v54  ;;  %v721_v0 = vmul.f32 %v1735_v41, %v579_v60  ;;  %v1347_v1 = vpack.c.bf16 %v823_v55, %v823_v55  ;;  %v1462_v5 = vpop.f32.mrf.mxu0  ;;  %v1494_v6 = vpop.f32.mrf.mxu1 }
  0xee   :  { %v1379_v2 = vpack.c.bf16 %v855_v56, %v855_v56  ;;  %v821_v3 = vmax.f32 %v757_v57, 0.0  ;;  %v853_v4 = vmax.f32 %v789_v58, 0.0  ;;  %v760_v9 = vadd.f32 %v1740_v43, %v689_v63 }
  0xef   :  { %v826_v7 = vmax.f32 %v762_v61, 0.0  ;;  %v858_v8 = vmax.f32 %v794_v62, 0.0  ;;  %v792_v10 = vadd.f32 %v1740_v43, %v721_v0  ;;  %1144 = vst.msk [vmem:[%s2130_s4 + $0x1c] sm:$0xf] %vm1136_vm3, %v1347_v1  ;;  %v692_v13 = vmul.f32 %v1462_v5, %v1735_v41  ;;  %v454_v15 = vpop.f32.mrf.mxu0  ;;  %v582_v16 = vpop.f32.mrf.mxu1 }
  0xf0   :  { %1176 = vst.msk [vmem:[%s2130_s4 + $0x9c] sm:$0xf] %vm1136_vm3, %v1379_v2  ;;  %v1345_v11 = vpack.c.bf16 %v821_v3, %v821_v3  ;;  %v1377_v12 = vpack.c.bf16 %v853_v4, %v853_v4  ;;  %v724_v14 = vmul.f32 %v1494_v6, %v1735_v41  ;;  %v824_v19 = vmax.f32 %v760_v9, 0.0 }
  0xf1   :  { %v1350_v17 = vpack.c.bf16 %v826_v7, %v826_v7  ;;  %v1382_v18 = vpack.c.bf16 %v858_v8, %v858_v8  ;;  %v856_v20 = vmax.f32 %v792_v10, 0.0  ;;  %v763_v21 = vadd.f32 %v1740_v43, %v692_v13  ;;  %v1465_v25 = vpop.f32.mrf.mxu0  ;;  %v1497_v26 = vpop.f32.mrf.mxu1 }
  0xf2   :  { %1142 = vst.msk [vmem:[%s2130_s4 + $0x14] sm:$0xf] %vm1136_vm3, %v1345_v11  ;;  %1174 = vst.msk [vmem:[%s2130_s4 + $0x94] sm:$0xf] %vm1136_vm3, %v1377_v12  ;;  %v795_v22 = vadd.f32 %v1740_v43, %v724_v14  ;;  %v690_v23 = vmul.f32 %v1735_v41, %v454_v15  ;;  %v722_v24 = vmul.f32 %v1735_v41, %v582_v16 }
  0xf3   :  { %1147 = vst.msk [vmem:[%s2130_s4 + $0x28] sm:$0xf] %vm1136_vm3, %v1350_v17  ;;  %1179 = vst.msk [vmem:[%s2130_s4 + $0xa8] sm:$0xf] %vm1136_vm3, %v1382_v18  ;;  %v1348_v27 = vpack.c.bf16 %v824_v19, %v824_v19  ;;  %v1380_v28 = vpack.c.bf16 %v856_v20, %v856_v20  ;;  %v695_v29 = vmul.f32 %v1465_v25, %v1735_v41  ;;  %v827_v31 = vmax.f32 %v763_v21, 0.0  ;;  %v467_v35 = vpop.f32.mrf.mxu0  ;;  %v595_v36 = vpop.f32.mrf.mxu1 }
  0xf4   :  { %v727_v30 = vmul.f32 %v1497_v26, %v1735_v41  ;;  %v859_v32 = vmax.f32 %v795_v22, 0.0  ;;  %v761_v33 = vadd.f32 %v1740_v43, %v690_v23  ;;  %v793_v34 = vadd.f32 %v1740_v43, %v722_v24 }
  0xf5   :  { %1145 = vst.msk [vmem:[%s2130_s4 + $0x20] sm:$0xf] %vm1136_vm3, %v1348_v27  ;;  %1177 = vst.msk [vmem:[%s2130_s4 + $0xa0] sm:$0xf] %vm1136_vm3, %v1380_v28  ;;  %v766_v37 = vadd.f32 %v1740_v43, %v695_v29  ;;  %v693_v39 = vmul.f32 %v1735_v41, %v467_v35  ;;  %v725_v40 = vmul.f32 %v1735_v41, %v595_v36  ;;  %v1466_v47 = vpop.f32.mrf.mxu0  ;;  %v1498_v48 = vpop.f32.mrf.mxu1 }
  0xf6   :  { %v798_v38 = vadd.f32 %v1740_v43, %v727_v30  ;;  %v1351_v42 = vpack.c.bf16 %v827_v31, %v827_v31  ;;  %v1383_v44 = vpack.c.bf16 %v859_v32, %v859_v32  ;;  %v825_v45 = vmax.f32 %v761_v33, 0.0 }
  0xf7   :  { %v857_v46 = vmax.f32 %v793_v34, 0.0  ;;  %v830_v49 = vmax.f32 %v766_v37, 0.0  ;;  %v764_v51 = vadd.f32 %v1740_v43, %v693_v39  ;;  %v796_v52 = vadd.f32 %v1740_v43, %v725_v40  ;;  %v470_v57 = vpop.f32.mrf.mxu0  ;;  %v598_v58 = vpop.f32.mrf.mxu1 }
  0xf8   :  { %v862_v50 = vmax.f32 %v798_v38, 0.0  ;;  %1148 = vst.msk [vmem:[%s2130_s4 + $0x2c] sm:$0xf] %vm1136_vm3, %v1351_v42  ;;  %1180 = vst.msk [vmem:[%s2130_s4 + $0xac] sm:$0xf] %vm1136_vm3, %v1383_v44  ;;  %v1349_v53 = vpack.c.bf16 %v825_v45, %v825_v45  ;;  %v696_v55 = vmul.f32 %v1466_v47, %v1735_v41  ;;  %v728_v56 = vmul.f32 %v1498_v48, %v1735_v41 }
  0xf9   :  { %v1381_v54 = vpack.c.bf16 %v857_v46, %v857_v46  ;;  %v1354_v59 = vpack.c.bf16 %v830_v49, %v830_v49  ;;  %v828_v61 = vmax.f32 %v764_v51, 0.0  ;;  %v860_v62 = vmax.f32 %v796_v52, 0.0  ;;  %v1469_v3 = vpop.f32.mrf.mxu0  ;;  %v1501_v4 = vpop.f32.mrf.mxu1 }
  0xfa   :  { %v1386_v60 = vpack.c.bf16 %v862_v50, %v862_v50  ;;  %1146 = vst.msk [vmem:[%s2130_s4 + $0x24] sm:$0xf] %vm1136_vm3, %v1349_v53  ;;  %v767_v63 = vadd.f32 %v1740_v43, %v696_v55  ;;  %v799_v0 = vadd.f32 %v1740_v43, %v728_v56  ;;  %v694_v1 = vmul.f32 %v1735_v41, %v470_v57 }
  0xfb   :  { %1178 = vst.msk [vmem:[%s2130_s4 + $0xa4] sm:$0xf] %vm1136_vm3, %v1381_v54  ;;  %v726_v2 = vmul.f32 %v1735_v41, %v598_v58  ;;  %1151 = vst.msk [vmem:[%s2130_s4 + $0x38] sm:$0xf] %vm1136_vm3, %v1354_v59  ;;  %v1352_v5 = vpack.c.bf16 %v828_v61, %v828_v61  ;;  %v1384_v6 = vpack.c.bf16 %v860_v62, %v860_v62  ;;  %v483_v13 = vpop.f32.mrf.mxu0  ;;  %v611_v14 = vpop.f32.mrf.mxu1 }
  0xfc   :  { %1183 = vst.msk [vmem:[%s2130_s4 + $0xb8] sm:$0xf] %vm1136_vm3, %v1386_v60  ;;  %v699_v7 = vmul.f32 %v1469_v3, %v1735_v41  ;;  %v731_v8 = vmul.f32 %v1501_v4, %v1735_v41  ;;  %v831_v9 = vmax.f32 %v767_v63, 0.0  ;;  %v863_v10 = vmax.f32 %v799_v0, 0.0 }
  0xfd   :  { %v765_v11 = vadd.f32 %v1740_v43, %v694_v1  ;;  %v797_v12 = vadd.f32 %v1740_v43, %v726_v2  ;;  %1149 = vst.msk [vmem:[%s2130_s4 + $0x30] sm:$0xf] %vm1136_vm3, %v1352_v5  ;;  %1181 = vst.msk [vmem:[%s2130_s4 + $0xb0] sm:$0xf] %vm1136_vm3, %v1384_v6  ;;  %v697_v17 = vmul.f32 %v1735_v41, %v483_v13  ;;  %v1470_v23 = vpop.f32.mrf.mxu0  ;;  %v1502_v24 = vpop.f32.mrf.mxu1 }
  0xfe   :  { %v770_v15 = vadd.f32 %v1740_v43, %v699_v7  ;;  %v802_v16 = vadd.f32 %v1740_v43, %v731_v8  ;;  %v729_v18 = vmul.f32 %v1735_v41, %v611_v14  ;;  %v1355_v19 = vpack.c.bf16 %v831_v9, %v831_v9 }
  0xff   :  { %v1387_v20 = vpack.c.bf16 %v863_v10, %v863_v10  ;;  %v829_v21 = vmax.f32 %v765_v11, 0.0  ;;  %v861_v22 = vmax.f32 %v797_v12, 0.0  ;;  %v768_v27 = vadd.f32 %v1740_v43, %v697_v17  ;;  %v486_v33 = vpop.f32.mrf.mxu0  ;;  %v614_v34 = vpop.f32.mrf.mxu1 }
 0x100   :  { %v834_v25 = vmax.f32 %v770_v15, 0.0  ;;  %v866_v26 = vmax.f32 %v802_v16, 0.0  ;;  %v800_v28 = vadd.f32 %v1740_v43, %v729_v18  ;;  %1152 = vst.msk [vmem:[%s2130_s4 + $0x3c] sm:$0xf] %vm1136_vm3, %v1355_v19  ;;  %v700_v31 = vmul.f32 %v1470_v23, %v1735_v41 }
 0x101   :  { %1184 = vst.msk [vmem:[%s2130_s4 + $0xbc] sm:$0xf] %vm1136_vm3, %v1387_v20  ;;  %v1353_v29 = vpack.c.bf16 %v829_v21, %v829_v21  ;;  %v1385_v30 = vpack.c.bf16 %v861_v22, %v861_v22  ;;  %v732_v32 = vmul.f32 %v1502_v24, %v1735_v41  ;;  %v832_v37 = vmax.f32 %v768_v27, 0.0  ;;  %v1473_v45 = vpop.f32.mrf.mxu0  ;;  %v1505_v46 = vpop.f32.mrf.mxu1 }
 0x102   :  { %v1358_v35 = vpack.c.bf16 %v834_v25, %v834_v25  ;;  %v1390_v36 = vpack.c.bf16 %v866_v26, %v866_v26  ;;  %v864_v38 = vmax.f32 %v800_v28, 0.0  ;;  %v771_v39 = vadd.f32 %v1740_v43, %v700_v31 }
 0x103   :  { %1150 = vst.msk [vmem:[%s2130_s4 + $0x34] sm:$0xf] %vm1136_vm3, %v1353_v29  ;;  %1182 = vst.msk [vmem:[%s2130_s4 + $0xb4] sm:$0xf] %vm1136_vm3, %v1385_v30  ;;  %v803_v40 = vadd.f32 %v1740_v43, %v732_v32  ;;  %v698_v42 = vmul.f32 %v1735_v41, %v486_v33  ;;  %v730_v44 = vmul.f32 %v1735_v41, %v614_v34  ;;  %v499_v55 = vpop.f32.mrf.mxu0  ;;  %v627_v56 = vpop.f32.mrf.mxu1 }
 0x104   :  { %1155 = vst.msk [vmem:[%s2130_s4 + $0x48] sm:$0xf] %vm1136_vm3, %v1358_v35  ;;  %1187 = vst.msk [vmem:[%s2130_s4 + $0xc8] sm:$0xf] %vm1136_vm3, %v1390_v36  ;;  %v1356_v47 = vpack.c.bf16 %v832_v37, %v832_v37  ;;  %v1388_v48 = vpack.c.bf16 %v864_v38, %v864_v38  ;;  %v703_v49 = vmul.f32 %v1473_v45, %v1735_v41  ;;  %v835_v51 = vmax.f32 %v771_v39, 0.0 }
 0x105   :  { %v735_v50 = vmul.f32 %v1505_v46, %v1735_v41  ;;  %v867_v52 = vmax.f32 %v803_v40, 0.0  ;;  %v769_v53 = vadd.f32 %v1740_v43, %v698_v42  ;;  %v801_v54 = vadd.f32 %v1740_v43, %v730_v44  ;;  %v1474_v1 = vpop.f32.mrf.mxu0  ;;  %v1506_v2 = vpop.f32.mrf.mxu1 }
 0x106   :  { %1153 = vst.msk [vmem:[%s2130_s4 + $0x40] sm:$0xf] %vm1136_vm3, %v1356_v47  ;;  %1185 = vst.msk [vmem:[%s2130_s4 + $0xc0] sm:$0xf] %vm1136_vm3, %v1388_v48  ;;  %v774_v57 = vadd.f32 %v1740_v43, %v703_v49  ;;  %v701_v59 = vmul.f32 %v1735_v41, %v499_v55  ;;  %v733_v60 = vmul.f32 %v1735_v41, %v627_v56 }
 0x107   :  { %v806_v58 = vadd.f32 %v1740_v43, %v735_v50  ;;  %v1359_v61 = vpack.c.bf16 %v835_v51, %v835_v51  ;;  %v1391_v62 = vpack.c.bf16 %v867_v52, %v867_v52  ;;  %v833_v63 = vmax.f32 %v769_v53, 0.0  ;;  %v502_v11 = vpop.f32.mrf.mxu0  ;;  %v630_v12 = vpop.f32.mrf.mxu1 }
 0x108   :  { %v865_v0 = vmax.f32 %v801_v54, 0.0  ;;  %v838_v3 = vmax.f32 %v774_v57, 0.0  ;;  %v772_v5 = vadd.f32 %v1740_v43, %v701_v59  ;;  %v804_v6 = vadd.f32 %v1740_v43, %v733_v60 }
 0x109   :  { %v870_v4 = vmax.f32 %v806_v58, 0.0  ;;  %1156 = vst.msk [vmem:[%s2130_s4 + $0x4c] sm:$0xf] %vm1136_vm3, %v1359_v61  ;;  %1188 = vst.msk [vmem:[%s2130_s4 + $0xcc] sm:$0xf] %vm1136_vm3, %v1391_v62  ;;  %v1357_v7 = vpack.c.bf16 %v833_v63, %v833_v63  ;;  %v704_v9 = vmul.f32 %v1474_v1, %v1735_v41  ;;  %v736_v10 = vmul.f32 %v1506_v2, %v1735_v41  ;;  %v1477_v21 = vpop.f32.mrf.mxu0  ;;  %v1509_v22 = vpop.f32.mrf.mxu1 }
 0x10a   :  { %v1389_v8 = vpack.c.bf16 %v865_v0, %v865_v0  ;;  %v1362_v13 = vpack.c.bf16 %v838_v3, %v838_v3  ;;  %v836_v15 = vmax.f32 %v772_v5, 0.0  ;;  %v868_v16 = vmax.f32 %v804_v6, 0.0 }
 0x10b   :  { %v1394_v14 = vpack.c.bf16 %v870_v4, %v870_v4  ;;  %1154 = vst.msk [vmem:[%s2130_s4 + $0x44] sm:$0xf] %vm1136_vm3, %v1357_v7  ;;  %v775_v17 = vadd.f32 %v1740_v43, %v704_v9  ;;  %v807_v18 = vadd.f32 %v1740_v43, %v736_v10  ;;  %v702_v19 = vmul.f32 %v1735_v41, %v502_v11  ;;  %v515_v31 = vpop.f32.mrf.mxu0  ;;  %v643_v32 = vpop.f32.mrf.mxu1 }
 0x10c   :  { %1186 = vst.msk [vmem:[%s2130_s4 + $0xc4] sm:$0xf] %vm1136_vm3, %v1389_v8  ;;  %v734_v20 = vmul.f32 %v1735_v41, %v630_v12  ;;  %1159 = vst.msk [vmem:[%s2130_s4 + $0x58] sm:$0xf] %vm1136_vm3, %v1362_v13  ;;  %v1360_v23 = vpack.c.bf16 %v836_v15, %v836_v15  ;;  %v1392_v24 = vpack.c.bf16 %v868_v16, %v868_v16 }
 0x10d   :  { %1191 = vst.msk [vmem:[%s2130_s4 + $0xd8] sm:$0xf] %vm1136_vm3, %v1394_v14  ;;  %v707_v25 = vmul.f32 %v1477_v21, %v1735_v41  ;;  %v739_v26 = vmul.f32 %v1509_v22, %v1735_v41  ;;  %v839_v27 = vmax.f32 %v775_v17, 0.0  ;;  %v871_v28 = vmax.f32 %v807_v18, 0.0  ;;  %v1478_v42 = vpop.f32.mrf.mxu0  ;;  %v1510_v44 = vpop.f32.mrf.mxu1 }
 0x10e   :  { %v773_v29 = vadd.f32 %v1740_v43, %v702_v19  ;;  %v805_v30 = vadd.f32 %v1740_v43, %v734_v20  ;;  %1157 = vst.msk [vmem:[%s2130_s4 + $0x50] sm:$0xf] %vm1136_vm3, %v1360_v23  ;;  %1189 = vst.msk [vmem:[%s2130_s4 + $0xd0] sm:$0xf] %vm1136_vm3, %v1392_v24  ;;  %v705_v35 = vmul.f32 %v1735_v41, %v515_v31 }
 0x10f   :  { %v778_v33 = vadd.f32 %v1740_v43, %v707_v25  ;;  %v810_v34 = vadd.f32 %v1740_v43, %v739_v26  ;;  %v737_v36 = vmul.f32 %v1735_v41, %v643_v32  ;;  %v1363_v37 = vpack.c.bf16 %v839_v27, %v839_v27  ;;  %v518_v53 = vpop.f32.mrf.mxu0  ;;  %v646_v54 = vpop.f32.mrf.mxu1 }
 0x110   :  { %v1395_v38 = vpack.c.bf16 %v871_v28, %v871_v28  ;;  %v837_v39 = vmax.f32 %v773_v29, 0.0  ;;  %v869_v40 = vmax.f32 %v805_v30, 0.0  ;;  %v776_v47 = vadd.f32 %v1740_v43, %v705_v35 }
 0x111   :  { %v842_v45 = vmax.f32 %v778_v33, 0.0  ;;  %v874_v46 = vmax.f32 %v810_v34, 0.0  ;;  %v808_v48 = vadd.f32 %v1740_v43, %v737_v36  ;;  %1160 = vst.msk [vmem:[%s2130_s4 + $0x5c] sm:$0xf] %vm1136_vm3, %v1363_v37  ;;  %v708_v51 = vmul.f32 %v1478_v42, %v1735_v41  ;;  %v1481_v63 = vpop.f32.mrf.mxu0  ;;  %v1513_v0 = vpop.f32.mrf.mxu1 }
 0x112   :  { %1192 = vst.msk [vmem:[%s2130_s4 + $0xdc] sm:$0xf] %vm1136_vm3, %v1395_v38  ;;  %v1361_v49 = vpack.c.bf16 %v837_v39, %v837_v39  ;;  %v1393_v50 = vpack.c.bf16 %v869_v40, %v869_v40  ;;  %v740_v52 = vmul.f32 %v1510_v44, %v1735_v41  ;;  %v840_v57 = vmax.f32 %v776_v47, 0.0 }
 0x113   :  { %v1366_v55 = vpack.c.bf16 %v842_v45, %v842_v45  ;;  %v1398_v56 = vpack.c.bf16 %v874_v46, %v874_v46  ;;  %v872_v58 = vmax.f32 %v808_v48, 0.0  ;;  %v779_v59 = vadd.f32 %v1740_v43, %v708_v51  ;;  %v531_v9 = vpop.f32.mrf.mxu0  ;;  %v659_v10 = vpop.f32.mrf.mxu1 }
 0x114   :  { %1158 = vst.msk [vmem:[%s2130_s4 + $0x54] sm:$0xf] %vm1136_vm3, %v1361_v49  ;;  %1190 = vst.msk [vmem:[%s2130_s4 + $0xd4] sm:$0xf] %vm1136_vm3, %v1393_v50  ;;  %v811_v60 = vadd.f32 %v1740_v43, %v740_v52  ;;  %v706_v61 = vmul.f32 %v1735_v41, %v518_v53  ;;  %v738_v62 = vmul.f32 %v1735_v41, %v646_v54 }
 0x115   :  { %1163 = vst.msk [vmem:[%s2130_s4 + $0x68] sm:$0xf] %vm1136_vm3, %v1366_v55  ;;  %1195 = vst.msk [vmem:[%s2130_s4 + $0xe8] sm:$0xf] %vm1136_vm3, %v1398_v56  ;;  %v1364_v1 = vpack.c.bf16 %v840_v57, %v840_v57  ;;  %v1396_v2 = vpack.c.bf16 %v872_v58, %v872_v58  ;;  %v711_v3 = vmul.f32 %v1481_v63, %v1735_v41  ;;  %v843_v5 = vmax.f32 %v779_v59, 0.0  ;;  %v1482_v19 = vpop.f32.mrf.mxu0  ;;  %v1514_v20 = vpop.f32.mrf.mxu1 }
 0x116   :  { %v743_v4 = vmul.f32 %v1513_v0, %v1735_v41  ;;  %v875_v6 = vmax.f32 %v811_v60, 0.0  ;;  %v777_v7 = vadd.f32 %v1740_v43, %v706_v61  ;;  %v809_v8 = vadd.f32 %v1740_v43, %v738_v62 }
 0x117   :  { %1161 = vst.msk [vmem:[%s2130_s4 + $0x60] sm:$0xf] %vm1136_vm3, %v1364_v1  ;;  %1193 = vst.msk [vmem:[%s2130_s4 + $0xe0] sm:$0xf] %vm1136_vm3, %v1396_v2  ;;  %v782_v11 = vadd.f32 %v1740_v43, %v711_v3  ;;  %v709_v13 = vmul.f32 %v1735_v41, %v531_v9  ;;  %v741_v14 = vmul.f32 %v1735_v41, %v659_v10  ;;  %v534_v29 = vpop.f32.mrf.mxu0  ;;  %v662_v30 = vpop.f32.mrf.mxu1 }
 0x118   :  { %v814_v12 = vadd.f32 %v1740_v43, %v743_v4  ;;  %v1367_v15 = vpack.c.bf16 %v843_v5, %v843_v5  ;;  %v1399_v16 = vpack.c.bf16 %v875_v6, %v875_v6  ;;  %v841_v17 = vmax.f32 %v777_v7, 0.0 }
 0x119   :  { %v873_v18 = vmax.f32 %v809_v8, 0.0  ;;  %v846_v21 = vmax.f32 %v782_v11, 0.0  ;;  %v780_v23 = vadd.f32 %v1740_v43, %v709_v13  ;;  %v812_v24 = vadd.f32 %v1740_v43, %v741_v14 }
 0x11a   :  { %v878_v22 = vmax.f32 %v814_v12, 0.0  ;;  %1164 = vst.msk [vmem:[%s2130_s4 + $0x6c] sm:$0xf] %vm1136_vm3, %v1367_v15  ;;  %1196 = vst.msk [vmem:[%s2130_s4 + $0xec] sm:$0xf] %vm1136_vm3, %v1399_v16  ;;  %v1365_v25 = vpack.c.bf16 %v841_v17, %v841_v17  ;;  %v712_v27 = vmul.f32 %v1482_v19, %v1735_v41  ;;  %v744_v28 = vmul.f32 %v1514_v20, %v1735_v41 }
 0x11b   :  { %v1397_v26 = vpack.c.bf16 %v873_v18, %v873_v18  ;;  %v1370_v31 = vpack.c.bf16 %v846_v21, %v846_v21  ;;  %v844_v33 = vmax.f32 %v780_v23, 0.0  ;;  %v876_v34 = vmax.f32 %v812_v24, 0.0 }
 0x11c   :  { %v1402_v32 = vpack.c.bf16 %v878_v22, %v878_v22  ;;  %1162 = vst.msk [vmem:[%s2130_s4 + $0x64] sm:$0xf] %vm1136_vm3, %v1365_v25  ;;  %v783_v35 = vadd.f32 %v1740_v43, %v712_v27  ;;  %v815_v36 = vadd.f32 %v1740_v43, %v744_v28  ;;  %v710_v37 = vmul.f32 %v1735_v41, %v534_v29 }
 0x11d   :  { %1194 = vst.msk [vmem:[%s2130_s4 + $0xe4] sm:$0xf] %vm1136_vm3, %v1397_v26  ;;  %v742_v38 = vmul.f32 %v1735_v41, %v662_v30  ;;  %1167 = vst.msk [vmem:[%s2130_s4 + $0x78] sm:$0xf] %vm1136_vm3, %v1370_v31  ;;  %v1368_v39 = vpack.c.bf16 %v844_v33, %v844_v33  ;;  %v1400_v40 = vpack.c.bf16 %v876_v34, %v876_v34 }
 0x11e   :  { %1199 = vst.msk [vmem:[%s2130_s4 + $0xf8] sm:$0xf] %vm1136_vm3, %v1402_v32  ;;  %v847_v42 = vmax.f32 %v783_v35, 0.0  ;;  %v879_v44 = vmax.f32 %v815_v36, 0.0  ;;  %v781_v45 = vadd.f32 %v1740_v43, %v710_v37 }
 0x11f   :  { %v813_v46 = vadd.f32 %v1740_v43, %v742_v38  ;;  %1165 = vst.msk [vmem:[%s2130_s4 + $0x70] sm:$0xf] %vm1136_vm3, %v1368_v39  ;;  %1197 = vst.msk [vmem:[%s2130_s4 + $0xf0] sm:$0xf] %vm1136_vm3, %v1400_v40 }
 0x120   :  { %v1371_v41 = vpack.c.bf16 %v847_v42, %v847_v42  ;;  %v1403_v47 = vpack.c.bf16 %v879_v44, %v879_v44  ;;  %v845_v48 = vmax.f32 %v781_v45, 0.0 }
 0x121   :  { %v877_v49 = vmax.f32 %v813_v46, 0.0 }
 0x122   :  { %1168 = vst.msk [vmem:[%s2130_s4 + $0x7c] sm:$0xf] %vm1136_vm3, %v1371_v41  ;;  %1200 = vst.msk [vmem:[%s2130_s4 + $0xfc] sm:$0xf] %vm1136_vm3, %v1403_v47  ;;  %v1369_v43 = vpack.c.bf16 %v845_v48, %v845_v48 }
 0x123   :  { %v1401_v50 = vpack.c.bf16 %v877_v49, %v877_v49 }
 0x124   :  { %1166 = vst.msk [vmem:[%s2130_s4 + $0x74] sm:$0xf] %vm1136_vm3, %v1369_v43 }
 0x125   :  { %1198 = vst.msk [vmem:[%s2130_s4 + $0xf4] sm:$0xf] %vm1136_vm3, %v1401_v50 }

// kernel: densenet_forward.10
= control target key start
LH: loop header
LB: loop body
LE: loop exit
PB: predicated region body
PF: predicated region fallthrough
CT: control target
= control target key end

     0   :  { %v497_v0 = vmov 0.0   ;;  %vm498_vm0 = vmmov 0   ;;  %vm130_vm1 = vcmask 523264   ;;  %vm192_vm2 = vcmask 261120   ;;  %s653_s0 = inlined_call_operand.vmem [shape: bf16[128,32], index: 0, kind: input, shape index: {}]   ;;  %s654_s1 = inlined_call_operand.vmem [shape: f32[1,32], index: 1, kind: input, shape index: {}]   ;;  %s655_s2 = inlined_call_operand.vmem [shape: f32[1,32], index: 2, kind: input, shape index: {}]   ;;  %s656_s4 = inlined_call_operand.vmem [shape: bf16[32,16], index: 4, kind: input, shape index: {}]   ;;  %s657_s3 = inlined_call_operand.vmem [shape: bf16[16,64], index: 3, kind: input, shape index: {}]   ;;  %s658_s5 = inlined_call_operand.vmem [shape: bf16[32,16], index: 5, kind: output, shape index: {}]  }
   0x1   :  { %449 = vmatprep.subr.bf16.mxu0 %v497_v0  ;;  %v428_v1 = vld [vmem:[%s653_s0 + $0x18] sm:$0xff]   ;;  %v536_v2 = vld [vmem:[%s654_s1] ss:$0 sm:$0xff]  ;;  %457 = vmatprep.mubr.msk.bf16.mxu0 %vm498_vm0, %v497_v0  ;;  %v427_v5 = vld [vmem:[%s653_s0 + $0x10] sm:$0xff]   ;;  %vm245_vm3 = vcmask 125952  }
   0x2   :  { %v408_v3 = vunpack.c.l.bf16 %v428_v1  ;;  %v409_v4 = vunpack.c.h.bf16 %v428_v1  ;;  %v426_v6 = vld [vmem:[%s653_s0 + $0x8] sm:$0xff]   ;;  %v395_v7 = vld [vmem:[%s653_s0] sm:$0xff]   ;;  %461 = vmatprep.subr.bf16.mxu1 %v497_v0  ;;  %465 = vmatprep.mubr.msk.bf16.mxu1 %vm498_vm0, %v497_v0  ;;  %v404_v9 = vunpack.c.l.bf16 %v427_v5  ;;  %v405_v10 = vunpack.c.h.bf16 %v427_v5  ;;  %v432_v46 = vld [vmem:[%s653_s0 + $0x38] sm:$0xff]  }
   0x3   :  { %v555_v8 = vld [vmem:[%s655_s2] ss:$0 sm:$0xff]  ;;  %v400_v11 = vunpack.c.l.bf16 %v426_v6  ;;  %v401_v12 = vunpack.c.h.bf16 %v426_v6  ;;  %v396_v15 = vunpack.c.l.bf16 %v395_v7  ;;  %v397_v16 = vunpack.c.h.bf16 %v395_v7  ;;  %v492_v17 = vld [vmem:[%s656_s4 + $0x8] sm:$0xff]   ;;  %v431_v49 = vld [vmem:[%s653_s0 + $0x30] sm:$0xff]  }
   0x4   :  { %v66_v13 = vmul.f32 %v408_v3, %v536_v2  ;;  %v67_v14 = vmul.f32 %v409_v4, %v536_v2  ;;  %v64_v18 = vmul.f32 %v404_v9, %v536_v2  ;;  %v65_v19 = vmul.f32 %v405_v10, %v536_v2  ;;  %462 = vmatpush3.bf16.msra.mxu1 %v492_v17  ;;  %v491_v44 = vld [vmem:[%s657_s3] sm:$0xff]   ;;  %v430_v54 = vld [vmem:[%s653_s0 + $0x28] sm:$0xff]  }
   0x5   :  { %v62_v20 = vmul.f32 %v400_v11, %v536_v2  ;;  %v63_v21 = vmul.f32 %v401_v12, %v536_v2  ;;  %v60_v26 = vmul.f32 %v396_v15, %v536_v2  ;;  %v61_v27 = vmul.f32 %v397_v16, %v536_v2  ;;  %463 = vmatprep.subr.bf16.mxu1 %v497_v0  ;;  %v493_v45 = vld [vmem:[%s656_s4] sm:$0xff]  }
   0x6   :  { %v89_v22 = vadd.f32 %v555_v8, %v66_v13  ;;  %v90_v23 = vadd.f32 %v555_v8, %v67_v14  ;;  %v87_v24 = vadd.f32 %v555_v8, %v64_v18  ;;  %v88_v25 = vadd.f32 %v555_v8, %v65_v19  ;;  %v429_v61 = vld [vmem:[%s653_s0 + $0x20] sm:$0xff]  }
   0x7   :  { %v85_v30 = vadd.f32 %v555_v8, %v62_v20  ;;  %v86_v31 = vadd.f32 %v555_v8, %v63_v21  ;;  %v83_v35 = vadd.f32 %v555_v8, %v60_v26  ;;  %v84_v39 = vadd.f32 %v555_v8, %v61_v27 }
   0x8   :  { %v105_v28 = vmax.f32 %v89_v22, 0.0  ;;  %v106_v29 = vmax.f32 %v90_v23, 0.0  ;;  %v103_v32 = vmax.f32 %v87_v24, 0.0  ;;  %v104_v33 = vmax.f32 %v88_v25, 0.0  ;;  %464 = vmatpush3.bf16.msra.mxu1 %v493_v45 }
   0x9   :  { %v101_v37 = vmax.f32 %v85_v30, 0.0  ;;  %v102_v38 = vmax.f32 %v86_v31, 0.0  ;;  %v99_v41 = vmax.f32 %v83_v35, 0.0  ;;  %v100_v42 = vmax.f32 %v84_v39, 0.0  ;;  %469 = vmatprep.subr.bf16.mxu1 %v497_v0  ;;  %v496_v30 = vld [vmem:[%s656_s4] sm:$0xff]  }
   0xa   :  { %v118_v34 = vpack.c.bf16 %v106_v29, %v105_v28  ;;  %v117_v36 = vpack.c.bf16 %v104_v33, %v103_v32  ;;  %v424_v47 = vunpack.c.l.bf16 %v432_v46  ;;  %v425_v48 = vunpack.c.h.bf16 %v432_v46  ;;  %v494_v29 = vld [vmem:[%s657_s3] sm:$0xff]  }
   0xb   :  { %v116_v40 = vpack.c.bf16 %v102_v38, %v101_v37  ;;  %v115_v43 = vpack.c.bf16 %v100_v42, %v99_v41  ;;  %v420_v52 = vunpack.c.l.bf16 %v431_v49  ;;  %v421_v53 = vunpack.c.h.bf16 %v431_v49 }
   0xc   :  { %450 = vmatpush3.bf16.msra.mxu0 %v118_v34  ;;  %v74_v50 = vmul.f32 %v424_v47, %v536_v2  ;;  %v75_v51 = vmul.f32 %v425_v48, %v536_v2  ;;  %v416_v59 = vunpack.c.l.bf16 %v430_v54  ;;  %v417_v60 = vunpack.c.h.bf16 %v430_v54 }
   0xd   :  { %451 = vmatprep.subr.bf16.mxu0 %v497_v0  ;;  %v72_v57 = vmul.f32 %v420_v52, %v536_v2  ;;  %v73_v58 = vmul.f32 %v421_v53, %v536_v2  ;;  %v412_v7 = vunpack.c.l.bf16 %v429_v61  ;;  %v413_v9 = vunpack.c.h.bf16 %v429_v61 }
   0xe   :  { %v97_v55 = vadd.f32 %v555_v8, %v74_v50  ;;  %v98_v56 = vadd.f32 %v555_v8, %v75_v51  ;;  %v70_v5 = vmul.f32 %v416_v59, %v536_v2  ;;  %v71_v6 = vmul.f32 %v417_v60, %v536_v2 }
   0xf   :  { %v95_v1 = vadd.f32 %v555_v8, %v72_v57  ;;  %v96_v3 = vadd.f32 %v555_v8, %v73_v58  ;;  %v68_v17 = vmul.f32 %v412_v7, %v536_v2  ;;  %v69_v18 = vmul.f32 %v413_v9, %v536_v2 }
  0x10   :  { %452 = vmatpush3.bf16.msra.mxu0 %v117_v36  ;;  %v113_v62 = vmax.f32 %v97_v55, 0.0  ;;  %v114_v63 = vmax.f32 %v98_v56, 0.0  ;;  %v93_v15 = vadd.f32 %v555_v8, %v70_v5  ;;  %v94_v16 = vadd.f32 %v555_v8, %v71_v6 }
  0x11   :  { %453 = vmatprep.subr.bf16.mxu0 %v497_v0  ;;  %v111_v12 = vmax.f32 %v95_v1, 0.0  ;;  %v112_v13 = vmax.f32 %v96_v3, 0.0  ;;  %v91_v24 = vadd.f32 %v555_v8, %v68_v17  ;;  %v92_v25 = vadd.f32 %v555_v8, %v69_v18  ;;  %v495_v8 = vld [vmem:[%s656_s4 + $0x8] sm:$0xff]  }
  0x12   :  { %v122_v11 = vpack.c.bf16 %v114_v63, %v113_v62  ;;  %v109_v22 = vmax.f32 %v93_v15, 0.0  ;;  %v110_v23 = vmax.f32 %v94_v16, 0.0 }
  0x13   :  { %v121_v21 = vpack.c.bf16 %v112_v13, %v111_v12  ;;  %v107_v2 = vmax.f32 %v91_v24, 0.0  ;;  %v108_v27 = vmax.f32 %v92_v25, 0.0 }
  0x14   :  { %454 = vmatpush3.bf16.msra.mxu0 %v116_v40  ;;  %v120_v26 = vpack.c.bf16 %v110_v23, %v109_v22 }
  0x15   :  { %455 = vmatprep.subr.bf16.mxu0 %v497_v0  ;;  %v119_v28 = vpack.c.bf16 %v108_v27, %v107_v2 }
  0x18   :  { %456 = vmatpush3.bf16.msra.mxu0 %v115_v43 }
  0x19   :  { %481 = vmatprep.subr.bf16.mxu0 %v497_v0 }
  0x1b   :  { %458 = vmatmul.mubr.msk.bf16.vlgmr.msra.gmra.mxu0 %vm130_vm1, %v491_v44 }
  0x1c   :  { %485 = vmatprep.mubr.msk.bf16.mxu0 %vm498_vm0, %v497_v0  ;;  %482 = vmatpush3.bf16.msra.mxu0 %v495_v8 }
  0x1d   :  { %483 = vmatprep.subr.bf16.mxu0 %v497_v0 }
  0x20   :  { %484 = vmatpush3.bf16.msra.mxu0 %v496_v30 }
  0xdb   :  { %v168_v4 = vpop.f32.mrf.mxu0 }
  0xdd   :  { %v459_v10 = vpop.f32.mrf.mxu0 }
  0xdf   :  { %v171_v14 = vpop.f32.mrf.mxu0 }
  0xe0   :  { %v175_v19 = vpack.c.bf16 %v171_v14, %v168_v4 }
  0xe1   :  { %v460_v20 = vpop.f32.mrf.mxu0 }
  0xe2   :  { %466 = vmatmul.mubr.msk.bf16.vlgmr.msra.gmra.mxu1 %vm192_vm2, %v175_v19 }
  0xe3   :  { %470 = vmatpush3.bf16.msra.mxu1 %v122_v11  ;;  %477 = vmatprep.mubr.msk.bf16.mxu1 %vm498_vm0, %v497_v0 }
  0xe4   :  { %471 = vmatprep.subr.bf16.mxu1 %v497_v0 }
  0xe7   :  { %472 = vmatpush3.bf16.msra.mxu1 %v121_v21 }
  0xe8   :  { %473 = vmatprep.subr.bf16.mxu1 %v497_v0 }
  0xeb   :  { %474 = vmatpush3.bf16.msra.mxu1 %v120_v26 }
  0xec   :  { %475 = vmatprep.subr.bf16.mxu1 %v497_v0 }
  0xef   :  { %476 = vmatpush3.bf16.msra.mxu1 %v119_v28 }
  0xf2   :  { %478 = vmatmul.mubr.msk.bf16.vlgmr.msra.gmra.mxu1 %vm130_vm1, %v494_v29 }
 0x1a2   :  { %v230_v31 = vpop.f32.mrf.mxu1 }
 0x1a3   :  { %v390_v32 = vpack.c.bf16 %v230_v31, %v230_v31 }
 0x1a4   :  { %v467_v33 = vpop.f32.mrf.mxu1 }
 0x1a5   :  { %246 = vst.msk [vmem:[%s658_s5] sm:$0xf] %vm245_vm3, %v390_v32 }
 0x1a6   :  { %v233_v34 = vpop.f32.mrf.mxu1 }
 0x1a7   :  { %v391_v35 = vpack.c.bf16 %v233_v34, %v233_v34 }
 0x1a8   :  { %v468_v36 = vpop.f32.mrf.mxu1 }
 0x1a9   :  { %247 = vst.msk [vmem:[%s658_s5 + $0x4] sm:$0xf] %vm245_vm3, %v391_v35 }
 0x1b2   :  { %v292_v0 = vpop.f32.mrf.mxu1 }
 0x1b4   :  { %v479_v37 = vpop.f32.mrf.mxu1 }
 0x1b6   :  { %v295_v38 = vpop.f32.mrf.mxu1 }
 0x1b7   :  { %v299_v39 = vpack.c.bf16 %v295_v38, %v292_v0 }
 0x1b8   :  { %v480_v40 = vpop.f32.mrf.mxu1 }
 0x1b9   :  { %486 = vmatmul.mubr.msk.bf16.vlgmr.msra.gmra.mxu0 %vm192_vm2, %v299_v39 }
 0x279   :  { %v353_v41 = vpop.f32.mrf.mxu0 }
 0x27a   :  { %v392_v42 = vpack.c.bf16 %v353_v41, %v353_v41 }
 0x27b   :  { %v487_v43 = vpop.f32.mrf.mxu0 }
 0x27c   :  { %368 = vst.msk [vmem:[%s658_s5 + $0x8] sm:$0xf] %vm245_vm3, %v392_v42 }
 0x27d   :  { %v356_v44 = vpop.f32.mrf.mxu0 }
 0x27e   :  { %v393_v45 = vpack.c.bf16 %v356_v44, %v356_v44 }
 0x27f   :  { %v488_v46 = vpop.f32.mrf.mxu0 }
 0x280   :  { %369 = vst.msk [vmem:[%s658_s5 + $0xc] sm:$0xf] %vm245_vm3, %v393_v45 }

// kernel: densenet_forward.8
= control target key start
LH: loop header
LB: loop body
LE: loop exit
PB: predicated region body
PF: predicated region fallthrough
CT: control target
= control target key end

     0   :  { %vm137_vm0 = vcmask 130048   ;;  %vm329_vm1 = vcmask 125952   ;;  %vm331_vm2 = vcmask 122880   ;;  %vm1094_vm3 = vcmask 1042432   ;;  %s3076_s12 = smov 16   ;;  %s3077_s13 = smov 96   ;;  %s4456_s3 = inlined_call_operand.vmem [shape: bf16[16,16], index: 3, kind: input, shape index: {}]   ;;  %s4457_s0 = inlined_call_operand.vmem [shape: bf16[128,16], index: 0, kind: input, shape index: {}]   ;;  %s4458_s1 = inlined_call_operand.vmem [shape: f32[1,16], index: 1, kind: input, shape index: {}]   ;;  %s4459_s2 = inlined_call_operand.vmem [shape: f32[1,16], index: 2, kind: input, shape index: {}]   ;;  %s4460_s4 = inlined_call_operand.vmem [shape: f32[1,16], index: 4, kind: input, shape index: {}]   ;;  %s4461_s5 = inlined_call_operand.vmem [shape: f32[1,16], index: 5, kind: input, shape index: {}]   ;;  %s4462_s6 = inlined_call_operand.vmem [shape: bf16[144,8], index: 6, kind: input, shape index: {}]   ;;  %s4463_s7 = inlined_call_operand.vmem [shape: bf16[128,24], index: 7, kind: output, shape index: {}]  }
   0x1   :  { %v3041_v0 = vld [vmem:[%s4456_s3] sm:$0xff]   ;;  %v3150_v7 = vld [vmem:[%s4457_s0 + $0x8] sm:$0xf]  ;;  %v3155_v8 = vld [vmem:[%s4457_s0 + $0xc] sm:$0xf]  ;;  %vm1095_vm4 = vcmask 1046532  }
   0x2   :  { %v3128_v1 = vld [vmem:[%s4457_s0] sm:$0xf]  ;;  %v3133_v2 = vld [vmem:[%s4457_s0 + $0x4] sm:$0xf]  ;;  %2997 = vmatprep.subr.bf16.mxu0 %v3041_v0  ;;  %4482 = vst [vmem:[#allocation6_spill] sm:$0xff] %v3150_v7  ;;  %4483 = vst [vmem:[#allocation7_spill] sm:$0xff] %v3155_v8  ;;  %v45_v9 = vunpack.c.l.bf16 %v3150_v7  ;;  %v46_v10 = vunpack.c.l.bf16 %v3155_v8 }
   0x3   :  { %4480 = vst [vmem:[#allocation4_spill] sm:$0xff] %v3128_v1  ;;  %4481 = vst [vmem:[#allocation5_spill] sm:$0xff] %v3133_v2  ;;  %v3138_v3 = vld [vmem:[%s4458_s1] ss:$0 sm:$0xff]  ;;  %v43_v4 = vunpack.c.l.bf16 %v3128_v1  ;;  %v44_v5 = vunpack.c.l.bf16 %v3133_v2  ;;  %2998 = vmatpush3.bf16.msra.mxu0 %v3041_v0  ;;  %v3162_v11 = vld [vmem:[%s4457_s0 + $0x10] sm:$0xf] }
   0x4   :  { %v3145_v6 = vld [vmem:[%s4459_s2] ss:$0 sm:$0xff]  ;;  %4484 = vst [vmem:[#allocation8_spill] sm:$0xff] %v3162_v11  ;;  %v3167_v12 = vld [vmem:[%s4457_s0 + $0x14] sm:$0xf]  ;;  %v47_v16 = vunpack.c.l.bf16 %v3162_v11  ;;  %v68_v19 = vmul.f32 %v3138_v3, %v45_v9  ;;  %v69_v20 = vmul.f32 %v3138_v3, %v46_v10  ;;  %vm3353_vm5 = vmor %vm1094_vm3, %vm1095_vm4  ;;  %s3078_s1 = smov 112  }
   0x5   :  { %4485 = vst [vmem:[#allocation9_spill] sm:$0xff] %v3167_v12  ;;  %v3172_v13 = vld [vmem:[%s4457_s0 + $0x18] sm:$0xf]  ;;  %v66_v14 = vmul.f32 %v3138_v3, %v43_v4  ;;  %v67_v15 = vmul.f32 %v3138_v3, %v44_v5  ;;  %v48_v17 = vunpack.c.l.bf16 %v3167_v12  ;;  %v3181_v18 = vld [vmem:[%s4457_s0 + $0x1c] sm:$0xf]  ;;  %vm1013_vm9 = vcmask 257152  }
   0x6   :  { %4486 = vst [vmem:[#allocation10_spill] sm:$0xff] %v3172_v13  ;;  %4487 = vst [vmem:[#allocation11_spill] sm:$0xff] %v3181_v18  ;;  %v49_v21 = vunpack.c.l.bf16 %v3172_v13  ;;  %v50_v22 = vunpack.c.l.bf16 %v3181_v18  ;;  %v70_v25 = vmul.f32 %v3138_v3, %v47_v16  ;;  %v91_v27 = vadd.f32 %v3145_v6, %v68_v19  ;;  %v3198_v31 = vld [vmem:[%s4457_s0 + $0x20] sm:$0xf]  ;;  %v3205_v36 = vld [vmem:[%s4457_s0 + $0x24] sm:$0xf] }
   0x7   :  { %v89_v23 = vadd.f32 %v3145_v6, %v66_v14  ;;  %v90_v24 = vadd.f32 %v3145_v6, %v67_v15  ;;  %v71_v26 = vmul.f32 %v3138_v3, %v48_v17  ;;  %v92_v28 = vadd.f32 %v3145_v6, %v69_v20  ;;  %4488 = vst [vmem:[#allocation12_spill] sm:$0xff] %v3198_v31  ;;  %v3212_v41 = vld [vmem:[%s4457_s0 + $0x28] sm:$0xf]  ;;  %v3217_v42 = vld [vmem:[%s4457_s0 + $0x2c] sm:$0xf]  ;;  %s3081_s17 = smov 64  }
   0x8   :  { %v72_v29 = vmul.f32 %v3138_v3, %v49_v21  ;;  %v73_v30 = vmul.f32 %v3138_v3, %v50_v22  ;;  %v93_v34 = vadd.f32 %v3145_v6, %v70_v25  ;;  %4489 = vst [vmem:[#allocation13_spill] sm:$0xff] %v3205_v36  ;;  %v107_v37 = vmax.f32 %v91_v27, 0.0  ;;  %4490 = vst [vmem:[#allocation14_spill] sm:$0xff] %v3212_v41  ;;  %v3223_v47 = vld [vmem:[%s4457_s0 + $0x30] sm:$0xf] }
   0x9   :  { %v105_v32 = vmax.f32 %v89_v23, 0.0  ;;  %v106_v33 = vmax.f32 %v90_v24, 0.0  ;;  %v94_v35 = vadd.f32 %v3145_v6, %v71_v26  ;;  %v108_v38 = vmax.f32 %v92_v28, 0.0  ;;  %4491 = vst [vmem:[#allocation15_spill] sm:$0xff] %v3217_v42  ;;  %4492 = vst [vmem:[#allocation16_spill] sm:$0xff] %v3223_v47 }
   0xa   :  { %v95_v39 = vadd.f32 %v3145_v6, %v72_v29  ;;  %v96_v40 = vadd.f32 %v3145_v6, %v73_v30  ;;  %v109_v44 = vmax.f32 %v93_v34, 0.0  ;;  %v51_v46 = vunpack.c.l.bf16 %v3198_v31  ;;  %v3228_v48 = vld [vmem:[%s4457_s0 + $0x34] sm:$0xf]  ;;  %v3242_v60 = vld [vmem:[%s4457_s0 + $0x38] sm:$0xf] }
   0xb   :  { %v121_v43 = vpack.c.bf16 %v106_v33, %v105_v32  ;;  %v110_v45 = vmax.f32 %v94_v35, 0.0  ;;  %4493 = vst [vmem:[#allocation17_spill] sm:$0xff] %v3228_v48  ;;  %v122_v49 = vpack.c.bf16 %v108_v38, %v107_v37  ;;  %v52_v52 = vunpack.c.l.bf16 %v3205_v36  ;;  %4494 = vst [vmem:[#allocation18_spill] sm:$0xff] %v3242_v60  ;;  %v3251_v0 = vld [vmem:[%s4457_s0 + $0x3c] sm:$0xf]  ;;  %s3075_s0 = smov 32  }
   0xc   :  { %v111_v50 = vmax.f32 %v95_v39, 0.0  ;;  %v112_v51 = vmax.f32 %v96_v40, 0.0  ;;  %v74_v54 = vmul.f32 %v3138_v3, %v51_v46  ;;  %v53_v55 = vunpack.c.l.bf16 %v3212_v41  ;;  %4495 = vst [vmem:[#allocation19_spill] sm:$0xff] %v3251_v0 }
   0xd   :  { %2999 = vmatprep.mubr.msk.bf16.mxu0 %vm137_vm0, %v121_v43  ;;  %v123_v53 = vpack.c.bf16 %v110_v45, %v109_v44  ;;  %v54_v56 = vunpack.c.l.bf16 %v3217_v42  ;;  %v75_v57 = vmul.f32 %v3138_v3, %v52_v52  ;;  %v55_v58 = vunpack.c.l.bf16 %v3223_v47 }
   0xe   :  { %3000 = vmatmul.mubr.msk.bf16.vlgmr.msra.gmra.mxu0 %vm137_vm0, %v122_v49  ;;  %v56_v59 = vunpack.c.l.bf16 %v3228_v48  ;;  %v97_v61 = vadd.f32 %v3145_v6, %v74_v54  ;;  %v76_v62 = vmul.f32 %v3138_v3, %v53_v55  ;;  %v124_v10 = vpack.c.bf16 %v112_v51, %v111_v50 }
   0xf   :  { %3003 = vmatprep.mubr.msk.bf16.mxu0 %vm137_vm0, %v123_v53  ;;  %v77_v63 = vmul.f32 %v3138_v3, %v54_v56  ;;  %v98_v4 = vadd.f32 %v3145_v6, %v75_v57  ;;  %v78_v5 = vmul.f32 %v3138_v3, %v55_v58  ;;  %v57_v15 = vunpack.c.l.bf16 %v3242_v60 }
  0x10   :  { %v79_v9 = vmul.f32 %v3138_v3, %v56_v59  ;;  %v113_v14 = vmax.f32 %v97_v61, 0.0  ;;  %v99_v17 = vadd.f32 %v3145_v6, %v76_v62  ;;  %v58_v20 = vunpack.c.l.bf16 %v3251_v0 }
  0x11   :  { %v114_v16 = vmax.f32 %v98_v4, 0.0  ;;  %v100_v19 = vadd.f32 %v3145_v6, %v77_v63  ;;  %v101_v21 = vadd.f32 %v3145_v6, %v78_v5  ;;  %v80_v26 = vmul.f32 %v3138_v3, %v57_v15 }
  0x12   :  { %v102_v22 = vadd.f32 %v3145_v6, %v79_v9  ;;  %v115_v24 = vmax.f32 %v99_v17, 0.0  ;;  %v81_v27 = vmul.f32 %v3138_v3, %v58_v20  ;;  %v3074_v3 = vmov 0  }
  0x13   :  { %v125_v23 = vpack.c.bf16 %v114_v16, %v113_v14  ;;  %v116_v25 = vmax.f32 %v100_v19, 0.0  ;;  %v117_v28 = vmax.f32 %v101_v21, 0.0  ;;  %v103_v32 = vadd.f32 %v3145_v6, %v80_v26  ;;  %337 = vst.msk [vmem:[#allocation2 + $0x18] sm:$0xf] %vm329_vm1, %v3074_v3  ;;  %330 = vst.msk [vmem:[#allocation2] sm:$0xf] %vm329_vm1, %v3074_v3  ;;  %2600 = vmatprep.subr.bf16.mxu0 %v3074_v3 }
  0x14   :  { %v118_v29 = vmax.f32 %v102_v22, 0.0  ;;  %v104_v33 = vadd.f32 %v3145_v6, %v81_v27  ;;  %338 = vst.msk [vmem:[#allocation2 + $0x1c] sm:$0x1] %vm331_vm2, %v3074_v3  ;;  %332 = vst.msk [vmem:[#allocation2 + $0x4] sm:$0x1] %vm331_vm2, %v3074_v3  ;;  %3015 = vmatprep.subr.bf16.mxu1 %v3074_v3  ;;  %vm1209_vm14 = vcmask 388352  }
  0x15   :  { %v126_v30 = vpack.c.bf16 %v116_v25, %v115_v24  ;;  %v119_v35 = vmax.f32 %v103_v32, 0.0  ;;  %333 = vst.msk [vmem:[#allocation2 + $0x8] sm:$0xf] %vm329_vm1, %v3074_v3  ;;  %335 = vst.msk [vmem:[#allocation2 + $0x10] sm:$0xf] %vm329_vm1, %v3074_v3  ;;  %vm1306_vm15 = vcmask 519552  }
  0x16   :  { %3004 = vmatmul.mubr.msk.bf16.gmra.mxu0 %vm137_vm0, %v124_v10  ;;  %v127_v34 = vpack.c.bf16 %v118_v29, %v117_v28  ;;  %v120_v37 = vmax.f32 %v104_v33, 0.0  ;;  %334 = vst.msk [vmem:[#allocation2 + $0xc] sm:$0x1] %vm331_vm2, %v3074_v3  ;;  %336 = vst.msk [vmem:[#allocation2 + $0x14] sm:$0x1] %vm331_vm2, %v3074_v3  ;;  %vm1820_vm3 = vcmask 781952  }
  0x17   :  { %3007 = vmatprep.mubr.msk.bf16.mxu0 %vm137_vm0, %v125_v23  ;;  %339 = vst.msk [vmem:[#allocation2 + $0x20] sm:$0xf] %vm329_vm1, %v3074_v3  ;;  %341 = vst.msk [vmem:[#allocation2 + $0x28] sm:$0xf] %vm329_vm1, %v3074_v3  ;;  %vm738_vm6 = vsmask.f32 3328 }
  0x18   :  { %v128_v38 = vpack.c.bf16 %v120_v37, %v119_v35  ;;  %340 = vst.msk [vmem:[#allocation2 + $0x24] sm:$0x1] %vm331_vm2, %v3074_v3  ;;  %342 = vst.msk [vmem:[#allocation2 + $0x2c] sm:$0x1] %vm331_vm2, %v3074_v3  ;;  %vm739_vm7 = vsmask.f32 7440 }
  0x19   :  { %343 = vst.msk [vmem:[#allocation2 + $0x30] sm:$0xf] %vm329_vm1, %v3074_v3  ;;  %345 = vst.msk [vmem:[#allocation2 + $0x38] sm:$0xf] %vm329_vm1, %v3074_v3  ;;  %vm573_vm10 = vsmask.f32 7938 }
  0x1a   :  { %344 = vst.msk [vmem:[#allocation2 + $0x34] sm:$0x1] %vm331_vm2, %v3074_v3  ;;  %346 = vst.msk [vmem:[#allocation2 + $0x3c] sm:$0x1] %vm331_vm2, %v3074_v3  ;;  %v1030_v51 = vld [vmem:[#allocation2] sm:$0xe] }
  0x1b   :  { %347 = vst.msk [vmem:[#allocation2 + $0x40] sm:$0xf] %vm329_vm1, %v3074_v3  ;;  %349 = vst.msk [vmem:[#allocation2 + $0x48] sm:$0xf] %vm329_vm1, %v3074_v3  ;;  %v1031_v52 = vld [vmem:[#allocation2 + $0x4] sm:$0x1] }
  0x1c   :  { %348 = vst.msk [vmem:[#allocation2 + $0x44] sm:$0x1] %vm331_vm2, %v3074_v3  ;;  %350 = vst.msk [vmem:[#allocation2 + $0x4c] sm:$0x1] %vm331_vm2, %v3074_v3  ;;  %v2859_v53 = vrot.slane %v1030_v51, 9  ;;  %v1099_v54 = vrot.slane %v1031_v52, 5 }
  0x1d   :  { %351 = vst.msk [vmem:[#allocation2 + $0x50] sm:$0xf] %vm329_vm1, %v3074_v3  ;;  %353 = vst.msk [vmem:[#allocation2 + $0x58] sm:$0xf] %vm329_vm1, %v3074_v3  ;;  %v706_v58 = vld [vmem:[#allocation2] sm:$0xf] }
  0x1e   :  { %3008 = vmatmul.mubr.msk.bf16.gmra.mxu0 %vm137_vm0, %v126_v30  ;;  %352 = vst.msk [vmem:[#allocation2 + $0x54] sm:$0x1] %vm331_vm2, %v3074_v3  ;;  %354 = vst.msk [vmem:[#allocation2 + $0x5c] sm:$0x1] %vm331_vm2, %v3074_v3  ;;  %v1100_v59 = vsel %vm3353_vm5, %v2859_v53, %v1099_v54  ;;  %v742_v63 = vshrl.u32 %v706_v58, 16  ;;  %v745_v5 = vshll.u32 %v706_v58, 16 }
  0x1f   :  { %3011 = vmatprep.mubr.msk.bf16.mxu0 %vm137_vm0, %v127_v34  ;;  %355 = vst.msk [vmem:[#allocation2 + $0x60] sm:$0xf] %vm329_vm1, %v3074_v3  ;;  %357 = vst.msk [vmem:[#allocation2 + $0x68] sm:$0xf] %vm329_vm1, %v3074_v3  ;;  %v707_v16 = vld [vmem:[#allocation2 + $0x4] sm:$0x1] }
  0x20   :  { %356 = vst.msk [vmem:[#allocation2 + $0x64] sm:$0x1] %vm331_vm2, %v3074_v3  ;;  %358 = vst.msk [vmem:[#allocation2 + $0x6c] sm:$0x1] %vm331_vm2, %v3074_v3  ;;  %v744_v17 = vrot.slane %v742_v63, 4  ;;  %v747_v20 = vrot.slane %v745_v5, 5 }
  0x21   :  { %359 = vst.msk [vmem:[#allocation2 + $0x70] sm:$0xf] %vm329_vm1, %v3074_v3  ;;  %361 = vst.msk [vmem:[#allocation2 + $0x78] sm:$0xf] %vm329_vm1, %v3074_v3  ;;  %v751_v23 = vshll.u32 %v707_v16, 16  ;;  %vm1918_vm4 = vcmask 913152  }
  0x22   :  { %360 = vst.msk [vmem:[#allocation2 + $0x74] sm:$0x1] %vm331_vm2, %v3074_v3  ;;  %362 = vst.msk [vmem:[#allocation2 + $0x7c] sm:$0x1] %vm331_vm2, %v3074_v3  ;;  %v1949_v4 = vld [vmem:[#allocation2 + $0x48] sm:$0xf]  ;;  %v748_v26 = vor.u32 %v747_v20, %v744_v17 }
  0x23   :  { %363 = vst.msk [vmem:[#allocation2 + $0x80] sm:$0xf] %vm329_vm1, %v3074_v3  ;;  %365 = vst.msk [vmem:[#allocation2 + $0x88] sm:$0xf] %vm329_vm1, %v3074_v3  ;;  %v2066_v9 = vshrl.u32 %v1949_v4, 16  ;;  %v2069_v10 = vshll.u32 %v1949_v4, 16 }
  0x24   :  { %364 = vst.msk [vmem:[#allocation2 + $0x84] sm:$0x1] %vm331_vm2, %v3074_v3  ;;  %366 = vst.msk [vmem:[#allocation2 + $0x8c] sm:$0x1] %vm331_vm2, %v3074_v3  ;;  %v1046_v6 = vld [vmem:[#allocation2 + $0x50] sm:$0xe] }
  0x25   :  { %367 = vst.msk [vmem:[#allocation2 + $0x90] sm:$0xf] %vm329_vm1, %v3074_v3  ;;  %369 = vst.msk [vmem:[#allocation2 + $0x98] sm:$0xf] %vm329_vm1, %v3074_v3  ;;  %v1047_v39 = vld [vmem:[#allocation2 + $0x54] sm:$0x1] }
  0x26   :  { %3012 = vmatmul.mubr.msk.bf16.gmra.mxu0 %vm137_vm0, %v128_v38  ;;  %368 = vst.msk [vmem:[#allocation2 + $0x94] sm:$0x1] %vm331_vm2, %v3074_v3  ;;  %370 = vst.msk [vmem:[#allocation2 + $0x9c] sm:$0x1] %vm331_vm2, %v3074_v3  ;;  %v2867_v40 = vrot.slane %v1046_v6, 9  ;;  %v1131_v43 = vrot.slane %v1047_v39, 5 }
  0x27   :  { %v722_v45 = vld [vmem:[#allocation2 + $0x50] sm:$0xf]  ;;  %v723_v57 = vld [vmem:[#allocation2 + $0x54] sm:$0x1]  ;;  %vm3363_vm8 = vmor %vm738_vm6, %vm739_vm7  ;;  %v2068_v25 = vrot.slane %v2066_v9, 4  ;;  %v2071_v27 = vrot.slane %v2069_v10, 5 }
  0x28   :  { %v1132_v46 = vsel %vm3353_vm5, %v2867_v40, %v1131_v43  ;;  %v854_v49 = vshrl.u32 %v722_v45, 16  ;;  %v857_v50 = vshll.u32 %v722_v45, 16  ;;  %v863_v62 = vshll.u32 %v723_v57, 16  ;;  %v1845_v22 = vld [vmem:[#allocation2 + $0x48] sm:$0xf]  ;;  %vm3405_vm12 = vmand %vm329_vm1, %vm573_vm10 }
  0x29   :  { %1177 = vrot.lane.b32.xlu0 %v1132_v46, %s3075_s0  ;;  %v1950_v24 = vld [vmem:[#allocation2 + $0x4c] sm:$0x1]  ;;  %1884 = vrot.lane.b32.xlu1 %v1845_v22, %s3077_s13  ;;  %v753_v29 = vrot.slane %v751_v23, 5  ;;  %v749_v30 = vrot.slane %v748_v26, 4  ;;  %v2072_v32 = vor.u32 %v2071_v27, %v2068_v25  ;;  %v3382_v6 = vld [vmem:[%s4460_s4] ss:$0 sm:$0xff] }
  0x2a   :  { %v856_v55 = vrot.slane %v854_v49, 4  ;;  %v859_v56 = vrot.slane %v857_v50, 5  ;;  %v865_v15 = vrot.slane %v863_v62, 5  ;;  %v2075_v28 = vshll.u32 %v1950_v24, 16  ;;  %v3389_v43 = vld [vmem:[%s4461_s5] ss:$0 sm:$0xff] }
  0x2b   :  { %v754_v34 = vsel %vm3363_vm8, %v749_v30, %v753_v29  ;;  %v2073_v35 = vrot.slane %v2072_v32, 4  ;;  %v682_v49 = vld [vmem:[#allocation2 + $0x50] sm:$0xf]  ;;  %v674_v58 = vld [vmem:[#allocation2] sm:$0xf]  ;;  %s3079_s4 = smov 48  }
  0x2c   :  { %v860_v61 = vor.u32 %v859_v56, %v856_v55  ;;  %v2077_v33 = vrot.slane %v2075_v28, 5  ;;  %698 = vst.msk [vmem:[#allocation3 + $0x40] sm:$0xf] %vm329_vm1, %v682_v49  ;;  %690 = vst.msk [vmem:[#allocation3] sm:$0xf] %vm329_vm1, %v674_v58  ;;  %s3080_s5 = smov 80  }
  0x2d   :  { %1161 = vrot.lane.b32.xlu0 %v1100_v59, %s3075_s0  ;;  %vm579_vm11 = vsmask.f32 256  ;;  %v590_v26 = vld [vmem:[#allocation2 + $0x18] sm:$0xf]  ;;  %v593_v27 = vld [vmem:[#allocation2 + $0x1c] sm:$0x1] }
  0x2e   :  { %v861_v14 = vrot.slane %v860_v61, 4  ;;  %v2078_v37 = vsel %vm3363_vm8, %v2073_v35, %v2077_v33  ;;  %vm3410_vm13 = vmand %vm331_vm2, %vm579_vm11  ;;  %vm1627_vm2 = vcmask 650752   ;;  %vm2239_vm6 = vcmask 1044352  }
  0x2f   :  { %2205 = vrot.lane.b32.xlu1 %v2078_v37, %s3078_s1 }
  0x30   :  { %v866_v21 = vsel %vm3363_vm8, %v861_v14, %v865_v15 }
  0x31   :  { %981 = vrot.lane.b32.xlu0 %v866_v21, %s3076_s12 }
  0x35   :  { %965 = vrot.lane.b32.xlu0 %v754_v34, %s3076_s12 }
  0x9b   :  { %v3377_v38 = vpop.permute.xlu0 %1177 }
  0x9f   :  { %v3384_v39 = vpop.permute.xlu0 %1161 }
  0xa3   :  { %v982_v53 = vpop.permute.xlu0 %981 }
  0xa4   :  { %1022 = vst.msk [vmem:[#allocation3 + $0x40] sm:$0xf] %vm1013_vm9, %v982_v53 }
  0xa5   :  { %1218 = vst.msk [vmem:[#allocation3 + $0x40] sm:$0xf] %vm1209_vm14, %v3377_v38 }
  0xa7   :  { %v966_v14 = vpop.permute.xlu0 %965 }
  0xa8   :  { %1014 = vst.msk [vmem:[#allocation3] sm:$0xf] %vm1013_vm9, %v966_v14 }
  0xa9   :  { %1210 = vst.msk [vmem:[#allocation3] sm:$0xf] %vm1209_vm14, %v3384_v39 }
  0xce   :  { %v3001_v40 = vpop.f32.mrf.mxu0 }
  0xcf   :  { %v268_v45 = vmul.f32 %v3001_v40, %v3382_v6 }
  0xd0   :  { %v196_v46 = vpop.f32.mrf.mxu0 }
  0xd1   :  { %v291_v50 = vadd.f32 %v3389_v43, %v268_v45  ;;  %v266_v51 = vmul.f32 %v3382_v6, %v196_v46  ;;  %v575_v45 = vld [vmem:[#allocation2 + $0x8] sm:$0xf]  ;;  %v581_v46 = vld [vmem:[#allocation2 + $0xc] sm:$0x1] }
  0xd2   :  { %v3002_v52 = vpop.f32.mrf.mxu0 }
  0xd3   :  { %v307_v54 = vmax.f32 %v291_v50, 0.0  ;;  %v289_v55 = vadd.f32 %v3389_v43, %v266_v51  ;;  %v269_v56 = vmul.f32 %v3002_v52, %v3382_v6 }
  0xd4   :  { %v199_v57 = vpop.f32.mrf.mxu0 }
  0xd5   :  { %v2958_v59 = vpack.c.bf16 %v307_v54, %v307_v54  ;;  %v305_v61 = vmax.f32 %v289_v55, 0.0  ;;  %v292_v62 = vadd.f32 %v3389_v43, %v269_v56  ;;  %v267_v63 = vmul.f32 %v3382_v6, %v199_v57 }
  0xd6   :  { %v3005_v4 = vpop.f32.mrf.mxu0 }
  0xd7   :  { %v428_v5 = vshrl.u32 %v2958_v59, 16  ;;  %v2956_v9 = vpack.c.bf16 %v305_v61, %v305_v61  ;;  %v308_v10 = vmax.f32 %v292_v62, 0.0  ;;  %v290_v15 = vadd.f32 %v3389_v43, %v267_v63 }
  0xd8   :  { %v272_v16 = vmul.f32 %v3005_v4, %v3382_v6  ;;  %v212_v17 = vpop.f32.mrf.mxu0  ;;  %v431_v21 = vshll.u32 %v2958_v59, 16 }
  0xd9   :  { %v430_v20 = vrot.slane %v428_v5, 7  ;;  %v412_v23 = vshrl.u32 %v2956_v9, 16  ;;  %v2959_v24 = vpack.c.bf16 %v308_v10, %v308_v10  ;;  %v415_v28 = vshll.u32 %v2956_v9, 16  ;;  %v596_v5 = vld [vmem:[#allocation2 + $0x20] sm:$0xf] }
  0xda   :  { %v306_v29 = vmax.f32 %v290_v15, 0.0  ;;  %v295_v30 = vadd.f32 %v3389_v43, %v272_v16  ;;  %v270_v32 = vmul.f32 %v3382_v6, %v212_v17  ;;  %v3006_v33 = vpop.f32.mrf.mxu0  ;;  %v599_v9 = vld [vmem:[#allocation2 + $0x24] sm:$0x1] }
  0xdb   :  { %v433_v34 = vor.u32 %v431_v21, %v430_v20  ;;  %v434_v35 = vrot.slane %v430_v20, 4  ;;  %v414_v37 = vrot.slane %v412_v23, 7  ;;  %v436_v40 = vshrl.u32 %v2959_v24, 16  ;;  %v584_v21 = vld [vmem:[#allocation2 + $0x10] sm:$0xf] }
  0xdc   :  { %v439_v49 = vshll.u32 %v2959_v24, 16  ;;  %v2957_v50 = vpack.c.bf16 %v306_v29, %v306_v29  ;;  %v311_v51 = vmax.f32 %v295_v30, 0.0  ;;  %v293_v52 = vadd.f32 %v3389_v43, %v270_v32  ;;  %v215_v62 = vpop.f32.mrf.mxu0  ;;  %v587_v23 = vld [vmem:[#allocation2 + $0x14] sm:$0x1] }
  0xdd   :  { %v591_v53 = vsel %vm3405_vm12, %v433_v34, %v590_v26  ;;  %v594_v54 = vsel %vm3410_vm13, %v434_v35, %v593_v27  ;;  %v417_v55 = vor.u32 %v415_v28, %v414_v37  ;;  %v418_v56 = vrot.slane %v414_v37, 4  ;;  %v614_v34 = vld [vmem:[#allocation2 + $0x38] sm:$0xf] }
  0xde   :  { %592 = vst [vmem:[#allocation2 + $0x18] sm:$0xf] %v591_v53  ;;  %595 = vst [vmem:[#allocation2 + $0x1c] sm:$0x1] %v594_v54  ;;  %v438_v57 = vrot.slane %v436_v40, 7  ;;  %v420_v58 = vshrl.u32 %v2957_v50, 16  ;;  %v2962_v61 = vpack.c.bf16 %v311_v51, %v311_v51  ;;  %v273_v14 = vmul.f32 %v3006_v33, %v3382_v6  ;;  %v3009_v54 = vpop.f32.mrf.mxu0 }
  0xdf   :  { %v423_v59 = vshll.u32 %v2957_v50, 16  ;;  %v576_v63 = vsel %vm3405_vm12, %v417_v55, %v575_v45  ;;  %v582_v4 = vsel %vm3410_vm13, %v418_v56, %v581_v46  ;;  %v309_v10 = vmax.f32 %v293_v52, 0.0  ;;  %v617_v50 = vld [vmem:[#allocation2 + $0x3c] sm:$0x1]  ;;  %v602_v51 = vld [vmem:[#allocation2 + $0x28] sm:$0xf] }
  0xe0   :  { %577 = vst [vmem:[#allocation2 + $0x8] sm:$0xf] %v576_v63  ;;  %583 = vst [vmem:[#allocation2 + $0xc] sm:$0x1] %v582_v4  ;;  %v441_v15 = vor.u32 %v439_v49, %v438_v57  ;;  %v442_v16 = vrot.slane %v438_v57, 4  ;;  %v422_v17 = vrot.slane %v420_v58, 7  ;;  %v296_v27 = vadd.f32 %v3389_v43, %v273_v14 }
  0xe1   :  { %v460_v20 = vshrl.u32 %v2962_v61, 16  ;;  %v463_v24 = vshll.u32 %v2962_v61, 16  ;;  %v2960_v26 = vpack.c.bf16 %v309_v10, %v309_v10  ;;  %v271_v28 = vmul.f32 %v3382_v6, %v215_v62  ;;  %v605_v52 = vld [vmem:[#allocation2 + $0x2c] sm:$0x1] }
  0xe2   :  { %v597_v29 = vsel %vm3405_vm12, %v441_v15, %v596_v5  ;;  %v600_v30 = vsel %vm3410_vm13, %v442_v16, %v599_v9  ;;  %v425_v32 = vor.u32 %v423_v59, %v422_v17  ;;  %v426_v33 = vrot.slane %v422_v17, 4 }
  0xe3   :  { %598 = vst [vmem:[#allocation2 + $0x20] sm:$0xf] %v597_v29  ;;  %601 = vst [vmem:[#allocation2 + $0x24] sm:$0x1] %v600_v30  ;;  %v462_v35 = vrot.slane %v460_v20, 7  ;;  %v444_v37 = vshrl.u32 %v2960_v26, 16  ;;  %v294_v53 = vadd.f32 %v3389_v43, %v271_v28  ;;  %v276_v5 = vmul.f32 %v3009_v54, %v3382_v6 }
  0xe4   :  { %v447_v40 = vshll.u32 %v2960_v26, 16  ;;  %v312_v45 = vmax.f32 %v296_v27, 0.0  ;;  %v585_v46 = vsel %vm3405_vm12, %v425_v32, %v584_v21  ;;  %v588_v49 = vsel %vm3410_vm13, %v426_v33, %v587_v23  ;;  %v228_v26 = vpop.f32.mrf.mxu0 }
  0xe5   :  { %586 = vst [vmem:[#allocation2 + $0x10] sm:$0xf] %v585_v46  ;;  %589 = vst [vmem:[#allocation2 + $0x14] sm:$0x1] %v588_v49  ;;  %v465_v55 = vor.u32 %v463_v24, %v462_v35  ;;  %v466_v56 = vrot.slane %v462_v35, 4  ;;  %v446_v57 = vrot.slane %v444_v37, 7  ;;  %v299_v54 = vadd.f32 %v3389_v43, %v276_v5 }
  0xe6   :  { %v2963_v58 = vpack.c.bf16 %v312_v45, %v312_v45  ;;  %v1839_v59 = vld [vmem:[#allocation2 + $0x18] sm:$0xf]  ;;  %v310_v62 = vmax.f32 %v294_v53, 0.0  ;;  %v1037_v4 = vld [vmem:[#allocation2 + $0x1c] sm:$0x1] }
  0xe7   :  { %v1228_v61 = vld [vmem:[#allocation2 + $0x18] sm:$0xf]  ;;  %1872 = vrot.lane.b32.xlu1 %v1839_v59, %s3077_s13  ;;  %v615_v9 = vsel %vm3405_vm12, %v465_v55, %v614_v34  ;;  %v618_v10 = vsel %vm3410_vm13, %v466_v56, %v617_v50  ;;  %v449_v14 = vor.u32 %v447_v40, %v446_v57  ;;  %v450_v15 = vrot.slane %v446_v57, 4  ;;  %v1649_v24 = vld [vmem:[#allocation2 + $0x1c] sm:$0x1]  ;;  %v3010_v55 = vpop.f32.mrf.mxu0 }
  0xe8   :  { %1262 = vrot.lane.b32.xlu0 %v1228_v61, %s3079_s4  ;;  %v1036_v63 = vld [vmem:[#allocation2 + $0x18] sm:$0xe]  ;;  %616 = vst [vmem:[#allocation2 + $0x38] sm:$0xf] %v615_v9  ;;  %619 = vst [vmem:[#allocation2 + $0x3c] sm:$0x1] %v618_v10  ;;  %v2961_v21 = vpack.c.bf16 %v310_v62, %v310_v62  ;;  %v274_v59 = vmul.f32 %v3382_v6, %v228_v26  ;;  %v277_v61 = vmul.f32 %v3010_v55, %v3382_v6 }
  0xe9   :  { %v1648_v16 = vld [vmem:[#allocation2 + $0x18] sm:$0xe]  ;;  %v468_v17 = vshrl.u32 %v2963_v58, 16  ;;  %v471_v20 = vshll.u32 %v2963_v58, 16  ;;  %v2862_v23 = vrot.slane %v1036_v63, 9  ;;  %v603_v27 = vsel %vm3405_vm12, %v449_v14, %v602_v51 }
  0xea   :  { %v606_v28 = vsel %vm3410_vm13, %v450_v15, %v605_v52  ;;  %v1111_v29 = vrot.slane %v1037_v4, 5  ;;  %v1226_v30 = vld [vmem:[#allocation2 + $0x8] sm:$0xf]  ;;  %v2877_v32 = vrot.slane %v1648_v16, 9  ;;  %604 = vst [vmem:[#allocation2 + $0x28] sm:$0xf] %v603_v27  ;;  %v297_v27 = vadd.f32 %v3389_v43, %v274_v59 }
  0xeb   :  { %607 = vst [vmem:[#allocation2 + $0x2c] sm:$0x1] %v606_v28  ;;  %v470_v33 = vrot.slane %v468_v17, 7  ;;  %v452_v34 = vshrl.u32 %v2961_v21, 16  ;;  %v455_v35 = vshll.u32 %v2961_v21, 16  ;;  %v1718_v37 = vrot.slane %v1649_v24, 5 }
  0xec   :  { %1258 = vrot.lane.b32.xlu0 %v1226_v30, %s3079_s4  ;;  %v620_v40 = vld [vmem:[#allocation2 + $0x40] sm:$0xf]  ;;  %v623_v45 = vld [vmem:[#allocation2 + $0x44] sm:$0x1]  ;;  %v1112_v46 = vsel %vm3353_vm5, %v2862_v23, %v1111_v29  ;;  %v1032_v52 = vld [vmem:[#allocation2 + $0x8] sm:$0xe]  ;;  %v300_v29 = vadd.f32 %v3389_v43, %v277_v61 }
  0xed   :  { %v473_v49 = vor.u32 %v471_v20, %v470_v33  ;;  %v474_v50 = vrot.slane %v470_v33, 4  ;;  %v454_v51 = vrot.slane %v452_v34, 7  ;;  %1167 = vrot.lane.b32.xlu1 %v1112_v46, %s3075_s0  ;;  %v1033_v53 = vld [vmem:[#allocation2 + $0xc] sm:$0x1]  ;;  %v608_v56 = vld [vmem:[#allocation2 + $0x30] sm:$0xf]  ;;  %v1719_v58 = vsel %vm3353_vm5, %v2877_v32, %v1718_v37 }
  0xee   :  { %v611_v57 = vld [vmem:[#allocation2 + $0x34] sm:$0x1]  ;;  %v1644_v5 = vld [vmem:[#allocation2 + $0x8] sm:$0xe]  ;;  %v1645_v10 = vld [vmem:[#allocation2 + $0xc] sm:$0x1] }
  0xef   :  { %v621_v62 = vsel %vm3405_vm12, %v473_v49, %v620_v40  ;;  %v624_v63 = vsel %vm3410_vm13, %v474_v50, %v623_v45  ;;  %v457_v4 = vor.u32 %v455_v35, %v454_v51  ;;  %v458_v9 = vrot.slane %v454_v51, 4  ;;  %v1229_v14 = vld [vmem:[#allocation2 + $0x20] sm:$0xf]  ;;  %v1937_v32 = vld [vmem:[#allocation2 + $0x18] sm:$0xf] }
  0xf0   :  { %1776 = vrot.lane.b32.xlu0 %v1719_v58, %s3080_s5  ;;  %622 = vst [vmem:[#allocation2 + $0x40] sm:$0xf] %v621_v62  ;;  %625 = vst [vmem:[#allocation2 + $0x44] sm:$0x1] %v624_v63  ;;  %v2860_v15 = vrot.slane %v1032_v52, 9  ;;  %v1103_v16 = vrot.slane %v1033_v53, 5 }
  0xf1   :  { %v609_v17 = vsel %vm3405_vm12, %v457_v4, %v608_v56  ;;  %v612_v20 = vsel %vm3410_vm13, %v458_v9, %v611_v57  ;;  %1264 = vrot.lane.b32.xlu1 %v1229_v14, %s3079_s4  ;;  %v315_v21 = vmax.f32 %v299_v54, 0.0  ;;  %v1840_v23 = vld [vmem:[#allocation2 + $0x20] sm:$0xf]  ;;  %v2875_v24 = vrot.slane %v1644_v5, 9  ;;  %v1651_v34 = vld [vmem:[#allocation2 + $0x24] sm:$0x1] }
  0xf2   :  { %610 = vst [vmem:[#allocation2 + $0x30] sm:$0xf] %v609_v17  ;;  %613 = vst [vmem:[#allocation2 + $0x34] sm:$0x1] %v612_v20  ;;  %v1710_v26 = vrot.slane %v1645_v10, 5  ;;  %v1104_v30 = vsel %vm3353_vm5, %v2860_v15, %v1103_v16  ;;  %v313_v49 = vmax.f32 %v297_v27, 0.0 }
  0xf3   :  { %v2966_v28 = vpack.c.bf16 %v315_v21, %v315_v21  ;;  %v1650_v33 = vld [vmem:[#allocation2 + $0x20] sm:$0xe]  ;;  %v1227_v40 = vld [vmem:[#allocation2 + $0x10] sm:$0xf]  ;;  %v1039_v46 = vld [vmem:[#allocation2 + $0x24] sm:$0x1] }
  0xf4   :  { %1874 = vrot.lane.b32.xlu0 %v1840_v23, %s3077_s13  ;;  %v1711_v37 = vsel %vm3353_vm5, %v2875_v24, %v1710_v26  ;;  %v1038_v45 = vld [vmem:[#allocation2 + $0x20] sm:$0xe]  ;;  %v1982_v50 = vshrl.u32 %v1937_v32, 16  ;;  %v1985_v51 = vshll.u32 %v1937_v32, 16  ;;  %v1327_v52 = vld [vmem:[#allocation2 + $0x18] sm:$0xf]  ;;  %v2964_v14 = vpack.c.bf16 %v313_v49, %v313_v49  ;;  %v231_v49 = vpop.f32.mrf.mxu0 }
  0xf5   :  { %1163 = vrot.lane.b32.xlu1 %v1104_v30, %s3075_s0  ;;  %v492_v35 = vshrl.u32 %v2966_v28, 16  ;;  %v316_v53 = vmax.f32 %v300_v29, 0.0  ;;  %v1838_v54 = vld [vmem:[#allocation2 + $0x10] sm:$0xf]  ;;  %v2878_v55 = vrot.slane %v1650_v33, 9  ;;  %v1722_v56 = vrot.slane %v1651_v34, 5 }
  0xf6   :  { %v641_v58 = vld [vmem:[#allocation2 + $0x6c] sm:$0x1]  ;;  %v2863_v59 = vrot.slane %v1038_v45, 9  ;;  %v1115_v61 = vrot.slane %v1039_v46, 5  ;;  %v1646_v62 = vld [vmem:[#allocation2 + $0x10] sm:$0xe] }
  0xf7   :  { %v494_v57 = vrot.slane %v492_v35, 7  ;;  %v712_v63 = vld [vmem:[#allocation2 + $0x18] sm:$0xf]  ;;  %v1647_v4 = vld [vmem:[#allocation2 + $0x14] sm:$0x1]  ;;  %v1384_v9 = vshrl.u32 %v1327_v52, 16  ;;  %v2967_v21 = vpack.c.bf16 %v316_v53, %v316_v53  ;;  %v1723_v23 = vsel %vm3353_vm5, %v2878_v55, %v1722_v56 }
  0xf8   :  { %1772 = vrot.lane.b32.xlu0 %v1711_v37, %s3080_s5  ;;  %v1387_v5 = vshll.u32 %v1327_v52, 16  ;;  %v495_v10 = vshll.u32 %v2966_v28, 16  ;;  %v1984_v15 = vrot.slane %v1982_v50, 4  ;;  %v1987_v16 = vrot.slane %v1985_v51, 5  ;;  %v638_v20 = vld [vmem:[#allocation2 + $0x68] sm:$0xf] }
  0xf9   :  { %1260 = vrot.lane.b32.xlu1 %v1227_v40, %s3079_s4  ;;  %v498_v17 = vrot.slane %v494_v57, 4  ;;  %v1938_v24 = vld [vmem:[#allocation2 + $0x1c] sm:$0x1]  ;;  %v784_v26 = vshrl.u32 %v712_v63, 16  ;;  %v787_v27 = vshll.u32 %v712_v63, 16  ;;  %v1116_v28 = vsel %vm3353_vm5, %v2863_v59, %v1115_v61 }
  0xfa   :  { %v497_v29 = vor.u32 %v495_v10, %v494_v57  ;;  %v2876_v30 = vrot.slane %v1646_v62, 9  ;;  %v1714_v32 = vrot.slane %v1647_v4, 5  ;;  %v1034_v33 = vld [vmem:[#allocation2 + $0x10] sm:$0xe]  ;;  %v1035_v35 = vld [vmem:[#allocation2 + $0x14] sm:$0x1]  ;;  %v1988_v51 = vor.u32 %v1987_v16, %v1984_v15 }
  0xfb   :  { %v642_v34 = vsel %vm3410_vm13, %v498_v17, %v641_v58  ;;  %v1386_v37 = vrot.slane %v1384_v9, 4  ;;  %v1389_v40 = vrot.slane %v1387_v5, 5  ;;  %v476_v46 = vshrl.u32 %v2964_v14, 16  ;;  %v1843_v50 = vld [vmem:[#allocation2 + $0x38] sm:$0xf] }
  0xfc   :  { %1870 = vrot.lane.b32.xlu0 %v1838_v54, %s3077_s13  ;;  %v639_v45 = vsel %vm3405_vm12, %v497_v29, %v638_v20  ;;  %643 = vst [vmem:[#allocation2 + $0x6c] sm:$0x1] %v642_v34  ;;  %v1991_v52 = vshll.u32 %v1938_v24, 16  ;;  %v479_v53 = vshll.u32 %v2964_v14, 16  ;;  %v626_v54 = vld [vmem:[#allocation2 + $0x58] sm:$0xf]  ;;  %v275_v15 = vmul.f32 %v3382_v6, %v231_v49 }
  0xfd   :  { %1778 = vrot.lane.b32.xlu1 %v1723_v23, %s3080_s5  ;;  %640 = vst [vmem:[#allocation2 + $0x68] sm:$0xf] %v639_v45  ;;  %v629_v55 = vld [vmem:[#allocation2 + $0x5c] sm:$0x1]  ;;  %v500_v56 = vshrl.u32 %v2967_v21, 16  ;;  %v786_v57 = vrot.slane %v784_v26, 4  ;;  %v1715_v14 = vsel %vm3353_vm5, %v2876_v30, %v1714_v32  ;;  %v1390_v20 = vor.u32 %v1389_v40, %v1386_v37 }
  0xfe   :  { %v789_v58 = vrot.slane %v787_v27, 5  ;;  %v1328_v59 = vld [vmem:[#allocation2 + $0x1c] sm:$0x1]  ;;  %v478_v61 = vrot.slane %v476_v46, 7  ;;  %v503_v62 = vshll.u32 %v2967_v21, 16  ;;  %v2861_v4 = vrot.slane %v1034_v33, 9 }
  0xff   :  { %v644_v63 = vld [vmem:[#allocation2 + $0x70] sm:$0xf]  ;;  %v1107_v9 = vrot.slane %v1035_v35, 5  ;;  %v502_v5 = vrot.slane %v500_v56, 7  ;;  %v647_v10 = vld [vmem:[#allocation2 + $0x74] sm:$0x1] }
 0x100   :  { %1169 = vrot.lane.b32.xlu0 %v1116_v28, %s3075_s0  ;;  %v1232_v16 = vld [vmem:[#allocation2 + $0x38] sm:$0xf]  ;;  %v713_v17 = vld [vmem:[#allocation2 + $0x1c] sm:$0x1]  ;;  %v481_v23 = vor.u32 %v479_v53, %v478_v61  ;;  %v482_v24 = vrot.slane %v478_v61, 4  ;;  %v1993_v21 = vrot.slane %v1991_v52, 5  ;;  %v790_v34 = vor.u32 %v789_v58, %v786_v57 }
 0x101   :  { %1880 = vrot.lane.b32.xlu1 %v1843_v50, %s3077_s13  ;;  %v1393_v26 = vshll.u32 %v1328_v59, 16  ;;  %v505_v27 = vor.u32 %v503_v62, %v502_v5  ;;  %v506_v29 = vrot.slane %v502_v5, 4  ;;  %v1323_v28 = vld [vmem:[#allocation2 + $0x8] sm:$0xf]  ;;  %v1989_v33 = vrot.slane %v1988_v51, 4 }
 0x102   :  { %v627_v35 = vsel %vm3405_vm12, %v481_v23, %v626_v54  ;;  %v630_v30 = vsel %vm3410_vm13, %v482_v24, %v629_v55  ;;  %v708_v32 = vld [vmem:[#allocation2 + $0x8] sm:$0xf]  ;;  %v1108_v37 = vsel %vm3353_vm5, %v2861_v4, %v1107_v9  ;;  %v793_v40 = vshll.u32 %v713_v17, 16  ;;  %v1656_v58 = vld [vmem:[#allocation2 + $0x38] sm:$0xe] }
 0x103   :  { %628 = vst [vmem:[#allocation2 + $0x58] sm:$0xf] %v627_v35  ;;  %631 = vst [vmem:[#allocation2 + $0x5c] sm:$0x1] %v630_v30  ;;  %v645_v45 = vsel %vm3405_vm12, %v505_v27, %v644_v63  ;;  %v648_v46 = vsel %vm3410_vm13, %v506_v29, %v647_v10  ;;  %v1391_v49 = vrot.slane %v1390_v20, 4  ;;  %v1356_v50 = vshrl.u32 %v1323_v28, 16 }
 0x104   :  { %1270 = vrot.lane.b32.xlu0 %v1232_v16, %s3079_s4  ;;  %646 = vst [vmem:[#allocation2 + $0x70] sm:$0xf] %v645_v45  ;;  %649 = vst [vmem:[#allocation2 + $0x74] sm:$0x1] %v648_v46  ;;  %v1359_v51 = vshll.u32 %v1323_v28, 16  ;;  %v298_v52 = vadd.f32 %v3389_v43, %v275_v15  ;;  %v1395_v53 = vrot.slane %v1393_v26, 5  ;;  %v1994_v56 = vsel %vm3363_vm8, %v1989_v33, %v1993_v21 }
 0x105   :  { %1774 = vrot.lane.b32.xlu1 %v1715_v14, %s3080_s5  ;;  %v756_v54 = vshrl.u32 %v708_v32, 16  ;;  %v759_v55 = vshll.u32 %v708_v32, 16  ;;  %v791_v57 = vrot.slane %v790_v34, 4  ;;  %v1657_v59 = vld [vmem:[#allocation2 + $0x3c] sm:$0x1]  ;;  %v795_v62 = vrot.slane %v793_v40, 5 }
 0x106   :  { %v314_v61 = vmax.f32 %v298_v52, 0.0  ;;  %v1396_v63 = vsel %vm3363_vm8, %v1391_v49, %v1395_v53  ;;  %v1358_v4 = vrot.slane %v1356_v50, 4  ;;  %v1361_v9 = vrot.slane %v1359_v51, 5  ;;  %v1939_v10 = vld [vmem:[#allocation2 + $0x20] sm:$0xf]  ;;  %v3042_v53 = vld [vmem:[%s4462_s6 + $0x38] sm:$0xff]  }
 0x107   :  { %v1044_v15 = vld [vmem:[#allocation2 + $0x38] sm:$0xe]  ;;  %v2881_v14 = vrot.slane %v1656_v58, 9  ;;  %v1734_v16 = vrot.slane %v1657_v59, 5  ;;  %v758_v17 = vrot.slane %v756_v54, 4  ;;  %v761_v20 = vrot.slane %v759_v55, 5  ;;  %2601 = vmatpush1.bf16.msra.mxu0 %v3042_v53  ;;  %3024 = vmatpush1.bf16.msra.mxu1 %v3042_v53 }
 0x108   :  { %1165 = vrot.lane.b32.xlu0 %v1108_v37, %s3075_s0  ;;  %v2965_v5 = vpack.c.bf16 %v314_v61, %v314_v61  ;;  %v796_v23 = vsel %vm3363_vm8, %v791_v57, %v795_v62  ;;  %v1045_v24 = vld [vmem:[#allocation2 + $0x3c] sm:$0x1]  ;;  %v1324_v21 = vld [vmem:[#allocation2 + $0xc] sm:$0x1]  ;;  %v632_v29 = vld [vmem:[#allocation2 + $0x60] sm:$0xf]  ;;  %v1362_v37 = vor.u32 %v1361_v9, %v1358_v4  ;;  %2602 = vmatprep.subr.bf16.mxu0 %v3074_v3 }
 0x109   :  { %2193 = vrot.lane.b32.xlu1 %v1994_v56, %s3078_s1  ;;  %v635_v28 = vld [vmem:[#allocation2 + $0x64] sm:$0x1]  ;;  %v1996_v33 = vshrl.u32 %v1939_v10, 16  ;;  %v1999_v34 = vshll.u32 %v1939_v10, 16  ;;  %v1329_v35 = vld [vmem:[#allocation2 + $0x20] sm:$0xf]  ;;  %v1735_v49 = vsel %vm3353_vm5, %v2881_v14, %v1734_v16  ;;  %v762_v51 = vor.u32 %v761_v20, %v758_v17  ;;  %3016 = vmatprep.subr.bf16.mxu1 %v3074_v3 }
 0x10a   :  { %v484_v26 = vshrl.u32 %v2965_v5, 16  ;;  %v487_v27 = vshll.u32 %v2965_v5, 16  ;;  %v1230_v30 = vld [vmem:[#allocation2 + $0x28] sm:$0xf]  ;;  %v2866_v32 = vrot.slane %v1044_v15, 9  ;;  %v1127_v46 = vrot.slane %v1045_v24, 5 }
 0x10b   :  { %v714_v45 = vld [vmem:[#allocation2 + $0x20] sm:$0xf]  ;;  %v709_v50 = vld [vmem:[#allocation2 + $0xc] sm:$0x1]  ;;  %v1365_v52 = vshll.u32 %v1324_v21, 16  ;;  %v1398_v57 = vshrl.u32 %v1329_v35, 16 }
 0x10c   :  { %1583 = vrot.lane.b32.xlu0 %v1396_v63, %s3081_s17  ;;  %v486_v40 = vrot.slane %v484_v26, 7  ;;  %v1841_v54 = vld [vmem:[#allocation2 + $0x28] sm:$0xf]  ;;  %v1401_v58 = vshll.u32 %v1329_v35, 16  ;;  %v1998_v59 = vrot.slane %v1996_v33, 4  ;;  %v2001_v61 = vrot.slane %v1999_v34, 5 }
 0x10d   :  { %971 = vrot.lane.b32.xlu1 %v796_v23, %s3076_s12  ;;  %v798_v62 = vshrl.u32 %v714_v45, 16  ;;  %v801_v63 = vshll.u32 %v714_v45, 16  ;;  %v765_v4 = vshll.u32 %v709_v50, 16  ;;  %v1363_v9 = vrot.slane %v1362_v37, 4  ;;  %v1940_v14 = vld [vmem:[#allocation2 + $0x24] sm:$0x1] }
 0x10e   :  { %v489_v55 = vor.u32 %v487_v27, %v486_v40  ;;  %v490_v56 = vrot.slane %v486_v40, 4  ;;  %v1128_v15 = vsel %vm3353_vm5, %v2866_v32, %v1127_v46  ;;  %v763_v16 = vrot.slane %v762_v51, 4  ;;  %v1330_v21 = vld [vmem:[#allocation2 + $0x24] sm:$0x1]  ;;  %v1935_v35 = vld [vmem:[#allocation2 + $0x10] sm:$0xf] }
 0x10f   :  { %v1367_v17 = vrot.slane %v1365_v52, 5  ;;  %v1400_v20 = vrot.slane %v1398_v57, 4  ;;  %v1403_v23 = vrot.slane %v1401_v58, 5  ;;  %v2002_v24 = vor.u32 %v2001_v61, %v1998_v59  ;;  %v715_v26 = vld [vmem:[#allocation2 + $0x24] sm:$0x1]  ;;  %v3044_v50 = vld [vmem:[%s4462_s6 + $0x28] sm:$0xff]  }
 0x110   :  { %1266 = vrot.lane.b32.xlu0 %v1230_v30, %s3079_s4  ;;  %v633_v5 = vsel %vm3405_vm12, %v489_v55, %v632_v29  ;;  %v636_v10 = vsel %vm3410_vm13, %v490_v56, %v635_v28  ;;  %v800_v27 = vrot.slane %v798_v62, 4  ;;  %v803_v29 = vrot.slane %v801_v63, 5  ;;  %v3043_v30 = vld [vmem:[%s4462_s6 + $0x30] sm:$0xff]   ;;  %v1040_v32 = vld [vmem:[#allocation2 + $0x28] sm:$0xe]  ;;  %v3013_v56 = vpop.f32.mrf.mxu0 }
 0x111   :  { %1876 = vrot.lane.b32.xlu1 %v1841_v54, %s3077_s13  ;;  %634 = vst [vmem:[#allocation2 + $0x60] sm:$0xf] %v633_v5  ;;  %637 = vst [vmem:[#allocation2 + $0x64] sm:$0x1] %v636_v10  ;;  %v767_v28 = vrot.slane %v765_v4, 5  ;;  %v1368_v33 = vsel %vm3363_vm8, %v1363_v9, %v1367_v17  ;;  %v2005_v34 = vshll.u32 %v1940_v14, 16  ;;  %v1404_v40 = vor.u32 %v1403_v23, %v1400_v20 }
 0x112   :  { %v1407_v45 = vshll.u32 %v1330_v21, 16  ;;  %v807_v46 = vshll.u32 %v715_v26, 16  ;;  %2603 = vmatpush1.bf16.msra.mxu0 %v3043_v30  ;;  %3025 = vmatpush1.bf16.msra.mxu1 %v3043_v30  ;;  %v1844_v51 = vld [vmem:[#allocation2 + $0x40] sm:$0xf]  ;;  %v2003_v52 = vrot.slane %v2002_v24, 4  ;;  %v804_v53 = vor.u32 %v803_v29, %v800_v27  ;;  %v244_v26 = vpop.f32.mrf.mxu0 }
 0x113   :  { %v768_v37 = vsel %vm3363_vm8, %v763_v16, %v767_v28  ;;  %v1968_v54 = vshrl.u32 %v1935_v35, 16  ;;  %v1971_v55 = vshll.u32 %v1935_v35, 16  ;;  %2604 = vmatprep.subr.bf16.mxu0 %v3074_v3  ;;  %v1233_v57 = vld [vmem:[#allocation2 + $0x40] sm:$0xf]  ;;  %v2007_v58 = vrot.slane %v2005_v34, 5  ;;  %3017 = vmatprep.subr.bf16.mxu1 %v3074_v3 }
 0x114   :  { %1784 = vrot.lane.b32.xlu0 %v1735_v49, %s3080_s5  ;;  %v1041_v49 = vld [vmem:[#allocation2 + $0x2c] sm:$0x1]  ;;  %v1652_v59 = vld [vmem:[#allocation2 + $0x28] sm:$0xe]  ;;  %v2864_v62 = vrot.slane %v1040_v32, 9  ;;  %v1405_v5 = vrot.slane %v1404_v40, 4  ;;  %v280_v34 = vmul.f32 %v3013_v56, %v3382_v6  ;;  %v3014_v56 = vpop.f32.mrf.mxu0 }
 0x115   :  { %1175 = vrot.lane.b32.xlu1 %v1128_v15, %s3075_s0  ;;  %v1653_v61 = vld [vmem:[#allocation2 + $0x2c] sm:$0x1]  ;;  %v1119_v63 = vrot.slane %v1041_v49, 5  ;;  %v3547_v4 = vld [vmem:[#allocation2 + $0x40] sm:$0xe]  ;;  %v1409_v10 = vrot.slane %v1407_v45, 5  ;;  %v2008_v17 = vsel %vm3363_vm8, %v2003_v52, %v2007_v58 }
 0x116   :  { %v1325_v9 = vld [vmem:[#allocation2 + $0x10] sm:$0xf]  ;;  %v809_v15 = vrot.slane %v807_v46, 5  ;;  %2605 = vmatpush1.bf16.msra.mxu0 %v3044_v50  ;;  %v3045_v16 = vld [vmem:[%s4462_s6 + $0x20] sm:$0xff]   ;;  %3026 = vmatpush1.bf16.msra.mxu1 %v3044_v50  ;;  %v805_v20 = vrot.slane %v804_v53, 4  ;;  %v1970_v24 = vrot.slane %v1968_v54, 4  ;;  %v303_v50 = vadd.f32 %v3389_v43, %v280_v34 }
 0x117   :  { %v710_v14 = vld [vmem:[#allocation2 + $0x10] sm:$0xf]  ;;  %v1659_v23 = vld [vmem:[#allocation2 + $0x44] sm:$0x1]  ;;  %v1973_v21 = vrot.slane %v1971_v55, 5  ;;  %2606 = vmatprep.subr.bf16.mxu0 %v3074_v3  ;;  %v2879_v27 = vrot.slane %v1652_v59, 9  ;;  %3018 = vmatprep.subr.bf16.mxu1 %v3074_v3  ;;  %v1120_v35 = vsel %vm3353_vm5, %v2864_v62, %v1119_v63  ;;  %v1410_v45 = vsel %vm3363_vm8, %v1405_v5, %v1409_v10 }
 0x118   :  { %1579 = vrot.lane.b32.xlu0 %v1368_v33, %s3081_s17  ;;  %v1726_v29 = vrot.slane %v1653_v61, 5  ;;  %v1936_v28 = vld [vmem:[#allocation2 + $0x14] sm:$0x1]  ;;  %v1370_v33 = vshrl.u32 %v1325_v9, 16  ;;  %v1373_v32 = vshll.u32 %v1325_v9, 16  ;;  %v773_v40 = vshll.u32 %v710_v14, 16 }
 0x119   :  { %967 = vrot.lane.b32.xlu1 %v768_v37, %s3076_s12  ;;  %v1326_v30 = vld [vmem:[#allocation2 + $0x14] sm:$0x1]  ;;  %v770_v37 = vshrl.u32 %v710_v14, 16  ;;  %v2882_v46 = vrot.slane %v3547_v4, 9  ;;  %v1738_v49 = vrot.slane %v1659_v23, 5  ;;  %v810_v52 = vsel %vm3363_vm8, %v805_v20, %v809_v15 }
 0x11a   :  { %2607 = vmatpush1.bf16.msra.mxu0 %v3045_v16  ;;  %3027 = vmatpush1.bf16.msra.mxu1 %v3045_v16  ;;  %v1974_v53 = vor.u32 %v1973_v21, %v1970_v24  ;;  %v1977_v54 = vshll.u32 %v1936_v28, 16  ;;  %v278_v55 = vmul.f32 %v3382_v6, %v244_v26  ;;  %v1379_v58 = vshll.u32 %v1326_v30, 16  ;;  %v3579_v10 = vld [vmem:[#allocation2 + $0x14] sm:$0x1]  ;;  %v720_v24 = vld [vmem:[#allocation2 + $0x38] sm:$0xf]  ;;  %v247_v26 = vpop.f32.mrf.mxu0 }
 0x11b   :  { %2608 = vmatprep.subr.bf16.mxu0 %v3074_v3  ;;  %v319_v59 = vmax.f32 %v303_v50, 0.0  ;;  %v281_v61 = vmul.f32 %v3014_v56, %v3382_v6  ;;  %3019 = vmatprep.subr.bf16.mxu1 %v3074_v3  ;;  %v1375_v62 = vrot.slane %v1373_v32, 5  ;;  %v772_v63 = vrot.slane %v770_v37, 4  ;;  %v3047_v16 = vld [vmem:[%s4462_s6 + $0x10] sm:$0xff]   ;;  %v662_v32 = vld [vmem:[#allocation2 + $0x88] sm:$0xf] }
 0x11c   :  { %1882 = vrot.lane.b32.xlu0 %v1844_v51, %s3077_s13  ;;  %v3046_v51 = vld [vmem:[%s4462_s6 + $0x18] sm:$0xff]   ;;  %v775_v4 = vrot.slane %v773_v40, 5  ;;  %v301_v9 = vadd.f32 %v3389_v43, %v278_v55  ;;  %v1727_v5 = vsel %vm3353_vm5, %v2879_v27, %v1726_v29  ;;  %v3588_v20 = vrot.slane %v1974_v53, 4  ;;  %v665_v37 = vld [vmem:[#allocation2 + $0x8c] sm:$0x1] }
 0x11d   :  { %1272 = vrot.lane.b32.xlu1 %v1233_v57, %s3079_s4  ;;  %v1372_v57 = vrot.slane %v1370_v33, 4  ;;  %v2970_v15 = vpack.c.bf16 %v319_v59, %v319_v59  ;;  %v304_v14 = vadd.f32 %v3389_v43, %v281_v61  ;;  %v3590_v23 = vrot.slane %v1977_v54, 5  ;;  %v1842_v53 = vld [vmem:[#allocation2 + $0x30] sm:$0xf]  ;;  %v1664_v39 = vld [vmem:[#allocation2 + $0x68] sm:$0xe] }
 0x11e   :  { %2609 = vmatpush1.bf16.msra.mxu0 %v3046_v51  ;;  %3028 = vmatpush1.bf16.msra.mxu1 %v3046_v51  ;;  %v317_v21 = vmax.f32 %v301_v9, 0.0  ;;  %v3593_v27 = vrot.slane %v1379_v58, 5  ;;  %v779_v30 = vshll.u32 %v3579_v10, 16  ;;  %v279_v51 = vmul.f32 %v3382_v6, %v247_v26  ;;  %v3608_v6 = vld [vmem:[#allocation2 + $0x38] sm:$0xf] }
 0x11f   :  { %2610 = vmatprep.subr.bf16.mxu0 %v3074_v3  ;;  %v524_v29 = vshrl.u32 %v2970_v15, 16  ;;  %v527_v28 = vshll.u32 %v2970_v15, 16  ;;  %v320_v33 = vmax.f32 %v304_v14, 0.0  ;;  %3020 = vmatprep.subr.bf16.mxu1 %v3074_v3  ;;  %v1376_v34 = vor.u32 %v1375_v62, %v1372_v57  ;;  %v1342_v0 = vld [vmem:[#allocation2 + $0x64] sm:$0x1] }
 0x120   :  { %2195 = vrot.lane.b32.xlu0 %v2008_v17, %s3078_s1  ;;  %v1739_v17 = vsel %vm3353_vm5, %v2882_v46, %v1738_v49  ;;  %v2968_v40 = vpack.c.bf16 %v317_v21, %v317_v21  ;;  %v840_v46 = vshrl.u32 %v720_v24, 16  ;;  %v1980_v54 = vsel %vm3363_vm8, %v3588_v20, %v3590_v23  ;;  %v653_v20 = vld [vmem:[#allocation2 + $0x7c] sm:$0x1]  ;;  %v681_v48 = vld [vmem:[#allocation2 + $0x38] sm:$0xf] }
 0x121   :  { %1585 = vrot.lane.b32.xlu1 %v1410_v45, %s3081_s17  ;;  %v1231_v45 = vld [vmem:[#allocation2 + $0x30] sm:$0xf]  ;;  %v526_v49 = vrot.slane %v524_v29, 7  ;;  %v2971_v50 = vpack.c.bf16 %v320_v33, %v320_v33  ;;  %v843_v55 = vshll.u32 %v720_v24, 16  ;;  %v302_v10 = vadd.f32 %v3389_v43, %v279_v51  ;;  %v671_v29 = vld [vmem:[#allocation2 + $0x94] sm:$0x1] }
 0x122   :  { %2611 = vmatpush1.bf16.msra.mxu0 %v3047_v16  ;;  %3029 = vmatpush1.bf16.msra.mxu1 %v3047_v16  ;;  %v508_v56 = vshrl.u32 %v2968_v40, 16  ;;  %v511_v57 = vshll.u32 %v2968_v40, 16  ;;  %v3613_v15 = vrot.slane %v840_v46, 4  ;;  %v668_v24 = vld [vmem:[#allocation2 + $0x90] sm:$0xf]  ;;  %v1440_v21 = vshrl.u32 %v3608_v6, 16 }
 0x123   :  { %2612 = vmatprep.subr.bf16.mxu0 %v3074_v3  ;;  %v529_v58 = vor.u32 %v527_v28, %v526_v49  ;;  %v530_v59 = vrot.slane %v526_v49, 4  ;;  %v532_v61 = vshrl.u32 %v2971_v50, 16  ;;  %v535_v62 = vshll.u32 %v2971_v50, 16  ;;  %3021 = vmatprep.subr.bf16.mxu1 %v3074_v3  ;;  %v3049_v33 = vld [vmem:[%s4462_s6] sm:$0xff]   ;;  %v1042_v51 = vld [vmem:[#allocation2 + $0x30] sm:$0xe] }
 0x124   :  { %973 = vrot.lane.b32.xlu0 %v810_v52, %s3076_s12  ;;  %v3048_v52 = vld [vmem:[%s4462_s6 + $0x8] sm:$0xff]   ;;  %v510_v9 = vrot.slane %v508_v56, 7  ;;  %v318_v28 = vmax.f32 %v302_v10, 0.0  ;;  %v781_v50 = vrot.slane %v779_v30, 5  ;;  %697 = vst.msk [vmem:[#allocation3 + $0x38] sm:$0xf] %vm329_vm1, %v681_v48 }
 0x125   :  { %1171 = vrot.lane.b32.xlu1 %v1120_v35, %s3075_s0  ;;  %v776_v35 = vor.u32 %v775_v4, %v772_v63  ;;  %v1377_v63 = vrot.slane %v1376_v34, 4  ;;  %v663_v14 = vsel %vm3405_vm12, %v529_v58, %v662_v32  ;;  %v666_v16 = vsel %vm3410_vm13, %v530_v59, %v665_v37  ;;  %v721_v34 = vld [vmem:[#allocation2 + $0x3c] sm:$0x1]  ;;  %v1941_v30 = vld [vmem:[#allocation2 + $0x28] sm:$0xf] }
 0x126   :  { %v534_v23 = vrot.slane %v532_v61, 7  ;;  %2613 = vmatpush1.bf16.msra.mxu0 %v3048_v52  ;;  %3030 = vmatpush1.bf16.msra.mxu1 %v3048_v52  ;;  %664 = vst [vmem:[#allocation2 + $0x88] sm:$0xf] %v663_v14  ;;  %667 = vst [vmem:[#allocation2 + $0x8c] sm:$0x1] %v666_v16  ;;  %v513_v43 = vor.u32 %v511_v57, %v510_v9  ;;  %v514_v26 = vrot.slane %v510_v9, 4 }
 0x127   :  { %v777_v4 = vrot.slane %v776_v35, 4  ;;  %2614 = vmatprep.subr.bf16.mxu0 %v3074_v3  ;;  %v845_v35 = vrot.slane %v843_v55, 5  ;;  %v1443_v32 = vshll.u32 %v3608_v6, 16  ;;  %3022 = vmatprep.subr.bf16.mxu1 %v3074_v3  ;;  %v2969_v46 = vpack.c.bf16 %v318_v28, %v318_v28  ;;  %v1043_v52 = vld [vmem:[#allocation2 + $0x34] sm:$0x1]  ;;  %v3050_v55 = vld [vmem:[%s4462_s6 + $0x40] sm:$0xff]  }
 0x128   :  { %1780 = vrot.lane.b32.xlu0 %v1727_v5, %s3080_s5  ;;  %v650_v5 = vld [vmem:[#allocation2 + $0x78] sm:$0xf]  ;;  %v537_v37 = vor.u32 %v535_v62, %v534_v23  ;;  %v1382_v49 = vsel %vm3363_vm8, %v1377_v63, %v3593_v27  ;;  %v849_v27 = vshll.u32 %v721_v34, 16  ;;  %v1336_v59 = vld [vmem:[#allocation2 + $0x3c] sm:$0x1]  ;;  %v1442_v61 = vrot.slane %v1440_v21, 4 }
 0x129   :  { %1268 = vrot.lane.b32.xlu1 %v1231_v45, %s3079_s4  ;;  %v651_v40 = vsel %vm3405_vm12, %v513_v43, %v650_v5  ;;  %v654_v45 = vsel %vm3410_vm13, %v514_v26, %v653_v20  ;;  %v516_v56 = vshrl.u32 %v2969_v46, 16  ;;  %v519_v57 = vshll.u32 %v2969_v46, 16  ;;  %v656_v63 = vld [vmem:[#allocation2 + $0x80] sm:$0xf]  ;;  %v659_v9 = vld [vmem:[#allocation2 + $0x84] sm:$0x1] }
 0x12a   :  { %652 = vst [vmem:[#allocation2 + $0x78] sm:$0xf] %v651_v40  ;;  %655 = vst [vmem:[#allocation2 + $0x7c] sm:$0x1] %v654_v45  ;;  %2615 = vmatpush1.bf16.msra.mxu0 %v3049_v33  ;;  %3031 = vmatpush1.bf16.msra.mxu1 %v3049_v33  ;;  %v782_v6 = vsel %vm3363_vm8, %v777_v4, %v781_v50  ;;  %v846_v58 = vor.u32 %v845_v35, %v3613_v15  ;;  %v1445_v62 = vrot.slane %v1443_v32, 5 }
 0x12b   :  { %2630 = vmatprep.subr.bf16.mxu0 %v3074_v3  ;;  %3023 = vmatprep.subr.bf16.mxu1 %v3074_v3  ;;  %v2865_v5 = vrot.slane %v1042_v51, 9  ;;  %v1123_v10 = vrot.slane %v1043_v52, 5  ;;  %v1654_v14 = vld [vmem:[#allocation2 + $0x30] sm:$0xe]  ;;  %v518_v16 = vrot.slane %v516_v56, 7  ;;  %v2013_v43 = vshll.u32 %v1941_v30, 16 }
 0x12c   :  { %1878 = vrot.lane.b32.xlu0 %v1842_v53, %s3077_s13  ;;  %v669_v53 = vsel %vm3405_vm12, %v537_v37, %v668_v24  ;;  %v1847_v20 = vld [vmem:[#allocation2 + $0x68] sm:$0xf]  ;;  %v2010_v24 = vshrl.u32 %v1941_v30, 16  ;;  %v1449_v15 = vshll.u32 %v1336_v59, 16  ;;  %v2880_v3 = vrot.slane %v1654_v14, 9 }
 0x12d   :  { %1786 = vrot.lane.b32.xlu1 %v1739_v17, %s3080_s5  ;;  %v538_v17 = vrot.slane %v534_v23, 4  ;;  %670 = vst [vmem:[#allocation2 + $0x90] sm:$0xf] %v669_v53  ;;  %v1655_v23 = vld [vmem:[#allocation2 + $0x34] sm:$0x1]  ;;  %v521_v26 = vor.u32 %v519_v57, %v518_v16  ;;  %v847_v28 = vrot.slane %v846_v58, 4  ;;  %v1446_v34 = vor.u32 %v1445_v62, %v1442_v61 }
 0x12e   :  { %2631 = vmatpush2.bf16.msra.mxu0 %v3050_v55  ;;  %3032 = vmatpush2.bf16.msra.mxu1 %v3050_v55  ;;  %v1236_v4 = vld [vmem:[#allocation2 + $0x68] sm:$0xf]  ;;  %v851_v33 = vrot.slane %v849_v27, 5  ;;  %v1124_v32 = vsel %vm3353_vm5, %v2865_v5, %v1123_v10  ;;  %v1730_v37 = vrot.slane %v1655_v23, 5  ;;  %v2012_v50 = vrot.slane %v2010_v24, 4 }
 0x12f   :  { %v716_v21 = vld [vmem:[#allocation2 + $0x28] sm:$0xf]  ;;  %v657_v40 = vsel %vm3405_vm12, %v521_v26, %v656_v63  ;;  %v2015_v51 = vrot.slane %v2013_v43, 5  ;;  %v1447_v22 = vrot.slane %v1446_v34, 4  ;;  %v717_v59 = vld [vmem:[#allocation2 + $0x2c] sm:$0x1] }
 0x130   :  { %2191 = vrot.lane.b32.xlu0 %v1980_v54, %s3078_s1  ;;  %v672_v54 = vsel %vm3410_vm13, %v538_v17, %v671_v29  ;;  %v522_v29 = vrot.slane %v518_v16, 4  ;;  %v1052_v35 = vld [vmem:[#allocation2 + $0x68] sm:$0xe]  ;;  %v1053_v17 = vld [vmem:[#allocation2 + $0x6c] sm:$0x1]  ;;  %v812_v52 = vshrl.u32 %v716_v21, 16  ;;  %v852_v55 = vsel %vm3363_vm8, %v847_v28, %v851_v33 }
 0x131   :  { %1581 = vrot.lane.b32.xlu1 %v1382_v49, %s3081_s17  ;;  %673 = vst [vmem:[#allocation2 + $0x94] sm:$0x1] %v672_v54  ;;  %v1331_v46 = vld [vmem:[#allocation2 + $0x28] sm:$0xf]  ;;  %v1942_v49 = vld [vmem:[#allocation2 + $0x2c] sm:$0x1]  ;;  %v2016_v58 = vor.u32 %v2015_v51, %v2012_v50 }
 0x132   :  { %v660_v45 = vsel %vm3410_vm13, %v522_v29, %v659_v9  ;;  %v815_v53 = vshll.u32 %v716_v21, 16  ;;  %658 = vst [vmem:[#allocation2 + $0x80] sm:$0xf] %v657_v40  ;;  %v1451_v54 = vrot.slane %v1449_v15, 5  ;;  %v1412_v27 = vshrl.u32 %v1331_v46, 16 }
 0x133   :  { %661 = vst [vmem:[#allocation2 + $0x84] sm:$0x1] %v660_v45  ;;  %v1415_v30 = vshll.u32 %v1331_v46, 16  ;;  %v2870_v25 = vrot.slane %v1052_v35, 9  ;;  %v1143_v56 = vrot.slane %v1053_v17, 5  ;;  %v2019_v57 = vshll.u32 %v1942_v49, 16 }
 0x134   :  { %969 = vrot.lane.b32.xlu0 %v782_v6, %s3076_s12  ;;  %v1731_v6 = vsel %vm3353_vm5, %v2880_v3, %v1730_v37  ;;  %v814_v61 = vrot.slane %v812_v52, 4  ;;  %v817_v62 = vrot.slane %v815_v53, 5  ;;  %v677_v63 = vld [vmem:[#allocation2 + $0x18] sm:$0xf]  ;;  %v1337_v9 = vld [vmem:[#allocation2 + $0x40] sm:$0xf]  ;;  %v1452_v38 = vsel %vm3363_vm8, %v1447_v22, %v1451_v54 }
 0x135   :  { %1888 = vrot.lane.b32.xlu1 %v1847_v20, %s3077_s13  ;;  %693 = vst.msk [vmem:[#allocation3 + $0x18] sm:$0xf] %vm329_vm1, %v677_v63  ;;  %v1665_v5 = vld [vmem:[#allocation2 + $0x6c] sm:$0x1]  ;;  %v1414_v10 = vrot.slane %v1412_v27, 4  ;;  %v1417_v14 = vrot.slane %v1415_v30, 5  ;;  %v1144_v16 = vsel %vm3353_vm5, %v2870_v25, %v1143_v56 }
 0x136   :  { %v2021_v20 = vrot.slane %v2019_v57, 5  ;;  %v821_v23 = vshll.u32 %v717_v59, 16  ;;  %v1332_v24 = vld [vmem:[#allocation2 + $0x2c] sm:$0x1]  ;;  %v1947_v43 = vld [vmem:[#allocation2 + $0x40] sm:$0xf]  ;;  %v818_v15 = vor.u32 %v817_v62, %v814_v61 }
 0x137   :  { %v1454_v21 = vshrl.u32 %v1337_v9, 16  ;;  %v1457_v26 = vshll.u32 %v1337_v9, 16  ;;  %v2885_v29 = vrot.slane %v1664_v39, 9  ;;  %v1750_v3 = vrot.slane %v1665_v5, 5  ;;  %v1234_v28 = vld [vmem:[#allocation2 + $0x58] sm:$0xf] }
 0x138   :  { %1278 = vrot.lane.b32.xlu0 %v1236_v4, %s3079_s4  ;;  %v2017_v4 = vrot.slane %v2016_v58, 4  ;;  %v1418_v33 = vor.u32 %v1417_v14, %v1414_v10  ;;  %v1421_v34 = vshll.u32 %v1332_v24, 16  ;;  %v2052_v35 = vshrl.u32 %v1947_v43, 16  ;;  %v675_v49 = vld [vmem:[#allocation2 + $0x8] sm:$0xf] }
 0x139   :  { %1173 = vrot.lane.b32.xlu1 %v1124_v32, %s3075_s0  ;;  %v2055_v32 = vshll.u32 %v1947_v43, 16  ;;  %v823_v37 = vrot.slane %v821_v23, 5  ;;  %v819_v40 = vrot.slane %v818_v15, 4  ;;  %v1456_v45 = vrot.slane %v1454_v21, 4  ;;  %v1338_v51 = vld [vmem:[#allocation2 + $0x44] sm:$0x1] }
 0x13a   :  { %v2022_v17 = vsel %vm3363_vm8, %v2017_v4, %v2021_v20  ;;  %v1459_v46 = vrot.slane %v1457_v26, 5  ;;  %v1751_v50 = vsel %vm3353_vm5, %v2885_v29, %v1750_v3  ;;  %691 = vst.msk [vmem:[#allocation3 + $0x8] sm:$0xf] %vm329_vm1, %v675_v49  ;;  %v1419_v52 = vrot.slane %v1418_v33, 4  ;;  %v1948_v22 = vld [vmem:[#allocation2 + $0x44] sm:$0x1] }
 0x13b   :  { %v1423_v53 = vrot.slane %v1421_v34, 5  ;;  %v2054_v54 = vrot.slane %v2052_v35, 4  ;;  %v824_v27 = vsel %vm3363_vm8, %v819_v40, %v823_v37  ;;  %v1463_v25 = vshll.u32 %v1338_v51, 16  ;;  %v1237_v58 = vld [vmem:[#allocation2 + $0x70] sm:$0xf] }
 0x13c   :  { %979 = vrot.lane.b32.xlu0 %v852_v55, %s3076_s12  ;;  %v2057_v55 = vrot.slane %v2055_v32, 5  ;;  %v1460_v30 = vor.u32 %v1459_v46, %v1456_v45  ;;  %v718_v59 = vld [vmem:[#allocation2 + $0x30] sm:$0xf]  ;;  %v1048_v9 = vld [vmem:[#allocation2 + $0x58] sm:$0xe] }
 0x13d   :  { %1782 = vrot.lane.b32.xlu1 %v1731_v6, %s3080_s5  ;;  %v1424_v56 = vsel %vm3363_vm8, %v1419_v52, %v1423_v53  ;;  %v2061_v6 = vshll.u32 %v1948_v22, 16  ;;  %v1848_v61 = vld [vmem:[#allocation2 + $0x70] sm:$0xf]  ;;  %v1465_v63 = vrot.slane %v1463_v25, 5  ;;  %v1049_v39 = vld [vmem:[#allocation2 + $0x5c] sm:$0x1] }
 0x13e   :  { %v2058_v57 = vor.u32 %v2057_v55, %v2054_v54  ;;  %v1461_v62 = vrot.slane %v1460_v30, 4  ;;  %v1333_v5 = vld [vmem:[#allocation2 + $0x30] sm:$0xf]  ;;  %v826_v20 = vshrl.u32 %v718_v59, 16  ;;  %v829_v23 = vshll.u32 %v718_v59, 16 }
 0x13f   :  { %v2063_v14 = vrot.slane %v2061_v6, 5  ;;  %v2868_v24 = vrot.slane %v1048_v9, 9  ;;  %v1661_v43 = vld [vmem:[#allocation2 + $0x5c] sm:$0x1]  ;;  %v1135_v15 = vrot.slane %v1049_v39, 5  ;;  %v1426_v21 = vshrl.u32 %v1333_v5, 16 }
 0x140   :  { %1591 = vrot.lane.b32.xlu0 %v1452_v38, %s3081_s17  ;;  %v3690_v38 = vpop.permute.xlu1 %1884  ;;  %v2059_v10 = vrot.slane %v2058_v57, 4  ;;  %v1466_v4 = vsel %vm3363_vm8, %v1461_v62, %v1465_v63  ;;  %v1429_v26 = vshll.u32 %v1333_v5, 16  ;;  %v828_v33 = vrot.slane %v826_v20, 4  ;;  %v719_v32 = vld [vmem:[#allocation2 + $0x34] sm:$0x1] }
 0x141   :  { %1183 = vrot.lane.b32.xlu1 %v1144_v16, %s3075_s0  ;;  %v1660_v16 = vld [vmem:[#allocation2 + $0x58] sm:$0xe]  ;;  %v831_v34 = vrot.slane %v829_v23, 5  ;;  %v678_v37 = vld [vmem:[#allocation2 + $0x20] sm:$0xf]  ;;  %v1428_v40 = vrot.slane %v1426_v21, 4 }
 0x142   :  { %v2883_v29 = vrot.slane %v1660_v16, 9  ;;  %v2064_v3 = vsel %vm3363_vm8, %v2059_v10, %v2063_v14  ;;  %v1431_v45 = vrot.slane %v1429_v26, 5  ;;  %694 = vst.msk [vmem:[#allocation3 + $0x20] sm:$0xf] %vm329_vm1, %v678_v37  ;;  %v1666_v46 = vld [vmem:[#allocation2 + $0x70] sm:$0xe] }
 0x143   :  { %v1667_v49 = vld [vmem:[#allocation2 + $0x74] sm:$0x1]  ;;  %v832_v52 = vor.u32 %v831_v34, %v828_v33  ;;  %v835_v53 = vshll.u32 %v719_v32, 16  ;;  %v1953_v54 = vld [vmem:[#allocation2 + $0x68] sm:$0xf] }
 0x144   :  { %1274 = vrot.lane.b32.xlu0 %v1234_v28, %s3079_s4  ;;  %v1742_v28 = vrot.slane %v1661_v43, 5  ;;  %v3699_v35 = vpop.permute.xlu1 %2205  ;;  %v1235_v55 = vld [vmem:[#allocation2 + $0x60] sm:$0xf]  ;;  %v728_v22 = vld [vmem:[#allocation2 + $0x68] sm:$0xf]  ;;  %v1754_v30 = vrot.slane %v1667_v49, 5  ;;  %v1432_v25 = vor.u32 %v1431_v45, %v1428_v40 }
 0x145   :  { %2197 = vrot.lane.b32.xlu1 %v2022_v17, %s3078_s1  ;;  %v1136_v17 = vsel %vm3353_vm5, %v2868_v24, %v1135_v15  ;;  %v1054_v59 = vld [vmem:[#allocation2 + $0x70] sm:$0xe]  ;;  %v833_v62 = vrot.slane %v832_v52, 4  ;;  %v837_v63 = vrot.slane %v835_v53, 5  ;;  %v1055_v9 = vld [vmem:[#allocation2 + $0x74] sm:$0x1] }
 0x146   :  { %v1743_v51 = vsel %vm3353_vm5, %v2883_v29, %v1742_v28  ;;  %v2097_v39 = vshll.u32 %v1953_v54, 16  ;;  %v896_v5 = vshrl.u32 %v728_v22, 16  ;;  %v899_v10 = vshll.u32 %v728_v22, 16  ;;  %v1343_v14 = vld [vmem:[#allocation2 + $0x68] sm:$0xf] }
 0x147   :  { %v1433_v20 = vrot.slane %v1432_v25, 4  ;;  %v2871_v43 = vrot.slane %v1054_v59, 9  ;;  %v838_v21 = vsel %vm3363_vm8, %v833_v62, %v837_v63  ;;  %v1954_v26 = vld [vmem:[#allocation2 + $0x6c] sm:$0x1]  ;;  %v1499_v28 = vshll.u32 %v1343_v14, 16 }
 0x148   :  { %1792 = vrot.lane.b32.xlu0 %v1751_v50, %s3080_s5  ;;  %v1334_v50 = vld [vmem:[#allocation2 + $0x34] sm:$0x1]  ;;  %v2099_v29 = vrot.slane %v2097_v39, 5  ;;  %v1662_v34 = vld [vmem:[#allocation2 + $0x60] sm:$0xe]  ;;  %v898_v37 = vrot.slane %v896_v5, 4 }
 0x149   :  { %975 = vrot.lane.b32.xlu1 %v824_v27, %s3076_s12  ;;  %v2886_v27 = vrot.slane %v1666_v46, 9  ;;  %v1663_v32 = vld [vmem:[#allocation2 + $0x64] sm:$0x1]  ;;  %v1050_v45 = vld [vmem:[#allocation2 + $0x60] sm:$0xe]  ;;  %v2103_v53 = vshll.u32 %v1954_v26, 16 }
 0x14a   :  { %v1051_v46 = vld [vmem:[#allocation2 + $0x64] sm:$0x1]  ;;  %v729_v49 = vld [vmem:[#allocation2 + $0x6c] sm:$0x1]  ;;  %v1501_v25 = vrot.slane %v1499_v28, 5  ;;  %v1746_v39 = vrot.slane %v1663_v32, 5 }
 0x14b   :  { %v1755_v16 = vsel %vm3353_vm5, %v2886_v27, %v1754_v30  ;;  %v1344_v27 = vld [vmem:[#allocation2 + $0x6c] sm:$0x1]  ;;  %v905_v59 = vshll.u32 %v729_v49, 16  ;;  %v1240_v5 = vld [vmem:[#allocation2 + $0x88] sm:$0xf] }
 0x14c   :  { %1587 = vrot.lane.b32.xlu0 %v1424_v56, %s3081_s17  ;;  %v1435_v56 = vshll.u32 %v1334_v50, 16  ;;  %v724_v50 = vld [vmem:[#allocation2 + $0x58] sm:$0xf]  ;;  %v1956_v49 = vld [vmem:[#allocation2 + $0x74] sm:$0x1] }
 0x14d   :  { %1280 = vrot.lane.b32.xlu1 %v1237_v58, %s3079_s4  ;;  %v1846_v58 = vld [vmem:[#allocation2 + $0x60] sm:$0xf]  ;;  %v868_v62 = vshrl.u32 %v724_v50, 16  ;;  %v871_v63 = vshll.u32 %v724_v50, 16  ;;  %v907_v32 = vrot.slane %v905_v59, 5 }
 0x14e   :  { %v1437_v23 = vrot.slane %v1435_v56, 5  ;;  %v676_v50 = vld [vmem:[#allocation2 + $0x10] sm:$0xf]  ;;  %v2259_v42 = vld [vmem:[#allocation2 + $0x1c] sm:$0x1] }
 0x14f   :  { %692 = vst.msk [vmem:[#allocation3 + $0x10] sm:$0xf] %vm329_vm1, %v676_v50  ;;  %v2326_v31 = vrot.slane %v2259_v42, 5  ;;  %v3866_v12 = vld [vmem:[#allocation2 + $0x88] sm:$0xf] }
 0x150   :  { %1890 = vrot.lane.b32.xlu0 %v1848_v61, %s3077_s13  ;;  %v2094_v61 = vshrl.u32 %v1953_v54, 16  ;;  %v1438_v40 = vsel %vm3363_vm8, %v1433_v20, %v1437_v23  ;;  %v2105_v20 = vrot.slane %v2103_v53, 5  ;;  %v2869_v23 = vrot.slane %v1050_v45, 9  ;;  %v680_v1 = vld [vmem:[#allocation2 + $0x30] sm:$0xf] }
 0x151   :  { %1593 = vrot.lane.b32.xlu1 %v1466_v4, %s3081_s17  ;;  %v1147_v4 = vrot.slane %v1055_v9, 5  ;;  %v2884_v9 = vrot.slane %v1662_v34, 9  ;;  %696 = vst.msk [vmem:[#allocation3 + $0x30] sm:$0xf] %vm329_vm1, %v680_v1 }
 0x152   :  { %v2096_v15 = vrot.slane %v2094_v61, 4  ;;  %v725_v61 = vld [vmem:[#allocation2 + $0x5c] sm:$0x1] }
 0x153   :  { %v1148_v54 = vsel %vm3353_vm5, %v2871_v43, %v1147_v4  ;;  %v1955_v43 = vld [vmem:[#allocation2 + $0x70] sm:$0xf]  ;;  %v877_v26 = vshll.u32 %v725_v61, 16 }
 0x154   :  { %2203 = vrot.lane.b32.xlu0 %v2064_v3, %s3078_s1  ;;  %v1496_v3 = vshrl.u32 %v1343_v14, 16  ;;  %v2100_v22 = vor.u32 %v2099_v29, %v2096_v15  ;;  %v1340_v29 = vld [vmem:[#allocation2 + $0x5c] sm:$0x1] }
 0x155   :  { %1179 = vrot.lane.b32.xlu1 %v1136_v17, %s3075_s0  ;;  %v901_v17 = vrot.slane %v899_v10, 5  ;;  %v3753_v61 = vrot.slane %v877_v26, 5 }
 0x156   :  { %v1498_v30 = vrot.slane %v1496_v3, 4  ;;  %v2101_v4 = vrot.slane %v2100_v22, 4  ;;  %v3736_v3 = vld [vmem:[#allocation2 + $0x88] sm:$0xe]  ;;  %v2111_v22 = vshll.u32 %v1955_v43, 16 }
 0x158   :  { %1788 = vrot.lane.b32.xlu0 %v1743_v51, %s3080_s5  ;;  %v1339_v51 = vld [vmem:[#allocation2 + $0x58] sm:$0xf]  ;;  %v1502_v15 = vor.u32 %v1501_v25, %v1498_v30  ;;  %v1346_v30 = vld [vmem:[#allocation2 + $0x74] sm:$0x1]  ;;  %v2106_v25 = vsel %vm3363_vm8, %v2101_v4, %v2105_v20  ;;  %v1341_v20 = vld [vmem:[#allocation2 + $0x60] sm:$0xf] }
 0x159   :  { %1276 = vrot.lane.b32.xlu1 %v1235_v55, %s3079_s4  ;;  %v3709_v57 = vpop.permute.xlu1 %1872  ;;  %v1851_v55 = vld [vmem:[#allocation2 + $0x88] sm:$0xf]  ;;  %v1468_v10 = vshrl.u32 %v1339_v51, 16  ;;  %v1471_v14 = vshll.u32 %v1339_v51, 16  ;;  %v1519_v50 = vshll.u32 %v1346_v30, 16 }
 0x15a   :  { %v3711_v6 = vpop.permute.xlu0 %1262  ;;  %v1238_v30 = vld [vmem:[#allocation2 + $0x78] sm:$0xf] }
 0x15b   :  { %v1470_v45 = vrot.slane %v1468_v10, 4  ;;  %v1477_v10 = vshll.u32 %v1340_v29, 16 }
 0x15c   :  { %1886 = vrot.lane.b32.xlu0 %v1846_v58, %s3077_s13  ;;  %v902_v58 = vor.u32 %v901_v17, %v898_v37  ;;  %v870_v37 = vrot.slane %v868_v62, 4  ;;  %v873_v17 = vrot.slane %v871_v63, 5  ;;  %v3755_v62 = vld [vmem:[#allocation2 + $0x88] sm:$0xe]  ;;  %v730_v63 = vld [vmem:[#allocation2 + $0x70] sm:$0xf] }
 0x15d   :  { %1794 = vrot.lane.b32.xlu1 %v1755_v16, %s3080_s5 }
 0x15e   :  { %v1259_v24 = vpop.permute.xlu0 %1258  ;;  %v903_v34 = vrot.slane %v902_v58, 4  ;;  %v1503_v58 = vrot.slane %v1502_v15, 4 }
 0x15f   :  { %1307 = vst.msk [vmem:[#allocation3] sm:$0xf] %vm1306_vm15, %v1259_v24  ;;  %v3720_v33 = vpop.permute.xlu1 %1167  ;;  %v1139_v24 = vrot.slane %v1051_v46, 5  ;;  %v1473_v46 = vrot.slane %v1471_v14, 5 }
 0x160   :  { %977 = vrot.lane.b32.xlu0 %v838_v21, %s3076_s12  ;;  %v1505_v21 = vshll.u32 %v1344_v27, 16  ;;  %v1345_v27 = vld [vmem:[#allocation2 + $0x70] sm:$0xf] }
 0x161   :  { %1589 = vrot.lane.b32.xlu1 %v1438_v40, %s3081_s17  ;;  %v1747_v40 = vsel %vm3353_vm5, %v2884_v9, %v1746_v39  ;;  %v1140_v53 = vsel %vm3353_vm5, %v2869_v23, %v1139_v24  ;;  %v908_v39 = vsel %vm3363_vm8, %v903_v34, %v907_v32  ;;  %v3763_v23 = vld [vmem:[#allocation2 + $0x8c] sm:$0x1]  ;;  %v1474_v24 = vor.u32 %v1473_v46, %v1470_v45  ;;  %v731_v32 = vld [vmem:[#allocation2 + $0x74] sm:$0x1]  ;;  %v3778_v34 = vld [vmem:[#allocation2 + $0x78] sm:$0xe] }
 0x162   :  { %v3726_v52 = vpop.permute.xlu0 %1776  ;;  %v1507_v59 = vrot.slane %v1505_v21, 5  ;;  %v1510_v4 = vshrl.u32 %v1345_v27, 16  ;;  %v1513_v15 = vshll.u32 %v1345_v27, 16  ;;  %v1951_v27 = vld [vmem:[#allocation2 + $0x60] sm:$0xf] }
 0x163   :  { %v3730_v56 = vpop.permute.xlu1 %1264 }
 0x164   :  { %1185 = vrot.lane.b32.xlu0 %v1148_v54, %s3075_s0  ;;  %v3748_v54 = vld [vmem:[#allocation2 + $0x8c] sm:$0x1]  ;;  %v1508_v29 = vsel %vm3363_vm8, %v1503_v58, %v1507_v59  ;;  %v1512_v59 = vrot.slane %v1510_v4, 4  ;;  %v1515_v14 = vrot.slane %v1513_v15, 5  ;;  %v919_v58 = vshll.u32 %v731_v32, 16 }
 0x165   :  { %1896 = vrot.lane.b32.xlu1 %v1851_v55, %s3077_s13  ;;  %v2108_v55 = vshrl.u32 %v1955_v43, 16  ;;  %v2117_v43 = vshll.u32 %v1956_v49, 16  ;;  %v1479_v49 = vrot.slane %v1477_v10, 5  ;;  %v2080_v15 = vshrl.u32 %v1951_v27, 16 }
 0x166   :  { %v3734_v16 = vpop.permute.xlu0 %1874 }
 0x167   :  { %v3738_v28 = vpop.permute.xlu1 %1163  ;;  %v2110_v26 = vrot.slane %v2108_v55, 4  ;;  %v3785_v10 = vrot.slane %v2117_v43, 5  ;;  %v3787_v55 = vrot.slane %v1519_v50, 5  ;;  %v3798_v43 = vld [vmem:[#allocation2 + $0x78] sm:$0xe] }
 0x168   :  { %1286 = vrot.lane.b32.xlu0 %v1240_v5, %s3079_s4  ;;  %v874_v5 = vor.u32 %v873_v17, %v870_v37  ;;  %v913_v37 = vshll.u32 %v730_v63, 16  ;;  %v1482_v17 = vshrl.u32 %v1341_v20, 16  ;;  %v2256_v50 = vld [vmem:[#allocation2 + $0x10] sm:$0xe] }
 0x169   :  { %1790 = vrot.lane.b32.xlu1 %v1747_v40, %s3080_s5  ;;  %v2113_v40 = vrot.slane %v2111_v22, 5  ;;  %v1485_v22 = vshll.u32 %v1341_v20, 16  ;;  %v2891_v41 = vrot.slane %v2256_v50, 9 }
 0x16a   :  { %v3744_v51 = vpop.permute.xlu0 %1772  ;;  %v3774_v46 = vrot.slane %v874_v5, 4  ;;  %v915_v60 = vrot.slane %v913_v37, 5  ;;  %v3789_v4 = vrot.slane %v1482_v17, 4  ;;  %v1516_v37 = vor.u32 %v1515_v14, %v1512_v59  ;;  %v3803_v17 = vld [vmem:[#allocation2 + $0x7c] sm:$0x1] }
 0x16b   :  { %v3757_v9 = vpop.permute.xlu1 %1260  ;;  %v2114_v5 = vor.u32 %v2113_v40, %v2110_v26  ;;  %v1487_v26 = vrot.slane %v1485_v22, 5  ;;  %v2083_v40 = vshll.u32 %v1951_v27, 16  ;;  %v1952_v22 = vld [vmem:[#allocation2 + $0x64] sm:$0x1]  ;;  %v726_v59 = vld [vmem:[#allocation2 + $0x60] sm:$0xf] }
 0x16c   :  { %1181 = vrot.lane.b32.xlu0 %v1140_v53, %s3075_s0  ;;  %v910_v53 = vshrl.u32 %v730_v63, 16  ;;  %v3780_v63 = vld [vmem:[#allocation2 + $0x7c] sm:$0x1] }
 0x16d   :  { %2209 = vrot.lane.b32.xlu1 %v2106_v25, %s3078_s1  ;;  %v1475_v25 = vrot.slane %v1474_v24, 4  ;;  %v1849_v24 = vld [vmem:[#allocation2 + $0x78] sm:$0xf]  ;;  %v3810_v18 = vrot.slane %v2114_v5, 4  ;;  %v2085_v48 = vrot.slane %v2083_v40, 5 }
 0x16e   :  { %v3766_v21 = vpop.permute.xlu0 %1870  ;;  %v912_v20 = vrot.slane %v910_v53, 4  ;;  %v2257_v53 = vld [vmem:[#allocation2 + $0x14] sm:$0x1] }
 0x16f   :  { %v3771_v45 = vpop.permute.xlu1 %1778  ;;  %v1480_v32 = vsel %vm3363_vm8, %v1475_v25, %v1479_v49  ;;  %v2322_v36 = vrot.slane %v2257_v53, 5  ;;  %v1491_v49 = vshll.u32 %v1342_v0, 16  ;;  %v3812_v25 = vld [vmem:[#allocation2 + $0x90] sm:$0xe]  ;;  %v3819_v53 = vrot.slane %v919_v58, 5 }
 0x170   :  { %1599 = vrot.lane.b32.xlu0 %v1508_v29, %s3081_s17  ;;  %v916_v14 = vor.u32 %v915_v60, %v912_v20  ;;  %v3824_v60 = vrot.slane %v1516_v37, 4  ;;  %v3828_v5 = vld [vmem:[#allocation2 + $0x94] sm:$0x1]  ;;  %v4505_v20 = vrot.slane %v3763_v23, 5  ;;  %v1852_v0 = vld [vmem:[#allocation2 + $0x90] sm:$0xf] }
 0x171   :  { %987 = vrot.lane.b32.xlu1 %v908_v39, %s3076_s12  ;;  %v880_v39 = vsel %vm3363_vm8, %v3774_v46, %v3753_v61  ;;  %v2323_v50 = vsel %vm3353_vm5, %v2891_v41, %v2322_v36  ;;  %v2082_v46 = vrot.slane %v2080_v15, 4  ;;  %v1488_v36 = vor.u32 %v1487_v26, %v3789_v4  ;;  %v3841_v4 = vld [vmem:[#allocation2 + $0x80] sm:$0xe]  ;;  %v1961_v26 = vld [vmem:[#allocation2 + $0x88] sm:$0xf] }
 0x172   :  { %v3783_v29 = vpop.permute.xlu0 %1169  ;;  %2400 = vst.msk [vmem:[#allocation3 + $0x4] sm:$0xf] %vm329_vm1, %v2323_v50  ;;  %v2089_v41 = vshll.u32 %v1952_v22, 16  ;;  %v3843_v37 = vrot.slane %v916_v14, 4  ;;  %v3845_v22 = vrot.slane %v1491_v49, 5 }
 0x173   :  { %v3791_v47 = vpop.permute.xlu1 %1880  ;;  %v3847_v50 = vld [vmem:[#allocation2 + $0x84] sm:$0x1]  ;;  %v3862_v40 = vrot.slane %v1488_v36, 4  ;;  %v1241_v14 = vld [vmem:[#allocation2 + $0x90] sm:$0xf] }
 0x174   :  { %4504 = vst [vmem:[#allocation20_spill] sm:$0xff] %v3791_v47  ;;  %1282 = vrot.lane.b32.xlu0 %v1238_v30, %s3079_s4  ;;  %v2258_v30 = vld [vmem:[#allocation2 + $0x18] sm:$0xe]  ;;  %v3864_v13 = vrot.slane %v2089_v41, 5  ;;  %v3880_v49 = vld [vmem:[#allocation2 + $0x84] sm:$0x1]  ;;  %v922_v1 = vsel %vm3363_vm8, %v3843_v37, %v3819_v53 }
 0x175   :  { %1892 = vrot.lane.b32.xlu1 %v1849_v24, %s3077_s13  ;;  %v2892_v27 = vrot.slane %v2258_v30, 9  ;;  %v727_v30 = vld [vmem:[#allocation2 + $0x64] sm:$0x1]  ;;  %v3943_v37 = vld [vmem:[#allocation2 + $0x78] sm:$0xf] }
 0x176   :  { %v3806_v61 = vpop.permute.xlu0 %1270 }
 0x177   :  { %v3816_v24 = vpop.permute.xlu1 %1774  ;;  %v2327_v42 = vsel %vm3353_vm5, %v2892_v27, %v2326_v31  ;;  %v4506_v31 = vrot.slane %v3755_v62, 9  ;;  %v891_v27 = vshll.u32 %v727_v30, 16  ;;  %v4507_v62 = vrot.slane %v3748_v54, 5  ;;  %v736_v30 = vld [vmem:[#allocation2 + $0x88] sm:$0xf] }
 0x178   :  { %1595 = vrot.lane.b32.xlu0 %v1480_v32, %s3081_s17  ;;  %2401 = vst.msk [vmem:[#allocation3 + $0xc] sm:$0xf] %vm329_vm1, %v2327_v42  ;;  %v882_v32 = vshrl.u32 %v726_v59, 16  ;;  %v4508_v42 = vrot.slane %v3736_v3, 9  ;;  %v2150_v54 = vshrl.u32 %v1961_v26, 16  ;;  %v2153_v3 = vshll.u32 %v1961_v26, 16 }
 0x179   :  { %983 = vrot.lane.b32.xlu1 %v880_v39, %s3076_s12  ;;  %v1767_v15 = vsel %vm3353_vm5, %v4506_v31, %v4505_v20  ;;  %v885_v39 = vshll.u32 %v726_v59, 16  ;;  %v2086_v31 = vor.u32 %v2085_v48, %v2082_v46  ;;  %v3860_v59 = vld [vmem:[#allocation2 + $0x8c] sm:$0x1]  ;;  %v3878_v41 = vrot.slane %v891_v27, 5  ;;  %v2260_v27 = vld [vmem:[#allocation2 + $0x20] sm:$0xe] }
 0x17a   :  { %v3832_v58 = vpop.permute.xlu0 %1165  ;;  %v1160_v20 = vsel %vm3353_vm5, %v4508_v42, %v4507_v62  ;;  %v3871_v46 = vrot.slane %v882_v32, 4  ;;  %v3874_v62 = vld [vmem:[#allocation2 + $0x80] sm:$0xe]  ;;  %v679_v42 = vld [vmem:[#allocation2 + $0x28] sm:$0xf]  ;;  %v952_v26 = vshrl.u32 %v736_v30, 16 }
 0x17b   :  { %v3849_v23 = vpop.permute.xlu1 %2193  ;;  %v3876_v36 = vrot.slane %v885_v39, 5  ;;  %v955_v11 = vshll.u32 %v736_v30, 16  ;;  %695 = vst.msk [vmem:[#allocation3 + $0x28] sm:$0xf] %vm329_vm1, %v679_v42  ;;  %v3884_v32 = vrot.slane %v2086_v31, 4  ;;  %v1552_v39 = vshrl.u32 %v3866_v12, 16 }
 0x17c   :  { %1800 = vrot.lane.b32.xlu0 %v1767_v15, %s3080_s5  ;;  %v3890_v7 = vrot.slane %v2150_v54, 4  ;;  %v3892_v30 = vrot.slane %v2153_v3, 5  ;;  %v2893_v2 = vrot.slane %v2260_v27, 9  ;;  %v2262_v3 = vld [vmem:[#allocation2 + $0x28] sm:$0xe]  ;;  %v3907_v27 = vrot.slane %v952_v26, 4 }
 0x17d   :  { %1191 = vrot.lane.b32.xlu1 %v1160_v20, %s3075_s0  ;;  %v2263_v48 = vld [vmem:[#allocation2 + $0x2c] sm:$0x1]  ;;  %v2894_v42 = vrot.slane %v2262_v3, 9  ;;  %v2268_v26 = vld [vmem:[#allocation2 + $0x40] sm:$0xe] }
 0x17e   :  { %v3869_v15 = vpop.permute.xlu0 %1583  ;;  %v686_v3 = vld [vmem:[#allocation2 + $0x70] sm:$0xf]  ;;  %v684_v54 = vld [vmem:[#allocation2 + $0x60] sm:$0xf] }
 0x17f   :  { %v972_v20 = vpop.permute.xlu1 %971  ;;  %702 = vst.msk [vmem:[#allocation3 + $0x60] sm:$0xf] %vm329_vm1, %v686_v3  ;;  %700 = vst.msk [vmem:[#allocation3 + $0x50] sm:$0xf] %vm329_vm1, %v684_v54 }
 0x180   :  { %1898 = vrot.lane.b32.xlu0 %v1852_v0, %s3077_s13  ;;  %1017 = vst.msk [vmem:[#allocation3 + $0x18] sm:$0xf] %vm1013_vm9, %v972_v20  ;;  %v2261_v0 = vld [vmem:[#allocation2 + $0x24] sm:$0x1]  ;;  %v2120_v20 = vsel %vm3363_vm8, %v3810_v18, %v3785_v10  ;;  %v3915_v18 = vrot.slane %v1552_v39, 4 }
 0x181   :  { %1213 = vst.msk [vmem:[#allocation3 + $0x18] sm:$0xf] %vm1209_vm14, %v3720_v33  ;;  %1288 = vrot.lane.b32.xlu1 %v1241_v14, %s3079_s4  ;;  %v2330_v8 = vrot.slane %v2261_v0, 5  ;;  %v3909_v33 = vrot.slane %v955_v11, 5  ;;  %v1555_v14 = vshll.u32 %v3866_v12, 16  ;;  %v2334_v0 = vrot.slane %v2263_v48, 5 }
 0x182   :  { %v3898_v31 = vpop.permute.xlu0 %1266  ;;  %1310 = vst.msk [vmem:[#allocation3 + $0x18] sm:$0xf] %vm1306_vm15, %v3730_v56  ;;  %v685_v56 = vld [vmem:[#allocation2 + $0x68] sm:$0xf]  ;;  %v1522_v11 = vsel %vm3363_vm8, %v3824_v60, %v3787_v55  ;;  %v2269_v12 = vld [vmem:[#allocation2 + $0x44] sm:$0x1] }
 0x183   :  { %v3912_v47 = vpop.permute.xlu1 %1876  ;;  %v2331_v10 = vsel %vm3353_vm5, %v2893_v2, %v2330_v8  ;;  %701 = vst.msk [vmem:[#allocation3 + $0x58] sm:$0xf] %vm329_vm1, %v685_v56  ;;  %v2270_v39 = vld [vmem:[#allocation2 + $0x48] sm:$0xe]  ;;  %v2335_v8 = vsel %vm3353_vm5, %v2894_v42, %v2334_v0  ;;  %v2897_v55 = vrot.slane %v2268_v26, 9  ;;  %v2346_v60 = vrot.slane %v2269_v12, 5 }
 0x184   :  { %2211 = vrot.lane.b32.xlu0 %v2120_v20, %s3078_s1  ;;  %2402 = vst.msk [vmem:[#allocation3 + $0x14] sm:$0xf] %vm329_vm1, %v2331_v10  ;;  %v2271_v20 = vld [vmem:[#allocation2 + $0x4c] sm:$0x1]  ;;  %v683_v48 = vld [vmem:[#allocation2 + $0x58] sm:$0xf] }
 0x185   :  { %1601 = vrot.lane.b32.xlu1 %v1522_v11, %s3081_s17  ;;  %v3935_v10 = vrot.slane %v1555_v14, 5  ;;  %2403 = vst.msk [vmem:[#allocation3 + $0x1c] sm:$0xf] %vm329_vm1, %v2335_v8  ;;  %v2898_v56 = vrot.slane %v2270_v39, 9  ;;  %v2350_v11 = vrot.slane %v2271_v20, 5  ;;  %v2347_v42 = vsel %vm3353_vm5, %v2897_v55, %v2346_v60 }
 0x186   :  { %v3927_v2 = vpop.permute.xlu0 %1784  ;;  %699 = vst.msk [vmem:[#allocation3 + $0x48] sm:$0xf] %vm329_vm1, %v683_v48  ;;  %v2272_v14 = vld [vmem:[#allocation2 + $0x60] sm:$0xe]  ;;  %v2273_v0 = vld [vmem:[#allocation2 + $0x64] sm:$0x1] }
 0x187   :  { %v3940_v53 = vpop.permute.xlu1 %1175  ;;  %v2274_v26 = vld [vmem:[#allocation2 + $0x68] sm:$0xe]  ;;  %v4509_v12 = vrot.slane %v3780_v63, 5  ;;  %v4510_v39 = vrot.slane %v3778_v34, 9  ;;  %2406 = vst.msk [vmem:[#allocation3 + $0x34] sm:$0xf] %vm329_vm1, %v2347_v42 }
 0x188   :  { %989 = vrot.lane.b32.xlu0 %v922_v1, %s3076_s12  ;;  %v2351_v1 = vsel %vm3353_vm5, %v2898_v56, %v2350_v11  ;;  %v2275_v8 = vld [vmem:[#allocation2 + $0x6c] sm:$0x1]  ;;  %v2899_v48 = vrot.slane %v2272_v14, 9  ;;  %v2354_v55 = vrot.slane %v2273_v0, 5  ;;  %v689_v60 = vld [vmem:[#allocation2 + $0x88] sm:$0xf] }
 0x189   :  { %v1152_v20 = vsel %vm3353_vm5, %v4510_v39, %v4509_v12  ;;  %2407 = vst.msk [vmem:[#allocation3 + $0x3c] sm:$0xf] %vm329_vm1, %v2351_v1  ;;  %v2900_v63 = vrot.slane %v2274_v26, 9  ;;  %v2358_v3 = vrot.slane %v2275_v8, 5  ;;  %705 = vst.msk [vmem:[#allocation3 + $0x78] sm:$0xf] %vm329_vm1, %v689_v60 }
 0x18a   :  { %1187 = vrot.lane.b32.xlu1 %v1152_v20, %s3075_s0  ;;  %v1580_v54 = vpop.permute.xlu0 %1579  ;;  %v687_v34 = vld [vmem:[#allocation2 + $0x78] sm:$0xf]  ;;  %v688_v12 = vld [vmem:[#allocation2 + $0x80] sm:$0xf]  ;;  %v4511_v56 = vrot.slane %v3803_v17, 5  ;;  %v4512_v11 = vrot.slane %v3798_v43, 9  ;;  %v2355_v0 = vsel %vm3353_vm5, %v2899_v48, %v2354_v55 }
 0x18b   :  { %1628 = vst.msk [vmem:[#allocation3] sm:$0xf] %vm1627_vm2, %v1580_v54  ;;  %v1239_v14 = vld [vmem:[#allocation2 + $0x80] sm:$0xf]  ;;  %v2276_v26 = vld [vmem:[#allocation2 + $0x70] sm:$0xe]  ;;  %v968_v1 = vpop.permute.xlu1 %967  ;;  %v2359_v43 = vsel %vm3353_vm5, %v2900_v63, %v2358_v3 }
 0x18c   :  { %v1759_v42 = vsel %vm3353_vm5, %v4512_v11, %v4511_v56  ;;  %703 = vst.msk [vmem:[#allocation3 + $0x68] sm:$0xf] %vm329_vm1, %v687_v34  ;;  %704 = vst.msk [vmem:[#allocation3 + $0x70] sm:$0xf] %vm329_vm1, %v688_v12  ;;  %v2277_v39 = vld [vmem:[#allocation2 + $0x74] sm:$0x1] }
 0x18d   :  { %v2278_v20 = vld [vmem:[#allocation2 + $0x78] sm:$0xe]  ;;  %1821 = vst.msk [vmem:[#allocation3] sm:$0xf] %vm1820_vm3, %v3744_v51  ;;  %1796 = vrot.lane.b32.xlu0 %v1759_v42, %s3080_s5  ;;  %v2279_v17 = vld [vmem:[#allocation2 + $0x7c] sm:$0x1] }
 0x18e   :  { %2408 = vst.msk [vmem:[#allocation3 + $0x44] sm:$0xf] %vm329_vm1, %v2355_v0  ;;  %v2901_v8 = vrot.slane %v2276_v26, 9  ;;  %v2362_v48 = vrot.slane %v2277_v39, 5  ;;  %v2902_v55 = vrot.slane %v2278_v20, 9  ;;  %v1524_v54 = vshrl.u32 %v3943_v37, 16  ;;  %1284 = vrot.lane.b32.xlu1 %v1239_v14, %s3079_s4  ;;  %v3985_v63 = vpop.permute.xlu0 %1882 }
 0x18f   :  { %1015 = vst.msk [vmem:[#allocation3 + $0x8] sm:$0xf] %vm1013_vm9, %v968_v1  ;;  %v1850_v60 = vld [vmem:[#allocation2 + $0x80] sm:$0xf]  ;;  %v2366_v51 = vrot.slane %v2279_v17, 5  ;;  %v4513_v3 = vrot.slane %v3828_v5, 5  ;;  %v888_v5 = vor.u32 %v3876_v36, %v3871_v46 }
 0x190   :  { %1919 = vst.msk [vmem:[#allocation3] sm:$0xf] %vm1918_vm4, %v3766_v21  ;;  %v2280_v34 = vld [vmem:[#allocation2 + $0x80] sm:$0xe]  ;;  %v2281_v12 = vld [vmem:[#allocation2 + $0x84] sm:$0x1]  ;;  %v2363_v42 = vsel %vm3353_vm5, %v2901_v8, %v2362_v48  ;;  %v4006_v8 = vpop.permute.xlu1 %1272 }
 0x191   :  { %2409 = vst.msk [vmem:[#allocation3 + $0x4c] sm:$0xf] %vm329_vm1, %v2359_v43  ;;  %v4514_v56 = vrot.slane %v3812_v25, 9  ;;  %v3993_v11 = vld [vmem:[#allocation2 + $0x8c] sm:$0x1]  ;;  %v2903_v39 = vrot.slane %v2280_v34, 9  ;;  %v2367_v25 = vsel %vm3353_vm5, %v2902_v55, %v2366_v51  ;;  %1894 = vrot.lane.b32.xlu0 %v1850_v60, %s3077_s13  ;;  %v2092_v34 = vsel %vm3363_vm8, %v3884_v32, %v3864_v13 }
 0x192   :  { %1211 = vst.msk [vmem:[#allocation3 + $0x8] sm:$0xf] %vm1209_vm14, %v3738_v28  ;;  %v2282_v0 = vld [vmem:[#allocation2 + $0x88] sm:$0xe]  ;;  %v2283_v26 = vld [vmem:[#allocation2 + $0x8c] sm:$0x1] }
 0x193   :  { %v1771_v21 = vsel %vm3353_vm5, %v4514_v56, %v4513_v3  ;;  %v2370_v28 = vrot.slane %v2281_v12, 5  ;;  %1308 = vst.msk [vmem:[#allocation3 + $0x8] sm:$0xf] %vm1306_vm15, %v3757_v9  ;;  %v4001_v14 = vld [vmem:[#allocation2 + $0x8c] sm:$0x1]  ;;  %v2904_v20 = vrot.slane %v2282_v0, 9  ;;  %v1494_v9 = vsel %vm3363_vm8, %v3862_v40, %v3845_v22  ;;  %v4024_v56 = vpop.permute.xlu0 %2195 }
 0x194   :  { %2410 = vst.msk [vmem:[#allocation3 + $0x54] sm:$0xf] %vm329_vm1, %v2363_v42  ;;  %v2374_v1 = vrot.slane %v2283_v26, 5  ;;  %v2264_v43 = vld [vmem:[#allocation2 + $0x30] sm:$0xe]  ;;  %1597 = vrot.lane.b32.xlu1 %v1494_v9, %s3081_s17  ;;  %v1527_v0 = vshll.u32 %v3943_v37, 16 }
 0x195   :  { %v2265_v17 = vld [vmem:[#allocation2 + $0x34] sm:$0x1]  ;;  %2411 = vst.msk [vmem:[#allocation3 + $0x5c] sm:$0xf] %vm329_vm1, %v2367_v25  ;;  %v2371_v46 = vsel %vm3353_vm5, %v2903_v39, %v2370_v28  ;;  %v2266_v36 = vld [vmem:[#allocation2 + $0x38] sm:$0xe]  ;;  %v2156_v28 = vor.u32 %v3892_v30, %v3890_v7  ;;  %2207 = vrot.lane.b32.xlu0 %v2092_v34, %s3078_s1 }
 0x196   :  { %v2267_v48 = vld [vmem:[#allocation2 + $0x3c] sm:$0x1]  ;;  %v2895_v55 = vrot.slane %v2264_v43, 9  ;;  %v2338_v51 = vrot.slane %v2265_v17, 5  ;;  %v2375_v60 = vsel %vm3353_vm5, %v2904_v20, %v2374_v1  ;;  %2412 = vst.msk [vmem:[#allocation3 + $0x64] sm:$0xf] %vm329_vm1, %v2371_v46  ;;  %v1586_v43 = vpop.permute.xlu1 %1585 }
 0x197   :  { %v2896_v40 = vrot.slane %v2266_v36, 9  ;;  %v2342_v22 = vrot.slane %v2267_v48, 5  ;;  %v2284_v12 = vld [vmem:[#allocation2 + $0x90] sm:$0xe]  ;;  %v2285_v3 = vld [vmem:[#allocation2 + $0x94] sm:$0x1]  ;;  %v1558_v36 = vor.u32 %v3935_v10, %v3915_v18 }
 0x198   :  { %v1957_v42 = vld [vmem:[#allocation2 + $0x78] sm:$0xf]  ;;  %2413 = vst.msk [vmem:[#allocation3 + $0x6c] sm:$0xf] %vm329_vm1, %v2375_v60  ;;  %v2339_v13 = vsel %vm3353_vm5, %v2895_v55, %v2338_v51  ;;  %v2905_v32 = vrot.slane %v2284_v12, 9  ;;  %v2378_v26 = vrot.slane %v2285_v3, 5  ;;  %1802 = vrot.lane.b32.xlu1 %v1771_v21, %s3080_s5 }
 0x199   :  { %v889_v39 = vrot.slane %v888_v5, 4  ;;  %v961_v25 = vshll.u32 %v3993_v11, 16  ;;  %v1959_v20 = vld [vmem:[#allocation2 + $0x80] sm:$0xf]  ;;  %v2343_v1 = vsel %vm3353_vm5, %v2896_v40, %v2342_v22  ;;  %2404 = vst.msk [vmem:[#allocation3 + $0x24] sm:$0xf] %vm329_vm1, %v2339_v13  ;;  %v958_v5 = vor.u32 %v3909_v33, %v3907_v27 }
 0x19a   :  { %v4515_v17 = vshll.u32 %v3860_v59, 16  ;;  %v1561_v7 = vshll.u32 %v4001_v14, 16  ;;  %2405 = vst.msk [vmem:[#allocation3 + $0x2c] sm:$0xf] %vm329_vm1, %v2343_v1  ;;  %v2379_v30 = vsel %vm3353_vm5, %v2905_v32, %v2378_v26  ;;  %v4516_v11 = vrot.slane %v3847_v50, 5  ;;  %v974_v50 = vpop.permute.xlu0 %973  ;;  %v4078_v37 = vpop.permute.xlu1 %1171 }
 0x19b   :  { %1631 = vst.msk [vmem:[#allocation3 + $0x18] sm:$0xf] %vm1627_vm2, %v1586_v43  ;;  %v4517_v46 = vrot.slane %v3841_v4, 9  ;;  %v1958_v27 = vld [vmem:[#allocation2 + $0x7c] sm:$0x1]  ;;  %v2122_v33 = vshrl.u32 %v1957_v42, 16  ;;  %v894_v18 = vsel %vm3363_vm8, %v889_v39, %v3878_v41 }
 0x19c   :  { %v4039_v9 = vrot.slane %v4515_v17, 5  ;;  %v2125_v14 = vshll.u32 %v1957_v42, 16  ;;  %v732_v48 = vld [vmem:[#allocation2 + $0x78] sm:$0xf]  ;;  %2414 = vst.msk [vmem:[#allocation3 + $0x74] sm:$0xf] %vm329_vm1, %v2379_v30  ;;  %985 = vrot.lane.b32.xlu0 %v894_v18, %s3076_s12 }
 0x19d   :  { %v1763_v59 = vsel %vm3353_vm5, %v4517_v46, %v4516_v11  ;;  %1824 = vst.msk [vmem:[#allocation3 + $0x18] sm:$0xf] %vm1820_vm3, %v3771_v45  ;;  %v1348_v55 = vld [vmem:[#allocation2 + $0x7c] sm:$0x1]  ;;  %v1526_v4 = vrot.slane %v1524_v54, 4  ;;  %v1529_v51 = vrot.slane %v1527_v0, 5 }
 0x19e   :  { %v2136_v34 = vshrl.u32 %v1959_v20, 16  ;;  %v2139_v60 = vshll.u32 %v1959_v20, 16  ;;  %1018 = vst.msk [vmem:[#allocation3 + $0x20] sm:$0xf] %vm1013_vm9, %v974_v50  ;;  %v2157_v10 = vrot.slane %v2156_v28, 4  ;;  %v4518_v40 = vrot.slane %v3880_v49, 5  ;;  %1798 = vrot.lane.b32.xlu1 %v1763_v59, %s3080_s5  ;;  %v4089_v43 = vpop.permute.xlu1 %1268 }
 0x19f   :  { %v4519_v45 = vrot.slane %v3874_v62, 9  ;;  %v4072_v22 = vrot.slane %v961_v25, 5  ;;  %1922 = vst.msk [vmem:[#allocation3 + $0x18] sm:$0xf] %vm1918_vm4, %v3912_v47  ;;  %v959_v41 = vrot.slane %v958_v5, 4  ;;  %v1563_v54 = vrot.slane %v1561_v7, 5 }
 0x1a0   :  { %1214 = vst.msk [vmem:[#allocation3 + $0x20] sm:$0xf] %vm1209_vm14, %v3783_v29  ;;  %v924_v49 = vshrl.u32 %v732_v48, 16  ;;  %v927_v12 = vshll.u32 %v732_v48, 16  ;;  %v734_v62 = vld [vmem:[#allocation2 + $0x80] sm:$0xf]  ;;  %v4084_v29 = vpop.permute.xlu0 %1780  ;;  %v1530_v26 = vor.u32 %v1529_v51, %v1526_v4  ;;  %v2162_v25 = vsel %vm3363_vm8, %v2157_v10, %v4039_v9 }
 0x1a1   :  { %v1156_v21 = vsel %vm3353_vm5, %v4519_v45, %v4518_v40  ;;  %1311 = vst.msk [vmem:[#allocation3 + $0x20] sm:$0xf] %vm1306_vm15, %v3898_v31  ;;  %v2124_v3 = vrot.slane %v2122_v33, 4  ;;  %v2127_v42 = vrot.slane %v2125_v14, 5  ;;  %v2131_v0 = vshll.u32 %v1958_v27, 16 }
 0x1a2   :  { %v1533_v13 = vshll.u32 %v1348_v55, 16  ;;  %v1353_v47 = vld [vmem:[#allocation2 + $0x90] sm:$0xf]  ;;  %v1559_v32 = vrot.slane %v1558_v36, 4  ;;  %v2138_v39 = vrot.slane %v2136_v34, 4  ;;  %v2141_v28 = vrot.slane %v2139_v60, 5  ;;  %1189 = vrot.lane.b32.xlu0 %v1156_v21, %s3075_s0  ;;  %2217 = vrot.lane.b32.xlu1 %v2162_v25, %s3078_s1  ;;  %v4100_v45 = vpop.permute.xlu1 %1786 }
 0x1a3   :  { %v1960_v20 = vld [vmem:[#allocation2 + $0x84] sm:$0x1]  ;;  %v938_v31 = vshrl.u32 %v734_v62, 16  ;;  %v941_v1 = vshll.u32 %v734_v62, 16  ;;  %v926_v17 = vrot.slane %v924_v49, 4  ;;  %v929_v5 = vrot.slane %v927_v12, 5 }
 0x1a4   :  { %v1566_v7 = vshrl.u32 %v1353_v47, 16  ;;  %v1569_v30 = vshll.u32 %v1353_v47, 16  ;;  %v1943_v11 = vld [vmem:[#allocation2 + $0x30] sm:$0xf]  ;;  %v964_v46 = vsel %vm3363_vm8, %v959_v41, %v4072_v22  ;;  %v2128_v59 = vor.u32 %v2127_v42, %v2124_v3  ;;  %v733_v27 = vld [vmem:[#allocation2 + $0x7c] sm:$0x1]  ;;  %v4096_v33 = vpop.permute.xlu0 %1878 }
 0x1a5   :  { %v2133_v36 = vrot.slane %v2131_v0, 5  ;;  %v1535_v9 = vrot.slane %v1533_v13, 5  ;;  %v1564_v14 = vsel %vm3363_vm8, %v1559_v32, %v1563_v54  ;;  %v1531_v48 = vrot.slane %v1530_v26, 4  ;;  %v735_v4 = vld [vmem:[#allocation2 + $0x84] sm:$0x1] }
 0x1a6   :  { %v2142_v50 = vor.u32 %v2141_v28, %v2138_v39  ;;  %v2145_v55 = vshll.u32 %v1960_v20, 16  ;;  %v1349_v51 = vld [vmem:[#allocation2 + $0x80] sm:$0xf]  ;;  %v940_v34 = vrot.slane %v938_v31, 4  ;;  %v943_v60 = vrot.slane %v941_v1, 5  ;;  %1607 = vrot.lane.b32.xlu0 %v1564_v14, %s3081_s17  ;;  %995 = vrot.lane.b32.xlu1 %v964_v46, %s3076_s12  ;;  %v1582_v31 = vpop.permute.xlu1 %1581 }
 0x1a7   :  { %v2024_v18 = vshrl.u32 %v1943_v11, 16  ;;  %v2027_v10 = vshll.u32 %v1943_v11, 16  ;;  %v1963_v40 = vld [vmem:[#allocation2 + $0x90] sm:$0xf]  ;;  %v930_v21 = vor.u32 %v929_v5, %v926_v17  ;;  %v933_v22 = vshll.u32 %v733_v27, 16 }
 0x1a8   :  { %v1568_v41 = vrot.slane %v1566_v7, 4  ;;  %v1571_v49 = vrot.slane %v1569_v30, 5  ;;  %v2129_v12 = vrot.slane %v2128_v59, 4  ;;  %v1354_v54 = vld [vmem:[#allocation2 + $0x94] sm:$0x1]  ;;  %v947_v62 = vshll.u32 %v735_v4, 16  ;;  %v2192_v0 = vpop.permute.xlu0 %2191 }
 0x1a9   :  { %v1538_v3 = vshrl.u32 %v1349_v51, 16  ;;  %v1541_v42 = vshll.u32 %v1349_v51, 16  ;;  %v1536_v13 = vsel %vm3363_vm8, %v1531_v48, %v1535_v9  ;;  %v2147_v47 = vrot.slane %v2145_v55, 5  ;;  %2240 = vst.msk [vmem:[#allocation3] sm:$0xf] %vm2239_vm6, %v2192_v0 }
 0x1aa   :  { %v2164_v32 = vshrl.u32 %v1963_v40, 16  ;;  %v2167_v26 = vshll.u32 %v1963_v40, 16  ;;  %v2143_v39 = vrot.slane %v2142_v50, 4  ;;  %v944_v28 = vor.u32 %v943_v60, %v940_v34  ;;  %1603 = vrot.lane.b32.xlu0 %v1536_v13, %s3081_s17  ;;  %v1944_v30 = vld [vmem:[#allocation2 + $0x34] sm:$0x1] }
 0x1ab   :  { %v2026_v25 = vrot.slane %v2024_v18, 4  ;;  %v2029_v20 = vrot.slane %v2027_v10, 5  ;;  %v931_v1 = vrot.slane %v930_v21, 4  ;;  %v935_v17 = vrot.slane %v933_v22, 5  ;;  %1629 = vst.msk [vmem:[#allocation3 + $0x8] sm:$0xf] %vm1627_vm2, %v1582_v31  ;;  %v4123_v18 = vpop.permute.xlu1 %1888 }
 0x1ac   :  { %v1572_v5 = vor.u32 %v1571_v49, %v1568_v41  ;;  %v1575_v7 = vshll.u32 %v1354_v54, 16  ;;  %v2134_v11 = vsel %vm3363_vm8, %v2129_v12, %v2133_v36  ;;  %v949_v46 = vrot.slane %v947_v62, 5  ;;  %1822 = vst.msk [vmem:[#allocation3 + $0x8] sm:$0xf] %vm1820_vm3, %v3816_v24  ;;  %v970_v27 = vpop.permute.xlu0 %969  ;;  %v1350_v14 = vld [vmem:[#allocation2 + $0x84] sm:$0x1] }
 0x1ad   :  { %v1540_v59 = vrot.slane %v1538_v3, 4  ;;  %v1543_v9 = vrot.slane %v1541_v42, 5  ;;  %2213 = vrot.lane.b32.xlu1 %v2134_v11, %s3078_s1  ;;  %v2166_v48 = vrot.slane %v2164_v32, 4  ;;  %v2169_v50 = vrot.slane %v2167_v26, 5  ;;  %v1945_v55 = vld [vmem:[#allocation2 + $0x38] sm:$0xf] }
 0x1ae   :  { %1920 = vst.msk [vmem:[#allocation3 + $0x8] sm:$0xf] %vm1918_vm4, %v3709_v57  ;;  %v2148_v36 = vsel %vm3363_vm8, %v2143_v39, %v2147_v47  ;;  %v945_v4 = vrot.slane %v944_v28, 4  ;;  %v2030_v51 = vor.u32 %v2029_v20, %v2026_v25  ;;  %v2033_v34 = vshll.u32 %v1944_v30, 16  ;;  %v1964_v60 = vld [vmem:[#allocation2 + $0x94] sm:$0x1] }
 0x1af   :  { %1016 = vst.msk [vmem:[#allocation3 + $0x10] sm:$0xf] %vm1013_vm9, %v970_v27  ;;  %v1965_v24 = vld [vmem:[#allocation2 + $0x98] sm:$0xf]  ;;  %v936_v57 = vsel %vm3363_vm8, %v931_v1, %v935_v17  ;;  %2215 = vrot.lane.b32.xlu0 %v2148_v36, %s3078_s1  ;;  %v1573_v10 = vrot.slane %v1572_v5, 4  ;;  %v1577_v40 = vrot.slane %v1575_v7, 5  ;;  %v1544_v21 = vor.u32 %v1543_v9, %v1540_v59 }
 0x1b0   :  { %2241 = vst.msk [vmem:[#allocation3 + $0x8] sm:$0xf] %vm2239_vm6, %v3849_v23  ;;  %v1547_v22 = vshll.u32 %v1350_v14, 16  ;;  %v2038_v41 = vshrl.u32 %v1945_v55, 16  ;;  %v2041_v49 = vshll.u32 %v1945_v55, 16  ;;  %v2170_v23 = vor.u32 %v2169_v50, %v2166_v48 }
 0x1b1   :  { %1212 = vst.msk [vmem:[#allocation3 + $0x10] sm:$0xf] %vm1209_vm14, %v3832_v58  ;;  %991 = vrot.lane.b32.xlu1 %v936_v57, %s3076_s12  ;;  %v4133_v58 = vpop.permute.xlu0 %1278  ;;  %v2173_v12 = vshll.u32 %v1964_v60, 16  ;;  %v2178_v54 = vshrl.u32 %v1965_v24, 16  ;;  %v2031_v62 = vrot.slane %v2030_v51, 4  ;;  %v2035_v3 = vrot.slane %v2033_v34, 5 }
 0x1b2   :  { %1309 = vst.msk [vmem:[#allocation3 + $0x10] sm:$0xf] %vm1306_vm15, %v3711_v6  ;;  %v950_v6 = vsel %vm3363_vm8, %v945_v4, %v949_v46  ;;  %v2181_v42 = vshll.u32 %v1965_v24, 16  ;;  %v1578_v0 = vsel %vm3363_vm8, %v1573_v10, %v1577_v40  ;;  %v1549_v13 = vrot.slane %v1547_v22, 5  ;;  %v3053_v31 = vld [vmem:[#allocation3 + $0x4] ss:$8 sps:$4 sm:$0xff]  }
 0x1b3   :  { %1630 = vst.msk [vmem:[#allocation3 + $0x10] sm:$0xf] %vm1627_vm2, %v3869_v15  ;;  %v4141_v15 = vpop.permute.xlu1 %1173  ;;  %993 = vrot.lane.b32.xlu0 %v950_v6, %s3076_s12  ;;  %v2040_v47 = vrot.slane %v2038_v41, 4  ;;  %v2043_v32 = vrot.slane %v2041_v49, 5  ;;  %v2171_v39 = vrot.slane %v2170_v23, 4  ;;  %v2175_v28 = vrot.slane %v2173_v12, 5  ;;  %2932 = vmatprep.mubr.msk.bf16.mxu0 %vm137_vm0, %v3053_v31 }
 0x1b4   :  { %1823 = vst.msk [vmem:[#allocation3 + $0x10] sm:$0xf] %vm1820_vm3, %v3726_v52  ;;  %v1545_v52 = vrot.slane %v1544_v21, 4  ;;  %v2180_v25 = vrot.slane %v2178_v54, 4  ;;  %v2036_v1 = vsel %vm3363_vm8, %v2031_v62, %v2035_v3  ;;  %v2183_v17 = vrot.slane %v2181_v42, 5 }
 0x1b5   :  { %1921 = vst.msk [vmem:[#allocation3 + $0x10] sm:$0xf] %vm1918_vm4, %v3734_v16  ;;  %1609 = vrot.lane.b32.xlu1 %v1578_v0, %s3081_s17  ;;  %v980_v26 = vpop.permute.xlu0 %979  ;;  %v1946_v16 = vld [vmem:[#allocation2 + $0x3c] sm:$0x1]  ;;  %v2044_v30 = vor.u32 %v2043_v32, %v2040_v47  ;;  %v1853_v59 = vld [vmem:[#allocation2 + $0x98] sm:$0xf] }
 0x1b6   :  { %2242 = vst.msk [vmem:[#allocation3 + $0x10] sm:$0xf] %vm2239_vm6, %v4024_v56  ;;  %v1966_v5 = vld [vmem:[#allocation2 + $0x9c] sm:$0x1]  ;;  %v1550_v7 = vsel %vm3363_vm8, %v1545_v52, %v1549_v13  ;;  %v2047_v11 = vshll.u32 %v1946_v16, 16  ;;  %v2184_v9 = vor.u32 %v2183_v17, %v2180_v25 }
 0x1b7   :  { %1021 = vst.msk [vmem:[#allocation3 + $0x38] sm:$0xf] %vm1013_vm9, %v980_v26  ;;  %v3051_v20 = vld [vmem:[#allocation3] ss:$8 sps:$4 sm:$0xff]   ;;  %v4152_v56 = vpop.permute.xlu1 %1782  ;;  %2199 = vrot.lane.b32.xlu0 %v2036_v1, %s3078_s1  ;;  %v2187_v27 = vshll.u32 %v1966_v5, 16 }
 0x1b8   :  { %1217 = vst.msk [vmem:[#allocation3 + $0x38] sm:$0xf] %vm1209_vm14, %v3940_v53  ;;  %2633 = vmatmul.mubr.bf16.vlgmr.msra.gmra.mxu0 %v3051_v20  ;;  %v2176_v53 = vsel %vm3363_vm8, %v2171_v39, %v2175_v28  ;;  %v2049_v48 = vrot.slane %v2047_v11, 5  ;;  %v2185_v55 = vrot.slane %v2184_v9, 4  ;;  %v2286_v4 = vld [vmem:[#allocation2 + $0x98] sm:$0xe] }
 0x1b9   :  { %1314 = vst.msk [vmem:[#allocation3 + $0x38] sm:$0xf] %vm1306_vm15, %v4006_v8  ;;  %1605 = vrot.lane.b32.xlu1 %v1550_v7, %s3081_s17  ;;  %v1592_v46 = vpop.permute.xlu0 %1591  ;;  %v2045_v8 = vrot.slane %v2044_v30, 4  ;;  %v2189_v36 = vrot.slane %v2187_v27, 5  ;;  %v2287_v51 = vld [vmem:[#allocation2 + $0x9c] sm:$0x1] }
 0x1ba   :  { %v2906_v60 = vrot.slane %v2286_v4, 9  ;;  %v2382_v24 = vrot.slane %v2287_v51, 5  ;;  %v3054_v19 = vld [vmem:[#allocation3 + $0x14] ss:$8 sps:$4 sm:$0xff]  }
 0x1bb   :  { %v4165_v14 = vpop.permute.xlu1 %1183  ;;  %2219 = vrot.lane.b32.xlu0 %v2176_v53, %s3078_s1  ;;  %v2050_v57 = vsel %vm3363_vm8, %v2045_v8, %v2049_v48  ;;  %v2190_v21 = vsel %vm3363_vm8, %v2185_v55, %v2189_v36  ;;  %2933 = vmatprep.mubr.msk.bf16.mxu0 %vm137_vm0, %v3054_v19  ;;  %v3059_v13 = vld [vmem:[#allocation3 + $0x34] ss:$8 sps:$4 sm:$0xff]   ;;  %v3065_v19 = vld [vmem:[#allocation3 + $0x64] ss:$8 sps:$4 sm:$0xff]  }
 0x1bc   :  { %v2383_v40 = vsel %vm3353_vm5, %v2906_v60, %v2382_v24  ;;  %2935 = vmatprep.mubr.msk.bf16.mxu1 %vm137_vm0, %v3059_v13  ;;  %v4534_v13 = vld [vmem:[#allocation17_spill] sm:$0xff] }
 0x1bd   :  { %1900 = vrot.lane.b32.xlu1 %v1853_v59, %s3077_s13  ;;  %v1275_v50 = vpop.permute.xlu0 %1274  ;;  %2415 = vst.msk [vmem:[#allocation3 + $0x7c] sm:$0xf] %vm329_vm1, %v2383_v40  ;;  %2710 = vst.msk [vmem:[%s4463_s7 + $0x34] sm:$0xf] %vm329_vm1, %v4534_v13 }
 0x1be   :  { %1315 = vst.msk [vmem:[#allocation3 + $0x40] sm:$0xf] %vm1306_vm15, %v1275_v50 }
 0x1bf   :  { %v2198_v34 = vpop.permute.xlu1 %2197 }
 0x1c0   :  { %2243 = vst.msk [vmem:[#allocation3 + $0x18] sm:$0xf] %vm2239_vm6, %v2198_v34 }
 0x1c1   :  { %2201 = vrot.lane.b32.xlu1 %v2050_v57, %s3078_s1  ;;  %v4174_v10 = vpop.permute.xlu0 %1792  ;;  %v3063_v57 = vld [vmem:[#allocation3 + $0x54] ss:$8 sps:$4 sm:$0xff]  }
 0x1c3   :  { %v976_v22 = vpop.permute.xlu1 %975 }
 0x1c4   :  { %1019 = vst.msk [vmem:[#allocation3 + $0x28] sm:$0xf] %vm1013_vm9, %v976_v22 }
 0x1c5   :  { %1215 = vst.msk [vmem:[#allocation3 + $0x28] sm:$0xf] %vm1209_vm14, %v4078_v37  ;;  %2221 = vrot.lane.b32.xlu1 %v2190_v21, %s3078_s1  ;;  %v1588_v41 = vpop.permute.xlu0 %1587 }
 0x1c6   :  { %1312 = vst.msk [vmem:[#allocation3 + $0x28] sm:$0xf] %vm1306_vm15, %v4089_v43 }
 0x1c7   :  { %1632 = vst.msk [vmem:[#allocation3 + $0x20] sm:$0xf] %vm1627_vm2, %v1588_v41  ;;  %v1281_v44 = vpop.permute.xlu1 %1280  ;;  %v3056_v49 = vld [vmem:[#allocation3 + $0x10] ss:$8 sps:$4 sm:$0xff]  }
 0x1c8   :  { %1825 = vst.msk [vmem:[#allocation3 + $0x20] sm:$0xf] %vm1820_vm3, %v4084_v29  ;;  %2641 = vmatmul.mubr.bf16.gmra.mxu0 %v3056_v49 }
 0x1c9   :  { %1923 = vst.msk [vmem:[#allocation3 + $0x20] sm:$0xf] %vm1918_vm4, %v4096_v33  ;;  %v4193_v37 = vpop.permute.xlu0 %1890 }
 0x1cb   :  { %v1594_v23 = vpop.permute.xlu1 %1593 }
 0x1cc   :  { %1635 = vst.msk [vmem:[#allocation3 + $0x38] sm:$0xf] %vm1627_vm2, %v1594_v23  ;;  %v3068_v23 = vld [vmem:[#allocation3 + $0x24] ss:$8 sps:$4 sm:$0xff]  }
 0x1cd   :  { %1828 = vst.msk [vmem:[#allocation3 + $0x38] sm:$0xf] %vm1820_vm3, %v4100_v45  ;;  %v2204_v43 = vpop.permute.xlu0 %2203  ;;  %2934 = vmatprep.mubr.msk.bf16.mxu0 %vm137_vm0, %v3068_v23 }
 0x1ce   :  { %1926 = vst.msk [vmem:[#allocation3 + $0x38] sm:$0xf] %vm1918_vm4, %v3690_v38 }
 0x1cf   :  { %2247 = vst.msk [vmem:[#allocation3 + $0x38] sm:$0xf] %vm2239_vm6, %v3699_v35  ;;  %v1180_v29 = vpop.permute.xlu1 %1179  ;;  %v4520_v35 = vld [vmem:[#allocation20_spill] sm:$0xff] }
 0x1d1   :  { %v1789_v33 = vpop.permute.xlu0 %1788 }
 0x1d3   :  { %v1277_v12 = vpop.permute.xlu1 %1276 }
 0x1d5   :  { %v1887_v54 = vpop.permute.xlu0 %1886 }
 0x1d7   :  { %v1795_v6 = vpop.permute.xlu1 %1794 }
 0x1d9   :  { %v978_v62 = vpop.permute.xlu0 %977 }
 0x1da   :  { %1020 = vst.msk [vmem:[#allocation3 + $0x30] sm:$0xf] %vm1013_vm9, %v978_v62  ;;  %v4524_v62 = vld [vmem:[#allocation7_spill] sm:$0xff] }
 0x1db   :  { %1216 = vst.msk [vmem:[#allocation3 + $0x30] sm:$0xf] %vm1209_vm14, %v4141_v15  ;;  %v1590_v3 = vpop.permute.xlu1 %1589 }
 0x1dc   :  { %1313 = vst.msk [vmem:[#allocation3 + $0x30] sm:$0xf] %vm1306_vm15, %v3806_v61 }
 0x1dd   :  { %1633 = vst.msk [vmem:[#allocation3 + $0x28] sm:$0xf] %vm1627_vm2, %v1590_v3  ;;  %1634 = vst.msk [vmem:[#allocation3 + $0x30] sm:$0xf] %vm1627_vm2, %v1592_v46  ;;  %v1186_v38 = vpop.permute.xlu0 %1185  ;;  %v4525_v3 = vld [vmem:[#allocation8_spill] sm:$0xff] }
 0x1de   :  { %1826 = vst.msk [vmem:[#allocation3 + $0x28] sm:$0xf] %vm1820_vm3, %v4152_v56  ;;  %1827 = vst.msk [vmem:[#allocation3 + $0x30] sm:$0xf] %vm1820_vm3, %v3927_v2 }
 0x1df   :  { %1924 = vst.msk [vmem:[#allocation3 + $0x28] sm:$0xf] %vm1918_vm4, %v4520_v35  ;;  %1925 = vst.msk [vmem:[#allocation3 + $0x30] sm:$0xf] %vm1918_vm4, %v3985_v63  ;;  %v4217_v45 = vpop.permute.xlu1 %1896  ;;  %v4527_v35 = vld [vmem:[#allocation10_spill] sm:$0xff] }
 0x1e0   :  { %2246 = vst.msk [vmem:[#allocation3 + $0x30] sm:$0xf] %vm2239_vm6, %v2204_v43 }
 0x1e1   :  { %v4220_v61 = vpop.permute.xlu0 %1286  ;;  %2700 = vst.msk [vmem:[%s4463_s7 + $0xc] sm:$0xf] %vm329_vm1, %v4524_v62  ;;  %2701 = vst.msk [vmem:[%s4463_s7 + $0x10] sm:$0xf] %vm329_vm1, %v4525_v3 }
 0x1e2   :  { %2703 = vst.msk [vmem:[%s4463_s7 + $0x18] sm:$0xf] %vm329_vm1, %v4527_v35 }
 0x1e3   :  { %v1791_v42 = vpop.permute.xlu1 %1790 }
 0x1e5   :  { %v1182_v15 = vpop.permute.xlu0 %1181 }
 0x1e7   :  { %v2210_v0 = vpop.permute.xlu1 %2209  ;;  %v3057_v52 = vld [vmem:[#allocation3 + $0x30] ss:$8 sps:$4 sm:$0xff]  }
 0x1e8   :  { %2657 = vmatmul.mubr.bf16.vlgmr.msra.gmra.mxu1 %v3057_v52  ;;  %v4533_v52 = vld [vmem:[#allocation16_spill] sm:$0xff] }
 0x1e9   :  { %v1600_v47 = vpop.permute.xlu0 %1599  ;;  %2709 = vst.msk [vmem:[%s4463_s7 + $0x30] sm:$0xf] %vm329_vm1, %v4533_v52 }
 0x1eb   :  { %v988_v2 = vpop.permute.xlu1 %987 }
 0x1ec   :  { %1025 = vst.msk [vmem:[#allocation3 + $0x58] sm:$0xf] %vm1013_vm9, %v988_v2  ;;  %v4536_v2 = vld [vmem:[#allocation19_spill] sm:$0xff] }
 0x1ed   :  { %1221 = vst.msk [vmem:[#allocation3 + $0x58] sm:$0xf] %vm1209_vm14, %v4165_v14  ;;  %v1283_v63 = vpop.permute.xlu0 %1282 }
 0x1ee   :  { %1318 = vst.msk [vmem:[#allocation3 + $0x58] sm:$0xf] %vm1306_vm15, %v1281_v44 }
 0x1ef   :  { %v1893_v32 = vpop.permute.xlu1 %1892  ;;  %2712 = vst.msk [vmem:[%s4463_s7 + $0x3c] sm:$0xf] %vm329_vm1, %v4536_v2 }
 0x1f1   :  { %v1596_v26 = vpop.permute.xlu0 %1595 }
 0x1f2   :  { %1636 = vst.msk [vmem:[#allocation3 + $0x40] sm:$0xf] %vm1627_vm2, %v1596_v26 }
 0x1f3   :  { %v984_v39 = vpop.permute.xlu1 %983  ;;  %1829 = vst.msk [vmem:[#allocation3 + $0x40] sm:$0xf] %vm1820_vm3, %v1789_v33 }
 0x1f4   :  { %1023 = vst.msk [vmem:[#allocation3 + $0x48] sm:$0xf] %vm1013_vm9, %v984_v39 }
 0x1f5   :  { %1927 = vst.msk [vmem:[#allocation3 + $0x40] sm:$0xf] %vm1918_vm4, %v1887_v54  ;;  %v4232_v28 = vpop.permute.xlu0 %1800  ;;  %v4522_v54 = vld [vmem:[#allocation5_spill] sm:$0xff] }
 0x1f6   :  { %1219 = vst.msk [vmem:[#allocation3 + $0x48] sm:$0xf] %vm1209_vm14, %v1180_v29  ;;  %v3071_v29 = vld [vmem:[#allocation3 + $0x74] ss:$8 sps:$4 sm:$0xff]  }
 0x1f7   :  { %1316 = vst.msk [vmem:[#allocation3 + $0x48] sm:$0xf] %vm1306_vm15, %v1277_v12  ;;  %v1192_v16 = vpop.permute.xlu1 %1191  ;;  %v4521_v12 = vld [vmem:[#allocation4_spill] sm:$0xff] }
 0x1f8   :  { %2697 = vst.msk [vmem:[%s4463_s7] sm:$0xf] %vm329_vm1, %v4521_v12  ;;  %2698 = vst.msk [vmem:[%s4463_s7 + $0x4] sm:$0xf] %vm329_vm1, %v4522_v54 }
 0x1f9   :  { %v4235_v25 = vpop.permute.xlu0 %1898 }
 0x1fb   :  { %v1289_v20 = vpop.permute.xlu1 %1288 }
 0x1fd   :  { %v2212_v31 = vpop.permute.xlu0 %2211 }
 0x1ff   :  { %v1602_v1 = vpop.permute.xlu1 %1601 }
 0x200   :  { %1639 = vst.msk [vmem:[#allocation3 + $0x58] sm:$0xf] %vm1627_vm2, %v1602_v1 }
 0x201   :  { %1832 = vst.msk [vmem:[#allocation3 + $0x58] sm:$0xf] %vm1820_vm3, %v1795_v6  ;;  %v990_v17 = vpop.permute.xlu0 %989  ;;  %v4523_v6 = vld [vmem:[#allocation6_spill] sm:$0xff] }
 0x202   :  { %1930 = vst.msk [vmem:[#allocation3 + $0x58] sm:$0xf] %vm1918_vm4, %v1893_v32 }
 0x203   :  { %1026 = vst.msk [vmem:[#allocation3 + $0x60] sm:$0xf] %vm1013_vm9, %v990_v17  ;;  %v1188_v56 = vpop.permute.xlu1 %1187 }
 0x204   :  { %1222 = vst.msk [vmem:[#allocation3 + $0x60] sm:$0xf] %vm1209_vm14, %v1186_v38  ;;  %v4526_v38 = vld [vmem:[#allocation9_spill] sm:$0xff] }
 0x205   :  { %1319 = vst.msk [vmem:[#allocation3 + $0x60] sm:$0xf] %vm1306_vm15, %v1283_v63  ;;  %v1797_v5 = vpop.permute.xlu0 %1796 }
 0x206   :  { %2699 = vst.msk [vmem:[%s4463_s7 + $0x8] sm:$0xf] %vm329_vm1, %v4523_v6  ;;  %2702 = vst.msk [vmem:[%s4463_s7 + $0x14] sm:$0xf] %vm329_vm1, %v4526_v38 }
 0x207   :  { %v1285_v7 = vpop.permute.xlu1 %1284 }
 0x209   :  { %v1895_v30 = vpop.permute.xlu0 %1894 }
 0x20b   :  { %v1598_v11 = vpop.permute.xlu1 %1597 }
 0x20c   :  { %1637 = vst.msk [vmem:[#allocation3 + $0x48] sm:$0xf] %vm1627_vm2, %v1598_v11 }
 0x20d   :  { %1830 = vst.msk [vmem:[#allocation3 + $0x48] sm:$0xf] %vm1820_vm3, %v1791_v42  ;;  %v2208_v46 = vpop.permute.xlu0 %2207  ;;  %v4530_v42 = vld [vmem:[#allocation13_spill] sm:$0xff] }
 0x20e   :  { %1928 = vst.msk [vmem:[#allocation3 + $0x48] sm:$0xf] %vm1918_vm4, %v4123_v18  ;;  %v3060_v18 = vld [vmem:[#allocation3 + $0x44] ss:$8 sps:$4 sm:$0xff]  }
 0x20f   :  { %2248 = vst.msk [vmem:[#allocation3 + $0x40] sm:$0xf] %vm2239_vm6, %v2208_v46  ;;  %2249 = vst.msk [vmem:[#allocation3 + $0x48] sm:$0xf] %vm2239_vm6, %v2210_v0  ;;  %v1803_v59 = vpop.permute.xlu1 %1802  ;;  %2936 = vmatprep.mubr.msk.bf16.mxu1 %vm137_vm0, %v3060_v18  ;;  %v4532_v0 = vld [vmem:[#allocation15_spill] sm:$0xff] }
 0x210   :  { %2706 = vst.msk [vmem:[%s4463_s7 + $0x24] sm:$0xf] %vm329_vm1, %v4530_v42  ;;  %2708 = vst.msk [vmem:[%s4463_s7 + $0x2c] sm:$0xf] %vm329_vm1, %v4532_v0 }
 0x211   :  { %v986_v53 = vpop.permute.xlu0 %985 }
 0x212   :  { %1024 = vst.msk [vmem:[#allocation3 + $0x50] sm:$0xf] %vm1013_vm9, %v986_v53 }
 0x213   :  { %1220 = vst.msk [vmem:[#allocation3 + $0x50] sm:$0xf] %vm1209_vm14, %v1182_v15  ;;  %v1799_v9 = vpop.permute.xlu1 %1798  ;;  %v4531_v15 = vld [vmem:[#allocation14_spill] sm:$0xff] }
 0x214   :  { %1317 = vst.msk [vmem:[#allocation3 + $0x50] sm:$0xf] %vm1306_vm15, %v4133_v58 }
 0x215   :  { %1638 = vst.msk [vmem:[#allocation3 + $0x50] sm:$0xf] %vm1627_vm2, %v1600_v47  ;;  %v1190_v27 = vpop.permute.xlu0 %1189  ;;  %v4535_v47 = vld [vmem:[#allocation18_spill] sm:$0xff] }
 0x216   :  { %1831 = vst.msk [vmem:[#allocation3 + $0x50] sm:$0xf] %vm1820_vm3, %v4174_v10  ;;  %v3062_v14 = vld [vmem:[#allocation3 + $0x40] ss:$8 sps:$4 sm:$0xff]  }
 0x217   :  { %1929 = vst.msk [vmem:[#allocation3 + $0x50] sm:$0xf] %vm1918_vm4, %v4193_v37  ;;  %v2218_v8 = vpop.permute.xlu1 %2217  ;;  %2665 = vmatmul.mubr.bf16.gmra.mxu1 %v3062_v14 }
 0x218   :  { %2250 = vst.msk [vmem:[#allocation3 + $0x50] sm:$0xf] %vm2239_vm6, %v2212_v31  ;;  %2937 = vmatprep.mubr.msk.bf16.mxu1 %vm137_vm0, %v3063_v57 }
 0x219   :  { %v1608_v48 = vpop.permute.xlu0 %1607  ;;  %2707 = vst.msk [vmem:[%s4463_s7 + $0x28] sm:$0xf] %vm329_vm1, %v4531_v15  ;;  %2711 = vst.msk [vmem:[%s4463_s7 + $0x38] sm:$0xf] %vm329_vm1, %v4535_v47 }
 0x21b   :  { %v996_v50 = vpop.permute.xlu1 %995 }
 0x21c   :  { %1029 = vst.msk [vmem:[#allocation3 + $0x78] sm:$0xf] %vm1013_vm9, %v996_v50 }
 0x21d   :  { %1225 = vst.msk [vmem:[#allocation3 + $0x78] sm:$0xf] %vm1209_vm14, %v1192_v16  ;;  %v1604_v58 = vpop.permute.xlu0 %1603 }
 0x21e   :  { %1322 = vst.msk [vmem:[#allocation3 + $0x78] sm:$0xf] %vm1306_vm15, %v1289_v20 }
 0x21f   :  { %1640 = vst.msk [vmem:[#allocation3 + $0x60] sm:$0xf] %vm1627_vm2, %v1604_v58  ;;  %v2214_v55 = vpop.permute.xlu1 %2213  ;;  %v2426_v60 = vld [vmem:[#allocation3 + $0x50] sm:$0xff] }
 0x220   :  { %1833 = vst.msk [vmem:[#allocation3 + $0x60] sm:$0xf] %vm1820_vm3, %v1797_v5 }
 0x221   :  { %2251 = vst.msk [vmem:[#allocation3 + $0x58] sm:$0xf] %vm2239_vm6, %v2214_v55  ;;  %v2216_v36 = vpop.permute.xlu0 %2215 }
 0x222   :  { %1931 = vst.msk [vmem:[#allocation3 + $0x60] sm:$0xf] %vm1918_vm4, %v1895_v30 }
 0x223   :  { %2252 = vst.msk [vmem:[#allocation3 + $0x60] sm:$0xf] %vm2239_vm6, %v2216_v36  ;;  %v992_v4 = vpop.permute.xlu1 %991 }
 0x224   :  { %1027 = vst.msk [vmem:[#allocation3 + $0x68] sm:$0xf] %vm1013_vm9, %v992_v4 }
 0x225   :  { %1223 = vst.msk [vmem:[#allocation3 + $0x68] sm:$0xf] %vm1209_vm14, %v1188_v56  ;;  %v994_v51 = vpop.permute.xlu0 %993 }
 0x226   :  { %1320 = vst.msk [vmem:[#allocation3 + $0x68] sm:$0xf] %vm1306_vm15, %v1285_v7 }
 0x227   :  { %1028 = vst.msk [vmem:[#allocation3 + $0x70] sm:$0xf] %vm1013_vm9, %v994_v51  ;;  %v1610_v34 = vpop.permute.xlu1 %1609 }
 0x228   :  { %1224 = vst.msk [vmem:[#allocation3 + $0x70] sm:$0xf] %vm1209_vm14, %v1190_v27  ;;  %v2427_v24 = vld [vmem:[#allocation3 + $0x58] sm:$0xff] }
 0x229   :  { %1643 = vst.msk [vmem:[#allocation3 + $0x78] sm:$0xf] %vm1627_vm2, %v1610_v34  ;;  %v2917_v10 = vcombine.low %v2426_v60, %v2427_v24  ;;  %v2200_v40 = vpop.permute.xlu0 %2199 }
 0x22a   :  { %1321 = vst.msk [vmem:[#allocation3 + $0x70] sm:$0xf] %vm1306_vm15, %v4220_v61  ;;  %v4529_v61 = vld [vmem:[#allocation12_spill] sm:$0xff] }
 0x22b   :  { %1836 = vst.msk [vmem:[#allocation3 + $0x78] sm:$0xf] %vm1820_vm3, %v1803_v59  ;;  %2673 = vmatmul.mubr.bf16.gmra.mxu1 %v2917_v10  ;;  %v1606_v21 = vpop.permute.xlu1 %1605 }
 0x22c   :  { %1642 = vst.msk [vmem:[#allocation3 + $0x70] sm:$0xf] %vm1627_vm2, %v1608_v48  ;;  %1641 = vst.msk [vmem:[#allocation3 + $0x68] sm:$0xf] %vm1627_vm2, %v1606_v21  ;;  %2938 = vmatprep.mubr.msk.bf16.mxu1 %vm137_vm0, %v3065_v19 }
 0x22d   :  { %1835 = vst.msk [vmem:[#allocation3 + $0x70] sm:$0xf] %vm1820_vm3, %v4232_v28  ;;  %1834 = vst.msk [vmem:[#allocation3 + $0x68] sm:$0xf] %vm1820_vm3, %v1799_v9  ;;  %v2220_v22 = vpop.permute.xlu0 %2219 }
 0x22e   :  { %2244 = vst.msk [vmem:[#allocation3 + $0x20] sm:$0xf] %vm2239_vm6, %v2200_v40 }
 0x22f   :  { %1933 = vst.msk [vmem:[#allocation3 + $0x70] sm:$0xf] %vm1918_vm4, %v4235_v25  ;;  %1932 = vst.msk [vmem:[#allocation3 + $0x68] sm:$0xf] %vm1918_vm4, %v4217_v45  ;;  %v1901_v41 = vpop.permute.xlu1 %1900  ;;  %v4528_v45 = vld [vmem:[#allocation11_spill] sm:$0xff] }
 0x230   :  { %2254 = vst.msk [vmem:[#allocation3 + $0x70] sm:$0xf] %vm2239_vm6, %v2220_v22  ;;  %2253 = vst.msk [vmem:[#allocation3 + $0x68] sm:$0xf] %vm2239_vm6, %v2218_v8 }
 0x231   :  { %1934 = vst.msk [vmem:[#allocation3 + $0x78] sm:$0xf] %vm1918_vm4, %v1901_v41 }
 0x232   :  { %2704 = vst.msk [vmem:[%s4463_s7 + $0x1c] sm:$0xf] %vm329_vm1, %v4528_v45  ;;  %2705 = vst.msk [vmem:[%s4463_s7 + $0x20] sm:$0xf] %vm329_vm1, %v4529_v61 }
 0x233   :  { %v2202_v44 = vpop.permute.xlu1 %2201 }
 0x234   :  { %2245 = vst.msk [vmem:[#allocation3 + $0x28] sm:$0xf] %vm2239_vm6, %v2202_v44 }
 0x237   :  { %v3067_v49 = vld [vmem:[#allocation3 + $0x60] ss:$8 sps:$4 sm:$0xff]   ;;  %v2222_v37 = vpop.permute.xlu1 %2221 }
 0x238   :  { %2255 = vst.msk [vmem:[#allocation3 + $0x78] sm:$0xf] %vm2239_vm6, %v2222_v37  ;;  %2681 = vmatmul.mubr.bf16.gmra.mxu1 %v3067_v49 }
 0x239   :  { %2939 = vmatprep.mubr.msk.bf16.mxu1 %vm137_vm0, %v3071_v29  ;;  %vm2809_vm0 = vcmask 191616  }
 0x23b   :  { %v3070_v43 = vld [vmem:[#allocation3 + $0x20] ss:$8 sps:$4 sm:$0xff]  }
 0x23c   :  { %2649 = vmatmul.mubr.bf16.gmra.mxu0 %v3070_v43 }
 0x23f   :  { %v3073_v33 = vld [vmem:[#allocation3 + $0x70] ss:$8 sps:$4 sm:$0xff]  }
 0x240   :  { %2689 = vmatmul.mubr.bf16.gmra.mxu1 %v3073_v33 }
 0x278   :  { %v2634_v63 = vpop.f32.mrf.mxu0 }
 0x279   :  { %v2972_v32 = vpack.c.bf16 %v2634_v63, %v2634_v63 }
 0x27a   :  { %v2636_v26 = vpop.f32.mrf.mxu0 }
 0x27b   :  { %2761 = vrot.lane.b32.xlu0 %v2972_v32, %s3076_s12 }
 0x27c   :  { %v2637_v39 = vpop.f32.mrf.mxu0 }
 0x27d   :  { %v2973_v28 = vpack.c.bf16 %v2637_v39, %v2637_v39 }
 0x27e   :  { %v2639_v16 = vpop.f32.mrf.mxu0 }
 0x27f   :  { %2763 = vrot.lane.b32.xlu1 %v2973_v28, %s3076_s12 }
 0x288   :  { %v2642_v25 = vpop.f32.mrf.mxu0 }
 0x289   :  { %v2974_v20 = vpack.c.bf16 %v2642_v25, %v2642_v25 }
 0x28a   :  { %v2644_v31 = vpop.f32.mrf.mxu0 }
 0x28b   :  { %2765 = vrot.lane.b32.xlu0 %v2974_v20, %s3076_s12 }
 0x28c   :  { %v2645_v1 = vpop.f32.mrf.mxu0 }
 0x28d   :  { %v2975_v17 = vpack.c.bf16 %v2645_v1, %v2645_v1 }
 0x28e   :  { %v2647_v56 = vpop.f32.mrf.mxu0 }
 0x28f   :  { %2767 = vrot.lane.b32.xlu1 %v2975_v17, %s3076_s12 }
 0x2a8   :  { %v2658_v5 = vpop.f32.mrf.mxu1 }
 0x2a9   :  { %v2978_v7 = vpack.c.bf16 %v2658_v5, %v2658_v5 }
 0x2aa   :  { %v2660_v30 = vpop.f32.mrf.mxu1 }
 0x2ab   :  { %2773 = vrot.lane.b32.xlu0 %v2978_v7, %s3076_s12 }
 0x2ac   :  { %v2661_v11 = vpop.f32.mrf.mxu1 }
 0x2ad   :  { %v2979_v46 = vpack.c.bf16 %v2661_v11, %v2661_v11 }
 0x2ae   :  { %v2663_v59 = vpop.f32.mrf.mxu1 }
 0x2af   :  { %2775 = vrot.lane.b32.xlu1 %v2979_v46, %s3076_s12 }
 0x2d7   :  { %v2666_v53 = vpop.f32.mrf.mxu1 }
 0x2d8   :  { %v2980_v22 = vpack.c.bf16 %v2666_v53, %v2666_v53 }
 0x2d9   :  { %v2668_v9 = vpop.f32.mrf.mxu1 }
 0x2db   :  { %v2669_v27 = vpop.f32.mrf.mxu1 }
 0x2dc   :  { %v2981_v23 = vpack.c.bf16 %v2669_v27, %v2669_v27 }
 0x2dd   :  { %v2671_v18 = vpop.f32.mrf.mxu1 }
 0x2eb   :  { %v2674_v14 = vpop.f32.mrf.mxu1 }
 0x2ec   :  { %v2982_v43 = vpack.c.bf16 %v2674_v14, %v2674_v14 }
 0x2ed   :  { %v2676_v8 = vpop.f32.mrf.mxu1  ;;  %v2762_v50 = vpop.permute.xlu0 %2761 }
 0x2ee   :  { %2810 = vst.msk [vmem:[%s4463_s7] sm:$0xf] %vm2809_vm0, %v2762_v50 }
 0x2ef   :  { %v2677_v48 = vpop.f32.mrf.mxu1 }
 0x2f0   :  { %v2983_v33 = vpack.c.bf16 %v2677_v48, %v2677_v48 }
 0x2f1   :  { %v2679_v58 = vpop.f32.mrf.mxu1  ;;  %v2764_v55 = vpop.permute.xlu1 %2763 }
 0x2f2   :  { %2811 = vst.msk [vmem:[%s4463_s7 + $0x4] sm:$0xf] %vm2809_vm0, %v2764_v55 }
 0x2f8   :  { %v2682_v36 = vpop.f32.mrf.mxu1 }
 0x2f9   :  { %v2984_v12 = vpack.c.bf16 %v2682_v36, %v2682_v36 }
 0x2fa   :  { %v2684_v4 = vpop.f32.mrf.mxu1 }
 0x2fc   :  { %v2685_v51 = vpop.f32.mrf.mxu1  ;;  %v2650_v34 = vpop.f32.mrf.mxu0 }
 0x2fd   :  { %v2976_v60 = vpack.c.bf16 %v2650_v34, %v2650_v34  ;;  %v2766_v57 = vpop.permute.xlu0 %2765  ;;  %v2985_v54 = vpack.c.bf16 %v2685_v51, %v2685_v51 }
 0x2fe   :  { %v2687_v24 = vpop.f32.mrf.mxu1  ;;  %2812 = vst.msk [vmem:[%s4463_s7 + $0x8] sm:$0xf] %vm2809_vm0, %v2766_v57  ;;  %v2652_v10 = vpop.f32.mrf.mxu0 }
 0x2ff   :  { %2769 = vrot.lane.b32.xlu0 %v2976_v60, %s3076_s12 }
 0x300   :  { %v2653_v40 = vpop.f32.mrf.mxu0  ;;  %v2690_v21 = vpop.f32.mrf.mxu1 }
 0x301   :  { %v2977_v41 = vpack.c.bf16 %v2653_v40, %v2653_v40  ;;  %v2768_v44 = vpop.permute.xlu1 %2767  ;;  %v2986_v6 = vpack.c.bf16 %v2690_v21, %v2690_v21 }
 0x302   :  { %2813 = vst.msk [vmem:[%s4463_s7 + $0xc] sm:$0xf] %vm2809_vm0, %v2768_v44  ;;  %v2655_v19 = vpop.f32.mrf.mxu0  ;;  %v2692_v49 = vpop.f32.mrf.mxu1 }
 0x303   :  { %2777 = vrot.lane.b32.xlu0 %v2980_v22, %s3076_s12  ;;  %2771 = vrot.lane.b32.xlu1 %v2977_v41, %s3076_s12 }
 0x304   :  { %v2693_v37 = vpop.f32.mrf.mxu1 }
 0x305   :  { %v2987_v62 = vpack.c.bf16 %v2693_v37, %v2693_v37 }
 0x306   :  { %v2695_v29 = vpop.f32.mrf.mxu1 }
 0x307   :  { %2781 = vrot.lane.b32.xlu0 %v2982_v43, %s3076_s12  ;;  %2779 = vrot.lane.b32.xlu1 %v2981_v23, %s3076_s12 }
 0x30b   :  { %2785 = vrot.lane.b32.xlu0 %v2984_v12, %s3076_s12  ;;  %2783 = vrot.lane.b32.xlu1 %v2983_v33, %s3076_s12 }
 0x30f   :  { %2787 = vrot.lane.b32.xlu1 %v2985_v54, %s3076_s12  ;;  %2789 = vrot.lane.b32.xlu0 %v2986_v6, %s3076_s12 }
 0x313   :  { %2791 = vrot.lane.b32.xlu1 %v2987_v62, %s3076_s12 }
 0x31d   :  { %v2774_v3 = vpop.permute.xlu0 %2773 }
 0x31e   :  { %2816 = vst.msk [vmem:[%s4463_s7 + $0x18] sm:$0xf] %vm2809_vm0, %v2774_v3 }
 0x321   :  { %v2776_v38 = vpop.permute.xlu1 %2775 }
 0x322   :  { %2817 = vst.msk [vmem:[%s4463_s7 + $0x1c] sm:$0xf] %vm2809_vm0, %v2776_v38 }
 0x371   :  { %v2770_v35 = vpop.permute.xlu0 %2769 }
 0x372   :  { %2814 = vst.msk [vmem:[%s4463_s7 + $0x10] sm:$0xf] %vm2809_vm0, %v2770_v35 }
 0x375   :  { %v2772_v45 = vpop.permute.xlu1 %2771  ;;  %v2778_v61 = vpop.permute.xlu0 %2777 }
 0x376   :  { %2815 = vst.msk [vmem:[%s4463_s7 + $0x14] sm:$0xf] %vm2809_vm0, %v2772_v45  ;;  %2818 = vst.msk [vmem:[%s4463_s7 + $0x20] sm:$0xf] %vm2809_vm0, %v2778_v61 }
 0x379   :  { %v2780_v42 = vpop.permute.xlu1 %2779  ;;  %v2782_v15 = vpop.permute.xlu0 %2781 }
 0x37a   :  { %2819 = vst.msk [vmem:[%s4463_s7 + $0x24] sm:$0xf] %vm2809_vm0, %v2780_v42  ;;  %2820 = vst.msk [vmem:[%s4463_s7 + $0x28] sm:$0xf] %vm2809_vm0, %v2782_v15 }
 0x37d   :  { %v2784_v0 = vpop.permute.xlu1 %2783  ;;  %v2786_v52 = vpop.permute.xlu0 %2785 }
 0x37e   :  { %2821 = vst.msk [vmem:[%s4463_s7 + $0x2c] sm:$0xf] %vm2809_vm0, %v2784_v0  ;;  %2822 = vst.msk [vmem:[%s4463_s7 + $0x30] sm:$0xf] %vm2809_vm0, %v2786_v52 }
 0x381   :  { %v2788_v13 = vpop.permute.xlu1 %2787  ;;  %v2790_v47 = vpop.permute.xlu0 %2789 }
 0x382   :  { %2823 = vst.msk [vmem:[%s4463_s7 + $0x34] sm:$0xf] %vm2809_vm0, %v2788_v13  ;;  %2824 = vst.msk [vmem:[%s4463_s7 + $0x38] sm:$0xf] %vm2809_vm0, %v2790_v47 }
 0x385   :  { %v2792_v2 = vpop.permute.xlu1 %2791 }
 0x386   :  { %2825 = vst.msk [vmem:[%s4463_s7 + $0x3c] sm:$0xf] %vm2809_vm0, %v2792_v2 }

// kernel: densenet_forward.9
= control target key start
LH: loop header
LB: loop body
LE: loop exit
PB: predicated region body
PF: predicated region fallthrough
CT: control target
= control target key end

     0   :  { %vm166_vm0 = vcmask 1043456   ;;  %vm141_vm1 = vcmask 195584   ;;  %vm337_vm2 = vcmask 125952   ;;  %vm339_vm3 = vcmask 122880   ;;  %s3093_s14 = smov 16   ;;  %s3094_s15 = smov 96   ;;  %s4477_s3 = inlined_call_operand.vmem [shape: bf16[24,16], index: 3, kind: input, shape index: {}]   ;;  %s4478_s0 = inlined_call_operand.vmem [shape: bf16[128,24], index: 0, kind: input, shape index: {}]   ;;  %s4479_s1 = inlined_call_operand.vmem [shape: f32[1,24], index: 1, kind: input, shape index: {}]   ;;  %s4480_s2 = inlined_call_operand.vmem [shape: f32[1,24], index: 2, kind: input, shape index: {}]   ;;  %s4481_s4 = inlined_call_operand.vmem [shape: f32[1,16], index: 4, kind: input, shape index: {}]   ;;  %s4482_s5 = inlined_call_operand.vmem [shape: f32[1,16], index: 5, kind: input, shape index: {}]   ;;  %s4483_s6 = inlined_call_operand.vmem [shape: bf16[144,8], index: 6, kind: input, shape index: {}]   ;;  %s4484_s7 = inlined_call_operand.vmem [shape: bf16[128,32], index: 7, kind: output, shape index: {}]  }
   0x1   :  { %v3057_v0 = vld [vmem:[%s4477_s3 + $0x8] ss:$0 sps:$4 sm:$0xff]   ;;  %v3058_v1 = vld [vmem:[%s4477_s3] sm:$0xff]   ;;  %v3176_v10 = vld [vmem:[%s4478_s0 + $0xc] sm:$0xf]  ;;  %vm1102_vm4 = vcmask 1042432  }
   0x2   :  { %v3149_v2 = vld [vmem:[%s4478_s0] sm:$0xf]  ;;  %3047 = vmatprep.subr.msk.bf16.mxu0 %vm166_vm0, %v3057_v0  ;;  %v168_v3 = vsel %vm166_vm0, %v3057_v0, 0  ;;  %v3154_v4 = vld [vmem:[%s4478_s0 + $0x4] sm:$0xf]  ;;  %4504 = vst [vmem:[#allocation7_spill] sm:$0xff] %v3176_v10  ;;  %v46_v13 = vunpack.c.l.bf16 %v3176_v10 }
   0x3   :  { %4501 = vst [vmem:[#allocation4_spill] sm:$0xff] %v3149_v2  ;;  %4502 = vst [vmem:[#allocation5_spill] sm:$0xff] %v3154_v4  ;;  %v43_v5 = vunpack.c.l.bf16 %v3149_v2  ;;  %v3160_v6 = vld [vmem:[%s4479_s1] ss:$0 sm:$0xff]  ;;  %3010 = vmatpush3.bf16.msra.mxu0 %v168_v3  ;;  %v44_v7 = vunpack.c.l.bf16 %v3154_v4  ;;  %v3171_v9 = vld [vmem:[%s4478_s0 + $0x8] sm:$0xf] }
   0x4   :  { %v3166_v8 = vld [vmem:[%s4480_s2] ss:$0 sm:$0xff]  ;;  %4503 = vst [vmem:[#allocation6_spill] sm:$0xff] %v3171_v9  ;;  %3011 = vmatprep.subr.bf16.mxu0 %v3058_v1  ;;  %v45_v12 = vunpack.c.l.bf16 %v3171_v9  ;;  %v3184_v14 = vld [vmem:[%s4478_s0 + $0x10] sm:$0xf]  ;;  %v69_v24 = vmul.f32 %v3160_v6, %v46_v13  ;;  %vm1103_vm5 = vcmask 1046532  }
   0x5   :  { %v66_v11 = vmul.f32 %v3160_v6, %v43_v5  ;;  %4505 = vst [vmem:[#allocation8_spill] sm:$0xff] %v3184_v14  ;;  %v3189_v15 = vld [vmem:[%s4478_s0 + $0x14] sm:$0xf]  ;;  %v3194_v16 = vld [vmem:[%s4478_s0 + $0x18] sm:$0xf]  ;;  %v67_v17 = vmul.f32 %v3160_v6, %v44_v7  ;;  %v47_v18 = vunpack.c.l.bf16 %v3184_v14  ;;  %vm3374_vm6 = vmor %vm1102_vm4, %vm1103_vm5  ;;  %s3095_s1 = smov 112  }
   0x6   :  { %4506 = vst [vmem:[#allocation9_spill] sm:$0xff] %v3189_v15  ;;  %4507 = vst [vmem:[#allocation10_spill] sm:$0xff] %v3194_v16  ;;  %v48_v19 = vunpack.c.l.bf16 %v3189_v15  ;;  %v3202_v20 = vld [vmem:[%s4478_s0 + $0x1c] sm:$0xf]  ;;  %v49_v21 = vunpack.c.l.bf16 %v3194_v16  ;;  %v68_v23 = vmul.f32 %v3160_v6, %v45_v12  ;;  %v3216_v30 = vld [vmem:[%s4478_s0 + $0x20] sm:$0xf]  ;;  %v92_v33 = vadd.f32 %v3166_v8, %v69_v24 }
   0x7   :  { %4508 = vst [vmem:[#allocation11_spill] sm:$0xff] %v3202_v20  ;;  %v89_v22 = vadd.f32 %v3166_v8, %v66_v11  ;;  %v50_v25 = vunpack.c.l.bf16 %v3202_v20  ;;  %3012 = vmatpush3.bf16.msra.mxu0 %v3058_v1  ;;  %v90_v26 = vadd.f32 %v3166_v8, %v67_v17  ;;  %v70_v27 = vmul.f32 %v3160_v6, %v47_v18  ;;  %v3227_v39 = vld [vmem:[%s4478_s0 + $0x24] sm:$0xf]  ;;  %v3232_v40 = vld [vmem:[%s4478_s0 + $0x28] sm:$0xf]  ;;  %s3098_s19 = smov 64  }
   0x8   :  { %v71_v28 = vmul.f32 %v3160_v6, %v48_v19  ;;  %v72_v29 = vmul.f32 %v3160_v6, %v49_v21  ;;  %4509 = vst [vmem:[#allocation12_spill] sm:$0xff] %v3216_v30  ;;  %v91_v32 = vadd.f32 %v3166_v8, %v68_v23  ;;  %4510 = vst [vmem:[#allocation13_spill] sm:$0xff] %v3227_v39  ;;  %v108_v42 = vmax.f32 %v92_v33, 0.0  ;;  %v3239_v45 = vld [vmem:[%s4478_s0 + $0x2c] sm:$0xf] }
   0x9   :  { %v105_v31 = vmax.f32 %v89_v22, 0.0  ;;  %v73_v34 = vmul.f32 %v3160_v6, %v50_v25  ;;  %v106_v35 = vmax.f32 %v90_v26, 0.0  ;;  %v93_v36 = vadd.f32 %v3166_v8, %v70_v27  ;;  %4511 = vst [vmem:[#allocation14_spill] sm:$0xff] %v3232_v40  ;;  %4512 = vst [vmem:[#allocation15_spill] sm:$0xff] %v3239_v45  ;;  %v3244_v46 = vld [vmem:[%s4478_s0 + $0x30] sm:$0xf] }
   0xa   :  { %v94_v37 = vadd.f32 %v3166_v8, %v71_v28  ;;  %v95_v38 = vadd.f32 %v3166_v8, %v72_v29  ;;  %v107_v41 = vmax.f32 %v91_v32, 0.0  ;;  %v51_v44 = vunpack.c.l.bf16 %v3216_v30  ;;  %4513 = vst [vmem:[#allocation16_spill] sm:$0xff] %v3244_v46  ;;  %v3249_v51 = vld [vmem:[%s4478_s0 + $0x34] sm:$0xf]  ;;  %v3264_v63 = vld [vmem:[%s4478_s0 + $0x38] sm:$0xf] }
   0xb   :  { %v96_v43 = vadd.f32 %v3166_v8, %v73_v34  ;;  %v121_v47 = vpack.c.bf16 %v106_v35, %v105_v31  ;;  %v109_v48 = vmax.f32 %v93_v36, 0.0  ;;  %4514 = vst [vmem:[#allocation17_spill] sm:$0xff] %v3249_v51  ;;  %v52_v54 = vunpack.c.l.bf16 %v3227_v39  ;;  %4515 = vst [vmem:[#allocation18_spill] sm:$0xff] %v3264_v63  ;;  %v3273_v5 = vld [vmem:[%s4478_s0 + $0x3c] sm:$0xf]  ;;  %s3092_s0 = smov 32  }
   0xc   :  { %v110_v49 = vmax.f32 %v94_v37, 0.0  ;;  %v111_v50 = vmax.f32 %v95_v38, 0.0  ;;  %v122_v52 = vpack.c.bf16 %v108_v42, %v107_v41  ;;  %v74_v55 = vmul.f32 %v3160_v6, %v51_v44  ;;  %4516 = vst [vmem:[#allocation19_spill] sm:$0xff] %v3273_v5 }
   0xd   :  { %v112_v53 = vmax.f32 %v96_v43, 0.0  ;;  %3013 = vmatprep.mubr.msk.bf16.mxu0 %vm141_vm1, %v121_v47  ;;  %v53_v57 = vunpack.c.l.bf16 %v3232_v40  ;;  %v54_v58 = vunpack.c.l.bf16 %v3239_v45  ;;  %v55_v59 = vunpack.c.l.bf16 %v3244_v46 }
   0xe   :  { %v123_v56 = vpack.c.bf16 %v110_v49, %v109_v48  ;;  %3014 = vmatmul.mubr.msk.bf16.vlgmr.msra.gmra.mxu0 %vm141_vm1, %v122_v52  ;;  %v75_v60 = vmul.f32 %v3160_v6, %v52_v54  ;;  %v97_v61 = vadd.f32 %v3166_v8, %v74_v55  ;;  %v56_v62 = vunpack.c.l.bf16 %v3249_v51 }
   0xf   :  { %v76_v0 = vmul.f32 %v3160_v6, %v53_v57  ;;  %v77_v1 = vmul.f32 %v3160_v6, %v54_v58  ;;  %v78_v3 = vmul.f32 %v3160_v6, %v55_v59  ;;  %v124_v13 = vpack.c.bf16 %v112_v53, %v111_v50 }
  0x10   :  { %3017 = vmatprep.mubr.msk.bf16.mxu0 %vm141_vm1, %v123_v56  ;;  %v98_v7 = vadd.f32 %v3166_v8, %v75_v60  ;;  %v113_v11 = vmax.f32 %v97_v61, 0.0  ;;  %v79_v12 = vmul.f32 %v3160_v6, %v56_v62  ;;  %v57_v17 = vunpack.c.l.bf16 %v3264_v63 }
  0x11   :  { %v99_v19 = vadd.f32 %v3166_v8, %v76_v0  ;;  %v100_v21 = vadd.f32 %v3166_v8, %v77_v1  ;;  %v58_v22 = vunpack.c.l.bf16 %v3273_v5  ;;  %v101_v23 = vadd.f32 %v3166_v8, %v78_v3 }
  0x12   :  { %v114_v18 = vmax.f32 %v98_v7, 0.0  ;;  %v102_v24 = vadd.f32 %v3166_v8, %v79_v12  ;;  %v80_v28 = vmul.f32 %v3160_v6, %v57_v17  ;;  %vm746_vm7 = vsmask.f32 3328 }
  0x13   :  { %v115_v26 = vmax.f32 %v99_v19, 0.0  ;;  %v116_v27 = vmax.f32 %v100_v21, 0.0  ;;  %v81_v29 = vmul.f32 %v3160_v6, %v58_v22  ;;  %v117_v31 = vmax.f32 %v101_v23, 0.0 }
  0x14   :  { %v125_v25 = vpack.c.bf16 %v114_v18, %v113_v11  ;;  %v118_v32 = vmax.f32 %v102_v24, 0.0  ;;  %v103_v34 = vadd.f32 %v3166_v8, %v80_v28  ;;  %v3091_v6 = vmov 0  }
  0x15   :  { %v126_v33 = vpack.c.bf16 %v116_v27, %v115_v26  ;;  %v104_v35 = vadd.f32 %v3166_v8, %v81_v29  ;;  %345 = vst.msk [vmem:[#allocation2 + $0x18] sm:$0xf] %vm337_vm2, %v3091_v6  ;;  %338 = vst.msk [vmem:[#allocation2] sm:$0xf] %vm337_vm2, %v3091_v6  ;;  %2609 = vmatprep.subr.bf16.mxu0 %v3091_v6  ;;  %3029 = vmatprep.subr.bf16.mxu1 %v3091_v6  ;;  %vm747_vm8 = vsmask.f32 7440 }
  0x16   :  { %3018 = vmatmul.mubr.msk.bf16.gmra.mxu0 %vm141_vm1, %v124_v13  ;;  %v127_v36 = vpack.c.bf16 %v118_v32, %v117_v31  ;;  %v119_v37 = vmax.f32 %v103_v34, 0.0  ;;  %346 = vst.msk [vmem:[#allocation2 + $0x1c] sm:$0x1] %vm339_vm3, %v3091_v6  ;;  %340 = vst.msk [vmem:[#allocation2 + $0x4] sm:$0x1] %vm339_vm3, %v3091_v6  ;;  %vm1021_vm10 = vcmask 257152  }
  0x17   :  { %3021 = vmatprep.mubr.msk.bf16.mxu0 %vm141_vm1, %v125_v25  ;;  %v120_v38 = vmax.f32 %v104_v35, 0.0  ;;  %341 = vst.msk [vmem:[#allocation2 + $0x8] sm:$0xf] %vm337_vm2, %v3091_v6  ;;  %343 = vst.msk [vmem:[#allocation2 + $0x10] sm:$0xf] %vm337_vm2, %v3091_v6  ;;  %vm1217_vm15 = vcmask 388352  }
  0x18   :  { %342 = vst.msk [vmem:[#allocation2 + $0xc] sm:$0x1] %vm339_vm3, %v3091_v6  ;;  %344 = vst.msk [vmem:[#allocation2 + $0x14] sm:$0x1] %vm339_vm3, %v3091_v6  ;;  %vm581_vm11 = vsmask.f32 7938 }
  0x19   :  { %v128_v41 = vpack.c.bf16 %v120_v38, %v119_v37  ;;  %347 = vst.msk [vmem:[#allocation2 + $0x20] sm:$0xf] %vm337_vm2, %v3091_v6  ;;  %349 = vst.msk [vmem:[#allocation2 + $0x28] sm:$0xf] %vm337_vm2, %v3091_v6  ;;  %vm587_vm12 = vsmask.f32 256 }
  0x1a   :  { %348 = vst.msk [vmem:[#allocation2 + $0x24] sm:$0x1] %vm339_vm3, %v3091_v6  ;;  %350 = vst.msk [vmem:[#allocation2 + $0x2c] sm:$0x1] %vm339_vm3, %v3091_v6  ;;  %vm1314_vm0 = vcmask 519552   ;;  %vm1926_vm4 = vcmask 913152  }
  0x1b   :  { %351 = vst.msk [vmem:[#allocation2 + $0x30] sm:$0xf] %vm337_vm2, %v3091_v6  ;;  %353 = vst.msk [vmem:[#allocation2 + $0x38] sm:$0xf] %vm337_vm2, %v3091_v6  ;;  %vm2247_vm5 = vcmask 1044352  }
  0x1c   :  { %352 = vst.msk [vmem:[#allocation2 + $0x34] sm:$0x1] %vm339_vm3, %v3091_v6  ;;  %354 = vst.msk [vmem:[#allocation2 + $0x3c] sm:$0x1] %vm339_vm3, %v3091_v6  ;;  %v1038_v53 = vld [vmem:[#allocation2] sm:$0xe] }
  0x1d   :  { %355 = vst.msk [vmem:[#allocation2 + $0x40] sm:$0xf] %vm337_vm2, %v3091_v6  ;;  %357 = vst.msk [vmem:[#allocation2 + $0x48] sm:$0xf] %vm337_vm2, %v3091_v6  ;;  %v1039_v54 = vld [vmem:[#allocation2 + $0x4] sm:$0x1] }
  0x1e   :  { %3022 = vmatmul.mubr.msk.bf16.gmra.mxu0 %vm141_vm1, %v126_v33  ;;  %356 = vst.msk [vmem:[#allocation2 + $0x44] sm:$0x1] %vm339_vm3, %v3091_v6  ;;  %358 = vst.msk [vmem:[#allocation2 + $0x4c] sm:$0x1] %vm339_vm3, %v3091_v6  ;;  %v2870_v55 = vrot.slane %v1038_v53, 9  ;;  %v1107_v56 = vrot.slane %v1039_v54, 5 }
  0x1f   :  { %3025 = vmatprep.mubr.msk.bf16.mxu0 %vm141_vm1, %v127_v36  ;;  %359 = vst.msk [vmem:[#allocation2 + $0x50] sm:$0xf] %vm337_vm2, %v3091_v6  ;;  %361 = vst.msk [vmem:[#allocation2 + $0x58] sm:$0xf] %vm337_vm2, %v3091_v6  ;;  %v714_v60 = vld [vmem:[#allocation2] sm:$0xf] }
  0x20   :  { %360 = vst.msk [vmem:[#allocation2 + $0x54] sm:$0x1] %vm339_vm3, %v3091_v6  ;;  %362 = vst.msk [vmem:[#allocation2 + $0x5c] sm:$0x1] %vm339_vm3, %v3091_v6  ;;  %v1108_v61 = vsel %vm3374_vm6, %v2870_v55, %v1107_v56  ;;  %v750_v1 = vshrl.u32 %v714_v60, 16  ;;  %v753_v7 = vshll.u32 %v714_v60, 16 }
  0x21   :  { %363 = vst.msk [vmem:[#allocation2 + $0x60] sm:$0xf] %vm337_vm2, %v3091_v6  ;;  %365 = vst.msk [vmem:[#allocation2 + $0x68] sm:$0xf] %vm337_vm2, %v3091_v6  ;;  %v715_v18 = vld [vmem:[#allocation2 + $0x4] sm:$0x1] }
  0x22   :  { %364 = vst.msk [vmem:[#allocation2 + $0x64] sm:$0x1] %vm339_vm3, %v3091_v6  ;;  %366 = vst.msk [vmem:[#allocation2 + $0x6c] sm:$0x1] %vm339_vm3, %v3091_v6  ;;  %v752_v19 = vrot.slane %v750_v1, 4  ;;  %v755_v22 = vrot.slane %v753_v7, 5 }
  0x23   :  { %367 = vst.msk [vmem:[#allocation2 + $0x70] sm:$0xf] %vm337_vm2, %v3091_v6  ;;  %369 = vst.msk [vmem:[#allocation2 + $0x78] sm:$0xf] %vm337_vm2, %v3091_v6  ;;  %v759_v25 = vshll.u32 %v715_v18, 16 }
  0x24   :  { %368 = vst.msk [vmem:[#allocation2 + $0x74] sm:$0x1] %vm339_vm3, %v3091_v6  ;;  %370 = vst.msk [vmem:[#allocation2 + $0x7c] sm:$0x1] %vm339_vm3, %v3091_v6  ;;  %v1957_v3 = vld [vmem:[#allocation2 + $0x48] sm:$0xf]  ;;  %v756_v28 = vor.u32 %v755_v22, %v752_v19 }
  0x25   :  { %371 = vst.msk [vmem:[#allocation2 + $0x80] sm:$0xf] %vm337_vm2, %v3091_v6  ;;  %373 = vst.msk [vmem:[#allocation2 + $0x88] sm:$0xf] %vm337_vm2, %v3091_v6  ;;  %v2074_v11 = vshrl.u32 %v1957_v3, 16  ;;  %v2077_v12 = vshll.u32 %v1957_v3, 16 }
  0x26   :  { %3026 = vmatmul.mubr.msk.bf16.gmra.mxu0 %vm141_vm1, %v128_v41  ;;  %372 = vst.msk [vmem:[#allocation2 + $0x84] sm:$0x1] %vm339_vm3, %v3091_v6  ;;  %374 = vst.msk [vmem:[#allocation2 + $0x8c] sm:$0x1] %vm339_vm3, %v3091_v6  ;;  %v1054_v8 = vld [vmem:[#allocation2 + $0x50] sm:$0xe] }
  0x27   :  { %375 = vst.msk [vmem:[#allocation2 + $0x90] sm:$0xf] %vm337_vm2, %v3091_v6  ;;  %377 = vst.msk [vmem:[#allocation2 + $0x98] sm:$0xf] %vm337_vm2, %v3091_v6  ;;  %v1055_v42 = vld [vmem:[#allocation2 + $0x54] sm:$0x1] }
  0x28   :  { %376 = vst.msk [vmem:[#allocation2 + $0x94] sm:$0x1] %vm339_vm3, %v3091_v6  ;;  %378 = vst.msk [vmem:[#allocation2 + $0x9c] sm:$0x1] %vm339_vm3, %v3091_v6  ;;  %v2878_v43 = vrot.slane %v1054_v8, 9  ;;  %v1139_v44 = vrot.slane %v1055_v42, 5 }
  0x29   :  { %v730_v48 = vld [vmem:[#allocation2 + $0x50] sm:$0xf]  ;;  %v731_v59 = vld [vmem:[#allocation2 + $0x54] sm:$0x1]  ;;  %vm3384_vm9 = vmor %vm746_vm7, %vm747_vm8  ;;  %v2076_v27 = vrot.slane %v2074_v11, 4  ;;  %v2079_v29 = vrot.slane %v2077_v12, 5 }
  0x2a   :  { %v1140_v49 = vsel %vm3374_vm6, %v2878_v43, %v1139_v44  ;;  %v862_v50 = vshrl.u32 %v730_v48, 16  ;;  %v865_v52 = vshll.u32 %v730_v48, 16  ;;  %v871_v0 = vshll.u32 %v731_v59, 16  ;;  %v1853_v24 = vld [vmem:[#allocation2 + $0x48] sm:$0xf]  ;;  %vm3426_vm13 = vmand %vm337_vm2, %vm581_vm11 }
  0x2b   :  { %1185 = vrot.lane.b32.xlu0 %v1140_v49, %s3092_s0  ;;  %v1958_v26 = vld [vmem:[#allocation2 + $0x4c] sm:$0x1]  ;;  %1892 = vrot.lane.b32.xlu1 %v1853_v24, %s3094_s15  ;;  %v761_v32 = vrot.slane %v759_v25, 5  ;;  %v757_v33 = vrot.slane %v756_v28, 4  ;;  %v2080_v34 = vor.u32 %v2079_v29, %v2076_v27  ;;  %v3403_v8 = vld [vmem:[%s4481_s4] ss:$0 sm:$0xff]  ;;  %vm3431_vm14 = vmand %vm339_vm3, %vm587_vm12 }
  0x2c   :  { %v864_v57 = vrot.slane %v862_v50, 4  ;;  %v867_v58 = vrot.slane %v865_v52, 5  ;;  %v873_v17 = vrot.slane %v871_v0, 5  ;;  %v2083_v31 = vshll.u32 %v1958_v26, 16  ;;  %v3410_v44 = vld [vmem:[%s4482_s5] ss:$0 sm:$0xff] }
  0x2d   :  { %v762_v36 = vsel %vm3384_vm9, %v757_v33, %v761_v32  ;;  %v2081_v37 = vrot.slane %v2080_v34, 4  ;;  %v690_v50 = vld [vmem:[#allocation2 + $0x50] sm:$0xf]  ;;  %v682_v60 = vld [vmem:[#allocation2] sm:$0xf]  ;;  %s3096_s4 = smov 48  }
  0x2e   :  { %v868_v62 = vor.u32 %v867_v58, %v864_v57  ;;  %v2085_v35 = vrot.slane %v2083_v31, 5  ;;  %706 = vst.msk [vmem:[#allocation3 + $0x40] sm:$0xf] %vm337_vm2, %v690_v50  ;;  %698 = vst.msk [vmem:[#allocation3] sm:$0xf] %vm337_vm2, %v682_v60  ;;  %s3097_s5 = smov 80  }
  0x2f   :  { %1169 = vrot.lane.b32.xlu0 %v1108_v61, %s3092_s0  ;;  %v598_v28 = vld [vmem:[#allocation2 + $0x18] sm:$0xf]  ;;  %v601_v29 = vld [vmem:[#allocation2 + $0x1c] sm:$0x1]  ;;  %vm1635_vm1 = vcmask 650752   ;;  %vm1828_vm3 = vcmask 781952  }
  0x30   :  { %v869_v13 = vrot.slane %v868_v62, 4  ;;  %v2086_v38 = vsel %vm3384_vm9, %v2081_v37, %v2085_v35  ;;  %vm2584_vm7 = vcmask 130048  }
  0x31   :  { %2213 = vrot.lane.b32.xlu1 %v2086_v38, %s3095_s1 }
  0x32   :  { %v874_v23 = vsel %vm3384_vm9, %v869_v13, %v873_v17 }
  0x33   :  { %989 = vrot.lane.b32.xlu0 %v874_v23, %s3093_s14 }
  0x37   :  { %973 = vrot.lane.b32.xlu0 %v762_v36, %s3093_s14 }
  0x9d   :  { %v3398_v41 = vpop.permute.xlu0 %1185 }
  0xa1   :  { %v3405_v42 = vpop.permute.xlu0 %1169 }
  0xa5   :  { %v990_v55 = vpop.permute.xlu0 %989 }
  0xa6   :  { %1030 = vst.msk [vmem:[#allocation3 + $0x40] sm:$0xf] %vm1021_vm10, %v990_v55 }
  0xa7   :  { %1226 = vst.msk [vmem:[#allocation3 + $0x40] sm:$0xf] %vm1217_vm15, %v3398_v41 }
  0xa9   :  { %v974_v13 = vpop.permute.xlu0 %973 }
  0xaa   :  { %1022 = vst.msk [vmem:[#allocation3] sm:$0xf] %vm1021_vm10, %v974_v13 }
  0xab   :  { %1218 = vst.msk [vmem:[#allocation3] sm:$0xf] %vm1217_vm15, %v3405_v42 }
  0xce   :  { %v3015_v43 = vpop.f32.mrf.mxu0 }
  0xcf   :  { %v276_v48 = vmul.f32 %v3015_v43, %v3403_v8 }
  0xd0   :  { %v204_v49 = vpop.f32.mrf.mxu0 }
  0xd1   :  { %v299_v52 = vadd.f32 %v3410_v44, %v276_v48  ;;  %v274_v53 = vmul.f32 %v3403_v8, %v204_v49  ;;  %v583_v48 = vld [vmem:[#allocation2 + $0x8] sm:$0xf]  ;;  %v589_v49 = vld [vmem:[#allocation2 + $0xc] sm:$0x1] }
  0xd2   :  { %v3016_v54 = vpop.f32.mrf.mxu0 }
  0xd3   :  { %v315_v56 = vmax.f32 %v299_v52, 0.0  ;;  %v297_v57 = vadd.f32 %v3410_v44, %v274_v53  ;;  %v277_v58 = vmul.f32 %v3016_v54, %v3403_v8 }
  0xd4   :  { %v207_v59 = vpop.f32.mrf.mxu0 }
  0xd5   :  { %v2969_v61 = vpack.c.bf16 %v315_v56, %v315_v56  ;;  %v313_v62 = vmax.f32 %v297_v57, 0.0  ;;  %v300_v0 = vadd.f32 %v3410_v44, %v277_v58  ;;  %v275_v1 = vmul.f32 %v3403_v8, %v207_v59 }
  0xd6   :  { %v3019_v3 = vpop.f32.mrf.mxu0 }
  0xd7   :  { %v436_v7 = vshrl.u32 %v2969_v61, 16  ;;  %v2967_v11 = vpack.c.bf16 %v313_v62, %v313_v62  ;;  %v316_v12 = vmax.f32 %v300_v0, 0.0  ;;  %v298_v17 = vadd.f32 %v3410_v44, %v275_v1 }
  0xd8   :  { %v280_v18 = vmul.f32 %v3019_v3, %v3403_v8  ;;  %v220_v19 = vpop.f32.mrf.mxu0  ;;  %v439_v23 = vshll.u32 %v2969_v61, 16 }
  0xd9   :  { %v438_v22 = vrot.slane %v436_v7, 7  ;;  %v420_v25 = vshrl.u32 %v2967_v11, 16  ;;  %v2970_v26 = vpack.c.bf16 %v316_v12, %v316_v12  ;;  %v423_v31 = vshll.u32 %v2967_v11, 16  ;;  %v604_v7 = vld [vmem:[#allocation2 + $0x20] sm:$0xf] }
  0xda   :  { %v314_v32 = vmax.f32 %v298_v17, 0.0  ;;  %v303_v33 = vadd.f32 %v3410_v44, %v280_v18  ;;  %v278_v34 = vmul.f32 %v3403_v8, %v220_v19  ;;  %v3020_v35 = vpop.f32.mrf.mxu0  ;;  %v607_v11 = vld [vmem:[#allocation2 + $0x24] sm:$0x1] }
  0xdb   :  { %v441_v36 = vor.u32 %v439_v23, %v438_v22  ;;  %v442_v37 = vrot.slane %v438_v22, 4  ;;  %v422_v38 = vrot.slane %v420_v25, 7  ;;  %v444_v43 = vshrl.u32 %v2970_v26, 16  ;;  %v592_v23 = vld [vmem:[#allocation2 + $0x10] sm:$0xf] }
  0xdc   :  { %v447_v50 = vshll.u32 %v2970_v26, 16  ;;  %v2968_v52 = vpack.c.bf16 %v314_v32, %v314_v32  ;;  %v319_v53 = vmax.f32 %v303_v33, 0.0  ;;  %v301_v54 = vadd.f32 %v3410_v44, %v278_v34  ;;  %v223_v0 = vpop.f32.mrf.mxu0  ;;  %v595_v25 = vld [vmem:[#allocation2 + $0x14] sm:$0x1] }
  0xdd   :  { %v599_v55 = vsel %vm3426_vm13, %v441_v36, %v598_v28  ;;  %v602_v56 = vsel %vm3431_vm14, %v442_v37, %v601_v29  ;;  %v425_v57 = vor.u32 %v423_v31, %v422_v38  ;;  %v426_v58 = vrot.slane %v422_v38, 4  ;;  %v622_v36 = vld [vmem:[#allocation2 + $0x38] sm:$0xf] }
  0xde   :  { %600 = vst [vmem:[#allocation2 + $0x18] sm:$0xf] %v599_v55  ;;  %603 = vst [vmem:[#allocation2 + $0x1c] sm:$0x1] %v602_v56  ;;  %v446_v59 = vrot.slane %v444_v43, 7  ;;  %v428_v60 = vshrl.u32 %v2968_v52, 16  ;;  %v2973_v62 = vpack.c.bf16 %v319_v53, %v319_v53  ;;  %v281_v13 = vmul.f32 %v3020_v35, %v3403_v8  ;;  %v3023_v56 = vpop.f32.mrf.mxu0 }
  0xdf   :  { %v431_v61 = vshll.u32 %v2968_v52, 16  ;;  %v584_v1 = vsel %vm3426_vm13, %v425_v57, %v583_v48  ;;  %v590_v3 = vsel %vm3431_vm14, %v426_v58, %v589_v49  ;;  %v317_v12 = vmax.f32 %v301_v54, 0.0  ;;  %v625_v52 = vld [vmem:[#allocation2 + $0x3c] sm:$0x1]  ;;  %v610_v53 = vld [vmem:[#allocation2 + $0x28] sm:$0xf] }
  0xe0   :  { %585 = vst [vmem:[#allocation2 + $0x8] sm:$0xf] %v584_v1  ;;  %591 = vst [vmem:[#allocation2 + $0xc] sm:$0x1] %v590_v3  ;;  %v449_v17 = vor.u32 %v447_v50, %v446_v59  ;;  %v450_v18 = vrot.slane %v446_v59, 4  ;;  %v430_v19 = vrot.slane %v428_v60, 7  ;;  %v304_v29 = vadd.f32 %v3410_v44, %v281_v13 }
  0xe1   :  { %v468_v22 = vshrl.u32 %v2973_v62, 16  ;;  %v471_v26 = vshll.u32 %v2973_v62, 16  ;;  %v2971_v28 = vpack.c.bf16 %v317_v12, %v317_v12  ;;  %v279_v31 = vmul.f32 %v3403_v8, %v223_v0  ;;  %v613_v54 = vld [vmem:[#allocation2 + $0x2c] sm:$0x1] }
  0xe2   :  { %v605_v32 = vsel %vm3426_vm13, %v449_v17, %v604_v7  ;;  %v608_v33 = vsel %vm3431_vm14, %v450_v18, %v607_v11  ;;  %v433_v34 = vor.u32 %v431_v61, %v430_v19  ;;  %v434_v35 = vrot.slane %v430_v19, 4 }
  0xe3   :  { %606 = vst [vmem:[#allocation2 + $0x20] sm:$0xf] %v605_v32  ;;  %609 = vst [vmem:[#allocation2 + $0x24] sm:$0x1] %v608_v33  ;;  %v470_v37 = vrot.slane %v468_v22, 7  ;;  %v452_v38 = vshrl.u32 %v2971_v28, 16  ;;  %v302_v55 = vadd.f32 %v3410_v44, %v279_v31  ;;  %v284_v7 = vmul.f32 %v3023_v56, %v3403_v8 }
  0xe4   :  { %v455_v43 = vshll.u32 %v2971_v28, 16  ;;  %v320_v48 = vmax.f32 %v304_v29, 0.0  ;;  %v593_v49 = vsel %vm3426_vm13, %v433_v34, %v592_v23  ;;  %v596_v50 = vsel %vm3431_vm14, %v434_v35, %v595_v25  ;;  %v236_v28 = vpop.f32.mrf.mxu0 }
  0xe5   :  { %594 = vst [vmem:[#allocation2 + $0x10] sm:$0xf] %v593_v49  ;;  %597 = vst [vmem:[#allocation2 + $0x14] sm:$0x1] %v596_v50  ;;  %v473_v57 = vor.u32 %v471_v26, %v470_v37  ;;  %v474_v58 = vrot.slane %v470_v37, 4  ;;  %v454_v59 = vrot.slane %v452_v38, 7  ;;  %v307_v56 = vadd.f32 %v3410_v44, %v284_v7 }
  0xe6   :  { %v2974_v60 = vpack.c.bf16 %v320_v48, %v320_v48  ;;  %v1847_v61 = vld [vmem:[#allocation2 + $0x18] sm:$0xf]  ;;  %v318_v0 = vmax.f32 %v302_v55, 0.0  ;;  %v1045_v3 = vld [vmem:[#allocation2 + $0x1c] sm:$0x1] }
  0xe7   :  { %v1236_v62 = vld [vmem:[#allocation2 + $0x18] sm:$0xf]  ;;  %1880 = vrot.lane.b32.xlu1 %v1847_v61, %s3094_s15  ;;  %v623_v11 = vsel %vm3426_vm13, %v473_v57, %v622_v36  ;;  %v626_v12 = vsel %vm3431_vm14, %v474_v58, %v625_v52  ;;  %v457_v13 = vor.u32 %v455_v43, %v454_v59  ;;  %v458_v17 = vrot.slane %v454_v59, 4  ;;  %v1657_v26 = vld [vmem:[#allocation2 + $0x1c] sm:$0x1]  ;;  %v3024_v57 = vpop.f32.mrf.mxu0 }
  0xe8   :  { %1270 = vrot.lane.b32.xlu0 %v1236_v62, %s3096_s4  ;;  %v1044_v1 = vld [vmem:[#allocation2 + $0x18] sm:$0xe]  ;;  %624 = vst [vmem:[#allocation2 + $0x38] sm:$0xf] %v623_v11  ;;  %627 = vst [vmem:[#allocation2 + $0x3c] sm:$0x1] %v626_v12  ;;  %v2972_v23 = vpack.c.bf16 %v318_v0, %v318_v0  ;;  %v282_v61 = vmul.f32 %v3403_v8, %v236_v28  ;;  %v285_v62 = vmul.f32 %v3024_v57, %v3403_v8 }
  0xe9   :  { %v1656_v18 = vld [vmem:[#allocation2 + $0x18] sm:$0xe]  ;;  %v476_v19 = vshrl.u32 %v2974_v60, 16  ;;  %v479_v22 = vshll.u32 %v2974_v60, 16  ;;  %v2873_v25 = vrot.slane %v1044_v1, 9  ;;  %v611_v29 = vsel %vm3426_vm13, %v457_v13, %v610_v53 }
  0xea   :  { %v614_v31 = vsel %vm3431_vm14, %v458_v17, %v613_v54  ;;  %v1119_v32 = vrot.slane %v1045_v3, 5  ;;  %v1234_v33 = vld [vmem:[#allocation2 + $0x8] sm:$0xf]  ;;  %v2888_v34 = vrot.slane %v1656_v18, 9  ;;  %612 = vst [vmem:[#allocation2 + $0x28] sm:$0xf] %v611_v29  ;;  %v305_v29 = vadd.f32 %v3410_v44, %v282_v61 }
  0xeb   :  { %615 = vst [vmem:[#allocation2 + $0x2c] sm:$0x1] %v614_v31  ;;  %v478_v35 = vrot.slane %v476_v19, 7  ;;  %v460_v36 = vshrl.u32 %v2972_v23, 16  ;;  %v463_v37 = vshll.u32 %v2972_v23, 16  ;;  %v1726_v38 = vrot.slane %v1657_v26, 5 }
  0xec   :  { %1266 = vrot.lane.b32.xlu0 %v1234_v33, %s3096_s4  ;;  %v628_v43 = vld [vmem:[#allocation2 + $0x40] sm:$0xf]  ;;  %v631_v48 = vld [vmem:[#allocation2 + $0x44] sm:$0x1]  ;;  %v1120_v49 = vsel %vm3374_vm6, %v2873_v25, %v1119_v32  ;;  %v1040_v54 = vld [vmem:[#allocation2 + $0x8] sm:$0xe]  ;;  %v308_v32 = vadd.f32 %v3410_v44, %v285_v62 }
  0xed   :  { %v481_v50 = vor.u32 %v479_v22, %v478_v35  ;;  %v482_v52 = vrot.slane %v478_v35, 4  ;;  %v462_v53 = vrot.slane %v460_v36, 7  ;;  %1175 = vrot.lane.b32.xlu1 %v1120_v49, %s3092_s0  ;;  %v1041_v55 = vld [vmem:[#allocation2 + $0xc] sm:$0x1]  ;;  %v616_v58 = vld [vmem:[#allocation2 + $0x30] sm:$0xf]  ;;  %v1727_v60 = vsel %vm3374_vm6, %v2888_v34, %v1726_v38 }
  0xee   :  { %v619_v59 = vld [vmem:[#allocation2 + $0x34] sm:$0x1]  ;;  %v1652_v7 = vld [vmem:[#allocation2 + $0x8] sm:$0xe]  ;;  %v1653_v12 = vld [vmem:[#allocation2 + $0xc] sm:$0x1] }
  0xef   :  { %v629_v0 = vsel %vm3426_vm13, %v481_v50, %v628_v43  ;;  %v632_v1 = vsel %vm3431_vm14, %v482_v52, %v631_v48  ;;  %v465_v3 = vor.u32 %v463_v37, %v462_v53  ;;  %v466_v11 = vrot.slane %v462_v53, 4  ;;  %v1237_v13 = vld [vmem:[#allocation2 + $0x20] sm:$0xf]  ;;  %v1945_v34 = vld [vmem:[#allocation2 + $0x18] sm:$0xf] }
  0xf0   :  { %1784 = vrot.lane.b32.xlu0 %v1727_v60, %s3097_s5  ;;  %630 = vst [vmem:[#allocation2 + $0x40] sm:$0xf] %v629_v0  ;;  %633 = vst [vmem:[#allocation2 + $0x44] sm:$0x1] %v632_v1  ;;  %v2871_v17 = vrot.slane %v1040_v54, 9  ;;  %v1111_v18 = vrot.slane %v1041_v55, 5 }
  0xf1   :  { %v617_v19 = vsel %vm3426_vm13, %v465_v3, %v616_v58  ;;  %v620_v22 = vsel %vm3431_vm14, %v466_v11, %v619_v59  ;;  %1272 = vrot.lane.b32.xlu1 %v1237_v13, %s3096_s4  ;;  %v323_v23 = vmax.f32 %v307_v56, 0.0  ;;  %v1848_v25 = vld [vmem:[#allocation2 + $0x20] sm:$0xf]  ;;  %v2886_v26 = vrot.slane %v1652_v7, 9  ;;  %v1659_v36 = vld [vmem:[#allocation2 + $0x24] sm:$0x1] }
  0xf2   :  { %618 = vst [vmem:[#allocation2 + $0x30] sm:$0xf] %v617_v19  ;;  %621 = vst [vmem:[#allocation2 + $0x34] sm:$0x1] %v620_v22  ;;  %v1718_v28 = vrot.slane %v1653_v12, 5  ;;  %v1112_v33 = vsel %vm3374_vm6, %v2871_v17, %v1111_v18  ;;  %v321_v50 = vmax.f32 %v305_v29, 0.0 }
  0xf3   :  { %v2977_v31 = vpack.c.bf16 %v323_v23, %v323_v23  ;;  %v1658_v35 = vld [vmem:[#allocation2 + $0x20] sm:$0xe]  ;;  %v1235_v43 = vld [vmem:[#allocation2 + $0x10] sm:$0xf]  ;;  %v1047_v49 = vld [vmem:[#allocation2 + $0x24] sm:$0x1] }
  0xf4   :  { %1882 = vrot.lane.b32.xlu0 %v1848_v25, %s3094_s15  ;;  %v1719_v38 = vsel %vm3374_vm6, %v2886_v26, %v1718_v28  ;;  %v1046_v48 = vld [vmem:[#allocation2 + $0x20] sm:$0xe]  ;;  %v1990_v52 = vshrl.u32 %v1945_v34, 16  ;;  %v1993_v53 = vshll.u32 %v1945_v34, 16  ;;  %v1335_v54 = vld [vmem:[#allocation2 + $0x18] sm:$0xf]  ;;  %v2975_v13 = vpack.c.bf16 %v321_v50, %v321_v50  ;;  %v239_v50 = vpop.f32.mrf.mxu0 }
  0xf5   :  { %1171 = vrot.lane.b32.xlu1 %v1112_v33, %s3092_s0  ;;  %v500_v37 = vshrl.u32 %v2977_v31, 16  ;;  %v324_v55 = vmax.f32 %v308_v32, 0.0  ;;  %v1846_v56 = vld [vmem:[#allocation2 + $0x10] sm:$0xf]  ;;  %v2889_v57 = vrot.slane %v1658_v35, 9  ;;  %v1730_v58 = vrot.slane %v1659_v36, 5 }
  0xf6   :  { %v649_v60 = vld [vmem:[#allocation2 + $0x6c] sm:$0x1]  ;;  %v2874_v61 = vrot.slane %v1046_v48, 9  ;;  %v1123_v62 = vrot.slane %v1047_v49, 5  ;;  %v1654_v0 = vld [vmem:[#allocation2 + $0x10] sm:$0xe] }
  0xf7   :  { %v502_v59 = vrot.slane %v500_v37, 7  ;;  %v720_v1 = vld [vmem:[#allocation2 + $0x18] sm:$0xf]  ;;  %v1655_v3 = vld [vmem:[#allocation2 + $0x14] sm:$0x1]  ;;  %v1392_v11 = vshrl.u32 %v1335_v54, 16  ;;  %v2978_v23 = vpack.c.bf16 %v324_v55, %v324_v55  ;;  %v1731_v25 = vsel %vm3374_vm6, %v2889_v57, %v1730_v58 }
  0xf8   :  { %1780 = vrot.lane.b32.xlu0 %v1719_v38, %s3097_s5  ;;  %v1395_v7 = vshll.u32 %v1335_v54, 16  ;;  %v503_v12 = vshll.u32 %v2977_v31, 16  ;;  %v1992_v17 = vrot.slane %v1990_v52, 4  ;;  %v1995_v18 = vrot.slane %v1993_v53, 5  ;;  %v646_v22 = vld [vmem:[#allocation2 + $0x68] sm:$0xf] }
  0xf9   :  { %1268 = vrot.lane.b32.xlu1 %v1235_v43, %s3096_s4  ;;  %v506_v19 = vrot.slane %v502_v59, 4  ;;  %v1946_v26 = vld [vmem:[#allocation2 + $0x1c] sm:$0x1]  ;;  %v792_v28 = vshrl.u32 %v720_v1, 16  ;;  %v795_v29 = vshll.u32 %v720_v1, 16  ;;  %v1124_v31 = vsel %vm3374_vm6, %v2874_v61, %v1123_v62 }
  0xfa   :  { %v505_v32 = vor.u32 %v503_v12, %v502_v59  ;;  %v2887_v33 = vrot.slane %v1654_v0, 9  ;;  %v1722_v34 = vrot.slane %v1655_v3, 5  ;;  %v1042_v35 = vld [vmem:[#allocation2 + $0x10] sm:$0xe]  ;;  %v1043_v37 = vld [vmem:[#allocation2 + $0x14] sm:$0x1]  ;;  %v1996_v53 = vor.u32 %v1995_v18, %v1992_v17 }
  0xfb   :  { %v650_v36 = vsel %vm3431_vm14, %v506_v19, %v649_v60  ;;  %v1394_v38 = vrot.slane %v1392_v11, 4  ;;  %v1397_v43 = vrot.slane %v1395_v7, 5  ;;  %v484_v49 = vshrl.u32 %v2975_v13, 16  ;;  %v1851_v52 = vld [vmem:[#allocation2 + $0x38] sm:$0xf] }
  0xfc   :  { %1878 = vrot.lane.b32.xlu0 %v1846_v56, %s3094_s15  ;;  %v647_v48 = vsel %vm3426_vm13, %v505_v32, %v646_v22  ;;  %651 = vst [vmem:[#allocation2 + $0x6c] sm:$0x1] %v650_v36  ;;  %v1999_v54 = vshll.u32 %v1946_v26, 16  ;;  %v487_v55 = vshll.u32 %v2975_v13, 16  ;;  %v634_v56 = vld [vmem:[#allocation2 + $0x58] sm:$0xf]  ;;  %v283_v17 = vmul.f32 %v3403_v8, %v239_v50 }
  0xfd   :  { %1786 = vrot.lane.b32.xlu1 %v1731_v25, %s3097_s5  ;;  %648 = vst [vmem:[#allocation2 + $0x68] sm:$0xf] %v647_v48  ;;  %v637_v57 = vld [vmem:[#allocation2 + $0x5c] sm:$0x1]  ;;  %v508_v58 = vshrl.u32 %v2978_v23, 16  ;;  %v794_v59 = vrot.slane %v792_v28, 4  ;;  %v1723_v13 = vsel %vm3374_vm6, %v2887_v33, %v1722_v34  ;;  %v1398_v22 = vor.u32 %v1397_v43, %v1394_v38 }
  0xfe   :  { %v797_v60 = vrot.slane %v795_v29, 5  ;;  %v1336_v61 = vld [vmem:[#allocation2 + $0x1c] sm:$0x1]  ;;  %v486_v62 = vrot.slane %v484_v49, 7  ;;  %v511_v0 = vshll.u32 %v2978_v23, 16  ;;  %v2872_v3 = vrot.slane %v1042_v35, 9 }
  0xff   :  { %v652_v1 = vld [vmem:[#allocation2 + $0x70] sm:$0xf]  ;;  %v1115_v11 = vrot.slane %v1043_v37, 5  ;;  %v510_v7 = vrot.slane %v508_v58, 7  ;;  %v655_v12 = vld [vmem:[#allocation2 + $0x74] sm:$0x1] }
 0x100   :  { %1177 = vrot.lane.b32.xlu0 %v1124_v31, %s3092_s0  ;;  %v1240_v18 = vld [vmem:[#allocation2 + $0x38] sm:$0xf]  ;;  %v721_v19 = vld [vmem:[#allocation2 + $0x1c] sm:$0x1]  ;;  %v489_v25 = vor.u32 %v487_v55, %v486_v62  ;;  %v490_v26 = vrot.slane %v486_v62, 4  ;;  %v2001_v23 = vrot.slane %v1999_v54, 5  ;;  %v798_v36 = vor.u32 %v797_v60, %v794_v59 }
 0x101   :  { %1888 = vrot.lane.b32.xlu1 %v1851_v52, %s3094_s15  ;;  %v1401_v28 = vshll.u32 %v1336_v61, 16  ;;  %v513_v29 = vor.u32 %v511_v0, %v510_v7  ;;  %v514_v32 = vrot.slane %v510_v7, 4  ;;  %v1331_v31 = vld [vmem:[#allocation2 + $0x8] sm:$0xf]  ;;  %v1997_v35 = vrot.slane %v1996_v53, 4 }
 0x102   :  { %v635_v37 = vsel %vm3426_vm13, %v489_v25, %v634_v56  ;;  %v638_v33 = vsel %vm3431_vm14, %v490_v26, %v637_v57  ;;  %v716_v34 = vld [vmem:[#allocation2 + $0x8] sm:$0xf]  ;;  %v1116_v38 = vsel %vm3374_vm6, %v2872_v3, %v1115_v11  ;;  %v801_v43 = vshll.u32 %v721_v19, 16  ;;  %v1664_v60 = vld [vmem:[#allocation2 + $0x38] sm:$0xe] }
 0x103   :  { %636 = vst [vmem:[#allocation2 + $0x58] sm:$0xf] %v635_v37  ;;  %639 = vst [vmem:[#allocation2 + $0x5c] sm:$0x1] %v638_v33  ;;  %v653_v48 = vsel %vm3426_vm13, %v513_v29, %v652_v1  ;;  %v656_v49 = vsel %vm3431_vm14, %v514_v32, %v655_v12  ;;  %v1399_v50 = vrot.slane %v1398_v22, 4  ;;  %v1364_v52 = vshrl.u32 %v1331_v31, 16 }
 0x104   :  { %1278 = vrot.lane.b32.xlu0 %v1240_v18, %s3096_s4  ;;  %654 = vst [vmem:[#allocation2 + $0x70] sm:$0xf] %v653_v48  ;;  %657 = vst [vmem:[#allocation2 + $0x74] sm:$0x1] %v656_v49  ;;  %v1367_v53 = vshll.u32 %v1331_v31, 16  ;;  %v306_v54 = vadd.f32 %v3410_v44, %v283_v17  ;;  %v1403_v55 = vrot.slane %v1401_v28, 5  ;;  %v2002_v58 = vsel %vm3384_vm9, %v1997_v35, %v2001_v23 }
 0x105   :  { %1782 = vrot.lane.b32.xlu1 %v1723_v13, %s3097_s5  ;;  %v764_v56 = vshrl.u32 %v716_v34, 16  ;;  %v767_v57 = vshll.u32 %v716_v34, 16  ;;  %v799_v59 = vrot.slane %v798_v36, 4  ;;  %v1665_v61 = vld [vmem:[#allocation2 + $0x3c] sm:$0x1]  ;;  %v803_v0 = vrot.slane %v801_v43, 5 }
 0x106   :  { %v322_v62 = vmax.f32 %v306_v54, 0.0  ;;  %v1404_v1 = vsel %vm3384_vm9, %v1399_v50, %v1403_v55  ;;  %v1366_v3 = vrot.slane %v1364_v52, 4  ;;  %v1369_v11 = vrot.slane %v1367_v53, 5  ;;  %v1947_v12 = vld [vmem:[#allocation2 + $0x20] sm:$0xf]  ;;  %v3059_v55 = vld [vmem:[%s4483_s6 + $0x38] sm:$0xff]  }
 0x107   :  { %v1052_v17 = vld [vmem:[#allocation2 + $0x38] sm:$0xe]  ;;  %v2892_v13 = vrot.slane %v1664_v60, 9  ;;  %v1742_v18 = vrot.slane %v1665_v61, 5  ;;  %v766_v19 = vrot.slane %v764_v56, 4  ;;  %v769_v22 = vrot.slane %v767_v57, 5  ;;  %2610 = vmatpush1.bf16.msra.mxu0 %v3059_v55  ;;  %3038 = vmatpush1.bf16.msra.mxu1 %v3059_v55 }
 0x108   :  { %1173 = vrot.lane.b32.xlu0 %v1116_v38, %s3092_s0  ;;  %v2976_v7 = vpack.c.bf16 %v322_v62, %v322_v62  ;;  %v804_v25 = vsel %vm3384_vm9, %v799_v59, %v803_v0  ;;  %v1053_v26 = vld [vmem:[#allocation2 + $0x3c] sm:$0x1]  ;;  %v1332_v23 = vld [vmem:[#allocation2 + $0xc] sm:$0x1]  ;;  %v640_v32 = vld [vmem:[#allocation2 + $0x60] sm:$0xf]  ;;  %v1370_v38 = vor.u32 %v1369_v11, %v1366_v3  ;;  %2611 = vmatprep.subr.bf16.mxu0 %v3091_v6 }
 0x109   :  { %2201 = vrot.lane.b32.xlu1 %v2002_v58, %s3095_s1  ;;  %v643_v31 = vld [vmem:[#allocation2 + $0x64] sm:$0x1]  ;;  %v2004_v35 = vshrl.u32 %v1947_v12, 16  ;;  %v2007_v36 = vshll.u32 %v1947_v12, 16  ;;  %v1337_v37 = vld [vmem:[#allocation2 + $0x20] sm:$0xf]  ;;  %v1743_v50 = vsel %vm3374_vm6, %v2892_v13, %v1742_v18  ;;  %v770_v53 = vor.u32 %v769_v22, %v766_v19  ;;  %3030 = vmatprep.subr.bf16.mxu1 %v3091_v6 }
 0x10a   :  { %v492_v28 = vshrl.u32 %v2976_v7, 16  ;;  %v495_v29 = vshll.u32 %v2976_v7, 16  ;;  %v1238_v33 = vld [vmem:[#allocation2 + $0x28] sm:$0xf]  ;;  %v2877_v34 = vrot.slane %v1052_v17, 9  ;;  %v1135_v49 = vrot.slane %v1053_v26, 5 }
 0x10b   :  { %v722_v48 = vld [vmem:[#allocation2 + $0x20] sm:$0xf]  ;;  %v717_v52 = vld [vmem:[#allocation2 + $0xc] sm:$0x1]  ;;  %v1373_v54 = vshll.u32 %v1332_v23, 16  ;;  %v1406_v59 = vshrl.u32 %v1337_v37, 16 }
 0x10c   :  { %1591 = vrot.lane.b32.xlu0 %v1404_v1, %s3098_s19  ;;  %v494_v43 = vrot.slane %v492_v28, 7  ;;  %v1849_v56 = vld [vmem:[#allocation2 + $0x28] sm:$0xf]  ;;  %v1409_v60 = vshll.u32 %v1337_v37, 16  ;;  %v2006_v61 = vrot.slane %v2004_v35, 4  ;;  %v2009_v62 = vrot.slane %v2007_v36, 5 }
 0x10d   :  { %979 = vrot.lane.b32.xlu1 %v804_v25, %s3093_s14  ;;  %v806_v0 = vshrl.u32 %v722_v48, 16  ;;  %v809_v1 = vshll.u32 %v722_v48, 16  ;;  %v773_v3 = vshll.u32 %v717_v52, 16  ;;  %v1371_v11 = vrot.slane %v1370_v38, 4  ;;  %v1948_v13 = vld [vmem:[#allocation2 + $0x24] sm:$0x1] }
 0x10e   :  { %v497_v57 = vor.u32 %v495_v29, %v494_v43  ;;  %v498_v58 = vrot.slane %v494_v43, 4  ;;  %v1136_v17 = vsel %vm3374_vm6, %v2877_v34, %v1135_v49  ;;  %v771_v18 = vrot.slane %v770_v53, 4  ;;  %v1338_v23 = vld [vmem:[#allocation2 + $0x24] sm:$0x1]  ;;  %v1943_v37 = vld [vmem:[#allocation2 + $0x10] sm:$0xf] }
 0x10f   :  { %v1375_v19 = vrot.slane %v1373_v54, 5  ;;  %v1408_v22 = vrot.slane %v1406_v59, 4  ;;  %v1411_v25 = vrot.slane %v1409_v60, 5  ;;  %v2010_v26 = vor.u32 %v2009_v62, %v2006_v61  ;;  %v723_v28 = vld [vmem:[#allocation2 + $0x24] sm:$0x1]  ;;  %v3061_v52 = vld [vmem:[%s4483_s6 + $0x28] sm:$0xff]  }
 0x110   :  { %1274 = vrot.lane.b32.xlu0 %v1238_v33, %s3096_s4  ;;  %v641_v7 = vsel %vm3426_vm13, %v497_v57, %v640_v32  ;;  %v644_v12 = vsel %vm3431_vm14, %v498_v58, %v643_v31  ;;  %v808_v29 = vrot.slane %v806_v0, 4  ;;  %v811_v32 = vrot.slane %v809_v1, 5  ;;  %v3060_v33 = vld [vmem:[%s4483_s6 + $0x30] sm:$0xff]   ;;  %v1048_v34 = vld [vmem:[#allocation2 + $0x28] sm:$0xe]  ;;  %v3027_v58 = vpop.f32.mrf.mxu0 }
 0x111   :  { %1884 = vrot.lane.b32.xlu1 %v1849_v56, %s3094_s15  ;;  %642 = vst [vmem:[#allocation2 + $0x60] sm:$0xf] %v641_v7  ;;  %645 = vst [vmem:[#allocation2 + $0x64] sm:$0x1] %v644_v12  ;;  %v775_v31 = vrot.slane %v773_v3, 5  ;;  %v1376_v35 = vsel %vm3384_vm9, %v1371_v11, %v1375_v19  ;;  %v2013_v36 = vshll.u32 %v1948_v13, 16  ;;  %v1412_v43 = vor.u32 %v1411_v25, %v1408_v22 }
 0x112   :  { %v1415_v48 = vshll.u32 %v1338_v23, 16  ;;  %v815_v49 = vshll.u32 %v723_v28, 16  ;;  %2612 = vmatpush1.bf16.msra.mxu0 %v3060_v33  ;;  %3039 = vmatpush1.bf16.msra.mxu1 %v3060_v33  ;;  %v1852_v53 = vld [vmem:[#allocation2 + $0x40] sm:$0xf]  ;;  %v2011_v54 = vrot.slane %v2010_v26, 4  ;;  %v812_v55 = vor.u32 %v811_v32, %v808_v29  ;;  %v252_v28 = vpop.f32.mrf.mxu0 }
 0x113   :  { %v776_v38 = vsel %vm3384_vm9, %v771_v18, %v775_v31  ;;  %v1976_v56 = vshrl.u32 %v1943_v37, 16  ;;  %v1979_v57 = vshll.u32 %v1943_v37, 16  ;;  %2613 = vmatprep.subr.bf16.mxu0 %v3091_v6  ;;  %v1241_v59 = vld [vmem:[#allocation2 + $0x40] sm:$0xf]  ;;  %v2015_v60 = vrot.slane %v2013_v36, 5  ;;  %3031 = vmatprep.subr.bf16.mxu1 %v3091_v6 }
 0x114   :  { %1792 = vrot.lane.b32.xlu0 %v1743_v50, %s3097_s5  ;;  %v1049_v50 = vld [vmem:[#allocation2 + $0x2c] sm:$0x1]  ;;  %v1660_v61 = vld [vmem:[#allocation2 + $0x28] sm:$0xe]  ;;  %v2875_v0 = vrot.slane %v1048_v34, 9  ;;  %v1413_v7 = vrot.slane %v1412_v43, 4  ;;  %v288_v36 = vmul.f32 %v3027_v58, %v3403_v8  ;;  %v3028_v58 = vpop.f32.mrf.mxu0 }
 0x115   :  { %1183 = vrot.lane.b32.xlu1 %v1136_v17, %s3092_s0  ;;  %v1661_v62 = vld [vmem:[#allocation2 + $0x2c] sm:$0x1]  ;;  %v1127_v1 = vrot.slane %v1049_v50, 5  ;;  %v3568_v3 = vld [vmem:[#allocation2 + $0x40] sm:$0xe]  ;;  %v1417_v12 = vrot.slane %v1415_v48, 5  ;;  %v2016_v19 = vsel %vm3384_vm9, %v2011_v54, %v2015_v60 }
 0x116   :  { %v1333_v11 = vld [vmem:[#allocation2 + $0x10] sm:$0xf]  ;;  %v817_v17 = vrot.slane %v815_v49, 5  ;;  %2614 = vmatpush1.bf16.msra.mxu0 %v3061_v52  ;;  %v3062_v18 = vld [vmem:[%s4483_s6 + $0x20] sm:$0xff]   ;;  %3040 = vmatpush1.bf16.msra.mxu1 %v3061_v52  ;;  %v813_v22 = vrot.slane %v812_v55, 4  ;;  %v1978_v26 = vrot.slane %v1976_v56, 4  ;;  %v311_v52 = vadd.f32 %v3410_v44, %v288_v36 }
 0x117   :  { %v718_v13 = vld [vmem:[#allocation2 + $0x10] sm:$0xf]  ;;  %v1667_v25 = vld [vmem:[#allocation2 + $0x44] sm:$0x1]  ;;  %v1981_v23 = vrot.slane %v1979_v57, 5  ;;  %2615 = vmatprep.subr.bf16.mxu0 %v3091_v6  ;;  %v2890_v29 = vrot.slane %v1660_v61, 9  ;;  %3032 = vmatprep.subr.bf16.mxu1 %v3091_v6  ;;  %v1128_v37 = vsel %vm3374_vm6, %v2875_v0, %v1127_v1  ;;  %v1418_v48 = vsel %vm3384_vm9, %v1413_v7, %v1417_v12 }
 0x118   :  { %1587 = vrot.lane.b32.xlu0 %v1376_v35, %s3098_s19  ;;  %v1734_v32 = vrot.slane %v1661_v62, 5  ;;  %v1944_v31 = vld [vmem:[#allocation2 + $0x14] sm:$0x1]  ;;  %v1378_v35 = vshrl.u32 %v1333_v11, 16  ;;  %v1381_v34 = vshll.u32 %v1333_v11, 16  ;;  %v781_v43 = vshll.u32 %v718_v13, 16 }
 0x119   :  { %975 = vrot.lane.b32.xlu1 %v776_v38, %s3093_s14  ;;  %v1334_v33 = vld [vmem:[#allocation2 + $0x14] sm:$0x1]  ;;  %v778_v38 = vshrl.u32 %v718_v13, 16  ;;  %v2893_v49 = vrot.slane %v3568_v3, 9  ;;  %v1746_v50 = vrot.slane %v1667_v25, 5  ;;  %v818_v54 = vsel %vm3384_vm9, %v813_v22, %v817_v17 }
 0x11a   :  { %2616 = vmatpush1.bf16.msra.mxu0 %v3062_v18  ;;  %3041 = vmatpush1.bf16.msra.mxu1 %v3062_v18  ;;  %v1982_v55 = vor.u32 %v1981_v23, %v1978_v26  ;;  %v1985_v56 = vshll.u32 %v1944_v31, 16  ;;  %v286_v57 = vmul.f32 %v3403_v8, %v252_v28  ;;  %v1387_v60 = vshll.u32 %v1334_v33, 16  ;;  %v3600_v12 = vld [vmem:[#allocation2 + $0x14] sm:$0x1]  ;;  %v728_v26 = vld [vmem:[#allocation2 + $0x38] sm:$0xf]  ;;  %v255_v28 = vpop.f32.mrf.mxu0 }
 0x11b   :  { %2617 = vmatprep.subr.bf16.mxu0 %v3091_v6  ;;  %v327_v61 = vmax.f32 %v311_v52, 0.0  ;;  %v289_v62 = vmul.f32 %v3028_v58, %v3403_v8  ;;  %3033 = vmatprep.subr.bf16.mxu1 %v3091_v6  ;;  %v1383_v0 = vrot.slane %v1381_v34, 5  ;;  %v780_v1 = vrot.slane %v778_v38, 4  ;;  %v3064_v18 = vld [vmem:[%s4483_s6 + $0x10] sm:$0xff]   ;;  %v670_v34 = vld [vmem:[#allocation2 + $0x88] sm:$0xf] }
 0x11c   :  { %1890 = vrot.lane.b32.xlu0 %v1852_v53, %s3094_s15  ;;  %v3063_v53 = vld [vmem:[%s4483_s6 + $0x18] sm:$0xff]   ;;  %v783_v3 = vrot.slane %v781_v43, 5  ;;  %v309_v11 = vadd.f32 %v3410_v44, %v286_v57  ;;  %v1735_v7 = vsel %vm3374_vm6, %v2890_v29, %v1734_v32  ;;  %v3609_v22 = vrot.slane %v1982_v55, 4  ;;  %v673_v38 = vld [vmem:[#allocation2 + $0x8c] sm:$0x1] }
 0x11d   :  { %1280 = vrot.lane.b32.xlu1 %v1241_v59, %s3096_s4  ;;  %v1380_v59 = vrot.slane %v1378_v35, 4  ;;  %v2981_v17 = vpack.c.bf16 %v327_v61, %v327_v61  ;;  %v312_v13 = vadd.f32 %v3410_v44, %v289_v62  ;;  %v3611_v25 = vrot.slane %v1985_v56, 5  ;;  %v1850_v55 = vld [vmem:[#allocation2 + $0x30] sm:$0xf]  ;;  %v1672_v42 = vld [vmem:[#allocation2 + $0x68] sm:$0xe] }
 0x11e   :  { %2618 = vmatpush1.bf16.msra.mxu0 %v3063_v53  ;;  %3042 = vmatpush1.bf16.msra.mxu1 %v3063_v53  ;;  %v325_v23 = vmax.f32 %v309_v11, 0.0  ;;  %v3614_v29 = vrot.slane %v1387_v60, 5  ;;  %v787_v33 = vshll.u32 %v3600_v12, 16  ;;  %v287_v53 = vmul.f32 %v3403_v8, %v255_v28  ;;  %v3629_v8 = vld [vmem:[#allocation2 + $0x38] sm:$0xf] }
 0x11f   :  { %2619 = vmatprep.subr.bf16.mxu0 %v3091_v6  ;;  %v532_v32 = vshrl.u32 %v2981_v17, 16  ;;  %v535_v31 = vshll.u32 %v2981_v17, 16  ;;  %v328_v35 = vmax.f32 %v312_v13, 0.0  ;;  %3034 = vmatprep.subr.bf16.mxu1 %v3091_v6  ;;  %v1384_v36 = vor.u32 %v1383_v0, %v1380_v59  ;;  %v1350_v5 = vld [vmem:[#allocation2 + $0x64] sm:$0x1] }
 0x120   :  { %2203 = vrot.lane.b32.xlu0 %v2016_v19, %s3095_s1  ;;  %v1747_v19 = vsel %vm3374_vm6, %v2893_v49, %v1746_v50  ;;  %v2979_v43 = vpack.c.bf16 %v325_v23, %v325_v23  ;;  %v848_v49 = vshrl.u32 %v728_v26, 16  ;;  %v1988_v56 = vsel %vm3384_vm9, %v3609_v22, %v3611_v25  ;;  %v661_v22 = vld [vmem:[#allocation2 + $0x7c] sm:$0x1]  ;;  %v689_v51 = vld [vmem:[#allocation2 + $0x38] sm:$0xf] }
 0x121   :  { %1593 = vrot.lane.b32.xlu1 %v1418_v48, %s3098_s19  ;;  %v1239_v48 = vld [vmem:[#allocation2 + $0x30] sm:$0xf]  ;;  %v534_v50 = vrot.slane %v532_v32, 7  ;;  %v2982_v52 = vpack.c.bf16 %v328_v35, %v328_v35  ;;  %v851_v57 = vshll.u32 %v728_v26, 16  ;;  %v310_v12 = vadd.f32 %v3410_v44, %v287_v53  ;;  %v679_v32 = vld [vmem:[#allocation2 + $0x94] sm:$0x1] }
 0x122   :  { %2620 = vmatpush1.bf16.msra.mxu0 %v3064_v18  ;;  %3043 = vmatpush1.bf16.msra.mxu1 %v3064_v18  ;;  %v516_v58 = vshrl.u32 %v2979_v43, 16  ;;  %v519_v59 = vshll.u32 %v2979_v43, 16  ;;  %v3634_v17 = vrot.slane %v848_v49, 4  ;;  %v676_v26 = vld [vmem:[#allocation2 + $0x90] sm:$0xf]  ;;  %v1448_v23 = vshrl.u32 %v3629_v8, 16 }
 0x123   :  { %2621 = vmatprep.subr.bf16.mxu0 %v3091_v6  ;;  %v537_v60 = vor.u32 %v535_v31, %v534_v50  ;;  %v538_v61 = vrot.slane %v534_v50, 4  ;;  %v540_v62 = vshrl.u32 %v2982_v52, 16  ;;  %v543_v0 = vshll.u32 %v2982_v52, 16  ;;  %3035 = vmatprep.subr.bf16.mxu1 %v3091_v6  ;;  %v3066_v35 = vld [vmem:[%s4483_s6] sm:$0xff]   ;;  %v1050_v53 = vld [vmem:[#allocation2 + $0x30] sm:$0xe] }
 0x124   :  { %981 = vrot.lane.b32.xlu0 %v818_v54, %s3093_s14  ;;  %v3065_v54 = vld [vmem:[%s4483_s6 + $0x8] sm:$0xff]   ;;  %v518_v11 = vrot.slane %v516_v58, 7  ;;  %v326_v31 = vmax.f32 %v310_v12, 0.0  ;;  %v789_v52 = vrot.slane %v787_v33, 5  ;;  %705 = vst.msk [vmem:[#allocation3 + $0x38] sm:$0xf] %vm337_vm2, %v689_v51 }
 0x125   :  { %1179 = vrot.lane.b32.xlu1 %v1128_v37, %s3092_s0  ;;  %v784_v37 = vor.u32 %v783_v3, %v780_v1  ;;  %v1385_v1 = vrot.slane %v1384_v36, 4  ;;  %v671_v13 = vsel %vm3426_vm13, %v537_v60, %v670_v34  ;;  %v674_v18 = vsel %vm3431_vm14, %v538_v61, %v673_v38  ;;  %v729_v36 = vld [vmem:[#allocation2 + $0x3c] sm:$0x1]  ;;  %v1949_v33 = vld [vmem:[#allocation2 + $0x28] sm:$0xf] }
 0x126   :  { %v542_v25 = vrot.slane %v540_v62, 7  ;;  %2622 = vmatpush1.bf16.msra.mxu0 %v3065_v54  ;;  %3044 = vmatpush1.bf16.msra.mxu1 %v3065_v54  ;;  %672 = vst [vmem:[#allocation2 + $0x88] sm:$0xf] %v671_v13  ;;  %675 = vst [vmem:[#allocation2 + $0x8c] sm:$0x1] %v674_v18  ;;  %v521_v44 = vor.u32 %v519_v59, %v518_v11  ;;  %v522_v28 = vrot.slane %v518_v11, 4 }
 0x127   :  { %v785_v3 = vrot.slane %v784_v37, 4  ;;  %2623 = vmatprep.subr.bf16.mxu0 %v3091_v6  ;;  %v853_v37 = vrot.slane %v851_v57, 5  ;;  %v1451_v34 = vshll.u32 %v3629_v8, 16  ;;  %3036 = vmatprep.subr.bf16.mxu1 %v3091_v6  ;;  %v2980_v49 = vpack.c.bf16 %v326_v31, %v326_v31  ;;  %v1051_v54 = vld [vmem:[#allocation2 + $0x34] sm:$0x1]  ;;  %v3067_v57 = vld [vmem:[%s4483_s6 + $0x40] sm:$0xff]  }
 0x128   :  { %1788 = vrot.lane.b32.xlu0 %v1735_v7, %s3097_s5  ;;  %v658_v7 = vld [vmem:[#allocation2 + $0x78] sm:$0xf]  ;;  %v545_v38 = vor.u32 %v543_v0, %v542_v25  ;;  %v1390_v50 = vsel %vm3384_vm9, %v1385_v1, %v3614_v29  ;;  %v857_v29 = vshll.u32 %v729_v36, 16  ;;  %v1344_v61 = vld [vmem:[#allocation2 + $0x3c] sm:$0x1]  ;;  %v1450_v62 = vrot.slane %v1448_v23, 4 }
 0x129   :  { %1276 = vrot.lane.b32.xlu1 %v1239_v48, %s3096_s4  ;;  %v659_v43 = vsel %vm3426_vm13, %v521_v44, %v658_v7  ;;  %v662_v48 = vsel %vm3431_vm14, %v522_v28, %v661_v22  ;;  %v524_v58 = vshrl.u32 %v2980_v49, 16  ;;  %v527_v59 = vshll.u32 %v2980_v49, 16  ;;  %v664_v1 = vld [vmem:[#allocation2 + $0x80] sm:$0xf]  ;;  %v667_v11 = vld [vmem:[#allocation2 + $0x84] sm:$0x1] }
 0x12a   :  { %660 = vst [vmem:[#allocation2 + $0x78] sm:$0xf] %v659_v43  ;;  %663 = vst [vmem:[#allocation2 + $0x7c] sm:$0x1] %v662_v48  ;;  %2624 = vmatpush1.bf16.msra.mxu0 %v3066_v35  ;;  %3045 = vmatpush1.bf16.msra.mxu1 %v3066_v35  ;;  %v790_v8 = vsel %vm3384_vm9, %v785_v3, %v789_v52  ;;  %v854_v60 = vor.u32 %v853_v37, %v3634_v17  ;;  %v1453_v0 = vrot.slane %v1451_v34, 5 }
 0x12b   :  { %2639 = vmatprep.subr.bf16.mxu0 %v3091_v6  ;;  %3037 = vmatprep.subr.bf16.mxu1 %v3091_v6  ;;  %v2876_v7 = vrot.slane %v1050_v53, 9  ;;  %v1131_v12 = vrot.slane %v1051_v54, 5  ;;  %v1662_v13 = vld [vmem:[#allocation2 + $0x30] sm:$0xe]  ;;  %v526_v18 = vrot.slane %v524_v58, 7  ;;  %v2021_v44 = vshll.u32 %v1949_v33, 16 }
 0x12c   :  { %1886 = vrot.lane.b32.xlu0 %v1850_v55, %s3094_s15  ;;  %v677_v55 = vsel %vm3426_vm13, %v545_v38, %v676_v26  ;;  %v1855_v22 = vld [vmem:[#allocation2 + $0x68] sm:$0xf]  ;;  %v2018_v26 = vshrl.u32 %v1949_v33, 16  ;;  %v1457_v17 = vshll.u32 %v1344_v61, 16  ;;  %v2891_v6 = vrot.slane %v1662_v13, 9 }
 0x12d   :  { %1794 = vrot.lane.b32.xlu1 %v1747_v19, %s3097_s5  ;;  %v546_v19 = vrot.slane %v542_v25, 4  ;;  %678 = vst [vmem:[#allocation2 + $0x90] sm:$0xf] %v677_v55  ;;  %v1663_v25 = vld [vmem:[#allocation2 + $0x34] sm:$0x1]  ;;  %v529_v28 = vor.u32 %v527_v59, %v526_v18  ;;  %v855_v31 = vrot.slane %v854_v60, 4  ;;  %v1454_v36 = vor.u32 %v1453_v0, %v1450_v62 }
 0x12e   :  { %2640 = vmatpush2.bf16.msra.mxu0 %v3067_v57  ;;  %3046 = vmatpush2.bf16.msra.mxu1 %v3067_v57  ;;  %v1244_v3 = vld [vmem:[#allocation2 + $0x68] sm:$0xf]  ;;  %v859_v35 = vrot.slane %v857_v29, 5  ;;  %v1132_v34 = vsel %vm3374_vm6, %v2876_v7, %v1131_v12  ;;  %v1738_v38 = vrot.slane %v1663_v25, 5  ;;  %v2020_v52 = vrot.slane %v2018_v26, 4 }
 0x12f   :  { %v724_v23 = vld [vmem:[#allocation2 + $0x28] sm:$0xf]  ;;  %v665_v43 = vsel %vm3426_vm13, %v529_v28, %v664_v1  ;;  %v2023_v53 = vrot.slane %v2021_v44, 5  ;;  %v1455_v24 = vrot.slane %v1454_v36, 4  ;;  %v725_v61 = vld [vmem:[#allocation2 + $0x2c] sm:$0x1] }
 0x130   :  { %2199 = vrot.lane.b32.xlu0 %v1988_v56, %s3095_s1  ;;  %v680_v56 = vsel %vm3431_vm14, %v546_v19, %v679_v32  ;;  %v530_v32 = vrot.slane %v526_v18, 4  ;;  %v1060_v37 = vld [vmem:[#allocation2 + $0x68] sm:$0xe]  ;;  %v1061_v19 = vld [vmem:[#allocation2 + $0x6c] sm:$0x1]  ;;  %v820_v54 = vshrl.u32 %v724_v23, 16  ;;  %v860_v57 = vsel %vm3384_vm9, %v855_v31, %v859_v35 }
 0x131   :  { %1589 = vrot.lane.b32.xlu1 %v1390_v50, %s3098_s19  ;;  %681 = vst [vmem:[#allocation2 + $0x94] sm:$0x1] %v680_v56  ;;  %v1339_v49 = vld [vmem:[#allocation2 + $0x28] sm:$0xf]  ;;  %v1950_v50 = vld [vmem:[#allocation2 + $0x2c] sm:$0x1]  ;;  %v2024_v60 = vor.u32 %v2023_v53, %v2020_v52 }
 0x132   :  { %v668_v48 = vsel %vm3431_vm14, %v530_v32, %v667_v11  ;;  %v823_v55 = vshll.u32 %v724_v23, 16  ;;  %666 = vst [vmem:[#allocation2 + $0x80] sm:$0xf] %v665_v43  ;;  %v1459_v56 = vrot.slane %v1457_v17, 5  ;;  %v1420_v29 = vshrl.u32 %v1339_v49, 16 }
 0x133   :  { %669 = vst [vmem:[#allocation2 + $0x84] sm:$0x1] %v668_v48  ;;  %v1423_v33 = vshll.u32 %v1339_v49, 16  ;;  %v2881_v27 = vrot.slane %v1060_v37, 9  ;;  %v1151_v58 = vrot.slane %v1061_v19, 5  ;;  %v2027_v59 = vshll.u32 %v1950_v50, 16 }
 0x134   :  { %977 = vrot.lane.b32.xlu0 %v790_v8, %s3093_s14  ;;  %v1739_v8 = vsel %vm3374_vm6, %v2891_v6, %v1738_v38  ;;  %v822_v62 = vrot.slane %v820_v54, 4  ;;  %v825_v0 = vrot.slane %v823_v55, 5  ;;  %v685_v1 = vld [vmem:[#allocation2 + $0x18] sm:$0xf]  ;;  %v1345_v11 = vld [vmem:[#allocation2 + $0x40] sm:$0xf]  ;;  %v1460_v41 = vsel %vm3384_vm9, %v1455_v24, %v1459_v56 }
 0x135   :  { %1896 = vrot.lane.b32.xlu1 %v1855_v22, %s3094_s15  ;;  %701 = vst.msk [vmem:[#allocation3 + $0x18] sm:$0xf] %vm337_vm2, %v685_v1  ;;  %v1673_v7 = vld [vmem:[#allocation2 + $0x6c] sm:$0x1]  ;;  %v1422_v12 = vrot.slane %v1420_v29, 4  ;;  %v1425_v13 = vrot.slane %v1423_v33, 5  ;;  %v1152_v18 = vsel %vm3374_vm6, %v2881_v27, %v1151_v58 }
 0x136   :  { %v2029_v22 = vrot.slane %v2027_v59, 5  ;;  %v829_v25 = vshll.u32 %v725_v61, 16  ;;  %v1340_v26 = vld [vmem:[#allocation2 + $0x2c] sm:$0x1]  ;;  %v1955_v44 = vld [vmem:[#allocation2 + $0x40] sm:$0xf]  ;;  %v826_v17 = vor.u32 %v825_v0, %v822_v62 }
 0x137   :  { %v1462_v23 = vshrl.u32 %v1345_v11, 16  ;;  %v1465_v28 = vshll.u32 %v1345_v11, 16  ;;  %v2896_v32 = vrot.slane %v1672_v42, 9  ;;  %v1758_v6 = vrot.slane %v1673_v7, 5  ;;  %v1242_v31 = vld [vmem:[#allocation2 + $0x58] sm:$0xf] }
 0x138   :  { %1286 = vrot.lane.b32.xlu0 %v1244_v3, %s3096_s4  ;;  %v2025_v3 = vrot.slane %v2024_v60, 4  ;;  %v1426_v35 = vor.u32 %v1425_v13, %v1422_v12  ;;  %v1429_v36 = vshll.u32 %v1340_v26, 16  ;;  %v2060_v37 = vshrl.u32 %v1955_v44, 16  ;;  %v683_v50 = vld [vmem:[#allocation2 + $0x8] sm:$0xf] }
 0x139   :  { %1181 = vrot.lane.b32.xlu1 %v1132_v34, %s3092_s0  ;;  %v2063_v34 = vshll.u32 %v1955_v44, 16  ;;  %v831_v38 = vrot.slane %v829_v25, 5  ;;  %v827_v43 = vrot.slane %v826_v17, 4  ;;  %v1464_v48 = vrot.slane %v1462_v23, 4  ;;  %v1346_v53 = vld [vmem:[#allocation2 + $0x44] sm:$0x1] }
 0x13a   :  { %v2030_v19 = vsel %vm3384_vm9, %v2025_v3, %v2029_v22  ;;  %v1467_v49 = vrot.slane %v1465_v28, 5  ;;  %v1759_v52 = vsel %vm3374_vm6, %v2896_v32, %v1758_v6  ;;  %699 = vst.msk [vmem:[#allocation3 + $0x8] sm:$0xf] %vm337_vm2, %v683_v50  ;;  %v1427_v54 = vrot.slane %v1426_v35, 4  ;;  %v1956_v24 = vld [vmem:[#allocation2 + $0x44] sm:$0x1] }
 0x13b   :  { %v1431_v55 = vrot.slane %v1429_v36, 5  ;;  %v2062_v56 = vrot.slane %v2060_v37, 4  ;;  %v832_v29 = vsel %vm3384_vm9, %v827_v43, %v831_v38  ;;  %v1471_v27 = vshll.u32 %v1346_v53, 16  ;;  %v1245_v60 = vld [vmem:[#allocation2 + $0x70] sm:$0xf] }
 0x13c   :  { %987 = vrot.lane.b32.xlu0 %v860_v57, %s3093_s14  ;;  %v2065_v57 = vrot.slane %v2063_v34, 5  ;;  %v1468_v33 = vor.u32 %v1467_v49, %v1464_v48  ;;  %v726_v61 = vld [vmem:[#allocation2 + $0x30] sm:$0xf]  ;;  %v1056_v11 = vld [vmem:[#allocation2 + $0x58] sm:$0xe] }
 0x13d   :  { %1790 = vrot.lane.b32.xlu1 %v1739_v8, %s3097_s5  ;;  %v1432_v58 = vsel %vm3384_vm9, %v1427_v54, %v1431_v55  ;;  %v2069_v8 = vshll.u32 %v1956_v24, 16  ;;  %v1856_v62 = vld [vmem:[#allocation2 + $0x70] sm:$0xf]  ;;  %v1473_v1 = vrot.slane %v1471_v27, 5  ;;  %v1057_v42 = vld [vmem:[#allocation2 + $0x5c] sm:$0x1] }
 0x13e   :  { %v2066_v59 = vor.u32 %v2065_v57, %v2062_v56  ;;  %v1469_v0 = vrot.slane %v1468_v33, 4  ;;  %v1341_v7 = vld [vmem:[#allocation2 + $0x30] sm:$0xf]  ;;  %v834_v22 = vshrl.u32 %v726_v61, 16  ;;  %v837_v25 = vshll.u32 %v726_v61, 16 }
 0x13f   :  { %v2071_v13 = vrot.slane %v2069_v8, 5  ;;  %v2879_v26 = vrot.slane %v1056_v11, 9  ;;  %v1669_v44 = vld [vmem:[#allocation2 + $0x5c] sm:$0x1]  ;;  %v1143_v17 = vrot.slane %v1057_v42, 5  ;;  %v1434_v23 = vshrl.u32 %v1341_v7, 16 }
 0x140   :  { %1599 = vrot.lane.b32.xlu0 %v1460_v41, %s3098_s19  ;;  %v3711_v41 = vpop.permute.xlu1 %1892  ;;  %v2067_v12 = vrot.slane %v2066_v59, 4  ;;  %v1474_v3 = vsel %vm3384_vm9, %v1469_v0, %v1473_v1  ;;  %v1437_v28 = vshll.u32 %v1341_v7, 16  ;;  %v836_v35 = vrot.slane %v834_v22, 4  ;;  %v727_v34 = vld [vmem:[#allocation2 + $0x34] sm:$0x1] }
 0x141   :  { %1191 = vrot.lane.b32.xlu1 %v1152_v18, %s3092_s0  ;;  %v1668_v18 = vld [vmem:[#allocation2 + $0x58] sm:$0xe]  ;;  %v839_v36 = vrot.slane %v837_v25, 5  ;;  %v686_v38 = vld [vmem:[#allocation2 + $0x20] sm:$0xf]  ;;  %v1436_v43 = vrot.slane %v1434_v23, 4 }
 0x142   :  { %v2894_v32 = vrot.slane %v1668_v18, 9  ;;  %v2072_v6 = vsel %vm3384_vm9, %v2067_v12, %v2071_v13  ;;  %v1439_v48 = vrot.slane %v1437_v28, 5  ;;  %702 = vst.msk [vmem:[#allocation3 + $0x20] sm:$0xf] %vm337_vm2, %v686_v38  ;;  %v1674_v49 = vld [vmem:[#allocation2 + $0x70] sm:$0xe] }
 0x143   :  { %v1675_v50 = vld [vmem:[#allocation2 + $0x74] sm:$0x1]  ;;  %v840_v54 = vor.u32 %v839_v36, %v836_v35  ;;  %v843_v55 = vshll.u32 %v727_v34, 16  ;;  %v1961_v56 = vld [vmem:[#allocation2 + $0x68] sm:$0xf] }
 0x144   :  { %1282 = vrot.lane.b32.xlu0 %v1242_v31, %s3096_s4  ;;  %v1750_v31 = vrot.slane %v1669_v44, 5  ;;  %v3720_v37 = vpop.permute.xlu1 %2213  ;;  %v1243_v57 = vld [vmem:[#allocation2 + $0x60] sm:$0xf]  ;;  %v736_v24 = vld [vmem:[#allocation2 + $0x68] sm:$0xf]  ;;  %v1762_v33 = vrot.slane %v1675_v50, 5  ;;  %v1440_v27 = vor.u32 %v1439_v48, %v1436_v43 }
 0x145   :  { %2205 = vrot.lane.b32.xlu1 %v2030_v19, %s3095_s1  ;;  %v1144_v19 = vsel %vm3374_vm6, %v2879_v26, %v1143_v17  ;;  %v1062_v61 = vld [vmem:[#allocation2 + $0x70] sm:$0xe]  ;;  %v841_v0 = vrot.slane %v840_v54, 4  ;;  %v845_v1 = vrot.slane %v843_v55, 5  ;;  %v1063_v11 = vld [vmem:[#allocation2 + $0x74] sm:$0x1] }
 0x146   :  { %v1751_v53 = vsel %vm3374_vm6, %v2894_v32, %v1750_v31  ;;  %v2105_v42 = vshll.u32 %v1961_v56, 16  ;;  %v904_v7 = vshrl.u32 %v736_v24, 16  ;;  %v907_v12 = vshll.u32 %v736_v24, 16  ;;  %v1351_v13 = vld [vmem:[#allocation2 + $0x68] sm:$0xf] }
 0x147   :  { %v1441_v22 = vrot.slane %v1440_v27, 4  ;;  %v2882_v44 = vrot.slane %v1062_v61, 9  ;;  %v846_v23 = vsel %vm3384_vm9, %v841_v0, %v845_v1  ;;  %v1962_v28 = vld [vmem:[#allocation2 + $0x6c] sm:$0x1]  ;;  %v1507_v31 = vshll.u32 %v1351_v13, 16 }
 0x148   :  { %1800 = vrot.lane.b32.xlu0 %v1759_v52, %s3097_s5  ;;  %v1342_v52 = vld [vmem:[#allocation2 + $0x34] sm:$0x1]  ;;  %v2107_v32 = vrot.slane %v2105_v42, 5  ;;  %v1670_v36 = vld [vmem:[#allocation2 + $0x60] sm:$0xe]  ;;  %v906_v38 = vrot.slane %v904_v7, 4 }
 0x149   :  { %983 = vrot.lane.b32.xlu1 %v832_v29, %s3093_s14  ;;  %v2897_v29 = vrot.slane %v1674_v49, 9  ;;  %v1671_v34 = vld [vmem:[#allocation2 + $0x64] sm:$0x1]  ;;  %v1058_v48 = vld [vmem:[#allocation2 + $0x60] sm:$0xe]  ;;  %v2111_v55 = vshll.u32 %v1962_v28, 16 }
 0x14a   :  { %v1059_v49 = vld [vmem:[#allocation2 + $0x64] sm:$0x1]  ;;  %v737_v50 = vld [vmem:[#allocation2 + $0x6c] sm:$0x1]  ;;  %v1509_v27 = vrot.slane %v1507_v31, 5  ;;  %v1754_v42 = vrot.slane %v1671_v34, 5 }
 0x14b   :  { %v1763_v18 = vsel %vm3374_vm6, %v2897_v29, %v1762_v33  ;;  %v1352_v29 = vld [vmem:[#allocation2 + $0x6c] sm:$0x1]  ;;  %v913_v61 = vshll.u32 %v737_v50, 16  ;;  %v1248_v7 = vld [vmem:[#allocation2 + $0x88] sm:$0xf] }
 0x14c   :  { %1595 = vrot.lane.b32.xlu0 %v1432_v58, %s3098_s19  ;;  %v1443_v58 = vshll.u32 %v1342_v52, 16  ;;  %v732_v52 = vld [vmem:[#allocation2 + $0x58] sm:$0xf]  ;;  %v1964_v50 = vld [vmem:[#allocation2 + $0x74] sm:$0x1] }
 0x14d   :  { %1288 = vrot.lane.b32.xlu1 %v1245_v60, %s3096_s4  ;;  %v1854_v60 = vld [vmem:[#allocation2 + $0x60] sm:$0xf]  ;;  %v876_v0 = vshrl.u32 %v732_v52, 16  ;;  %v879_v1 = vshll.u32 %v732_v52, 16  ;;  %v915_v34 = vrot.slane %v913_v61, 5 }
 0x14e   :  { %v1445_v25 = vrot.slane %v1443_v58, 5  ;;  %v684_v52 = vld [vmem:[#allocation2 + $0x10] sm:$0xf]  ;;  %v2267_v45 = vld [vmem:[#allocation2 + $0x1c] sm:$0x1] }
 0x14f   :  { %700 = vst.msk [vmem:[#allocation3 + $0x10] sm:$0xf] %vm337_vm2, %v684_v52  ;;  %v2334_v30 = vrot.slane %v2267_v45, 5  ;;  %v3887_v15 = vld [vmem:[#allocation2 + $0x88] sm:$0xf] }
 0x150   :  { %1898 = vrot.lane.b32.xlu0 %v1856_v62, %s3094_s15  ;;  %v2102_v62 = vshrl.u32 %v1961_v56, 16  ;;  %v1446_v43 = vsel %vm3384_vm9, %v1441_v22, %v1445_v25  ;;  %v2113_v22 = vrot.slane %v2111_v55, 5  ;;  %v2880_v25 = vrot.slane %v1058_v48, 9  ;;  %v688_v2 = vld [vmem:[#allocation2 + $0x30] sm:$0xf] }
 0x151   :  { %1601 = vrot.lane.b32.xlu1 %v1474_v3, %s3098_s19  ;;  %v1155_v3 = vrot.slane %v1063_v11, 5  ;;  %v2895_v11 = vrot.slane %v1670_v36, 9  ;;  %704 = vst.msk [vmem:[#allocation3 + $0x30] sm:$0xf] %vm337_vm2, %v688_v2 }
 0x152   :  { %v2104_v17 = vrot.slane %v2102_v62, 4  ;;  %v733_v62 = vld [vmem:[#allocation2 + $0x5c] sm:$0x1] }
 0x153   :  { %v1156_v56 = vsel %vm3374_vm6, %v2882_v44, %v1155_v3  ;;  %v1963_v44 = vld [vmem:[#allocation2 + $0x70] sm:$0xf]  ;;  %v885_v28 = vshll.u32 %v733_v62, 16 }
 0x154   :  { %2211 = vrot.lane.b32.xlu0 %v2072_v6, %s3095_s1  ;;  %v1504_v6 = vshrl.u32 %v1351_v13, 16  ;;  %v2108_v24 = vor.u32 %v2107_v32, %v2104_v17  ;;  %v1348_v32 = vld [vmem:[#allocation2 + $0x5c] sm:$0x1] }
 0x155   :  { %1187 = vrot.lane.b32.xlu1 %v1144_v19, %s3092_s0  ;;  %v909_v19 = vrot.slane %v907_v12, 5  ;;  %v3774_v62 = vrot.slane %v885_v28, 5 }
 0x156   :  { %v1506_v33 = vrot.slane %v1504_v6, 4  ;;  %v2109_v3 = vrot.slane %v2108_v24, 4  ;;  %v3757_v6 = vld [vmem:[#allocation2 + $0x88] sm:$0xe]  ;;  %v2119_v24 = vshll.u32 %v1963_v44, 16 }
 0x158   :  { %1796 = vrot.lane.b32.xlu0 %v1751_v53, %s3097_s5  ;;  %v1347_v53 = vld [vmem:[#allocation2 + $0x58] sm:$0xf]  ;;  %v1510_v17 = vor.u32 %v1509_v27, %v1506_v33  ;;  %v1354_v33 = vld [vmem:[#allocation2 + $0x74] sm:$0x1]  ;;  %v2114_v27 = vsel %vm3384_vm9, %v2109_v3, %v2113_v22  ;;  %v1349_v22 = vld [vmem:[#allocation2 + $0x60] sm:$0xf] }
 0x159   :  { %1284 = vrot.lane.b32.xlu1 %v1243_v57, %s3096_s4  ;;  %v3730_v59 = vpop.permute.xlu1 %1880  ;;  %v1859_v57 = vld [vmem:[#allocation2 + $0x88] sm:$0xf]  ;;  %v1476_v12 = vshrl.u32 %v1347_v53, 16  ;;  %v1479_v13 = vshll.u32 %v1347_v53, 16  ;;  %v1527_v52 = vshll.u32 %v1354_v33, 16 }
 0x15a   :  { %v3732_v8 = vpop.permute.xlu0 %1270  ;;  %v1246_v33 = vld [vmem:[#allocation2 + $0x78] sm:$0xf] }
 0x15b   :  { %v1478_v48 = vrot.slane %v1476_v12, 4  ;;  %v1485_v12 = vshll.u32 %v1348_v32, 16 }
 0x15c   :  { %1894 = vrot.lane.b32.xlu0 %v1854_v60, %s3094_s15  ;;  %v910_v60 = vor.u32 %v909_v19, %v906_v38  ;;  %v878_v38 = vrot.slane %v876_v0, 4  ;;  %v881_v19 = vrot.slane %v879_v1, 5  ;;  %v3776_v0 = vld [vmem:[#allocation2 + $0x88] sm:$0xe]  ;;  %v738_v1 = vld [vmem:[#allocation2 + $0x70] sm:$0xf] }
 0x15d   :  { %1802 = vrot.lane.b32.xlu1 %v1763_v18, %s3097_s5 }
 0x15e   :  { %v1267_v26 = vpop.permute.xlu0 %1266  ;;  %v911_v36 = vrot.slane %v910_v60, 4  ;;  %v1511_v60 = vrot.slane %v1510_v17, 4 }
 0x15f   :  { %1315 = vst.msk [vmem:[#allocation3] sm:$0xf] %vm1314_vm0, %v1267_v26  ;;  %v3741_v35 = vpop.permute.xlu1 %1175  ;;  %v1147_v26 = vrot.slane %v1059_v49, 5  ;;  %v1481_v49 = vrot.slane %v1479_v13, 5 }
 0x160   :  { %985 = vrot.lane.b32.xlu0 %v846_v23, %s3093_s14  ;;  %v1513_v23 = vshll.u32 %v1352_v29, 16  ;;  %v1353_v29 = vld [vmem:[#allocation2 + $0x70] sm:$0xf] }
 0x161   :  { %1597 = vrot.lane.b32.xlu1 %v1446_v43, %s3098_s19  ;;  %v1755_v43 = vsel %vm3374_vm6, %v2895_v11, %v1754_v42  ;;  %v1148_v55 = vsel %vm3374_vm6, %v2880_v25, %v1147_v26  ;;  %v916_v42 = vsel %vm3384_vm9, %v911_v36, %v915_v34  ;;  %v3784_v25 = vld [vmem:[#allocation2 + $0x8c] sm:$0x1]  ;;  %v1482_v26 = vor.u32 %v1481_v49, %v1478_v48  ;;  %v739_v34 = vld [vmem:[#allocation2 + $0x74] sm:$0x1]  ;;  %v3799_v36 = vld [vmem:[#allocation2 + $0x78] sm:$0xe] }
 0x162   :  { %v3747_v54 = vpop.permute.xlu0 %1784  ;;  %v1515_v61 = vrot.slane %v1513_v23, 5  ;;  %v1518_v3 = vshrl.u32 %v1353_v29, 16  ;;  %v1521_v17 = vshll.u32 %v1353_v29, 16  ;;  %v1959_v29 = vld [vmem:[#allocation2 + $0x60] sm:$0xf] }
 0x163   :  { %v3751_v58 = vpop.permute.xlu1 %1272 }
 0x164   :  { %1193 = vrot.lane.b32.xlu0 %v1156_v56, %s3092_s0  ;;  %v3769_v56 = vld [vmem:[#allocation2 + $0x8c] sm:$0x1]  ;;  %v1516_v32 = vsel %vm3384_vm9, %v1511_v60, %v1515_v61  ;;  %v1520_v61 = vrot.slane %v1518_v3, 4  ;;  %v1523_v13 = vrot.slane %v1521_v17, 5  ;;  %v927_v60 = vshll.u32 %v739_v34, 16 }
 0x165   :  { %1904 = vrot.lane.b32.xlu1 %v1859_v57, %s3094_s15  ;;  %v2116_v57 = vshrl.u32 %v1963_v44, 16  ;;  %v2125_v44 = vshll.u32 %v1964_v50, 16  ;;  %v1487_v50 = vrot.slane %v1485_v12, 5  ;;  %v2088_v17 = vshrl.u32 %v1959_v29, 16 }
 0x166   :  { %v3755_v18 = vpop.permute.xlu0 %1882 }
 0x167   :  { %v3759_v31 = vpop.permute.xlu1 %1171  ;;  %v2118_v28 = vrot.slane %v2116_v57, 4  ;;  %v3806_v12 = vrot.slane %v2125_v44, 5  ;;  %v3808_v57 = vrot.slane %v1527_v52, 5  ;;  %v3819_v44 = vld [vmem:[#allocation2 + $0x78] sm:$0xe] }
 0x168   :  { %1294 = vrot.lane.b32.xlu0 %v1248_v7, %s3096_s4  ;;  %v882_v7 = vor.u32 %v881_v19, %v878_v38  ;;  %v921_v38 = vshll.u32 %v738_v1, 16  ;;  %v1490_v19 = vshrl.u32 %v1349_v22, 16  ;;  %v2264_v52 = vld [vmem:[#allocation2 + $0x10] sm:$0xe] }
 0x169   :  { %1798 = vrot.lane.b32.xlu1 %v1755_v43, %s3097_s5  ;;  %v2121_v43 = vrot.slane %v2119_v24, 5  ;;  %v1493_v24 = vshll.u32 %v1349_v22, 16  ;;  %v2902_v40 = vrot.slane %v2264_v52, 9 }
 0x16a   :  { %v3765_v53 = vpop.permute.xlu0 %1780  ;;  %v3795_v49 = vrot.slane %v882_v7, 4  ;;  %v923_v63 = vrot.slane %v921_v38, 5  ;;  %v3810_v3 = vrot.slane %v1490_v19, 4  ;;  %v1524_v38 = vor.u32 %v1523_v13, %v1520_v61  ;;  %v3824_v19 = vld [vmem:[#allocation2 + $0x7c] sm:$0x1] }
 0x16b   :  { %v3778_v11 = vpop.permute.xlu1 %1268  ;;  %v2122_v7 = vor.u32 %v2121_v43, %v2118_v28  ;;  %v1495_v28 = vrot.slane %v1493_v24, 5  ;;  %v2091_v43 = vshll.u32 %v1959_v29, 16  ;;  %v1960_v24 = vld [vmem:[#allocation2 + $0x64] sm:$0x1]  ;;  %v734_v61 = vld [vmem:[#allocation2 + $0x60] sm:$0xf] }
 0x16c   :  { %1189 = vrot.lane.b32.xlu0 %v1148_v55, %s3092_s0  ;;  %v918_v55 = vshrl.u32 %v738_v1, 16  ;;  %v3801_v1 = vld [vmem:[#allocation2 + $0x7c] sm:$0x1] }
 0x16d   :  { %2217 = vrot.lane.b32.xlu1 %v2114_v27, %s3095_s1  ;;  %v1483_v27 = vrot.slane %v1482_v26, 4  ;;  %v1857_v26 = vld [vmem:[#allocation2 + $0x78] sm:$0xf]  ;;  %v3831_v20 = vrot.slane %v2122_v7, 4  ;;  %v2093_v51 = vrot.slane %v2091_v43, 5 }
 0x16e   :  { %v3787_v23 = vpop.permute.xlu0 %1878  ;;  %v920_v22 = vrot.slane %v918_v55, 4  ;;  %v2265_v55 = vld [vmem:[#allocation2 + $0x14] sm:$0x1] }
 0x16f   :  { %v3792_v48 = vpop.permute.xlu1 %1786  ;;  %v1488_v34 = vsel %vm3384_vm9, %v1483_v27, %v1487_v50  ;;  %v2330_v39 = vrot.slane %v2265_v55, 5  ;;  %v1499_v50 = vshll.u32 %v1350_v5, 16  ;;  %v3833_v27 = vld [vmem:[#allocation2 + $0x90] sm:$0xe]  ;;  %v3840_v55 = vrot.slane %v927_v60, 5 }
 0x170   :  { %1607 = vrot.lane.b32.xlu0 %v1516_v32, %s3098_s19  ;;  %v924_v13 = vor.u32 %v923_v63, %v920_v22  ;;  %v3845_v63 = vrot.slane %v1524_v38, 4  ;;  %v3849_v7 = vld [vmem:[#allocation2 + $0x94] sm:$0x1]  ;;  %v4526_v22 = vrot.slane %v3784_v25, 5  ;;  %v1860_v5 = vld [vmem:[#allocation2 + $0x90] sm:$0xf] }
 0x171   :  { %995 = vrot.lane.b32.xlu1 %v916_v42, %s3093_s14  ;;  %v888_v42 = vsel %vm3384_vm9, %v3795_v49, %v3774_v62  ;;  %v2331_v52 = vsel %vm3374_vm6, %v2902_v40, %v2330_v39  ;;  %v2090_v49 = vrot.slane %v2088_v17, 4  ;;  %v1496_v39 = vor.u32 %v1495_v28, %v3810_v3  ;;  %v3862_v3 = vld [vmem:[#allocation2 + $0x80] sm:$0xe]  ;;  %v1969_v28 = vld [vmem:[#allocation2 + $0x88] sm:$0xf] }
 0x172   :  { %v3804_v32 = vpop.permute.xlu0 %1177  ;;  %2408 = vst.msk [vmem:[#allocation3 + $0x4] sm:$0xf] %vm337_vm2, %v2331_v52  ;;  %v2097_v40 = vshll.u32 %v1960_v24, 16  ;;  %v3864_v38 = vrot.slane %v924_v13, 4  ;;  %v3866_v24 = vrot.slane %v1499_v50, 5 }
 0x173   :  { %v3812_v46 = vpop.permute.xlu1 %1888  ;;  %v3868_v52 = vld [vmem:[#allocation2 + $0x84] sm:$0x1]  ;;  %v3883_v43 = vrot.slane %v1496_v39, 4  ;;  %v1249_v13 = vld [vmem:[#allocation2 + $0x90] sm:$0xf] }
 0x174   :  { %4525 = vst [vmem:[#allocation20_spill] sm:$0xff] %v3812_v46  ;;  %1290 = vrot.lane.b32.xlu0 %v1246_v33, %s3096_s4  ;;  %v2266_v33 = vld [vmem:[#allocation2 + $0x18] sm:$0xe]  ;;  %v3885_v16 = vrot.slane %v2097_v40, 5  ;;  %v3901_v50 = vld [vmem:[#allocation2 + $0x84] sm:$0x1]  ;;  %v930_v2 = vsel %vm3384_vm9, %v3864_v38, %v3840_v55 }
 0x175   :  { %1900 = vrot.lane.b32.xlu1 %v1857_v26, %s3094_s15  ;;  %v2903_v29 = vrot.slane %v2266_v33, 9  ;;  %v735_v33 = vld [vmem:[#allocation2 + $0x64] sm:$0x1]  ;;  %v3964_v38 = vld [vmem:[#allocation2 + $0x78] sm:$0xf] }
 0x176   :  { %v3827_v62 = vpop.permute.xlu0 %1278 }
 0x177   :  { %v3837_v26 = vpop.permute.xlu1 %1782  ;;  %v2335_v45 = vsel %vm3374_vm6, %v2903_v29, %v2334_v30  ;;  %v4527_v30 = vrot.slane %v3776_v0, 9  ;;  %v899_v29 = vshll.u32 %v735_v33, 16  ;;  %v4528_v0 = vrot.slane %v3769_v56, 5  ;;  %v744_v33 = vld [vmem:[#allocation2 + $0x88] sm:$0xf] }
 0x178   :  { %1603 = vrot.lane.b32.xlu0 %v1488_v34, %s3098_s19  ;;  %2409 = vst.msk [vmem:[#allocation3 + $0xc] sm:$0xf] %vm337_vm2, %v2335_v45  ;;  %v890_v34 = vshrl.u32 %v734_v61, 16  ;;  %v4529_v45 = vrot.slane %v3757_v6, 9  ;;  %v2158_v56 = vshrl.u32 %v1969_v28, 16  ;;  %v2161_v6 = vshll.u32 %v1969_v28, 16 }
 0x179   :  { %991 = vrot.lane.b32.xlu1 %v888_v42, %s3093_s14  ;;  %v1775_v17 = vsel %vm3374_vm6, %v4527_v30, %v4526_v22  ;;  %v893_v42 = vshll.u32 %v734_v61, 16  ;;  %v2094_v30 = vor.u32 %v2093_v51, %v2090_v49  ;;  %v3881_v61 = vld [vmem:[#allocation2 + $0x8c] sm:$0x1]  ;;  %v3899_v40 = vrot.slane %v899_v29, 5  ;;  %v2268_v29 = vld [vmem:[#allocation2 + $0x20] sm:$0xe] }
 0x17a   :  { %v3853_v60 = vpop.permute.xlu0 %1173  ;;  %v1168_v22 = vsel %vm3374_vm6, %v4529_v45, %v4528_v0  ;;  %v3892_v49 = vrot.slane %v890_v34, 4  ;;  %v3895_v0 = vld [vmem:[#allocation2 + $0x80] sm:$0xe]  ;;  %v687_v45 = vld [vmem:[#allocation2 + $0x28] sm:$0xf]  ;;  %v960_v28 = vshrl.u32 %v744_v33, 16 }
 0x17b   :  { %v3870_v25 = vpop.permute.xlu1 %2201  ;;  %v3897_v39 = vrot.slane %v893_v42, 5  ;;  %v963_v14 = vshll.u32 %v744_v33, 16  ;;  %703 = vst.msk [vmem:[#allocation3 + $0x28] sm:$0xf] %vm337_vm2, %v687_v45  ;;  %v3905_v34 = vrot.slane %v2094_v30, 4  ;;  %v1560_v42 = vshrl.u32 %v3887_v15, 16 }
 0x17c   :  { %1808 = vrot.lane.b32.xlu0 %v1775_v17, %s3097_s5  ;;  %v3911_v9 = vrot.slane %v2158_v56, 4  ;;  %v3913_v33 = vrot.slane %v2161_v6, 5  ;;  %v2904_v4 = vrot.slane %v2268_v29, 9  ;;  %v2270_v6 = vld [vmem:[#allocation2 + $0x28] sm:$0xe]  ;;  %v3928_v29 = vrot.slane %v960_v28, 4 }
 0x17d   :  { %1199 = vrot.lane.b32.xlu1 %v1168_v22, %s3092_s0  ;;  %v2271_v51 = vld [vmem:[#allocation2 + $0x2c] sm:$0x1]  ;;  %v2905_v45 = vrot.slane %v2270_v6, 9  ;;  %v2276_v28 = vld [vmem:[#allocation2 + $0x40] sm:$0xe] }
 0x17e   :  { %v3890_v17 = vpop.permute.xlu0 %1591  ;;  %v694_v6 = vld [vmem:[#allocation2 + $0x70] sm:$0xf]  ;;  %v692_v56 = vld [vmem:[#allocation2 + $0x60] sm:$0xf] }
 0x17f   :  { %v980_v22 = vpop.permute.xlu1 %979  ;;  %710 = vst.msk [vmem:[#allocation3 + $0x60] sm:$0xf] %vm337_vm2, %v694_v6  ;;  %708 = vst.msk [vmem:[#allocation3 + $0x50] sm:$0xf] %vm337_vm2, %v692_v56 }
 0x180   :  { %1906 = vrot.lane.b32.xlu0 %v1860_v5, %s3094_s15  ;;  %1025 = vst.msk [vmem:[#allocation3 + $0x18] sm:$0xf] %vm1021_vm10, %v980_v22  ;;  %v2269_v5 = vld [vmem:[#allocation2 + $0x24] sm:$0x1]  ;;  %v2128_v22 = vsel %vm3384_vm9, %v3831_v20, %v3806_v12  ;;  %v3936_v20 = vrot.slane %v1560_v42, 4 }
 0x181   :  { %1221 = vst.msk [vmem:[#allocation3 + $0x18] sm:$0xf] %vm1217_vm15, %v3741_v35  ;;  %1296 = vrot.lane.b32.xlu1 %v1249_v13, %s3096_s4  ;;  %v2338_v10 = vrot.slane %v2269_v5, 5  ;;  %v3930_v35 = vrot.slane %v963_v14, 5  ;;  %v1563_v13 = vshll.u32 %v3887_v15, 16  ;;  %v2342_v5 = vrot.slane %v2271_v51, 5 }
 0x182   :  { %v3919_v30 = vpop.permute.xlu0 %1274  ;;  %1318 = vst.msk [vmem:[#allocation3 + $0x18] sm:$0xf] %vm1314_vm0, %v3751_v58  ;;  %v693_v58 = vld [vmem:[#allocation2 + $0x68] sm:$0xf]  ;;  %v1530_v14 = vsel %vm3384_vm9, %v3845_v63, %v3808_v57  ;;  %v2277_v15 = vld [vmem:[#allocation2 + $0x44] sm:$0x1] }
 0x183   :  { %v3933_v46 = vpop.permute.xlu1 %1884  ;;  %v2339_v12 = vsel %vm3374_vm6, %v2904_v4, %v2338_v10  ;;  %709 = vst.msk [vmem:[#allocation3 + $0x58] sm:$0xf] %vm337_vm2, %v693_v58  ;;  %v2278_v42 = vld [vmem:[#allocation2 + $0x48] sm:$0xe]  ;;  %v2343_v10 = vsel %vm3374_vm6, %v2905_v45, %v2342_v5  ;;  %v2908_v57 = vrot.slane %v2276_v28, 9  ;;  %v2354_v63 = vrot.slane %v2277_v15, 5 }
 0x184   :  { %2219 = vrot.lane.b32.xlu0 %v2128_v22, %s3095_s1  ;;  %2410 = vst.msk [vmem:[#allocation3 + $0x14] sm:$0xf] %vm337_vm2, %v2339_v12  ;;  %v2279_v22 = vld [vmem:[#allocation2 + $0x4c] sm:$0x1]  ;;  %v691_v51 = vld [vmem:[#allocation2 + $0x58] sm:$0xf] }
 0x185   :  { %1609 = vrot.lane.b32.xlu1 %v1530_v14, %s3098_s19  ;;  %v3956_v12 = vrot.slane %v1563_v13, 5  ;;  %2411 = vst.msk [vmem:[#allocation3 + $0x1c] sm:$0xf] %vm337_vm2, %v2343_v10  ;;  %v2909_v58 = vrot.slane %v2278_v42, 9  ;;  %v2358_v14 = vrot.slane %v2279_v22, 5  ;;  %v2355_v45 = vsel %vm3374_vm6, %v2908_v57, %v2354_v63 }
 0x186   :  { %v3948_v4 = vpop.permute.xlu0 %1792  ;;  %707 = vst.msk [vmem:[#allocation3 + $0x48] sm:$0xf] %vm337_vm2, %v691_v51  ;;  %v2280_v13 = vld [vmem:[#allocation2 + $0x60] sm:$0xe]  ;;  %v2281_v5 = vld [vmem:[#allocation2 + $0x64] sm:$0x1] }
 0x187   :  { %v3961_v55 = vpop.permute.xlu1 %1183  ;;  %v2282_v28 = vld [vmem:[#allocation2 + $0x68] sm:$0xe]  ;;  %v4530_v15 = vrot.slane %v3801_v1, 5  ;;  %v4531_v42 = vrot.slane %v3799_v36, 9  ;;  %2414 = vst.msk [vmem:[#allocation3 + $0x34] sm:$0xf] %vm337_vm2, %v2355_v45 }
 0x188   :  { %997 = vrot.lane.b32.xlu0 %v930_v2, %s3093_s14  ;;  %v2359_v2 = vsel %vm3374_vm6, %v2909_v58, %v2358_v14  ;;  %v2283_v10 = vld [vmem:[#allocation2 + $0x6c] sm:$0x1]  ;;  %v2910_v51 = vrot.slane %v2280_v13, 9  ;;  %v2362_v57 = vrot.slane %v2281_v5, 5  ;;  %v697_v63 = vld [vmem:[#allocation2 + $0x88] sm:$0xf] }
 0x189   :  { %v1160_v22 = vsel %vm3374_vm6, %v4531_v42, %v4530_v15  ;;  %2415 = vst.msk [vmem:[#allocation3 + $0x3c] sm:$0xf] %vm337_vm2, %v2359_v2  ;;  %v2911_v1 = vrot.slane %v2282_v28, 9  ;;  %v2366_v6 = vrot.slane %v2283_v10, 5  ;;  %713 = vst.msk [vmem:[#allocation3 + $0x78] sm:$0xf] %vm337_vm2, %v697_v63 }
 0x18a   :  { %1195 = vrot.lane.b32.xlu1 %v1160_v22, %s3092_s0  ;;  %v1588_v56 = vpop.permute.xlu0 %1587  ;;  %v695_v36 = vld [vmem:[#allocation2 + $0x78] sm:$0xf]  ;;  %v696_v15 = vld [vmem:[#allocation2 + $0x80] sm:$0xf]  ;;  %v4532_v58 = vrot.slane %v3824_v19, 5  ;;  %v4533_v14 = vrot.slane %v3819_v44, 9  ;;  %v2363_v5 = vsel %vm3374_vm6, %v2910_v51, %v2362_v57 }
 0x18b   :  { %1636 = vst.msk [vmem:[#allocation3] sm:$0xf] %vm1635_vm1, %v1588_v56  ;;  %v1247_v13 = vld [vmem:[#allocation2 + $0x80] sm:$0xf]  ;;  %v2284_v28 = vld [vmem:[#allocation2 + $0x70] sm:$0xe]  ;;  %v976_v2 = vpop.permute.xlu1 %975  ;;  %v2367_v44 = vsel %vm3374_vm6, %v2911_v1, %v2366_v6 }
 0x18c   :  { %v1767_v45 = vsel %vm3374_vm6, %v4533_v14, %v4532_v58  ;;  %711 = vst.msk [vmem:[#allocation3 + $0x68] sm:$0xf] %vm337_vm2, %v695_v36  ;;  %712 = vst.msk [vmem:[#allocation3 + $0x70] sm:$0xf] %vm337_vm2, %v696_v15  ;;  %v2285_v42 = vld [vmem:[#allocation2 + $0x74] sm:$0x1] }
 0x18d   :  { %v2286_v22 = vld [vmem:[#allocation2 + $0x78] sm:$0xe]  ;;  %1829 = vst.msk [vmem:[#allocation3] sm:$0xf] %vm1828_vm3, %v3765_v53  ;;  %1804 = vrot.lane.b32.xlu0 %v1767_v45, %s3097_s5  ;;  %v2287_v19 = vld [vmem:[#allocation2 + $0x7c] sm:$0x1] }
 0x18e   :  { %2416 = vst.msk [vmem:[#allocation3 + $0x44] sm:$0xf] %vm337_vm2, %v2363_v5  ;;  %v2912_v10 = vrot.slane %v2284_v28, 9  ;;  %v2370_v51 = vrot.slane %v2285_v42, 5  ;;  %v2913_v57 = vrot.slane %v2286_v22, 9  ;;  %v1532_v56 = vshrl.u32 %v3964_v38, 16  ;;  %1292 = vrot.lane.b32.xlu1 %v1247_v13, %s3096_s4  ;;  %v4006_v1 = vpop.permute.xlu0 %1890 }
 0x18f   :  { %1023 = vst.msk [vmem:[#allocation3 + $0x8] sm:$0xf] %vm1021_vm10, %v976_v2  ;;  %v1858_v63 = vld [vmem:[#allocation2 + $0x80] sm:$0xf]  ;;  %v2374_v53 = vrot.slane %v2287_v19, 5  ;;  %v4534_v6 = vrot.slane %v3849_v7, 5  ;;  %v896_v7 = vor.u32 %v3897_v39, %v3892_v49 }
 0x190   :  { %1927 = vst.msk [vmem:[#allocation3] sm:$0xf] %vm1926_vm4, %v3787_v23  ;;  %v2288_v36 = vld [vmem:[#allocation2 + $0x80] sm:$0xe]  ;;  %v2289_v15 = vld [vmem:[#allocation2 + $0x84] sm:$0x1]  ;;  %v2371_v45 = vsel %vm3374_vm6, %v2912_v10, %v2370_v51  ;;  %v4027_v10 = vpop.permute.xlu1 %1280 }
 0x191   :  { %2417 = vst.msk [vmem:[#allocation3 + $0x4c] sm:$0xf] %vm337_vm2, %v2367_v44  ;;  %v4535_v58 = vrot.slane %v3833_v27, 9  ;;  %v4014_v14 = vld [vmem:[#allocation2 + $0x8c] sm:$0x1]  ;;  %v2914_v42 = vrot.slane %v2288_v36, 9  ;;  %v2375_v27 = vsel %vm3374_vm6, %v2913_v57, %v2374_v53  ;;  %1902 = vrot.lane.b32.xlu0 %v1858_v63, %s3094_s15  ;;  %v2100_v36 = vsel %vm3384_vm9, %v3905_v34, %v3885_v16 }
 0x192   :  { %1219 = vst.msk [vmem:[#allocation3 + $0x8] sm:$0xf] %vm1217_vm15, %v3759_v31  ;;  %v2290_v5 = vld [vmem:[#allocation2 + $0x88] sm:$0xe]  ;;  %v2291_v28 = vld [vmem:[#allocation2 + $0x8c] sm:$0x1] }
 0x193   :  { %v1779_v23 = vsel %vm3374_vm6, %v4535_v58, %v4534_v6  ;;  %v2378_v31 = vrot.slane %v2289_v15, 5  ;;  %1316 = vst.msk [vmem:[#allocation3 + $0x8] sm:$0xf] %vm1314_vm0, %v3778_v11  ;;  %v4022_v13 = vld [vmem:[#allocation2 + $0x8c] sm:$0x1]  ;;  %v2915_v22 = vrot.slane %v2290_v5, 9  ;;  %v1502_v11 = vsel %vm3384_vm9, %v3883_v43, %v3866_v24  ;;  %v4045_v58 = vpop.permute.xlu0 %2203 }
 0x194   :  { %2418 = vst.msk [vmem:[#allocation3 + $0x54] sm:$0xf] %vm337_vm2, %v2371_v45  ;;  %v2382_v2 = vrot.slane %v2291_v28, 5  ;;  %v2272_v44 = vld [vmem:[#allocation2 + $0x30] sm:$0xe]  ;;  %1605 = vrot.lane.b32.xlu1 %v1502_v11, %s3098_s19  ;;  %v1535_v5 = vshll.u32 %v3964_v38, 16 }
 0x195   :  { %v2273_v19 = vld [vmem:[#allocation2 + $0x34] sm:$0x1]  ;;  %2419 = vst.msk [vmem:[#allocation3 + $0x5c] sm:$0xf] %vm337_vm2, %v2375_v27  ;;  %v2379_v49 = vsel %vm3374_vm6, %v2914_v42, %v2378_v31  ;;  %v2274_v39 = vld [vmem:[#allocation2 + $0x38] sm:$0xe]  ;;  %v2164_v31 = vor.u32 %v3913_v33, %v3911_v9  ;;  %2215 = vrot.lane.b32.xlu0 %v2100_v36, %s3095_s1 }
 0x196   :  { %v2275_v51 = vld [vmem:[#allocation2 + $0x3c] sm:$0x1]  ;;  %v2906_v57 = vrot.slane %v2272_v44, 9  ;;  %v2346_v53 = vrot.slane %v2273_v19, 5  ;;  %v2383_v63 = vsel %vm3374_vm6, %v2915_v22, %v2382_v2  ;;  %2420 = vst.msk [vmem:[#allocation3 + $0x64] sm:$0xf] %vm337_vm2, %v2379_v49  ;;  %v1594_v44 = vpop.permute.xlu1 %1593 }
 0x197   :  { %v2907_v43 = vrot.slane %v2274_v39, 9  ;;  %v2350_v24 = vrot.slane %v2275_v51, 5  ;;  %v2292_v15 = vld [vmem:[#allocation2 + $0x90] sm:$0xe]  ;;  %v2293_v6 = vld [vmem:[#allocation2 + $0x94] sm:$0x1]  ;;  %v1566_v39 = vor.u32 %v3956_v12, %v3936_v20 }
 0x198   :  { %v1965_v45 = vld [vmem:[#allocation2 + $0x78] sm:$0xf]  ;;  %2421 = vst.msk [vmem:[#allocation3 + $0x6c] sm:$0xf] %vm337_vm2, %v2383_v63  ;;  %v2347_v16 = vsel %vm3374_vm6, %v2906_v57, %v2346_v53  ;;  %v2916_v34 = vrot.slane %v2292_v15, 9  ;;  %v2386_v28 = vrot.slane %v2293_v6, 5  ;;  %1810 = vrot.lane.b32.xlu1 %v1779_v23, %s3097_s5 }
 0x199   :  { %v897_v42 = vrot.slane %v896_v7, 4  ;;  %v969_v27 = vshll.u32 %v4014_v14, 16  ;;  %v1967_v22 = vld [vmem:[#allocation2 + $0x80] sm:$0xf]  ;;  %v2351_v2 = vsel %vm3374_vm6, %v2907_v43, %v2350_v24  ;;  %2412 = vst.msk [vmem:[#allocation3 + $0x24] sm:$0xf] %vm337_vm2, %v2347_v16  ;;  %v966_v7 = vor.u32 %v3930_v35, %v3928_v29 }
 0x19a   :  { %v4536_v19 = vshll.u32 %v3881_v61, 16  ;;  %v1569_v9 = vshll.u32 %v4022_v13, 16  ;;  %2413 = vst.msk [vmem:[#allocation3 + $0x2c] sm:$0xf] %vm337_vm2, %v2351_v2  ;;  %v2387_v33 = vsel %vm3374_vm6, %v2916_v34, %v2386_v28  ;;  %v4537_v14 = vrot.slane %v3868_v52, 5  ;;  %v982_v52 = vpop.permute.xlu0 %981  ;;  %v4099_v38 = vpop.permute.xlu1 %1179 }
 0x19b   :  { %1639 = vst.msk [vmem:[#allocation3 + $0x18] sm:$0xf] %vm1635_vm1, %v1594_v44  ;;  %v4538_v49 = vrot.slane %v3862_v3, 9  ;;  %v1966_v29 = vld [vmem:[#allocation2 + $0x7c] sm:$0x1]  ;;  %v2130_v35 = vshrl.u32 %v1965_v45, 16  ;;  %v902_v20 = vsel %vm3384_vm9, %v897_v42, %v3899_v40 }
 0x19c   :  { %v4060_v11 = vrot.slane %v4536_v19, 5  ;;  %v2133_v13 = vshll.u32 %v1965_v45, 16  ;;  %v740_v51 = vld [vmem:[#allocation2 + $0x78] sm:$0xf]  ;;  %2422 = vst.msk [vmem:[#allocation3 + $0x74] sm:$0xf] %vm337_vm2, %v2387_v33  ;;  %993 = vrot.lane.b32.xlu0 %v902_v20, %s3093_s14 }
 0x19d   :  { %v1771_v61 = vsel %vm3374_vm6, %v4538_v49, %v4537_v14  ;;  %1832 = vst.msk [vmem:[#allocation3 + $0x18] sm:$0xf] %vm1828_vm3, %v3792_v48  ;;  %v1356_v57 = vld [vmem:[#allocation2 + $0x7c] sm:$0x1]  ;;  %v1534_v3 = vrot.slane %v1532_v56, 4  ;;  %v1537_v53 = vrot.slane %v1535_v5, 5 }
 0x19e   :  { %v2144_v36 = vshrl.u32 %v1967_v22, 16  ;;  %v2147_v63 = vshll.u32 %v1967_v22, 16  ;;  %1026 = vst.msk [vmem:[#allocation3 + $0x20] sm:$0xf] %vm1021_vm10, %v982_v52  ;;  %v2165_v12 = vrot.slane %v2164_v31, 4  ;;  %v4539_v43 = vrot.slane %v3901_v50, 5  ;;  %1806 = vrot.lane.b32.xlu1 %v1771_v61, %s3097_s5  ;;  %v4110_v44 = vpop.permute.xlu1 %1276 }
 0x19f   :  { %v4540_v48 = vrot.slane %v3895_v0, 9  ;;  %v4093_v24 = vrot.slane %v969_v27, 5  ;;  %1930 = vst.msk [vmem:[#allocation3 + $0x18] sm:$0xf] %vm1926_vm4, %v3933_v46  ;;  %v967_v40 = vrot.slane %v966_v7, 4  ;;  %v1571_v56 = vrot.slane %v1569_v9, 5 }
 0x1a0   :  { %1222 = vst.msk [vmem:[#allocation3 + $0x20] sm:$0xf] %vm1217_vm15, %v3804_v32  ;;  %v932_v50 = vshrl.u32 %v740_v51, 16  ;;  %v935_v15 = vshll.u32 %v740_v51, 16  ;;  %v742_v0 = vld [vmem:[#allocation2 + $0x80] sm:$0xf]  ;;  %v4105_v32 = vpop.permute.xlu0 %1788  ;;  %v1538_v28 = vor.u32 %v1537_v53, %v1534_v3  ;;  %v2170_v27 = vsel %vm3384_vm9, %v2165_v12, %v4060_v11 }
 0x1a1   :  { %v1164_v23 = vsel %vm3374_vm6, %v4540_v48, %v4539_v43  ;;  %1319 = vst.msk [vmem:[#allocation3 + $0x20] sm:$0xf] %vm1314_vm0, %v3919_v30  ;;  %v2132_v6 = vrot.slane %v2130_v35, 4  ;;  %v2135_v45 = vrot.slane %v2133_v13, 5  ;;  %v2139_v5 = vshll.u32 %v1966_v29, 16 }
 0x1a2   :  { %v1541_v16 = vshll.u32 %v1356_v57, 16  ;;  %v1361_v46 = vld [vmem:[#allocation2 + $0x90] sm:$0xf]  ;;  %v1567_v34 = vrot.slane %v1566_v39, 4  ;;  %v2146_v42 = vrot.slane %v2144_v36, 4  ;;  %v2149_v31 = vrot.slane %v2147_v63, 5  ;;  %1197 = vrot.lane.b32.xlu0 %v1164_v23, %s3092_s0  ;;  %2225 = vrot.lane.b32.xlu1 %v2170_v27, %s3095_s1  ;;  %v4121_v48 = vpop.permute.xlu1 %1794 }
 0x1a3   :  { %v1968_v22 = vld [vmem:[#allocation2 + $0x84] sm:$0x1]  ;;  %v946_v30 = vshrl.u32 %v742_v0, 16  ;;  %v949_v2 = vshll.u32 %v742_v0, 16  ;;  %v934_v19 = vrot.slane %v932_v50, 4  ;;  %v937_v7 = vrot.slane %v935_v15, 5 }
 0x1a4   :  { %v1574_v9 = vshrl.u32 %v1361_v46, 16  ;;  %v1577_v33 = vshll.u32 %v1361_v46, 16  ;;  %v1951_v14 = vld [vmem:[#allocation2 + $0x30] sm:$0xf]  ;;  %v972_v49 = vsel %vm3384_vm9, %v967_v40, %v4093_v24  ;;  %v2136_v61 = vor.u32 %v2135_v45, %v2132_v6  ;;  %v741_v29 = vld [vmem:[#allocation2 + $0x7c] sm:$0x1]  ;;  %v4117_v35 = vpop.permute.xlu0 %1886 }
 0x1a5   :  { %v2141_v39 = vrot.slane %v2139_v5, 5  ;;  %v1543_v11 = vrot.slane %v1541_v16, 5  ;;  %v1572_v13 = vsel %vm3384_vm9, %v1567_v34, %v1571_v56  ;;  %v1539_v51 = vrot.slane %v1538_v28, 4  ;;  %v743_v3 = vld [vmem:[#allocation2 + $0x84] sm:$0x1] }
 0x1a6   :  { %v2150_v52 = vor.u32 %v2149_v31, %v2146_v42  ;;  %v2153_v57 = vshll.u32 %v1968_v22, 16  ;;  %v1357_v53 = vld [vmem:[#allocation2 + $0x80] sm:$0xf]  ;;  %v948_v36 = vrot.slane %v946_v30, 4  ;;  %v951_v63 = vrot.slane %v949_v2, 5  ;;  %1615 = vrot.lane.b32.xlu0 %v1572_v13, %s3098_s19  ;;  %1003 = vrot.lane.b32.xlu1 %v972_v49, %s3093_s14  ;;  %v1590_v30 = vpop.permute.xlu1 %1589 }
 0x1a7   :  { %v2032_v20 = vshrl.u32 %v1951_v14, 16  ;;  %v2035_v12 = vshll.u32 %v1951_v14, 16  ;;  %v1971_v43 = vld [vmem:[#allocation2 + $0x90] sm:$0xf]  ;;  %v938_v23 = vor.u32 %v937_v7, %v934_v19  ;;  %v941_v24 = vshll.u32 %v741_v29, 16 }
 0x1a8   :  { %v1576_v40 = vrot.slane %v1574_v9, 4  ;;  %v1579_v50 = vrot.slane %v1577_v33, 5  ;;  %v2137_v15 = vrot.slane %v2136_v61, 4  ;;  %v1362_v56 = vld [vmem:[#allocation2 + $0x94] sm:$0x1]  ;;  %v955_v0 = vshll.u32 %v743_v3, 16  ;;  %v2200_v5 = vpop.permute.xlu0 %2199 }
 0x1a9   :  { %v1546_v6 = vshrl.u32 %v1357_v53, 16  ;;  %v1549_v45 = vshll.u32 %v1357_v53, 16  ;;  %v1544_v16 = vsel %vm3384_vm9, %v1539_v51, %v1543_v11  ;;  %v2155_v46 = vrot.slane %v2153_v57, 5  ;;  %2248 = vst.msk [vmem:[#allocation3] sm:$0xf] %vm2247_vm5, %v2200_v5 }
 0x1aa   :  { %v2172_v34 = vshrl.u32 %v1971_v43, 16  ;;  %v2175_v28 = vshll.u32 %v1971_v43, 16  ;;  %v2151_v42 = vrot.slane %v2150_v52, 4  ;;  %v952_v31 = vor.u32 %v951_v63, %v948_v36  ;;  %1611 = vrot.lane.b32.xlu0 %v1544_v16, %s3098_s19  ;;  %v1952_v33 = vld [vmem:[#allocation2 + $0x34] sm:$0x1] }
 0x1ab   :  { %v2034_v27 = vrot.slane %v2032_v20, 4  ;;  %v2037_v22 = vrot.slane %v2035_v12, 5  ;;  %v939_v2 = vrot.slane %v938_v23, 4  ;;  %v943_v19 = vrot.slane %v941_v24, 5  ;;  %1637 = vst.msk [vmem:[#allocation3 + $0x8] sm:$0xf] %vm1635_vm1, %v1590_v30  ;;  %v4144_v20 = vpop.permute.xlu1 %1896 }
 0x1ac   :  { %v1580_v7 = vor.u32 %v1579_v50, %v1576_v40  ;;  %v1583_v9 = vshll.u32 %v1362_v56, 16  ;;  %v2142_v14 = vsel %vm3384_vm9, %v2137_v15, %v2141_v39  ;;  %v957_v49 = vrot.slane %v955_v0, 5  ;;  %1830 = vst.msk [vmem:[#allocation3 + $0x8] sm:$0xf] %vm1828_vm3, %v3837_v26  ;;  %v978_v29 = vpop.permute.xlu0 %977  ;;  %v1358_v13 = vld [vmem:[#allocation2 + $0x84] sm:$0x1] }
 0x1ad   :  { %v1548_v61 = vrot.slane %v1546_v6, 4  ;;  %v1551_v11 = vrot.slane %v1549_v45, 5  ;;  %2221 = vrot.lane.b32.xlu1 %v2142_v14, %s3095_s1  ;;  %v2174_v51 = vrot.slane %v2172_v34, 4  ;;  %v2177_v52 = vrot.slane %v2175_v28, 5  ;;  %v1953_v57 = vld [vmem:[#allocation2 + $0x38] sm:$0xf] }
 0x1ae   :  { %1928 = vst.msk [vmem:[#allocation3 + $0x8] sm:$0xf] %vm1926_vm4, %v3730_v59  ;;  %v2156_v39 = vsel %vm3384_vm9, %v2151_v42, %v2155_v46  ;;  %v953_v3 = vrot.slane %v952_v31, 4  ;;  %v2038_v53 = vor.u32 %v2037_v22, %v2034_v27  ;;  %v2041_v36 = vshll.u32 %v1952_v33, 16  ;;  %v1972_v63 = vld [vmem:[#allocation2 + $0x94] sm:$0x1] }
 0x1af   :  { %1024 = vst.msk [vmem:[#allocation3 + $0x10] sm:$0xf] %vm1021_vm10, %v978_v29  ;;  %v1973_v26 = vld [vmem:[#allocation2 + $0x98] sm:$0xf]  ;;  %v944_v59 = vsel %vm3384_vm9, %v939_v2, %v943_v19  ;;  %2223 = vrot.lane.b32.xlu0 %v2156_v39, %s3095_s1  ;;  %v1581_v12 = vrot.slane %v1580_v7, 4  ;;  %v1585_v43 = vrot.slane %v1583_v9, 5  ;;  %v1552_v23 = vor.u32 %v1551_v11, %v1548_v61 }
 0x1b0   :  { %2249 = vst.msk [vmem:[#allocation3 + $0x8] sm:$0xf] %vm2247_vm5, %v3870_v25  ;;  %v1555_v24 = vshll.u32 %v1358_v13, 16  ;;  %v2046_v40 = vshrl.u32 %v1953_v57, 16  ;;  %v2049_v50 = vshll.u32 %v1953_v57, 16  ;;  %v2178_v25 = vor.u32 %v2177_v52, %v2174_v51 }
 0x1b1   :  { %1220 = vst.msk [vmem:[#allocation3 + $0x10] sm:$0xf] %vm1217_vm15, %v3853_v60  ;;  %999 = vrot.lane.b32.xlu1 %v944_v59, %s3093_s14  ;;  %v4154_v60 = vpop.permute.xlu0 %1286  ;;  %v2181_v15 = vshll.u32 %v1972_v63, 16  ;;  %v2186_v56 = vshrl.u32 %v1973_v26, 16  ;;  %v2039_v0 = vrot.slane %v2038_v53, 4  ;;  %v2043_v6 = vrot.slane %v2041_v36, 5 }
 0x1b2   :  { %1317 = vst.msk [vmem:[#allocation3 + $0x10] sm:$0xf] %vm1314_vm0, %v3732_v8  ;;  %v958_v8 = vsel %vm3384_vm9, %v953_v3, %v957_v49  ;;  %v2189_v45 = vshll.u32 %v1973_v26, 16  ;;  %v1586_v5 = vsel %vm3384_vm9, %v1581_v12, %v1585_v43  ;;  %v1557_v16 = vrot.slane %v1555_v24, 5  ;;  %v1954_v31 = vld [vmem:[#allocation2 + $0x3c] sm:$0x1] }
 0x1b3   :  { %1638 = vst.msk [vmem:[#allocation3 + $0x10] sm:$0xf] %vm1635_vm1, %v3890_v17  ;;  %v4162_v17 = vpop.permute.xlu1 %1181  ;;  %1001 = vrot.lane.b32.xlu0 %v958_v8, %s3093_s14  ;;  %v2048_v46 = vrot.slane %v2046_v40, 4  ;;  %v2051_v34 = vrot.slane %v2049_v50, 5  ;;  %v2179_v42 = vrot.slane %v2178_v25, 4  ;;  %v2188_v27 = vrot.slane %v2186_v56, 4 }
 0x1b4   :  { %1831 = vst.msk [vmem:[#allocation3 + $0x10] sm:$0xf] %vm1828_vm3, %v3747_v54  ;;  %v1553_v54 = vrot.slane %v1552_v23, 4  ;;  %v3070_v30 = vld [vmem:[#allocation3 + $0x4] ss:$8 sps:$4 sm:$0xff]   ;;  %v2044_v2 = vsel %vm3384_vm9, %v2039_v0, %v2043_v6  ;;  %v2055_v14 = vshll.u32 %v1954_v31, 16 }
 0x1b5   :  { %1929 = vst.msk [vmem:[#allocation3 + $0x10] sm:$0xf] %vm1926_vm4, %v3755_v18  ;;  %1617 = vrot.lane.b32.xlu1 %v1586_v5, %s3098_s19  ;;  %v988_v28 = vpop.permute.xlu0 %987  ;;  %v2183_v18 = vrot.slane %v2181_v15, 5  ;;  %v1974_v7 = vld [vmem:[#allocation2 + $0x9c] sm:$0x1]  ;;  %2943 = vmatprep.mubr.msk.bf16.mxu0 %vm2584_vm7, %v3070_v30  ;;  %v2052_v33 = vor.u32 %v2051_v34, %v2048_v46  ;;  %s3099_s14 = smov 24  }
 0x1b6   :  { %2250 = vst.msk [vmem:[#allocation3 + $0x10] sm:$0xf] %vm2247_vm5, %v4045_v58  ;;  %v2191_v58 = vrot.slane %v2189_v45, 5  ;;  %v1558_v9 = vsel %vm3384_vm9, %v1553_v54, %v1557_v16  ;;  %v1861_v61 = vld [vmem:[#allocation2 + $0x98] sm:$0xf]  ;;  %v2195_v29 = vshll.u32 %v1974_v7, 16 }
 0x1b7   :  { %1029 = vst.msk [vmem:[#allocation3 + $0x38] sm:$0xf] %vm1021_vm10, %v988_v28  ;;  %v3068_v22 = vld [vmem:[#allocation3] ss:$8 sps:$4 sm:$0xff]   ;;  %v4173_v19 = vpop.permute.xlu1 %1790  ;;  %2207 = vrot.lane.b32.xlu0 %v2044_v2, %s3095_s1  ;;  %v2057_v51 = vrot.slane %v2055_v14, 5 }
 0x1b8   :  { %1225 = vst.msk [vmem:[#allocation3 + $0x38] sm:$0xf] %vm1217_vm15, %v3961_v55  ;;  %2642 = vmatmul.mubr.bf16.vlgmr.msra.gmra.mxu0 %v3068_v22  ;;  %v2184_v55 = vsel %vm3384_vm9, %v2179_v42, %v2183_v18  ;;  %v2192_v11 = vor.u32 %v2191_v58, %v2188_v27  ;;  %v2197_v39 = vrot.slane %v2195_v29, 5  ;;  %v2294_v3 = vld [vmem:[#allocation2 + $0x98] sm:$0xe] }
 0x1b9   :  { %1322 = vst.msk [vmem:[#allocation3 + $0x38] sm:$0xf] %vm1314_vm0, %v4027_v10  ;;  %1613 = vrot.lane.b32.xlu1 %v1558_v9, %s3098_s19  ;;  %v1600_v49 = vpop.permute.xlu0 %1599  ;;  %v2053_v10 = vrot.slane %v2052_v33, 4  ;;  %v2295_v53 = vld [vmem:[#allocation2 + $0x9c] sm:$0x1]  ;;  %v2917_v63 = vrot.slane %v2294_v3, 9 }
 0x1ba   :  { %v2193_v57 = vrot.slane %v2192_v11, 4  ;;  %v2390_v26 = vrot.slane %v2295_v53, 5  ;;  %v3071_v21 = vld [vmem:[#allocation3 + $0x14] ss:$8 sps:$4 sm:$0xff]  }
 0x1bb   :  { %v4186_v13 = vpop.permute.xlu1 %1191  ;;  %2227 = vrot.lane.b32.xlu0 %v2184_v55, %s3095_s1  ;;  %v2058_v59 = vsel %vm3384_vm9, %v2053_v10, %v2057_v51  ;;  %2944 = vmatprep.mubr.msk.bf16.mxu0 %vm2584_vm7, %v3071_v21  ;;  %v3076_v16 = vld [vmem:[#allocation3 + $0x34] ss:$8 sps:$4 sm:$0xff]   ;;  %v3082_v21 = vld [vmem:[#allocation3 + $0x64] ss:$8 sps:$4 sm:$0xff]  }
 0x1bc   :  { %v2391_v43 = vsel %vm3374_vm6, %v2917_v63, %v2390_v26  ;;  %v2198_v23 = vsel %vm3384_vm9, %v2193_v57, %v2197_v39  ;;  %2946 = vmatprep.mubr.msk.bf16.mxu1 %vm2584_vm7, %v3076_v16  ;;  %v4555_v16 = vld [vmem:[#allocation17_spill] sm:$0xff]  ;;  %vm2819_vm6 = vcmask 257216  }
 0x1bd   :  { %1908 = vrot.lane.b32.xlu1 %v1861_v61, %s3094_s15  ;;  %v1283_v52 = vpop.permute.xlu0 %1282  ;;  %2423 = vst.msk [vmem:[#allocation3 + $0x7c] sm:$0xf] %vm337_vm2, %v2391_v43  ;;  %vm2706_vm2 = vcmask 191488  }
 0x1be   :  { %1323 = vst.msk [vmem:[#allocation3 + $0x40] sm:$0xf] %vm1314_vm0, %v1283_v52 }
 0x1bf   :  { %v2206_v36 = vpop.permute.xlu1 %2205  ;;  %2720 = vst.msk [vmem:[%s4484_s7 + $0x34] sm:$0xf] %vm2706_vm2, %v4555_v16 }
 0x1c0   :  { %2251 = vst.msk [vmem:[#allocation3 + $0x18] sm:$0xf] %vm2247_vm5, %v2206_v36 }
 0x1c1   :  { %2209 = vrot.lane.b32.xlu1 %v2058_v59, %s3095_s1  ;;  %v4195_v12 = vpop.permute.xlu0 %1800  ;;  %v3080_v59 = vld [vmem:[#allocation3 + $0x54] ss:$8 sps:$4 sm:$0xff]  }
 0x1c3   :  { %v984_v24 = vpop.permute.xlu1 %983 }
 0x1c4   :  { %1027 = vst.msk [vmem:[#allocation3 + $0x28] sm:$0xf] %vm1021_vm10, %v984_v24 }
 0x1c5   :  { %1223 = vst.msk [vmem:[#allocation3 + $0x28] sm:$0xf] %vm1217_vm15, %v4099_v38  ;;  %2229 = vrot.lane.b32.xlu1 %v2198_v23, %s3095_s1  ;;  %v1596_v40 = vpop.permute.xlu0 %1595 }
 0x1c6   :  { %1320 = vst.msk [vmem:[#allocation3 + $0x28] sm:$0xf] %vm1314_vm0, %v4110_v44 }
 0x1c7   :  { %1640 = vst.msk [vmem:[#allocation3 + $0x20] sm:$0xf] %vm1635_vm1, %v1596_v40  ;;  %v1289_v47 = vpop.permute.xlu1 %1288  ;;  %v3073_v50 = vld [vmem:[#allocation3 + $0x10] ss:$8 sps:$4 sm:$0xff]  }
 0x1c8   :  { %1833 = vst.msk [vmem:[#allocation3 + $0x20] sm:$0xf] %vm1828_vm3, %v4105_v32  ;;  %2650 = vmatmul.mubr.bf16.gmra.mxu0 %v3073_v50 }
 0x1c9   :  { %1931 = vst.msk [vmem:[#allocation3 + $0x20] sm:$0xf] %vm1926_vm4, %v4117_v35  ;;  %v4214_v38 = vpop.permute.xlu0 %1898 }
 0x1cb   :  { %v1602_v25 = vpop.permute.xlu1 %1601 }
 0x1cc   :  { %1643 = vst.msk [vmem:[#allocation3 + $0x38] sm:$0xf] %vm1635_vm1, %v1602_v25  ;;  %v3085_v25 = vld [vmem:[#allocation3 + $0x24] ss:$8 sps:$4 sm:$0xff]  }
 0x1cd   :  { %1836 = vst.msk [vmem:[#allocation3 + $0x38] sm:$0xf] %vm1828_vm3, %v4121_v48  ;;  %v2212_v44 = vpop.permute.xlu0 %2211  ;;  %2945 = vmatprep.mubr.msk.bf16.mxu0 %vm2584_vm7, %v3085_v25 }
 0x1ce   :  { %1934 = vst.msk [vmem:[#allocation3 + $0x38] sm:$0xf] %vm1926_vm4, %v3711_v41 }
 0x1cf   :  { %2255 = vst.msk [vmem:[#allocation3 + $0x38] sm:$0xf] %vm2247_vm5, %v3720_v37  ;;  %v1188_v32 = vpop.permute.xlu1 %1187  ;;  %v4541_v37 = vld [vmem:[#allocation20_spill] sm:$0xff] }
 0x1d1   :  { %v1797_v35 = vpop.permute.xlu0 %1796 }
 0x1d3   :  { %v1285_v15 = vpop.permute.xlu1 %1284 }
 0x1d5   :  { %v1895_v56 = vpop.permute.xlu0 %1894 }
 0x1d7   :  { %v1803_v8 = vpop.permute.xlu1 %1802 }
 0x1d9   :  { %v986_v0 = vpop.permute.xlu0 %985 }
 0x1da   :  { %1028 = vst.msk [vmem:[#allocation3 + $0x30] sm:$0xf] %vm1021_vm10, %v986_v0  ;;  %v4545_v0 = vld [vmem:[#allocation7_spill] sm:$0xff] }
 0x1db   :  { %1224 = vst.msk [vmem:[#allocation3 + $0x30] sm:$0xf] %vm1217_vm15, %v4162_v17  ;;  %v1598_v6 = vpop.permute.xlu1 %1597 }
 0x1dc   :  { %1321 = vst.msk [vmem:[#allocation3 + $0x30] sm:$0xf] %vm1314_vm0, %v3827_v62 }
 0x1dd   :  { %1641 = vst.msk [vmem:[#allocation3 + $0x28] sm:$0xf] %vm1635_vm1, %v1598_v6  ;;  %1642 = vst.msk [vmem:[#allocation3 + $0x30] sm:$0xf] %vm1635_vm1, %v1600_v49  ;;  %v1194_v41 = vpop.permute.xlu0 %1193  ;;  %v4546_v6 = vld [vmem:[#allocation8_spill] sm:$0xff] }
 0x1de   :  { %1834 = vst.msk [vmem:[#allocation3 + $0x28] sm:$0xf] %vm1828_vm3, %v4173_v19  ;;  %1835 = vst.msk [vmem:[#allocation3 + $0x30] sm:$0xf] %vm1828_vm3, %v3948_v4 }
 0x1df   :  { %1932 = vst.msk [vmem:[#allocation3 + $0x28] sm:$0xf] %vm1926_vm4, %v4541_v37  ;;  %1933 = vst.msk [vmem:[#allocation3 + $0x30] sm:$0xf] %vm1926_vm4, %v4006_v1  ;;  %v4238_v48 = vpop.permute.xlu1 %1904  ;;  %v4548_v37 = vld [vmem:[#allocation10_spill] sm:$0xff] }
 0x1e0   :  { %2254 = vst.msk [vmem:[#allocation3 + $0x30] sm:$0xf] %vm2247_vm5, %v2212_v44 }
 0x1e1   :  { %v4241_v62 = vpop.permute.xlu0 %1294  ;;  %2710 = vst.msk [vmem:[%s4484_s7 + $0xc] sm:$0xf] %vm2706_vm2, %v4545_v0  ;;  %2711 = vst.msk [vmem:[%s4484_s7 + $0x10] sm:$0xf] %vm2706_vm2, %v4546_v6 }
 0x1e2   :  { %2713 = vst.msk [vmem:[%s4484_s7 + $0x18] sm:$0xf] %vm2706_vm2, %v4548_v37 }
 0x1e3   :  { %v1799_v45 = vpop.permute.xlu1 %1798 }
 0x1e5   :  { %v1190_v17 = vpop.permute.xlu0 %1189 }
 0x1e7   :  { %v2218_v5 = vpop.permute.xlu1 %2217  ;;  %v3074_v54 = vld [vmem:[#allocation3 + $0x30] ss:$8 sps:$4 sm:$0xff]  }
 0x1e8   :  { %2666 = vmatmul.mubr.bf16.vlgmr.msra.gmra.mxu1 %v3074_v54  ;;  %v4554_v54 = vld [vmem:[#allocation16_spill] sm:$0xff] }
 0x1e9   :  { %v1608_v46 = vpop.permute.xlu0 %1607  ;;  %2719 = vst.msk [vmem:[%s4484_s7 + $0x30] sm:$0xf] %vm2706_vm2, %v4554_v54 }
 0x1eb   :  { %v996_v4 = vpop.permute.xlu1 %995 }
 0x1ec   :  { %1033 = vst.msk [vmem:[#allocation3 + $0x58] sm:$0xf] %vm1021_vm10, %v996_v4  ;;  %v4557_v4 = vld [vmem:[#allocation19_spill] sm:$0xff] }
 0x1ed   :  { %1229 = vst.msk [vmem:[#allocation3 + $0x58] sm:$0xf] %vm1217_vm15, %v4186_v13  ;;  %v1291_v1 = vpop.permute.xlu0 %1290 }
 0x1ee   :  { %1326 = vst.msk [vmem:[#allocation3 + $0x58] sm:$0xf] %vm1314_vm0, %v1289_v47 }
 0x1ef   :  { %v1901_v34 = vpop.permute.xlu1 %1900  ;;  %2722 = vst.msk [vmem:[%s4484_s7 + $0x3c] sm:$0xf] %vm2706_vm2, %v4557_v4 }
 0x1f1   :  { %v1604_v28 = vpop.permute.xlu0 %1603 }
 0x1f2   :  { %1644 = vst.msk [vmem:[#allocation3 + $0x40] sm:$0xf] %vm1635_vm1, %v1604_v28 }
 0x1f3   :  { %v992_v42 = vpop.permute.xlu1 %991  ;;  %1837 = vst.msk [vmem:[#allocation3 + $0x40] sm:$0xf] %vm1828_vm3, %v1797_v35 }
 0x1f4   :  { %1031 = vst.msk [vmem:[#allocation3 + $0x48] sm:$0xf] %vm1021_vm10, %v992_v42 }
 0x1f5   :  { %1935 = vst.msk [vmem:[#allocation3 + $0x40] sm:$0xf] %vm1926_vm4, %v1895_v56  ;;  %v4253_v18 = vpop.permute.xlu0 %1808  ;;  %v4543_v56 = vld [vmem:[#allocation5_spill] sm:$0xff] }
 0x1f6   :  { %1227 = vst.msk [vmem:[#allocation3 + $0x48] sm:$0xf] %vm1217_vm15, %v1188_v32  ;;  %v3088_v32 = vld [vmem:[#allocation3 + $0x74] ss:$8 sps:$4 sm:$0xff]  }
 0x1f7   :  { %1324 = vst.msk [vmem:[#allocation3 + $0x48] sm:$0xf] %vm1314_vm0, %v1285_v15  ;;  %v1200_v31 = vpop.permute.xlu1 %1199  ;;  %v4542_v15 = vld [vmem:[#allocation4_spill] sm:$0xff] }
 0x1f8   :  { %2707 = vst.msk [vmem:[%s4484_s7] sm:$0xf] %vm2706_vm2, %v4542_v15  ;;  %2708 = vst.msk [vmem:[%s4484_s7 + $0x4] sm:$0xf] %vm2706_vm2, %v4543_v56 }
 0x1f9   :  { %v4256_v27 = vpop.permute.xlu0 %1906 }
 0x1fb   :  { %v1297_v22 = vpop.permute.xlu1 %1296 }
 0x1fd   :  { %v2220_v30 = vpop.permute.xlu0 %2219 }
 0x1ff   :  { %v1610_v2 = vpop.permute.xlu1 %1609 }
 0x200   :  { %1647 = vst.msk [vmem:[#allocation3 + $0x58] sm:$0xf] %vm1635_vm1, %v1610_v2 }
 0x201   :  { %1840 = vst.msk [vmem:[#allocation3 + $0x58] sm:$0xf] %vm1828_vm3, %v1803_v8  ;;  %v998_v58 = vpop.permute.xlu0 %997  ;;  %v4544_v8 = vld [vmem:[#allocation6_spill] sm:$0xff] }
 0x202   :  { %1938 = vst.msk [vmem:[#allocation3 + $0x58] sm:$0xf] %vm1926_vm4, %v1901_v34 }
 0x203   :  { %1034 = vst.msk [vmem:[#allocation3 + $0x60] sm:$0xf] %vm1021_vm10, %v998_v58  ;;  %v1196_v19 = vpop.permute.xlu1 %1195 }
 0x204   :  { %1230 = vst.msk [vmem:[#allocation3 + $0x60] sm:$0xf] %vm1217_vm15, %v1194_v41  ;;  %v4547_v41 = vld [vmem:[#allocation9_spill] sm:$0xff] }
 0x205   :  { %1327 = vst.msk [vmem:[#allocation3 + $0x60] sm:$0xf] %vm1314_vm0, %v1291_v1  ;;  %v1805_v7 = vpop.permute.xlu0 %1804 }
 0x206   :  { %2709 = vst.msk [vmem:[%s4484_s7 + $0x8] sm:$0xf] %vm2706_vm2, %v4544_v8  ;;  %2712 = vst.msk [vmem:[%s4484_s7 + $0x14] sm:$0xf] %vm2706_vm2, %v4547_v41 }
 0x207   :  { %v1293_v9 = vpop.permute.xlu1 %1292 }
 0x209   :  { %v1903_v33 = vpop.permute.xlu0 %1902 }
 0x20b   :  { %v1606_v14 = vpop.permute.xlu1 %1605 }
 0x20c   :  { %1645 = vst.msk [vmem:[#allocation3 + $0x48] sm:$0xf] %vm1635_vm1, %v1606_v14 }
 0x20d   :  { %1838 = vst.msk [vmem:[#allocation3 + $0x48] sm:$0xf] %vm1828_vm3, %v1799_v45  ;;  %v2216_v49 = vpop.permute.xlu0 %2215  ;;  %v4551_v45 = vld [vmem:[#allocation13_spill] sm:$0xff] }
 0x20e   :  { %1936 = vst.msk [vmem:[#allocation3 + $0x48] sm:$0xf] %vm1926_vm4, %v4144_v20  ;;  %v3077_v20 = vld [vmem:[#allocation3 + $0x44] ss:$8 sps:$4 sm:$0xff]  }
 0x20f   :  { %2256 = vst.msk [vmem:[#allocation3 + $0x40] sm:$0xf] %vm2247_vm5, %v2216_v49  ;;  %2257 = vst.msk [vmem:[#allocation3 + $0x48] sm:$0xf] %vm2247_vm5, %v2218_v5  ;;  %v1811_v61 = vpop.permute.xlu1 %1810  ;;  %2947 = vmatprep.mubr.msk.bf16.mxu1 %vm2584_vm7, %v3077_v20  ;;  %v4553_v5 = vld [vmem:[#allocation15_spill] sm:$0xff] }
 0x210   :  { %2716 = vst.msk [vmem:[%s4484_s7 + $0x24] sm:$0xf] %vm2706_vm2, %v4551_v45  ;;  %2718 = vst.msk [vmem:[%s4484_s7 + $0x2c] sm:$0xf] %vm2706_vm2, %v4553_v5 }
 0x211   :  { %v994_v55 = vpop.permute.xlu0 %993 }
 0x212   :  { %1032 = vst.msk [vmem:[#allocation3 + $0x50] sm:$0xf] %vm1021_vm10, %v994_v55 }
 0x213   :  { %1228 = vst.msk [vmem:[#allocation3 + $0x50] sm:$0xf] %vm1217_vm15, %v1190_v17  ;;  %v1807_v11 = vpop.permute.xlu1 %1806  ;;  %v4552_v17 = vld [vmem:[#allocation14_spill] sm:$0xff] }
 0x214   :  { %1325 = vst.msk [vmem:[#allocation3 + $0x50] sm:$0xf] %vm1314_vm0, %v4154_v60 }
 0x215   :  { %1646 = vst.msk [vmem:[#allocation3 + $0x50] sm:$0xf] %vm1635_vm1, %v1608_v46  ;;  %v1198_v29 = vpop.permute.xlu0 %1197  ;;  %v4556_v46 = vld [vmem:[#allocation18_spill] sm:$0xff] }
 0x216   :  { %1839 = vst.msk [vmem:[#allocation3 + $0x50] sm:$0xf] %vm1828_vm3, %v4195_v12  ;;  %v3079_v13 = vld [vmem:[#allocation3 + $0x40] ss:$8 sps:$4 sm:$0xff]  }
 0x217   :  { %1937 = vst.msk [vmem:[#allocation3 + $0x50] sm:$0xf] %vm1926_vm4, %v4214_v38  ;;  %v2226_v10 = vpop.permute.xlu1 %2225  ;;  %2674 = vmatmul.mubr.bf16.gmra.mxu1 %v3079_v13 }
 0x218   :  { %2258 = vst.msk [vmem:[#allocation3 + $0x50] sm:$0xf] %vm2247_vm5, %v2220_v30  ;;  %2948 = vmatprep.mubr.msk.bf16.mxu1 %vm2584_vm7, %v3080_v59 }
 0x219   :  { %v1616_v51 = vpop.permute.xlu0 %1615  ;;  %2717 = vst.msk [vmem:[%s4484_s7 + $0x28] sm:$0xf] %vm2706_vm2, %v4552_v17  ;;  %2721 = vst.msk [vmem:[%s4484_s7 + $0x38] sm:$0xf] %vm2706_vm2, %v4556_v46 }
 0x21b   :  { %v1004_v52 = vpop.permute.xlu1 %1003 }
 0x21c   :  { %1037 = vst.msk [vmem:[#allocation3 + $0x78] sm:$0xf] %vm1021_vm10, %v1004_v52 }
 0x21d   :  { %1233 = vst.msk [vmem:[#allocation3 + $0x78] sm:$0xf] %vm1217_vm15, %v1200_v31  ;;  %v1612_v60 = vpop.permute.xlu0 %1611 }
 0x21e   :  { %1330 = vst.msk [vmem:[#allocation3 + $0x78] sm:$0xf] %vm1314_vm0, %v1297_v22 }
 0x21f   :  { %1648 = vst.msk [vmem:[#allocation3 + $0x60] sm:$0xf] %vm1635_vm1, %v1612_v60  ;;  %v2222_v57 = vpop.permute.xlu1 %2221  ;;  %v2434_v63 = vld [vmem:[#allocation3 + $0x50] sm:$0xff] }
 0x220   :  { %1841 = vst.msk [vmem:[#allocation3 + $0x60] sm:$0xf] %vm1828_vm3, %v1805_v7 }
 0x221   :  { %2259 = vst.msk [vmem:[#allocation3 + $0x58] sm:$0xf] %vm2247_vm5, %v2222_v57  ;;  %v2224_v39 = vpop.permute.xlu0 %2223 }
 0x222   :  { %1939 = vst.msk [vmem:[#allocation3 + $0x60] sm:$0xf] %vm1926_vm4, %v1903_v33 }
 0x223   :  { %2260 = vst.msk [vmem:[#allocation3 + $0x60] sm:$0xf] %vm2247_vm5, %v2224_v39  ;;  %v1000_v3 = vpop.permute.xlu1 %999 }
 0x224   :  { %1035 = vst.msk [vmem:[#allocation3 + $0x68] sm:$0xf] %vm1021_vm10, %v1000_v3 }
 0x225   :  { %1231 = vst.msk [vmem:[#allocation3 + $0x68] sm:$0xf] %vm1217_vm15, %v1196_v19  ;;  %v1002_v53 = vpop.permute.xlu0 %1001 }
 0x226   :  { %1328 = vst.msk [vmem:[#allocation3 + $0x68] sm:$0xf] %vm1314_vm0, %v1293_v9 }
 0x227   :  { %1036 = vst.msk [vmem:[#allocation3 + $0x70] sm:$0xf] %vm1021_vm10, %v1002_v53  ;;  %v1618_v36 = vpop.permute.xlu1 %1617 }
 0x228   :  { %1232 = vst.msk [vmem:[#allocation3 + $0x70] sm:$0xf] %vm1217_vm15, %v1198_v29  ;;  %v2435_v26 = vld [vmem:[#allocation3 + $0x58] sm:$0xff] }
 0x229   :  { %1651 = vst.msk [vmem:[#allocation3 + $0x78] sm:$0xf] %vm1635_vm1, %v1618_v36  ;;  %v2928_v12 = vcombine.low %v2434_v63, %v2435_v26  ;;  %v2208_v43 = vpop.permute.xlu0 %2207 }
 0x22a   :  { %1329 = vst.msk [vmem:[#allocation3 + $0x70] sm:$0xf] %vm1314_vm0, %v4241_v62  ;;  %v4550_v62 = vld [vmem:[#allocation12_spill] sm:$0xff] }
 0x22b   :  { %1844 = vst.msk [vmem:[#allocation3 + $0x78] sm:$0xf] %vm1828_vm3, %v1811_v61  ;;  %2682 = vmatmul.mubr.bf16.gmra.mxu1 %v2928_v12  ;;  %v1614_v23 = vpop.permute.xlu1 %1613 }
 0x22c   :  { %1650 = vst.msk [vmem:[#allocation3 + $0x70] sm:$0xf] %vm1635_vm1, %v1616_v51  ;;  %1649 = vst.msk [vmem:[#allocation3 + $0x68] sm:$0xf] %vm1635_vm1, %v1614_v23  ;;  %2949 = vmatprep.mubr.msk.bf16.mxu1 %vm2584_vm7, %v3082_v21 }
 0x22d   :  { %1843 = vst.msk [vmem:[#allocation3 + $0x70] sm:$0xf] %vm1828_vm3, %v4253_v18  ;;  %1842 = vst.msk [vmem:[#allocation3 + $0x68] sm:$0xf] %vm1828_vm3, %v1807_v11  ;;  %v2228_v24 = vpop.permute.xlu0 %2227 }
 0x22e   :  { %2252 = vst.msk [vmem:[#allocation3 + $0x20] sm:$0xf] %vm2247_vm5, %v2208_v43 }
 0x22f   :  { %1941 = vst.msk [vmem:[#allocation3 + $0x70] sm:$0xf] %vm1926_vm4, %v4256_v27  ;;  %1940 = vst.msk [vmem:[#allocation3 + $0x68] sm:$0xf] %vm1926_vm4, %v4238_v48  ;;  %v1909_v40 = vpop.permute.xlu1 %1908  ;;  %v4549_v48 = vld [vmem:[#allocation11_spill] sm:$0xff] }
 0x230   :  { %2262 = vst.msk [vmem:[#allocation3 + $0x70] sm:$0xf] %vm2247_vm5, %v2228_v24  ;;  %2261 = vst.msk [vmem:[#allocation3 + $0x68] sm:$0xf] %vm2247_vm5, %v2226_v10 }
 0x231   :  { %1942 = vst.msk [vmem:[#allocation3 + $0x78] sm:$0xf] %vm1926_vm4, %v1909_v40 }
 0x232   :  { %2714 = vst.msk [vmem:[%s4484_s7 + $0x1c] sm:$0xf] %vm2706_vm2, %v4549_v48  ;;  %2715 = vst.msk [vmem:[%s4484_s7 + $0x20] sm:$0xf] %vm2706_vm2, %v4550_v62 }
 0x233   :  { %v2210_v47 = vpop.permute.xlu1 %2209 }
 0x234   :  { %2253 = vst.msk [vmem:[#allocation3 + $0x28] sm:$0xf] %vm2247_vm5, %v2210_v47 }
 0x237   :  { %v3084_v50 = vld [vmem:[#allocation3 + $0x60] ss:$8 sps:$4 sm:$0xff]   ;;  %v2230_v38 = vpop.permute.xlu1 %2229 }
 0x238   :  { %2263 = vst.msk [vmem:[#allocation3 + $0x78] sm:$0xf] %vm2247_vm5, %v2230_v38  ;;  %2690 = vmatmul.mubr.bf16.gmra.mxu1 %v3084_v50 }
 0x239   :  { %2950 = vmatprep.mubr.msk.bf16.mxu1 %vm2584_vm7, %v3088_v32 }
 0x23b   :  { %v3087_v44 = vld [vmem:[#allocation3 + $0x20] ss:$8 sps:$4 sm:$0xff]  }
 0x23c   :  { %2658 = vmatmul.mubr.bf16.gmra.mxu0 %v3087_v44 }
 0x23f   :  { %v3090_v35 = vld [vmem:[#allocation3 + $0x70] ss:$8 sps:$4 sm:$0xff]  }
 0x240   :  { %2698 = vmatmul.mubr.bf16.gmra.mxu1 %v3090_v35 }
 0x278   :  { %v2643_v1 = vpop.f32.mrf.mxu0 }
 0x279   :  { %v2983_v34 = vpack.c.bf16 %v2643_v1, %v2643_v1 }
 0x27a   :  { %v2645_v28 = vpop.f32.mrf.mxu0 }
 0x27b   :  { %2771 = vrot.lane.b32.xlu0 %v2983_v34, %s3099_s14 }
 0x27c   :  { %v2646_v42 = vpop.f32.mrf.mxu0 }
 0x27d   :  { %v2984_v18 = vpack.c.bf16 %v2646_v42, %v2646_v42 }
 0x27e   :  { %v2648_v31 = vpop.f32.mrf.mxu0 }
 0x27f   :  { %2773 = vrot.lane.b32.xlu1 %v2984_v18, %s3099_s14 }
 0x288   :  { %v2651_v27 = vpop.f32.mrf.mxu0 }
 0x289   :  { %v2985_v22 = vpack.c.bf16 %v2651_v27, %v2651_v27 }
 0x28a   :  { %v2653_v30 = vpop.f32.mrf.mxu0 }
 0x28b   :  { %2775 = vrot.lane.b32.xlu0 %v2985_v22, %s3099_s14 }
 0x28c   :  { %v2654_v2 = vpop.f32.mrf.mxu0 }
 0x28d   :  { %v2986_v58 = vpack.c.bf16 %v2654_v2, %v2654_v2 }
 0x28e   :  { %v2656_v19 = vpop.f32.mrf.mxu0 }
 0x28f   :  { %2777 = vrot.lane.b32.xlu1 %v2986_v58, %s3099_s14 }
 0x2a8   :  { %v2667_v7 = vpop.f32.mrf.mxu1 }
 0x2a9   :  { %v2989_v9 = vpack.c.bf16 %v2667_v7, %v2667_v7 }
 0x2aa   :  { %v2669_v33 = vpop.f32.mrf.mxu1 }
 0x2ab   :  { %2783 = vrot.lane.b32.xlu0 %v2989_v9, %s3099_s14 }
 0x2ac   :  { %v2670_v14 = vpop.f32.mrf.mxu1 }
 0x2ad   :  { %v2990_v49 = vpack.c.bf16 %v2670_v14, %v2670_v14 }
 0x2ae   :  { %v2672_v61 = vpop.f32.mrf.mxu1 }
 0x2af   :  { %2785 = vrot.lane.b32.xlu1 %v2990_v49, %s3099_s14 }
 0x2d7   :  { %v2675_v55 = vpop.f32.mrf.mxu1 }
 0x2d8   :  { %v2991_v24 = vpack.c.bf16 %v2675_v55, %v2675_v55 }
 0x2d9   :  { %v2677_v11 = vpop.f32.mrf.mxu1 }
 0x2db   :  { %v2678_v29 = vpop.f32.mrf.mxu1 }
 0x2dc   :  { %v2992_v25 = vpack.c.bf16 %v2678_v29, %v2678_v29 }
 0x2dd   :  { %v2680_v20 = vpop.f32.mrf.mxu1 }
 0x2eb   :  { %v2683_v13 = vpop.f32.mrf.mxu1 }
 0x2ec   :  { %v2993_v44 = vpack.c.bf16 %v2683_v13, %v2683_v13 }
 0x2ed   :  { %v2685_v10 = vpop.f32.mrf.mxu1  ;;  %v2772_v52 = vpop.permute.xlu0 %2771 }
 0x2ee   :  { %2820 = vst.msk [vmem:[%s4484_s7] sm:$0xf] %vm2819_vm6, %v2772_v52 }
 0x2ef   :  { %v2686_v51 = vpop.f32.mrf.mxu1 }
 0x2f0   :  { %v2994_v35 = vpack.c.bf16 %v2686_v51, %v2686_v51 }
 0x2f1   :  { %v2688_v60 = vpop.f32.mrf.mxu1  ;;  %v2774_v57 = vpop.permute.xlu1 %2773 }
 0x2f2   :  { %2821 = vst.msk [vmem:[%s4484_s7 + $0x4] sm:$0xf] %vm2819_vm6, %v2774_v57 }
 0x2f8   :  { %v2691_v39 = vpop.f32.mrf.mxu1 }
 0x2f9   :  { %v2995_v15 = vpack.c.bf16 %v2691_v39, %v2691_v39 }
 0x2fa   :  { %v2693_v3 = vpop.f32.mrf.mxu1 }
 0x2fc   :  { %v2694_v53 = vpop.f32.mrf.mxu1  ;;  %v2659_v36 = vpop.f32.mrf.mxu0 }
 0x2fd   :  { %v2987_v63 = vpack.c.bf16 %v2659_v36, %v2659_v36  ;;  %v2776_v59 = vpop.permute.xlu0 %2775  ;;  %v2996_v56 = vpack.c.bf16 %v2694_v53, %v2694_v53 }
 0x2fe   :  { %v2696_v26 = vpop.f32.mrf.mxu1  ;;  %2822 = vst.msk [vmem:[%s4484_s7 + $0x8] sm:$0xf] %vm2819_vm6, %v2776_v59  ;;  %v2661_v12 = vpop.f32.mrf.mxu0 }
 0x2ff   :  { %2779 = vrot.lane.b32.xlu0 %v2987_v63, %s3099_s14 }
 0x300   :  { %v2662_v43 = vpop.f32.mrf.mxu0  ;;  %v2699_v23 = vpop.f32.mrf.mxu1 }
 0x301   :  { %v2988_v40 = vpack.c.bf16 %v2662_v43, %v2662_v43  ;;  %v2778_v47 = vpop.permute.xlu1 %2777  ;;  %v2997_v8 = vpack.c.bf16 %v2699_v23, %v2699_v23 }
 0x302   :  { %2823 = vst.msk [vmem:[%s4484_s7 + $0xc] sm:$0xf] %vm2819_vm6, %v2778_v47  ;;  %v2664_v21 = vpop.f32.mrf.mxu0  ;;  %v2701_v50 = vpop.f32.mrf.mxu1 }
 0x303   :  { %2787 = vrot.lane.b32.xlu0 %v2991_v24, %s3099_s14  ;;  %2781 = vrot.lane.b32.xlu1 %v2988_v40, %s3099_s14 }
 0x304   :  { %v2702_v38 = vpop.f32.mrf.mxu1 }
 0x305   :  { %v2998_v0 = vpack.c.bf16 %v2702_v38, %v2702_v38 }
 0x306   :  { %v2704_v32 = vpop.f32.mrf.mxu1 }
 0x307   :  { %2791 = vrot.lane.b32.xlu0 %v2993_v44, %s3099_s14  ;;  %2789 = vrot.lane.b32.xlu1 %v2992_v25, %s3099_s14 }
 0x30b   :  { %2795 = vrot.lane.b32.xlu0 %v2995_v15, %s3099_s14  ;;  %2793 = vrot.lane.b32.xlu1 %v2994_v35, %s3099_s14 }
 0x30f   :  { %2797 = vrot.lane.b32.xlu1 %v2996_v56, %s3099_s14  ;;  %2799 = vrot.lane.b32.xlu0 %v2997_v8, %s3099_s14 }
 0x313   :  { %2801 = vrot.lane.b32.xlu1 %v2998_v0, %s3099_s14 }
 0x31d   :  { %v2784_v6 = vpop.permute.xlu0 %2783 }
 0x31e   :  { %2826 = vst.msk [vmem:[%s4484_s7 + $0x18] sm:$0xf] %vm2819_vm6, %v2784_v6 }
 0x321   :  { %v2786_v41 = vpop.permute.xlu1 %2785 }
 0x322   :  { %2827 = vst.msk [vmem:[%s4484_s7 + $0x1c] sm:$0xf] %vm2819_vm6, %v2786_v41 }
 0x371   :  { %v2780_v37 = vpop.permute.xlu0 %2779 }
 0x372   :  { %2824 = vst.msk [vmem:[%s4484_s7 + $0x10] sm:$0xf] %vm2819_vm6, %v2780_v37 }
 0x375   :  { %v2782_v48 = vpop.permute.xlu1 %2781  ;;  %v2788_v62 = vpop.permute.xlu0 %2787 }
 0x376   :  { %2825 = vst.msk [vmem:[%s4484_s7 + $0x14] sm:$0xf] %vm2819_vm6, %v2782_v48  ;;  %2828 = vst.msk [vmem:[%s4484_s7 + $0x20] sm:$0xf] %vm2819_vm6, %v2788_v62 }
 0x379   :  { %v2790_v45 = vpop.permute.xlu1 %2789  ;;  %v2792_v17 = vpop.permute.xlu0 %2791 }
 0x37a   :  { %2829 = vst.msk [vmem:[%s4484_s7 + $0x24] sm:$0xf] %vm2819_vm6, %v2790_v45  ;;  %2830 = vst.msk [vmem:[%s4484_s7 + $0x28] sm:$0xf] %vm2819_vm6, %v2792_v17 }
 0x37d   :  { %v2794_v5 = vpop.permute.xlu1 %2793  ;;  %v2796_v54 = vpop.permute.xlu0 %2795 }
 0x37e   :  { %2831 = vst.msk [vmem:[%s4484_s7 + $0x2c] sm:$0xf] %vm2819_vm6, %v2794_v5  ;;  %2832 = vst.msk [vmem:[%s4484_s7 + $0x30] sm:$0xf] %vm2819_vm6, %v2796_v54 }
 0x381   :  { %v2798_v16 = vpop.permute.xlu1 %2797  ;;  %v2800_v46 = vpop.permute.xlu0 %2799 }
 0x382   :  { %2833 = vst.msk [vmem:[%s4484_s7 + $0x34] sm:$0xf] %vm2819_vm6, %v2798_v16  ;;  %2834 = vst.msk [vmem:[%s4484_s7 + $0x38] sm:$0xf] %vm2819_vm6, %v2800_v46 }
 0x385   :  { %v2802_v4 = vpop.permute.xlu1 %2801 }
 0x386   :  { %2835 = vst.msk [vmem:[%s4484_s7 + $0x3c] sm:$0xf] %vm2819_vm6, %v2802_v4 }

// kernel: densenet_forward.11
= control target key start
LH: loop header
LB: loop body
LE: loop exit
PB: predicated region body
PF: predicated region fallthrough
CT: control target
= control target key end

     0   :  { %vm71_vm0 = vcmask 130048   ;;  %vm155_vm1 = vcmask 124928   ;;  %v2076_v25 = vmov 0   ;;  %vm681_vm2 = vcmask 1040384   ;;  %s2080_s14 = smov 112   ;;  %s2084_s19 = smov 64   ;;  %s2520_s3 = inlined_call_operand.vmem [shape: bf16[16,16], index: 3, kind: input, shape index: {}]   ;;  %s2521_s0 = inlined_call_operand.vmem [shape: bf16[32,16], index: 0, kind: input, shape index: {}]   ;;  %s2522_s1 = inlined_call_operand.vmem [shape: f32[1,16], index: 1, kind: input, shape index: {}]   ;;  %s2523_s2 = inlined_call_operand.vmem [shape: f32[1,16], index: 2, kind: input, shape index: {}]   ;;  %s2524_s4 = inlined_call_operand.vmem [shape: f32[1,16], index: 4, kind: input, shape index: {}]   ;;  %s2525_s5 = inlined_call_operand.vmem [shape: f32[1,16], index: 5, kind: input, shape index: {}]   ;;  %s2526_s6 = inlined_call_operand.vmem [shape: bf16[144,8], index: 6, kind: input, shape index: {}]   ;;  %s2527_s7 = inlined_call_operand.vmem [shape: bf16[32,24], index: 7, kind: output, shape index: {}]  }
   0x1   :  { %v2058_v0 = vld [vmem:[%s2520_s3] sm:$0xff]   ;;  %v2146_v6 = vld [vmem:[%s2521_s0 + $0x8] sm:$0xf]  ;;  %v2151_v7 = vld [vmem:[%s2521_s0 + $0xc] sm:$0xf]  ;;  %2031 = vmatprep.subr.bf16.mxu1 %v2076_v25  ;;  %vm682_vm3 = vcmask 1042434  }
   0x2   :  { %v2131_v1 = vld [vmem:[%s2521_s0] sm:$0xf]  ;;  %v2136_v2 = vld [vmem:[%s2521_s0 + $0x4] sm:$0xf]  ;;  %2025 = vmatprep.subr.bf16.mxu0 %v2058_v0  ;;  %v33_v9 = vunpack.c.l.bf16 %v2146_v6  ;;  %v34_v10 = vunpack.c.l.bf16 %v2151_v7  ;;  %163 = vst.msk [vmem:[#allocation2 + $0x1c] sm:$0x7] %vm155_vm1, %v2076_v25  ;;  %vm683_vm4 = vmor %vm681_vm2, %vm682_vm3 }
   0x3   :  { %v1906_v3 = vld [vmem:[%s2522_s1] ss:$0 sm:$0xff]  ;;  %v31_v4 = vunpack.c.l.bf16 %v2131_v1  ;;  %v32_v5 = vunpack.c.l.bf16 %v2136_v2  ;;  %2026 = vmatpush3.bf16.msra.mxu0 %v2058_v0  ;;  %164 = vst.msk [vmem:[#allocation2 + $0x20] sm:$0x7] %vm155_vm1, %v2076_v25  ;;  %165 = vst.msk [vmem:[#allocation2 + $0x24] sm:$0x7] %vm155_vm1, %v2076_v25 }
   0x4   :  { %v1907_v8 = vld [vmem:[%s2523_s2] ss:$0 sm:$0xff]  ;;  %v44_v13 = vmul.f32 %v1906_v3, %v33_v9  ;;  %v45_v14 = vmul.f32 %v1906_v3, %v34_v10  ;;  %166 = vst.msk [vmem:[#allocation2 + $0x28] sm:$0x7] %vm155_vm1, %v2076_v25  ;;  %156 = vst.msk [vmem:[#allocation2] sm:$0x7] %vm155_vm1, %v2076_v25  ;;  %1819 = vmatprep.subr.bf16.mxu0 %v2076_v25 }
   0x5   :  { %v42_v11 = vmul.f32 %v1906_v3, %v31_v4  ;;  %v43_v12 = vmul.f32 %v1906_v3, %v32_v5  ;;  %157 = vst.msk [vmem:[#allocation2 + $0x4] sm:$0x7] %vm155_vm1, %v2076_v25  ;;  %158 = vst.msk [vmem:[#allocation2 + $0x8] sm:$0x7] %vm155_vm1, %v2076_v25  ;;  %vm684_vm5 = vcmask 1044484   ;;  %vm686_vm7 = vcmask 1046534  }
   0x6   :  { %v55_v17 = vadd.f32 %v1907_v8, %v44_v13  ;;  %v56_v18 = vadd.f32 %v1907_v8, %v45_v14  ;;  %159 = vst.msk [vmem:[#allocation2 + $0xc] sm:$0x7] %vm155_vm1, %v2076_v25  ;;  %160 = vst.msk [vmem:[#allocation2 + $0x10] sm:$0x7] %vm155_vm1, %v2076_v25  ;;  %s2077_s0 = smov 32   ;;  %s2078_s1 = smov 96  }
   0x7   :  { %v53_v15 = vadd.f32 %v1907_v8, %v42_v11  ;;  %v54_v16 = vadd.f32 %v1907_v8, %v43_v12  ;;  %161 = vst.msk [vmem:[#allocation2 + $0x14] sm:$0x7] %vm155_vm1, %v2076_v25  ;;  %162 = vst.msk [vmem:[#allocation2 + $0x18] sm:$0x7] %vm155_vm1, %v2076_v25  ;;  %vm449_vm9 = vsmask.f32 1280 }
   0x8   :  { %v59_v21 = vmax.f32 %v55_v17, 0.0  ;;  %v60_v22 = vmax.f32 %v56_v18, 0.0  ;;  %167 = vst.msk [vmem:[#allocation2 + $0x2c] sm:$0x7] %vm155_vm1, %v2076_v25  ;;  %vm685_vm6 = vmor %vm683_vm4, %vm684_vm5  ;;  %vm450_vm10 = vsmask.f32 3336  ;;  %v174_v18 = vlaneseq }
   0x9   :  { %v57_v19 = vmax.f32 %v53_v15, 0.0  ;;  %v58_v20 = vmax.f32 %v54_v16, 0.0  ;;  %vm2186_vm8 = vmor %vm685_vm6, %vm686_vm7  ;;  %vm452_vm11 = vsmask.f32 5392  ;;  %vm454_vm14 = vsmask.f32 7448 }
   0xa   :  { %v62_v24 = vpack.c.bf16 %v60_v22, %v59_v21  ;;  %vm451_vm12 = vmor %vm449_vm9, %vm450_vm10  ;;  %s2079_s2 = smov 16   ;;  %v1911_v13 = vld [vmem:[%s2524_s4] ss:$0 sm:$0xff]  ;;  %v2081_v16 = vmov 1983009808   ;;  %vm360_vm2 = vcmask 123904  }
   0xb   :  { %v61_v23 = vpack.c.bf16 %v58_v20, %v57_v19  ;;  %v1923_v26 = vld.sshfl [vmem:[#allocation2] sm:$0x12 pattern:$0x76325410]  ;;  %vm453_vm13 = vmor %vm451_vm12, %vm452_vm11  ;;  %v172_v17 = vunpack.c.l.s4 %v2081_v16  ;;  %v1912_v21 = vld [vmem:[%s2525_s5] ss:$0 sm:$0xff] }
   0xc   :  { %v624_v27 = vcombine.high %v1923_v26, %v1923_v26  ;;  %v1931_v28 = vrot.slane %v1923_v26, 9  ;;  %v1915_v34 = vld.sshfl [vmem:[#allocation2] sm:$0x13 pattern:$0x76325410]  ;;  %vm2197_vm15 = vmor %vm453_vm13, %vm454_vm14  ;;  %vm592_vm3 = vcmask 255104  }
   0xd   :  { %2027 = vmatprep.mubr.msk.bf16.mxu0 %vm71_vm0, %v61_v23  ;;  %v457_v35 = vshrl.u32 %v1915_v34, 16  ;;  %v460_v36 = vshll.u32 %v1915_v34, 16  ;;  %v392_v39 = vcombine.high %v1915_v34, %v1915_v34  ;;  %v352_v19 = vld [vmem:[#allocation2] sm:$0x3]  ;;  %vm326_vm4 = vsmask.f32 2306 }
   0xe   :  { %2028 = vmatmul.mubr.msk.bf16.vlgmr.msra.gmra.mxu0 %vm71_vm0, %v62_v24  ;;  %v690_v29 = vrot.slane %v624_v27, 7  ;;  %v1927_v31 = vld.sshfl [vmem:[#allocation2 + $0x18] sm:$0x12 pattern:$0x76325410]  ;;  %vm2226_vm5 = vmand %vm155_vm1, %vm326_vm4  ;;  %vm744_vm1 = vcmask 386304  }
   0xf   :  { %v656_v33 = vcombine.high %v1927_v31, %v1927_v31  ;;  %v1935_v37 = vrot.slane %v1927_v31, 9  ;;  %v459_v40 = vrot.slane %v457_v35, 6  ;;  %v462_v41 = vrot.slane %v460_v36, 7  ;;  %v356_v20 = vld [vmem:[#allocation2 + $0x18] sm:$0x3]  ;;  %s2082_s4 = smov 48  }
  0x10   :  { %v691_v32 = vsel %vm2186_vm8, %v1931_v28, %v690_v29  ;;  %v1974_v44 = vld.sshfl [vmem:[#allocation2 + $0x14] sm:$0x3 pattern:$0x76325410]  ;;  %v466_v46 = vshll.u32 %v392_v39, 16  ;;  %v173_v28 = vunpack.c.0.s8 %v172_v17  ;;  %v175_v29 = vshrl.u32 %v174_v18, 7 }
  0x11   :  { %720 = vrot.lane.b32.xlu0 %v691_v32, %s2077_s0  ;;  %v706_v38 = vrot.slane %v656_v33, 7  ;;  %v463_v43 = vor.u32 %v462_v41, %v459_v40  ;;  %1307 = vrot.lane.b32.xlu1 %v1974_v44, %s2078_s1  ;;  %v1919_v48 = vld.sshfl [vmem:[#allocation2 + $0x18] sm:$0x13 pattern:$0x76325410]  ;;  %s2083_s5 = smov 80  }
  0x12   :  { %v468_v49 = vrot.slane %v466_v46, 7  ;;  %v424_v50 = vcombine.high %v1919_v48, %v1919_v48  ;;  %v513_v51 = vshrl.u32 %v1919_v48, 16  ;;  %v516_v52 = vshll.u32 %v1919_v48, 16  ;;  %361 = vst.msk [vmem:[#allocation3] sm:$0x3] %vm360_vm2, %v352_v19 }
  0x13   :  { %v707_v42 = vsel %vm2186_vm8, %v1935_v37, %v706_v38  ;;  %v464_v45 = vrot.slane %v463_v43, 2  ;;  %v1978_v53 = vld.sshfl [vmem:[#allocation2 + $0x2c] sm:$0x3 pattern:$0x76325410]  ;;  %v176_v38 = vsub.s32 %v173_v28, %v175_v29  ;;  %vm849_vm6 = vcmask 517504  }
  0x14   :  { %v515_v55 = vrot.slane %v513_v51, 6  ;;  %v518_v56 = vrot.slane %v516_v52, 7  ;;  %v522_v57 = vshll.u32 %v424_v50, 16  ;;  %365 = vst.msk [vmem:[#allocation3 + $0x10] sm:$0x3] %vm360_vm2, %v356_v20  ;;  %vm1074_vm7 = vcmask 648704  }
  0x15   :  { %728 = vrot.lane.b32.xlu0 %v707_v42, %s2077_s0  ;;  %v469_v54 = vsel %vm2197_vm15, %v464_v45, %v468_v49  ;;  %1315 = vrot.lane.b32.xlu1 %v1978_v53, %s2078_s1  ;;  %v1982_v58 = vld.sshfl [vmem:[#allocation2 + $0x14] sm:$0x13 pattern:$0x76325410]  ;;  %v346_v18 = vld [vmem:[#allocation2 + $0x24] sm:$0x7] }
  0x16   :  { %v519_v59 = vor.u32 %v518_v56, %v515_v55  ;;  %v524_v60 = vrot.slane %v522_v57, 7  ;;  %v1381_v61 = vcombine.high %v1982_v58, %v1982_v58  ;;  %v1457_v62 = vshrl.u32 %v1982_v58, 16 }
  0x17   :  { %v1460_v63 = vshll.u32 %v1982_v58, 16  ;;  %vm1325_vm9 = vcmask 911104   ;;  %vm1550_vm10 = vcmask 1042304   ;;  %vm1868_vm11 = vcmask 125952  }
  0x18   :  { %v520_v0 = vrot.slane %v519_v59, 2  ;;  %v1459_v3 = vrot.slane %v1457_v62, 6  ;;  %v1466_v4 = vshll.u32 %v1381_v61, 16  ;;  %1869 = vst.msk [vmem:[%s2527_s7] sm:$0xf] %vm1868_vm11, %v2131_v1 }
  0x19   :  { %568 = vrot.lane.b32.xlu0 %v469_v54, %s2079_s2  ;;  %v1462_v5 = vrot.slane %v1460_v63, 7  ;;  %1870 = vst.msk [vmem:[%s2527_s7 + $0x4] sm:$0xf] %vm1868_vm11, %v2136_v2  ;;  %1871 = vst.msk [vmem:[%s2527_s7 + $0x8] sm:$0xf] %vm1868_vm11, %v2146_v6 }
  0x1a   :  { %v525_v8 = vsel %vm2197_vm15, %v520_v0, %v524_v60  ;;  %v1468_v10 = vrot.slane %v1466_v4, 7  ;;  %1872 = vst.msk [vmem:[%s2527_s7 + $0xc] sm:$0xf] %vm1868_vm11, %v2151_v7 }
  0x1b   :  { %v1463_v9 = vor.u32 %v1462_v5, %v1459_v3 }
  0x1d   :  { %576 = vrot.lane.b32.xlu0 %v525_v8, %s2079_s2  ;;  %v1464_v11 = vrot.slane %v1463_v9, 2 }
  0x1f   :  { %v1469_v12 = vsel %vm2197_vm15, %v1464_v11, %v1468_v10 }
  0x20   :  { %1532 = vrot.lane.b32.xlu1 %v1469_v12, %s2080_s14  ;;  %v340_v12 = vld [vmem:[#allocation2 + $0x1c] sm:$0x7] }
  0x83   :  { %v2219_v32 = vpop.permute.xlu0 %720 }
  0x87   :  { %v2221_v44 = vpop.permute.xlu0 %728 }
  0x8b   :  { %v569_v60 = vpop.permute.xlu0 %568 }
  0x8c   :  { %593 = vst.msk [vmem:[#allocation3] sm:$0x3] %vm592_vm3, %v569_v60 }
  0x8d   :  { %745 = vst.msk [vmem:[#allocation3] sm:$0x3] %vm744_vm1, %v2219_v32 }
  0xce   :  { %v2029_v14 = vpop.f32.mrf.mxu0 }
  0xcf   :  { %v136_v15 = vmul.f32 %v2029_v14, %v1911_v13 }
  0xd0   :  { %v112_v22 = vpop.f32.mrf.mxu0 }
  0xd1   :  { %v134_v23 = vmul.f32 %v1911_v13, %v112_v22  ;;  %v147_v26 = vadd.f32 %v1912_v21, %v136_v15  ;;  %v349_v22 = vld [vmem:[#allocation2 + $0x28] sm:$0x7] }
  0xd2   :  { %v2030_v24 = vpop.f32.mrf.mxu0 }
  0xd3   :  { %v137_v27 = vmul.f32 %v2030_v24, %v1911_v13  ;;  %v145_v33 = vadd.f32 %v1912_v21, %v134_v23  ;;  %v151_v36 = vmax.f32 %v147_v26, 0.0 }
  0xd4   :  { %v115_v31 = vpop.f32.mrf.mxu0 }
  0xd5   :  { %v148_v34 = vadd.f32 %v1912_v21, %v137_v27  ;;  %v135_v35 = vmul.f32 %v1911_v13, %v115_v31  ;;  %v149_v40 = vmax.f32 %v145_v33, 0.0 }
  0xd7   :  { %v152_v37 = vmax.f32 %v148_v34, 0.0  ;;  %v146_v39 = vadd.f32 %v1912_v21, %v135_v35  ;;  %v343_v21 = vld [vmem:[#allocation2 + $0x20] sm:$0x7] }
  0xd9   :  { %v154_v41 = vpack.c.bf16 %v152_v37, %v151_v36  ;;  %v1914_v42 = vpack.c.bf16 %v152_v37, %v152_v37  ;;  %v150_v43 = vmax.f32 %v146_v39, 0.0  ;;  %v577_v36 = vpop.permute.xlu0 %576 }
  0xda   :  { %597 = vst.msk [vmem:[#allocation3 + $0x10] sm:$0x3] %vm592_vm3, %v577_v36 }
  0xdb   :  { %v194_v45 = vrot.slane %v154_v41, %v176_v38  ;;  %v201_v46 = vrot.slane %v1914_v42, %v176_v38  ;;  %v153_v48 = vpack.c.bf16 %v150_v43, %v149_v40  ;;  %v1913_v49 = vpack.c.bf16 %v150_v43, %v150_v43  ;;  %v328_v41 = vld [vmem:[#allocation2 + $0x4] sm:$0x7]  ;;  %749 = vst.msk [vmem:[#allocation3 + $0x10] sm:$0x3] %vm744_vm1, %v2221_v44 }
  0xdd   :  { %v202_v50 = vcombine.high %v194_v45, %v194_v45  ;;  %v203_v51 = vcombine.high %v201_v46, %v201_v46  ;;  %v238_v52 = vrot.slane %v194_v45, %v176_v38  ;;  %v252_v53 = vrot.slane %v201_v46, %v176_v38 }
  0xde   :  { %v177_v54 = vrot.slane %v153_v48, %v176_v38  ;;  %v184_v55 = vrot.slane %v1913_v49, %v176_v38  ;;  %v331_v48 = vld [vmem:[#allocation2 + $0x8] sm:$0x7] }
  0xdf   :  { %v245_v56 = vrot.slane %v202_v50, %v176_v38  ;;  %v259_v57 = vrot.slane %v203_v51, %v176_v38  ;;  %v289_v58 = vshrl.u32 %v238_v52, 16  ;;  %v292_v59 = vshll.u32 %v238_v52, 16  ;;  %v334_v50 = vld [vmem:[#allocation2 + $0xc] sm:$0x7] }
  0xe0   :  { %v303_v61 = vshrl.u32 %v252_v53, 16  ;;  %v306_v62 = vshll.u32 %v252_v53, 16  ;;  %v185_v63 = vcombine.high %v177_v54, %v177_v54  ;;  %v186_v0 = vcombine.high %v184_v55, %v184_v55 }
  0xe1   :  { %v291_v3 = vrot.slane %v289_v58, 7  ;;  %v296_v4 = vshrl.u32 %v245_v56, 16  ;;  %v299_v5 = vshll.u32 %v245_v56, 16  ;;  %v310_v8 = vshrl.u32 %v259_v57, 16  ;;  %v337_v56 = vld [vmem:[#allocation2 + $0x10] sm:$0x7] }
  0xe2   :  { %v305_v9 = vrot.slane %v303_v61, 7  ;;  %v313_v10 = vshll.u32 %v259_v57, 16  ;;  %v210_v13 = vrot.slane %v177_v54, %v176_v38  ;;  %v217_v14 = vrot.slane %v185_v63, %v176_v38 }
  0xe3   :  { %v294_v15 = vor.u32 %v292_v59, %v291_v3  ;;  %v298_v16 = vrot.slane %v296_v4, 7  ;;  %v312_v17 = vrot.slane %v310_v8, 7  ;;  %v224_v19 = vrot.slane %v184_v55, %v176_v38 }
  0xe4   :  { %v308_v20 = vor.u32 %v306_v62, %v305_v9  ;;  %v231_v23 = vrot.slane %v186_v0, %v176_v38  ;;  %v261_v24 = vshrl.u32 %v210_v13, 16  ;;  %v268_v29 = vshrl.u32 %v217_v14, 16 }
  0xe5   :  { %v301_v26 = vor.u32 %v299_v5, %v298_v16  ;;  %v315_v27 = vor.u32 %v313_v10, %v312_v17  ;;  %v341_v28 = vsel %vm2226_vm5, %v294_v15, %v340_v12  ;;  %v264_v34 = vshll.u32 %v210_v13, 16 }
  0xe6   :  { %342 = vst [vmem:[#allocation2 + $0x1c] sm:$0x7] %v341_v28  ;;  %v347_v31 = vsel %vm2226_vm5, %v308_v20, %v346_v18  ;;  %v263_v33 = vrot.slane %v261_v24, 7  ;;  %v275_v35 = vshrl.u32 %v224_v19, 16  ;;  %v270_v39 = vrot.slane %v268_v29, 7 }
  0xe7   :  { %v344_v37 = vsel %vm2226_vm5, %v301_v26, %v343_v21  ;;  %348 = vst [vmem:[#allocation2 + $0x24] sm:$0x7] %v347_v31  ;;  %v350_v38 = vsel %vm2226_vm5, %v315_v27, %v349_v22  ;;  %v271_v40 = vshll.u32 %v217_v14, 16  ;;  %v278_v45 = vshll.u32 %v224_v19, 16 }
  0xe8   :  { %345 = vst [vmem:[#allocation2 + $0x20] sm:$0x7] %v344_v37  ;;  %351 = vst [vmem:[#allocation2 + $0x28] sm:$0x7] %v350_v38  ;;  %v266_v42 = vor.u32 %v264_v34, %v263_v33  ;;  %v277_v43 = vrot.slane %v275_v35, 7  ;;  %v282_v46 = vshrl.u32 %v231_v23, 16 }
  0xe9   :  { %v273_v49 = vor.u32 %v271_v40, %v270_v39  ;;  %v285_v53 = vshll.u32 %v231_v23, 16 }
  0xea   :  { %v280_v51 = vor.u32 %v278_v45, %v277_v43  ;;  %v284_v52 = vrot.slane %v282_v46, 7  ;;  %v329_v54 = vsel %vm2226_vm5, %v266_v42, %v328_v41 }
  0xeb   :  { %330 = vst [vmem:[#allocation2 + $0x4] sm:$0x7] %v329_v54  ;;  %v332_v55 = vsel %vm2226_vm5, %v273_v49, %v331_v48 }
  0xec   :  { %v287_v57 = vor.u32 %v285_v53, %v284_v52  ;;  %333 = vst [vmem:[#allocation2 + $0x8] sm:$0x7] %v332_v55  ;;  %v335_v58 = vsel %vm2226_vm5, %v280_v51, %v334_v50 }
  0xed   :  { %336 = vst [vmem:[#allocation2 + $0xc] sm:$0x7] %v335_v58  ;;  %v1943_v59 = vld.sshfl [vmem:[#allocation2 + $0x1c] sm:$0x3 pattern:$0x76325410] }
  0xee   :  { %v357_v60 = vld [vmem:[#allocation2 + $0x1c] sm:$0x3]  ;;  %v338_v61 = vsel %vm2226_vm5, %v287_v57, %v337_v56  ;;  %v1976_v44 = vld.sshfl [vmem:[#allocation2 + $0x24] sm:$0x3 pattern:$0x76325410]  ;;  %833 = vrot.lane.b32.xlu0 %v1943_v59, %s2082_s4 }
  0xef   :  { %366 = vst.msk [vmem:[#allocation3 + $0x14] sm:$0x3] %vm360_vm2, %v357_v60  ;;  %v359_v32 = vld [vmem:[#allocation2 + $0x24] sm:$0x3]  ;;  %339 = vst [vmem:[#allocation2 + $0x10] sm:$0x7] %v338_v61  ;;  %1311 = vrot.lane.b32.xlu1 %v1976_v44, %s2078_s1 }
  0xf0   :  { %368 = vst.msk [vmem:[#allocation3 + $0x1c] sm:$0x3] %vm360_vm2, %v359_v32  ;;  %v358_v62 = vld [vmem:[#allocation2 + $0x20] sm:$0x3] }
  0xf1   :  { %367 = vst.msk [vmem:[#allocation3 + $0x18] sm:$0x3] %vm360_vm2, %v358_v62  ;;  %v1944_v63 = vld.sshfl [vmem:[#allocation2 + $0x20] sm:$0x3 pattern:$0x76325410] }
  0xf2   :  { %837 = vrot.lane.b32.xlu0 %v1976_v44, %s2082_s4  ;;  %v353_v0 = vld [vmem:[#allocation2 + $0x4] sm:$0x3]  ;;  %v1946_v5 = vld.sshfl [vmem:[#allocation2 + $0x28] sm:$0x3 pattern:$0x76325410] }
  0xf3   :  { %835 = vrot.lane.b32.xlu1 %v1944_v63, %s2082_s4  ;;  %362 = vst.msk [vmem:[#allocation3 + $0x4] sm:$0x3] %vm360_vm2, %v353_v0  ;;  %v1939_v3 = vld.sshfl [vmem:[#allocation2 + $0x4] sm:$0x3 pattern:$0x76325410] }
  0xf4   :  { %v355_v4 = vld [vmem:[#allocation2 + $0xc] sm:$0x3]  ;;  %v354_v8 = vld [vmem:[#allocation2 + $0x8] sm:$0x3] }
  0xf5   :  { %364 = vst.msk [vmem:[#allocation3 + $0xc] sm:$0x3] %vm360_vm2, %v355_v4  ;;  %363 = vst.msk [vmem:[#allocation3 + $0x8] sm:$0x3] %vm360_vm2, %v354_v8 }
  0xf6   :  { %825 = vrot.lane.b32.xlu0 %v1939_v3, %s2082_s4  ;;  %v1972_v9 = vld.sshfl [vmem:[#allocation2 + $0xc] sm:$0x3 pattern:$0x76325410] }
  0xf7   :  { %839 = vrot.lane.b32.xlu1 %v1946_v5, %s2082_s4  ;;  %v1928_v10 = vld.sshfl [vmem:[#allocation2 + $0x1c] sm:$0x12 pattern:$0x76325410] }
  0xf8   :  { %v664_v11 = vcombine.high %v1928_v10, %v1928_v10  ;;  %v1925_v12 = vld.sshfl [vmem:[#allocation2 + $0x8] sm:$0x12 pattern:$0x76325410]  ;;  %v1936_v24 = vrot.slane %v1928_v10, 9 }
  0xf9   :  { %v1940_v13 = vld.sshfl [vmem:[#allocation2 + $0x8] sm:$0x3 pattern:$0x76325410]  ;;  %v640_v15 = vcombine.high %v1925_v12, %v1925_v12  ;;  %v1933_v20 = vrot.slane %v1925_v12, 9 }
  0xfa   :  { %829 = vrot.lane.b32.xlu0 %v1972_v9, %s2082_s4  ;;  %v1930_v14 = vld.sshfl [vmem:[#allocation2 + $0x24] sm:$0x12 pattern:$0x76325410]  ;;  %v710_v16 = vrot.slane %v664_v11, 7 }
  0xfb   :  { %1303 = vrot.lane.b32.xlu1 %v1972_v9, %s2078_s1  ;;  %v1958_v17 = vld.sshfl [vmem:[#allocation2 + $0x10] sm:$0x12 pattern:$0x76325410]  ;;  %v680_v19 = vcombine.high %v1930_v14, %v1930_v14  ;;  %v698_v21 = vrot.slane %v640_v15, 7  ;;  %v1938_v36 = vrot.slane %v1930_v14, 9 }
  0xfc   :  { %v1942_v18 = vld.sshfl [vmem:[#allocation2 + $0x10] sm:$0x3 pattern:$0x76325410]  ;;  %v1130_v22 = vcombine.high %v1958_v17, %v1958_v17  ;;  %v1966_v27 = vrot.slane %v1958_v17, 9  ;;  %v711_v29 = vsel %vm2186_vm8, %v1936_v24, %v710_v16 }
  0xfd   :  { %v1924_v23 = vld.sshfl [vmem:[#allocation2 + $0x4] sm:$0x12 pattern:$0x76325410]  ;;  %v2271_v26 = vsel %vm2186_vm8, %v1933_v20, %v698_v21  ;;  %v718_v31 = vrot.slane %v680_v19, 7 }
  0xfe   :  { %1309 = vrot.lane.b32.xlu0 %v1944_v63, %s2078_s1  ;;  %v1177_v28 = vrot.slane %v1130_v22, 7  ;;  %1679 = vst.msk [vmem:[#allocation3 + $0x2] sm:$0x3] %vm360_vm2, %v2271_v26  ;;  %v632_v33 = vcombine.high %v1924_v23, %v1924_v23  ;;  %v1932_v42 = vrot.slane %v1924_v23, 9 }
  0xff   :  { %827 = vrot.lane.b32.xlu1 %v1940_v13, %s2082_s4  ;;  %v1926_v34 = vld.sshfl [vmem:[#allocation2 + $0xc] sm:$0x12 pattern:$0x76325410]  ;;  %v719_v39 = vsel %vm2186_vm8, %v1938_v36, %v718_v31 }
 0x100   :  { %v2280_v35 = vsel %vm2186_vm8, %v1966_v27, %v1177_v28  ;;  %v648_v37 = vcombine.high %v1926_v34, %v1926_v34  ;;  %v1929_v38 = vld.sshfl [vmem:[#allocation2 + $0x20] sm:$0x12 pattern:$0x76325410]  ;;  %v694_v40 = vrot.slane %v632_v33, 7  ;;  %v1934_v52 = vrot.slane %v1926_v34, 9 }
 0x101   :  { %1681 = vst.msk [vmem:[#allocation3 + $0xa] sm:$0x3] %vm360_vm2, %v2280_v35  ;;  %v1920_v41 = vld.sshfl [vmem:[#allocation2 + $0x1c] sm:$0x13 pattern:$0x76325410]  ;;  %v672_v43 = vcombine.high %v1929_v38, %v1929_v38 }
 0x102   :  { %1313 = vrot.lane.b32.xlu0 %v1946_v5, %s2078_s1  ;;  %v702_v45 = vrot.slane %v648_v37, 7  ;;  %v1962_v46 = vld.sshfl [vmem:[#allocation2 + $0x28] sm:$0x12 pattern:$0x76325410]  ;;  %v695_v48 = vsel %vm2186_vm8, %v1932_v42, %v694_v40  ;;  %v527_v49 = vshrl.u32 %v1920_v41, 16  ;;  %v432_v44 = vcombine.high %v1920_v41, %v1920_v41 }
 0x103   :  { %831 = vrot.lane.b32.xlu1 %v1942_v18, %s2082_s4  ;;  %v530_v50 = vshll.u32 %v1920_v41, 16  ;;  %v1922_v51 = vld.sshfl [vmem:[#allocation2 + $0x24] sm:$0x13 pattern:$0x76325410]  ;;  %v714_v53 = vrot.slane %v672_v43, 7  ;;  %v1162_v54 = vcombine.high %v1962_v46, %v1962_v46 }
 0x104   :  { %v1991_v55 = vld.sshfl [vmem:[#allocation2 + $0x20] sm:$0x12 pattern:$0x76325410]  ;;  %v703_v56 = vsel %vm2186_vm8, %v1934_v52, %v702_v45  ;;  %v1937_v57 = vrot.slane %v1929_v38, 9  ;;  %v555_v58 = vshrl.u32 %v1922_v51, 16  ;;  %v448_v20 = vcombine.high %v1922_v51, %v1922_v51 }
 0x105   :  { %v529_v59 = vrot.slane %v527_v49, 6  ;;  %v532_v60 = vrot.slane %v530_v50, 7  ;;  %v558_v61 = vshll.u32 %v1922_v51, 16  ;;  %v1614_v62 = vcombine.high %v1991_v55, %v1991_v55  ;;  %1680 = vst.msk [vmem:[#allocation3 + $0x6] sm:$0x3] %vm360_vm2, %v703_v56 }
 0x106   :  { %1301 = vrot.lane.b32.xlu0 %v1940_v13, %s2078_s1  ;;  %v1992_v32 = vld.sshfl [vmem:[#allocation2 + $0x24] sm:$0x12 pattern:$0x76325410]  ;;  %v715_v63 = vsel %vm2186_vm8, %v1937_v57, %v714_v53  ;;  %v1193_v0 = vrot.slane %v1162_v54, 7  ;;  %v557_v5 = vrot.slane %v555_v58, 6 }
 0x107   :  { %730 = vrot.lane.b32.xlu1 %v711_v29, %s2077_s0  ;;  %v1993_v3 = vld.sshfl [vmem:[#allocation2 + $0x28] sm:$0x12 pattern:$0x76325410]  ;;  %v1622_v4 = vcombine.high %v1992_v32, %v1992_v32  ;;  %v1999_v9 = vrot.slane %v1991_v55, 9  ;;  %v1657_v10 = vrot.slane %v1614_v62, 7  ;;  %v533_v11 = vor.u32 %v532_v60, %v529_v59 }
 0x108   :  { %v1630_v8 = vcombine.high %v1993_v3, %v1993_v3  ;;  %v560_v12 = vrot.slane %v558_v61, 7  ;;  %v2000_v13 = vrot.slane %v1992_v32, 9  ;;  %v2001_v16 = vrot.slane %v1993_v3, 9 }
 0x109   :  { %v1661_v14 = vrot.slane %v1622_v4, 7  ;;  %v1658_v15 = vsel %vm2186_vm8, %v1999_v9, %v1657_v10  ;;  %v536_v19 = vshll.u32 %v432_v44, 16  ;;  %v534_v24 = vrot.slane %v533_v11, 2 }
 0x10a   :  { %1305 = vrot.lane.b32.xlu0 %v1942_v18, %s2078_s1  ;;  %v1665_v17 = vrot.slane %v1630_v8, 7  ;;  %v1970_v18 = vrot.slane %v1962_v46, 9  ;;  %1683 = vst.msk [vmem:[#allocation3 + $0x12] sm:$0x3] %vm360_vm2, %v1658_v15  ;;  %v561_v27 = vor.u32 %v560_v12, %v557_v5  ;;  %v564_v31 = vshll.u32 %v448_v20, 16 }
 0x10b   :  { %734 = vrot.lane.b32.xlu1 %v719_v39, %s2077_s0  ;;  %v1662_v21 = vsel %vm2186_vm8, %v2000_v13, %v1661_v14  ;;  %v1916_v28 = vld.sshfl [vmem:[#allocation2 + $0x4] sm:$0x13 pattern:$0x76325410]  ;;  %v2059_v14 = vld [vmem:[%s2526_s6 + $0x38] sm:$0xff]  }
 0x10c   :  { %v1666_v22 = vsel %vm2186_vm8, %v2001_v16, %v1665_v17  ;;  %1684 = vst.msk [vmem:[#allocation3 + $0x16] sm:$0x3] %vm360_vm2, %v1662_v21  ;;  %v1194_v23 = vsel %vm2186_vm8, %v1970_v18, %v1193_v0  ;;  %v471_v33 = vshrl.u32 %v1916_v28, 16  ;;  %v474_v34 = vshll.u32 %v1916_v28, 16  ;;  %1820 = vmatpush1.bf16.msra.mxu0 %v2059_v14  ;;  %2040 = vmatpush1.bf16.msra.mxu1 %v2059_v14  ;;  %v2060_v16 = vld [vmem:[%s2526_s6 + $0x30] sm:$0xff]  }
 0x10d   :  { %1685 = vst.msk [vmem:[#allocation3 + $0x1a] sm:$0x3] %vm360_vm2, %v1666_v22  ;;  %v1918_v36 = vld.sshfl [vmem:[#allocation2 + $0xc] sm:$0x13 pattern:$0x76325410]  ;;  %v400_v50 = vcombine.high %v1916_v28, %v1916_v28  ;;  %1821 = vmatprep.subr.bf16.mxu0 %v2076_v25  ;;  %2032 = vmatprep.subr.bf16.mxu1 %v2076_v25 }
 0x10e   :  { %1203 = vrot.lane.b32.xlu0 %v711_v29, %s2083_s5  ;;  %v538_v29 = vrot.slane %v536_v19, 7  ;;  %v562_v38 = vrot.slane %v561_v27, 2  ;;  %v566_v40 = vrot.slane %v564_v31, 7  ;;  %v499_v41 = vshrl.u32 %v1918_v36, 16  ;;  %v2061_v22 = vld [vmem:[%s2526_s6 + $0x28] sm:$0xff]  }
 0x10f   :  { %722 = vrot.lane.b32.xlu1 %v695_v48, %s2077_s0  ;;  %v502_v42 = vshll.u32 %v1918_v36, 16  ;;  %v473_v43 = vrot.slane %v471_v33, 6  ;;  %v476_v45 = vrot.slane %v474_v34, 7  ;;  %v416_v51 = vcombine.high %v1918_v36, %v1918_v36 }
 0x110   :  { %v539_v37 = vsel %vm2197_vm15, %v534_v24, %v538_v29  ;;  %v567_v49 = vsel %vm2197_vm15, %v562_v38, %v566_v40  ;;  %v501_v52 = vrot.slane %v499_v41, 6  ;;  %v1954_v58 = vld.sshfl [vmem:[#allocation2 + $0x28] sm:$0x13 pattern:$0x76325410]  ;;  %v480_v59 = vshll.u32 %v400_v50, 16  ;;  %1822 = vmatpush1.bf16.msra.mxu0 %v2060_v16  ;;  %2041 = vmatpush1.bf16.msra.mxu1 %v2060_v16 }
 0x111   :  { %v504_v53 = vrot.slane %v502_v42, 7  ;;  %v477_v55 = vor.u32 %v476_v45, %v473_v43  ;;  %v508_v61 = vshll.u32 %v416_v51, 16  ;;  %v1040_v0 = vshll.u32 %v1954_v58, 16  ;;  %1823 = vmatprep.subr.bf16.mxu0 %v2076_v25  ;;  %2033 = vmatprep.subr.bf16.mxu1 %v2076_v25  ;;  %v2062_v42 = vld [vmem:[%s2526_s6 + $0x20] sm:$0xff]  }
 0x112   :  { %1207 = vrot.lane.b32.xlu0 %v719_v39, %s2083_s5  ;;  %v1921_v39 = vld.sshfl [vmem:[#allocation2 + $0x20] sm:$0x13 pattern:$0x76325410]  ;;  %v482_v3 = vrot.slane %v480_v59, 7  ;;  %v937_v9 = vcombine.high %v1954_v58, %v1954_v58 }
 0x113   :  { %726 = vrot.lane.b32.xlu1 %v703_v56, %s2077_s0  ;;  %v541_v46 = vshrl.u32 %v1921_v39, 16  ;;  %v440_v54 = vcombine.high %v1921_v39, %v1921_v39  ;;  %v505_v60 = vor.u32 %v504_v53, %v501_v52  ;;  %v478_v32 = vrot.slane %v477_v55, 2  ;;  %v1979_v12 = vld.sshfl [vmem:[#allocation2 + $0x8] sm:$0x13 pattern:$0x76325410] }
 0x114   :  { %v510_v5 = vrot.slane %v508_v61, 7  ;;  %v1042_v13 = vrot.slane %v1040_v0, 7  ;;  %v1981_v15 = vld.sshfl [vmem:[#allocation2 + $0x10] sm:$0x13 pattern:$0x76325410]  ;;  %v1357_v31 = vcombine.high %v1979_v12, %v1979_v12  ;;  %1824 = vmatpush1.bf16.msra.mxu0 %v2061_v22  ;;  %2042 = vmatpush1.bf16.msra.mxu1 %v2061_v22 }
 0x115   :  { %v550_v44 = vshll.u32 %v440_v54, 16  ;;  %v506_v4 = vrot.slane %v505_v60, 2  ;;  %v1415_v18 = vshrl.u32 %v1979_v12, 16  ;;  %v1418_v19 = vshll.u32 %v1979_v12, 16  ;;  %1825 = vmatprep.subr.bf16.mxu0 %v2076_v25  ;;  %2034 = vmatprep.subr.bf16.mxu1 %v2076_v25 }
 0x116   :  { %732 = vrot.lane.b32.xlu0 %v715_v63, %s2077_s0  ;;  %v1443_v27 = vshrl.u32 %v1981_v15, 16  ;;  %v1446_v28 = vshll.u32 %v1981_v15, 16  ;;  %v1986_v38 = vld.sshfl [vmem:[#allocation2 + $0x2c] sm:$0x13 pattern:$0x76325410]  ;;  %v1373_v41 = vcombine.high %v1981_v15, %v1981_v15 }
 0x117   :  { %1205 = vrot.lane.b32.xlu1 %v715_v63, %s2083_s5  ;;  %v1037_v63 = vshrl.u32 %v1954_v58, 16  ;;  %v552_v8 = vrot.slane %v550_v44, 7  ;;  %v511_v20 = vsel %vm2197_vm15, %v506_v4, %v510_v5  ;;  %v1420_v24 = vrot.slane %v1418_v19, 7 }
 0x118   :  { %v1445_v36 = vrot.slane %v1443_v27, 6  ;;  %v1424_v40 = vshll.u32 %v1357_v31, 16  ;;  %v1513_v43 = vshrl.u32 %v1986_v38, 16  ;;  %v1516_v45 = vshll.u32 %v1986_v38, 16  ;;  %1826 = vmatpush1.bf16.msra.mxu0 %v2062_v42  ;;  %2043 = vmatpush1.bf16.msra.mxu1 %v2062_v42 }
 0x119   :  { %v1039_v11 = vrot.slane %v1037_v63, 6  ;;  %1827 = vmatprep.subr.bf16.mxu0 %v2076_v25  ;;  %v1452_v51 = vshll.u32 %v1373_v41, 16  ;;  %2035 = vmatprep.subr.bf16.mxu1 %v2076_v25  ;;  %v1413_v52 = vcombine.high %v1986_v38, %v1986_v38  ;;  %v1990_v59 = vld.sshfl [vmem:[#allocation2 + $0x14] sm:$0x12 pattern:$0x76325410] }
 0x11a   :  { %1195 = vrot.lane.b32.xlu0 %v695_v48, %s2083_s5  ;;  %v544_v48 = vshll.u32 %v1921_v39, 16  ;;  %v1426_v50 = vrot.slane %v1424_v40, 7  ;;  %v1515_v53 = vrot.slane %v1513_v43, 6  ;;  %v1518_v54 = vrot.slane %v1516_v45, 7  ;;  %v2065_v63 = vld [vmem:[%s2526_s6 + $0x8] sm:$0xff]  }
 0x11b   :  { %1209 = vrot.lane.b32.xlu1 %v1194_v23, %s2083_s5  ;;  %v1043_v21 = vor.u32 %v1042_v13, %v1039_v11  ;;  %v1417_v23 = vrot.slane %v1415_v18, 6  ;;  %v1454_v58 = vrot.slane %v1452_v51, 7  ;;  %v1522_v61 = vshll.u32 %v1413_v52, 16 }
 0x11c   :  { %v546_v57 = vrot.slane %v544_v48, 7  ;;  %v1519_v60 = vor.u32 %v1518_v54, %v1515_v53  ;;  %v1606_v44 = vcombine.high %v1990_v59, %v1990_v59  ;;  %v1994_v11 = vld.sshfl [vmem:[#allocation2 + $0x2c] sm:$0x12 pattern:$0x76325410] }
 0x11d   :  { %v1044_v29 = vrot.slane %v1043_v21, 2  ;;  %v1421_v34 = vor.u32 %v1420_v24, %v1417_v23  ;;  %v1524_v4 = vrot.slane %v1522_v61, 7  ;;  %v1638_v12 = vcombine.high %v1994_v11, %v1994_v11 }
 0x11e   :  { %1199 = vrot.lane.b32.xlu0 %v703_v56, %s2083_s5  ;;  %v543_v56 = vrot.slane %v541_v46, 6  ;;  %v1653_v0 = vrot.slane %v1606_v44, 7  ;;  %v2002_v13 = vrot.slane %v1994_v11, 9 }
 0x11f   :  { %578 = vrot.lane.b32.xlu1 %v539_v37, %s2079_s2  ;;  %v1422_v46 = vrot.slane %v1421_v34, 2  ;;  %v1669_v47 = vrot.slane %v1638_v12, 7 }
 0x120   :  { %v547_v62 = vor.u32 %v546_v57, %v543_v56  ;;  %v2064_v57 = vld [vmem:[%s2526_s6 + $0x10] sm:$0xff]  }
 0x121   :  { %v1427_v55 = vsel %vm2197_vm15, %v1422_v46, %v1426_v50  ;;  %v1670_v14 = vsel %vm2186_vm8, %v2002_v13, %v1669_v47 }
 0x122   :  { %724 = vrot.lane.b32.xlu0 %v2271_v26, %s2077_s0  ;;  %v548_v10 = vrot.slane %v547_v62, 2  ;;  %1686 = vst.msk [vmem:[#allocation3 + $0x1e] sm:$0x3] %vm360_vm2, %v1670_v14 }
 0x123   :  { %582 = vrot.lane.b32.xlu1 %v567_v49, %s2079_s2 }
 0x124   :  { %v553_v17 = vsel %vm2197_vm15, %v548_v10, %v552_v8  ;;  %v2066_v8 = vld [vmem:[%s2526_s6] sm:$0xff]   ;;  %v2407_v10 = vpop.permute.xlu1 %1307 }
 0x126   :  { %1058 = vrot.lane.b32.xlu0 %v539_v37, %s2084_s19  ;;  %v1448_v37 = vrot.slane %v1446_v28, 7 }
 0x127   :  { %1197 = vrot.lane.b32.xlu1 %v2271_v26, %s2083_s5  ;;  %v483_v26 = vsel %vm2197_vm15, %v478_v32, %v482_v3  ;;  %v1998_v32 = vrot.slane %v1990_v59, 9  ;;  %v1520_v3 = vrot.slane %v1519_v60, 2 }
 0x128   :  { %v1449_v48 = vor.u32 %v1448_v37, %v1445_v36 }
 0x129   :  { %v1654_v5 = vsel %vm2186_vm8, %v1998_v32, %v1653_v0  ;;  %vm1219_vm8 = vcmask 779904  }
 0x12a   :  { %1062 = vrot.lane.b32.xlu0 %v567_v49, %s2084_s19  ;;  %v1450_v56 = vrot.slane %v1449_v48, 2  ;;  %1682 = vst.msk [vmem:[#allocation3 + $0xe] sm:$0x3] %vm360_vm2, %v1654_v5 }
 0x12b   :  { %1201 = vrot.lane.b32.xlu1 %v2280_v35, %s2083_s5  ;;  %v1046_v35 = vshll.u32 %v937_v9, 16  ;;  %v1525_v9 = vsel %vm2197_vm15, %v1520_v3, %v1524_v4 }
 0x12c   :  { %v1455_v62 = vsel %vm2197_vm15, %v1450_v56, %v1454_v58 }
 0x12d   :  { %v1048_v33 = vrot.slane %v1046_v35, 7  ;;  %v2411_v35 = vpop.permute.xlu1 %1315 }
 0x12e   :  { %570 = vrot.lane.b32.xlu0 %v483_v26, %s2079_s2 }
 0x12f   :  { %1536 = vrot.lane.b32.xlu1 %v567_v49, %s2080_s14  ;;  %v1049_v39 = vsel %vm2197_vm15, %v1044_v29, %v1048_v33  ;;  %v2063_v49 = vld [vmem:[%s2526_s6 + $0x18] sm:$0xff]  }
 0x130   :  { %1828 = vmatpush1.bf16.msra.mxu0 %v2063_v49  ;;  %2044 = vmatpush1.bf16.msra.mxu1 %v2063_v49 }
 0x131   :  { %1829 = vmatprep.subr.bf16.mxu0 %v2076_v25  ;;  %2036 = vmatprep.subr.bf16.mxu1 %v2076_v25  ;;  %v2414_v15 = vpop.permute.xlu1 %1532 }
 0x132   :  { %580 = vrot.lane.b32.xlu0 %v553_v17, %s2079_s2 }
 0x133   :  { %574 = vrot.lane.b32.xlu1 %v511_v20, %s2079_s2 }
 0x134   :  { %1830 = vmatpush1.bf16.msra.mxu0 %v2064_v57  ;;  %2045 = vmatpush1.bf16.msra.mxu1 %v2064_v57 }
 0x135   :  { %1831 = vmatprep.subr.bf16.mxu0 %v2076_v25  ;;  %2037 = vmatprep.subr.bf16.mxu1 %v2076_v25 }
 0x136   :  { %1050 = vrot.lane.b32.xlu0 %v483_v26, %s2084_s19  ;;  %v2067_v26 = vld [vmem:[%s2526_s6 + $0x40] sm:$0xff]  }
 0x137   :  { %1060 = vrot.lane.b32.xlu1 %v553_v17, %s2084_s19 }
 0x138   :  { %1832 = vmatpush1.bf16.msra.mxu0 %v2065_v63  ;;  %2046 = vmatpush1.bf16.msra.mxu1 %v2065_v63 }
 0x139   :  { %1833 = vmatprep.subr.bf16.mxu0 %v2076_v25  ;;  %2038 = vmatprep.subr.bf16.mxu1 %v2076_v25 }
 0x13a   :  { %1054 = vrot.lane.b32.xlu0 %v511_v20, %s2084_s19 }
 0x13b   :  { %1064 = vrot.lane.b32.xlu1 %v1049_v39, %s2084_s19 }
 0x13c   :  { %1834 = vmatpush1.bf16.msra.mxu0 %v2066_v8  ;;  %2047 = vmatpush1.bf16.msra.mxu1 %v2066_v8 }
 0x13d   :  { %1849 = vmatprep.subr.bf16.mxu0 %v2076_v25  ;;  %2039 = vmatprep.subr.bf16.mxu1 %v2076_v25 }
 0x13e   :  { %1534 = vrot.lane.b32.xlu0 %v553_v17, %s2080_s14 }
 0x13f   :  { %1528 = vrot.lane.b32.xlu1 %v511_v20, %s2080_s14 }
 0x140   :  { %1850 = vmatpush2.bf16.msra.mxu0 %v2067_v26  ;;  %2048 = vmatpush2.bf16.msra.mxu1 %v2067_v26 }
 0x142   :  { %1526 = vrot.lane.b32.xlu0 %v1427_v55, %s2080_s14 }
 0x143   :  { %572 = vrot.lane.b32.xlu1 %v1427_v55, %s2079_s2 }
 0x146   :  { %1530 = vrot.lane.b32.xlu0 %v1455_v62, %s2080_s14 }
 0x147   :  { %1052 = vrot.lane.b32.xlu1 %v1427_v55, %s2084_s19 }
 0x14a   :  { %1538 = vrot.lane.b32.xlu0 %v1049_v39, %s2080_s14 }
 0x14b   :  { %1056 = vrot.lane.b32.xlu1 %v1455_v62, %s2084_s19 }
 0x14f   :  { %1540 = vrot.lane.b32.xlu1 %v1525_v9, %s2080_s14 }
 0x160   :  { %v834_v25 = vpop.permute.xlu0 %833 }
 0x161   :  { %v2416_v16 = vpop.permute.xlu1 %1311  ;;  %854 = vst.msk [vmem:[#allocation3 + $0x10] sm:$0x3] %vm849_vm6, %v834_v25 }
 0x164   :  { %v838_v17 = vpop.permute.xlu0 %837 }
 0x165   :  { %v836_v18 = vpop.permute.xlu1 %835 }
 0x168   :  { %v826_v19 = vpop.permute.xlu0 %825 }
 0x169   :  { %v840_v20 = vpop.permute.xlu1 %839  ;;  %850 = vst.msk [vmem:[#allocation3] sm:$0x3] %vm849_vm6, %v826_v19 }
 0x16c   :  { %v2420_v30 = vpop.permute.xlu0 %829 }
 0x16d   :  { %v2422_v21 = vpop.permute.xlu1 %1303 }
 0x170   :  { %v1310_v22 = vpop.permute.xlu0 %1309 }
 0x171   :  { %v828_v23 = vpop.permute.xlu1 %827 }
 0x174   :  { %v1314_v24 = vpop.permute.xlu0 %1313 }
 0x175   :  { %v832_v27 = vpop.permute.xlu1 %831 }
 0x178   :  { %v1302_v28 = vpop.permute.xlu0 %1301 }
 0x179   :  { %v731_v29 = vpop.permute.xlu1 %730 }
 0x17c   :  { %v2424_v31 = vpop.permute.xlu0 %1305 }
 0x17d   :  { %v735_v33 = vpop.permute.xlu1 %734 }
 0x180   :  { %v1204_v34 = vpop.permute.xlu0 %1203 }
 0x181   :  { %v723_v36 = vpop.permute.xlu1 %722 }
 0x184   :  { %v1208_v37 = vpop.permute.xlu0 %1207 }
 0x185   :  { %v727_v38 = vpop.permute.xlu1 %726 }
 0x188   :  { %v733_v39 = vpop.permute.xlu0 %732 }
 0x189   :  { %v1206_v40 = vpop.permute.xlu1 %1205 }
 0x18c   :  { %v1196_v41 = vpop.permute.xlu0 %1195 }
 0x18d   :  { %v1210_v42 = vpop.permute.xlu1 %1209 }
 0x190   :  { %v2426_v43 = vpop.permute.xlu0 %1199 }
 0x191   :  { %v579_v45 = vpop.permute.xlu1 %578 }
 0x192   :  { %598 = vst.msk [vmem:[#allocation3 + $0x14] sm:$0x3] %vm592_vm3, %v579_v45 }
 0x193   :  { %750 = vst.msk [vmem:[#allocation3 + $0x14] sm:$0x3] %vm744_vm1, %v731_v29 }
 0x194   :  { %855 = vst.msk [vmem:[#allocation3 + $0x14] sm:$0x3] %vm849_vm6, %v836_v18  ;;  %v725_v46 = vpop.permute.xlu0 %724 }
 0x195   :  { %v583_v48 = vpop.permute.xlu1 %582 }
 0x196   :  { %600 = vst.msk [vmem:[#allocation3 + $0x1c] sm:$0x3] %vm592_vm3, %v583_v48 }
 0x197   :  { %752 = vst.msk [vmem:[#allocation3 + $0x1c] sm:$0x3] %vm744_vm1, %v735_v33 }
 0x198   :  { %857 = vst.msk [vmem:[#allocation3 + $0x1c] sm:$0x3] %vm849_vm6, %v840_v20  ;;  %v1059_v49 = vpop.permute.xlu0 %1058 }
 0x199   :  { %v1198_v50 = vpop.permute.xlu1 %1197  ;;  %1079 = vst.msk [vmem:[#allocation3 + $0x10] sm:$0x3] %vm1074_vm7, %v1059_v49 }
 0x19a   :  { %1224 = vst.msk [vmem:[#allocation3 + $0x10] sm:$0x3] %vm1219_vm8, %v1204_v34 }
 0x19b   :  { %1330 = vst.msk [vmem:[#allocation3 + $0x10] sm:$0x3] %vm1325_vm9, %v1310_v22 }
 0x19c   :  { %v1063_v51 = vpop.permute.xlu0 %1062 }
 0x19d   :  { %v1202_v52 = vpop.permute.xlu1 %1201 }
 0x1a0   :  { %v571_v53 = vpop.permute.xlu0 %570 }
 0x1a1   :  { %v1537_v54 = vpop.permute.xlu1 %1536  ;;  %594 = vst.msk [vmem:[#allocation3 + $0x4] sm:$0x3] %vm592_vm3, %v571_v53 }
 0x1a2   :  { %746 = vst.msk [vmem:[#allocation3 + $0x4] sm:$0x3] %vm744_vm1, %v723_v36 }
 0x1a3   :  { %851 = vst.msk [vmem:[#allocation3 + $0x4] sm:$0x3] %vm849_vm6, %v828_v23 }
 0x1a4   :  { %v581_v55 = vpop.permute.xlu0 %580 }
 0x1a5   :  { %v575_v56 = vpop.permute.xlu1 %574  ;;  %599 = vst.msk [vmem:[#allocation3 + $0x18] sm:$0x3] %vm592_vm3, %v581_v55 }
 0x1a6   :  { %596 = vst.msk [vmem:[#allocation3 + $0xc] sm:$0x3] %vm592_vm3, %v575_v56 }
 0x1a7   :  { %751 = vst.msk [vmem:[#allocation3 + $0x18] sm:$0x3] %vm744_vm1, %v733_v39  ;;  %748 = vst.msk [vmem:[#allocation3 + $0xc] sm:$0x3] %vm744_vm1, %v727_v38 }
 0x1a8   :  { %856 = vst.msk [vmem:[#allocation3 + $0x18] sm:$0x3] %vm849_vm6, %v838_v17  ;;  %853 = vst.msk [vmem:[#allocation3 + $0xc] sm:$0x3] %vm849_vm6, %v832_v27  ;;  %v1051_v57 = vpop.permute.xlu0 %1050 }
 0x1a9   :  { %1081 = vst.msk [vmem:[#allocation3 + $0x18] sm:$0x3] %vm1074_vm7, %v1063_v51  ;;  %v1061_v58 = vpop.permute.xlu1 %1060  ;;  %1075 = vst.msk [vmem:[#allocation3] sm:$0x3] %vm1074_vm7, %v1051_v57 }
 0x1aa   :  { %1226 = vst.msk [vmem:[#allocation3 + $0x18] sm:$0x3] %vm1219_vm8, %v1208_v37  ;;  %1220 = vst.msk [vmem:[#allocation3] sm:$0x3] %vm1219_vm8, %v1196_v41 }
 0x1ab   :  { %1080 = vst.msk [vmem:[#allocation3 + $0x14] sm:$0x3] %vm1074_vm7, %v1061_v58 }
 0x1ac   :  { %1332 = vst.msk [vmem:[#allocation3 + $0x18] sm:$0x3] %vm1325_vm9, %v1314_v24  ;;  %1326 = vst.msk [vmem:[#allocation3] sm:$0x3] %vm1325_vm9, %v1302_v28  ;;  %v1055_v59 = vpop.permute.xlu0 %1054 }
 0x1ad   :  { %1225 = vst.msk [vmem:[#allocation3 + $0x14] sm:$0x3] %vm1219_vm8, %v1206_v40  ;;  %v1065_v60 = vpop.permute.xlu1 %1064 }
 0x1ae   :  { %1331 = vst.msk [vmem:[#allocation3 + $0x14] sm:$0x3] %vm1325_vm9, %v2416_v16 }
 0x1af   :  { %1556 = vst.msk [vmem:[#allocation3 + $0x14] sm:$0x3] %vm1550_vm10, %v1537_v54 }
 0x1b0   :  { %1082 = vst.msk [vmem:[#allocation3 + $0x1c] sm:$0x3] %vm1074_vm7, %v1065_v60  ;;  %v1535_v61 = vpop.permute.xlu0 %1534 }
 0x1b1   :  { %1227 = vst.msk [vmem:[#allocation3 + $0x1c] sm:$0x3] %vm1219_vm8, %v1210_v42  ;;  %v1529_v44 = vpop.permute.xlu1 %1528 }
 0x1b2   :  { %1333 = vst.msk [vmem:[#allocation3 + $0x1c] sm:$0x3] %vm1325_vm9, %v2411_v35 }
 0x1b3   :  { %1555 = vst.msk [vmem:[#allocation3 + $0x10] sm:$0x3] %vm1550_vm10, %v1535_v61 }
 0x1b4   :  { %v1527_v32 = vpop.permute.xlu0 %1526 }
 0x1b5   :  { %1551 = vst.msk [vmem:[#allocation3] sm:$0x3] %vm1550_vm10, %v1527_v32  ;;  %v573_v62 = vpop.permute.xlu1 %572 }
 0x1b6   :  { %595 = vst.msk [vmem:[#allocation3 + $0x8] sm:$0x3] %vm592_vm3, %v573_v62 }
 0x1b7   :  { %747 = vst.msk [vmem:[#allocation3 + $0x8] sm:$0x3] %vm744_vm1, %v725_v46 }
 0x1b8   :  { %852 = vst.msk [vmem:[#allocation3 + $0x8] sm:$0x3] %vm849_vm6, %v2420_v30  ;;  %v1531_v63 = vpop.permute.xlu0 %1530 }
 0x1b9   :  { %1077 = vst.msk [vmem:[#allocation3 + $0x8] sm:$0x3] %vm1074_vm7, %v1055_v59  ;;  %v1053_v0 = vpop.permute.xlu1 %1052 }
 0x1ba   :  { %1222 = vst.msk [vmem:[#allocation3 + $0x8] sm:$0x3] %vm1219_vm8, %v2426_v43  ;;  %v2074_v9 = vld.sshfl [vmem:[#allocation3 + $0x10] sm:$0xff pattern:$0x76325410] }
 0x1bb   :  { %1076 = vst.msk [vmem:[#allocation3 + $0x4] sm:$0x3] %vm1074_vm7, %v1053_v0 }
 0x1bc   :  { %1328 = vst.msk [vmem:[#allocation3 + $0x8] sm:$0x3] %vm1325_vm9, %v2424_v31  ;;  %v1539_v3 = vpop.permute.xlu0 %1538 }
 0x1bd   :  { %1221 = vst.msk [vmem:[#allocation3 + $0x4] sm:$0x3] %vm1219_vm8, %v1198_v50  ;;  %v1057_v4 = vpop.permute.xlu1 %1056 }
 0x1be   :  { %1553 = vst.msk [vmem:[#allocation3 + $0x8] sm:$0x3] %vm1550_vm10, %v1531_v63  ;;  %1557 = vst.msk [vmem:[#allocation3 + $0x18] sm:$0x3] %vm1550_vm10, %v1539_v3 }
 0x1bf   :  { %1327 = vst.msk [vmem:[#allocation3 + $0x4] sm:$0x3] %vm1325_vm9, %v2422_v21 }
 0x1c0   :  { %1552 = vst.msk [vmem:[#allocation3 + $0x4] sm:$0x3] %vm1550_vm10, %v1529_v44 }
 0x1c1   :  { %1078 = vst.msk [vmem:[#allocation3 + $0xc] sm:$0x3] %vm1074_vm7, %v1057_v4  ;;  %v1541_v5 = vpop.permute.xlu1 %1540 }
 0x1c2   :  { %1223 = vst.msk [vmem:[#allocation3 + $0xc] sm:$0x3] %vm1219_vm8, %v1202_v52 }
 0x1c3   :  { %1329 = vst.msk [vmem:[#allocation3 + $0xc] sm:$0x3] %vm1325_vm9, %v2407_v10 }
 0x1c4   :  { %1554 = vst.msk [vmem:[#allocation3 + $0xc] sm:$0x3] %vm1550_vm10, %v2414_v15  ;;  %1558 = vst.msk [vmem:[#allocation3 + $0x1c] sm:$0x3] %vm1550_vm10, %v1541_v5 }
 0x1c7   :  { %v2072_v8 = vld.sshfl [vmem:[#allocation3] sm:$0xff pattern:$0x76325410] }
 0x1cb   :  { %v2073_v26 = vld.sshfl [vmem:[#allocation3 + $0x8] sm:$0xff pattern:$0x76325410]  ;;  %v2075_v11 = vld.sshfl [vmem:[#allocation3 + $0x18] sm:$0xff pattern:$0x76325410] }
 0x1cc   :  { %v1738_v12 = vcombine.high %v2072_v8, %v2073_v26  ;;  %v1737_v13 = vcombine.low %v2072_v8, %v2073_v26  ;;  %v1756_v47 = vcombine.high %v2074_v9, %v2075_v11  ;;  %v1755_v14 = vcombine.low %v2074_v9, %v2075_v11 }
 0x1ce   :  { %2012 = vmatprep.mubr.msk.bf16.mxu0 %vm71_vm0, %v1738_v12  ;;  %2013 = vmatprep.mubr.msk.bf16.mxu1 %vm71_vm0, %v1756_v47  ;;  %vm1897_vm0 = vcmask 191616  }
 0x1cf   :  { %1852 = vmatmul.mubr.bf16.vlgmr.msra.gmra.mxu0 %v1737_v13  ;;  %1860 = vmatmul.mubr.bf16.vlgmr.msra.gmra.mxu1 %v1755_v14 }
 0x28f   :  { %v1853_v10 = vpop.f32.mrf.mxu0  ;;  %v1861_v15 = vpop.f32.mrf.mxu1 }
 0x290   :  { %v2018_v35 = vpack.c.bf16 %v1853_v10, %v1853_v10  ;;  %v2020_v17 = vpack.c.bf16 %v1861_v15, %v1861_v15 }
 0x291   :  { %v1855_v25 = vpop.f32.mrf.mxu0  ;;  %v1863_v1 = vpop.f32.mrf.mxu1 }
 0x292   :  { %1885 = vrot.lane.b32.xlu0 %v2018_v35, %s2079_s2 }
 0x293   :  { %v1856_v16 = vpop.f32.mrf.mxu0  ;;  %v1864_v18 = vpop.f32.mrf.mxu1 }
 0x294   :  { %v2019_v2 = vpack.c.bf16 %v1856_v16, %v1856_v16  ;;  %v2021_v6 = vpack.c.bf16 %v1864_v18, %v1864_v18 }
 0x295   :  { %v1858_v19 = vpop.f32.mrf.mxu0  ;;  %v1866_v20 = vpop.f32.mrf.mxu1 }
 0x296   :  { %1889 = vrot.lane.b32.xlu0 %v2020_v17, %s2079_s2  ;;  %1887 = vrot.lane.b32.xlu1 %v2019_v2, %s2079_s2 }
 0x29a   :  { %1891 = vrot.lane.b32.xlu1 %v2021_v6, %s2079_s2 }
 0x304   :  { %v1886_v7 = vpop.permute.xlu0 %1885 }
 0x305   :  { %1898 = vst.msk [vmem:[%s2527_s7] sm:$0xf] %vm1897_vm0, %v1886_v7 }
 0x308   :  { %v1890_v30 = vpop.permute.xlu0 %1889  ;;  %v1888_v21 = vpop.permute.xlu1 %1887 }
 0x309   :  { %1900 = vst.msk [vmem:[%s2527_s7 + $0x8] sm:$0xf] %vm1897_vm0, %v1890_v30  ;;  %1899 = vst.msk [vmem:[%s2527_s7 + $0x4] sm:$0xf] %vm1897_vm0, %v1888_v21 }
 0x30c   :  { %v1892_v22 = vpop.permute.xlu1 %1891 }
 0x30d   :  { %1901 = vst.msk [vmem:[%s2527_s7 + $0xc] sm:$0xf] %vm1897_vm0, %v1892_v22 }

// kernel: densenet_forward.12
= control target key start
LH: loop header
LB: loop body
LE: loop exit
PB: predicated region body
PF: predicated region fallthrough
CT: control target
= control target key end

     0   :  { %vm82_vm0 = vcmask 1043456   ;;  %vm75_vm1 = vcmask 195584   ;;  %vm163_vm2 = vcmask 124928   ;;  %v2074_v27 = vmov 0   ;;  %s2078_s16 = smov 112   ;;  %s2082_s21 = smov 64   ;;  %s2516_s3 = inlined_call_operand.vmem [shape: bf16[24,16], index: 3, kind: input, shape index: {}]   ;;  %s2517_s0 = inlined_call_operand.vmem [shape: bf16[32,24], index: 0, kind: input, shape index: {}]   ;;  %s2518_s1 = inlined_call_operand.vmem [shape: f32[1,24], index: 1, kind: input, shape index: {}]   ;;  %s2519_s2 = inlined_call_operand.vmem [shape: f32[1,24], index: 2, kind: input, shape index: {}]   ;;  %s2520_s4 = inlined_call_operand.vmem [shape: f32[1,16], index: 4, kind: input, shape index: {}]   ;;  %s2521_s5 = inlined_call_operand.vmem [shape: f32[1,16], index: 5, kind: input, shape index: {}]   ;;  %s2522_s6 = inlined_call_operand.vmem [shape: bf16[144,8], index: 6, kind: input, shape index: {}]   ;;  %s2523_s7 = inlined_call_operand.vmem [shape: bf16[32,32], index: 7, kind: output, shape index: {}]  }
   0x1   :  { %v2055_v0 = vld [vmem:[%s2516_s3 + $0x8] ss:$0 sps:$4 sm:$0xff]   ;;  %v2056_v1 = vld [vmem:[%s2516_s3] sm:$0xff]   ;;  %v2156_v10 = vld [vmem:[%s2517_s0 + $0xc] sm:$0xf]  ;;  %1828 = vmatprep.subr.bf16.mxu1 %v2074_v27  ;;  %vm689_vm3 = vcmask 1040384  }
   0x2   :  { %v2133_v2 = vld [vmem:[%s2517_s0] sm:$0xf]  ;;  %2044 = vmatprep.subr.msk.bf16.mxu0 %vm82_vm0, %v2055_v0  ;;  %v84_v3 = vsel %vm82_vm0, %v2055_v0, 0  ;;  %v2138_v4 = vld [vmem:[%s2517_s0 + $0x4] sm:$0xf]  ;;  %v34_v13 = vunpack.c.l.bf16 %v2156_v10  ;;  %vm690_vm4 = vcmask 1042434  }
   0x3   :  { %v31_v5 = vunpack.c.l.bf16 %v2133_v2  ;;  %v1915_v6 = vld [vmem:[%s2518_s1] ss:$0 sm:$0xff]  ;;  %2037 = vmatpush3.bf16.msra.mxu0 %v84_v3  ;;  %v32_v7 = vunpack.c.l.bf16 %v2138_v4  ;;  %v2151_v9 = vld [vmem:[%s2517_s0 + $0x8] sm:$0xf]  ;;  %171 = vst.msk [vmem:[#allocation2 + $0x1c] sm:$0x7] %vm163_vm2, %v2074_v27  ;;  %vm691_vm5 = vmor %vm689_vm3, %vm690_vm4 }
   0x4   :  { %v1916_v8 = vld [vmem:[%s2519_s2] ss:$0 sm:$0xff]  ;;  %2038 = vmatprep.subr.bf16.mxu0 %v2056_v1  ;;  %v33_v12 = vunpack.c.l.bf16 %v2151_v9  ;;  %v45_v17 = vmul.f32 %v1915_v6, %v34_v13  ;;  %172 = vst.msk [vmem:[#allocation2 + $0x20] sm:$0x7] %vm163_vm2, %v2074_v27  ;;  %173 = vst.msk [vmem:[#allocation2 + $0x24] sm:$0x7] %vm163_vm2, %v2074_v27 }
   0x5   :  { %v42_v11 = vmul.f32 %v1915_v6, %v31_v5  ;;  %v43_v14 = vmul.f32 %v1915_v6, %v32_v7  ;;  %174 = vst.msk [vmem:[#allocation2 + $0x28] sm:$0x7] %vm163_vm2, %v2074_v27  ;;  %164 = vst.msk [vmem:[#allocation2] sm:$0x7] %vm163_vm2, %v2074_v27  ;;  %vm692_vm6 = vcmask 1044484   ;;  %vm694_vm8 = vcmask 1046534  }
   0x6   :  { %v44_v16 = vmul.f32 %v1915_v6, %v33_v12  ;;  %v56_v21 = vadd.f32 %v1916_v8, %v45_v17  ;;  %165 = vst.msk [vmem:[#allocation2 + $0x4] sm:$0x7] %vm163_vm2, %v2074_v27  ;;  %166 = vst.msk [vmem:[#allocation2 + $0x8] sm:$0x7] %vm163_vm2, %v2074_v27  ;;  %s2075_s0 = smov 32   ;;  %s2076_s1 = smov 16  }
   0x7   :  { %v53_v15 = vadd.f32 %v1916_v8, %v42_v11  ;;  %2039 = vmatpush3.bf16.msra.mxu0 %v2056_v1  ;;  %v54_v18 = vadd.f32 %v1916_v8, %v43_v14  ;;  %167 = vst.msk [vmem:[#allocation2 + $0xc] sm:$0x7] %vm163_vm2, %v2074_v27  ;;  %168 = vst.msk [vmem:[#allocation2 + $0x10] sm:$0x7] %vm163_vm2, %v2074_v27  ;;  %vm457_vm10 = vsmask.f32 1280 }
   0x8   :  { %v55_v20 = vadd.f32 %v1916_v8, %v44_v16  ;;  %v60_v24 = vmax.f32 %v56_v21, 0.0  ;;  %169 = vst.msk [vmem:[#allocation2 + $0x14] sm:$0x7] %vm163_vm2, %v2074_v27  ;;  %170 = vst.msk [vmem:[#allocation2 + $0x18] sm:$0x7] %vm163_vm2, %v2074_v27  ;;  %s2077_s2 = smov 96  }
   0x9   :  { %v57_v19 = vmax.f32 %v53_v15, 0.0  ;;  %v58_v22 = vmax.f32 %v54_v18, 0.0  ;;  %175 = vst.msk [vmem:[#allocation2 + $0x2c] sm:$0x7] %vm163_vm2, %v2074_v27  ;;  %vm693_vm7 = vmor %vm691_vm5, %vm692_vm6  ;;  %vm458_vm11 = vsmask.f32 3336 }
   0xa   :  { %v59_v23 = vmax.f32 %v55_v20, 0.0  ;;  %vm2185_vm9 = vmor %vm693_vm7, %vm694_vm8  ;;  %vm460_vm13 = vsmask.f32 5392  ;;  %vm462_vm15 = vsmask.f32 7448  ;;  %vm600_vm3 = vcmask 255104  }
   0xb   :  { %v61_v25 = vpack.c.bf16 %v58_v22, %v57_v19  ;;  %vm459_vm12 = vmor %vm457_vm10, %vm458_vm11  ;;  %v1921_v14 = vld [vmem:[%s2520_s4] ss:$0 sm:$0xff]  ;;  %v2079_v17 = vmov 1983009808   ;;  %v182_v19 = vlaneseq  ;;  %vm334_vm4 = vsmask.f32 2306 }
   0xc   :  { %v62_v26 = vpack.c.bf16 %v60_v24, %v59_v23  ;;  %v1933_v28 = vld.sshfl [vmem:[#allocation2] sm:$0x12 pattern:$0x76325410]  ;;  %vm461_vm14 = vmor %vm459_vm12, %vm460_vm13  ;;  %v180_v18 = vunpack.c.l.s4 %v2079_v17  ;;  %v1922_v20 = vld [vmem:[%s2521_s5] ss:$0 sm:$0xff] }
   0xd   :  { %2040 = vmatprep.mubr.msk.bf16.mxu0 %vm75_vm1, %v61_v25  ;;  %v632_v29 = vcombine.high %v1933_v28, %v1933_v28  ;;  %v1941_v30 = vrot.slane %v1933_v28, 9  ;;  %v1925_v36 = vld.sshfl [vmem:[#allocation2] sm:$0x13 pattern:$0x76325410]  ;;  %vm2195_vm0 = vmor %vm461_vm14, %vm462_vm15  ;;  %v183_v28 = vshrl.u32 %v182_v19, 7 }
   0xe   :  { %2041 = vmatmul.mubr.msk.bf16.vlgmr.msra.gmra.mxu0 %vm75_vm1, %v62_v26  ;;  %v465_v37 = vshrl.u32 %v1925_v36, 16  ;;  %v468_v38 = vshll.u32 %v1925_v36, 16  ;;  %v400_v41 = vcombine.high %v1925_v36, %v1925_v36  ;;  %v181_v26 = vunpack.c.0.s8 %v180_v18  ;;  %vm2224_vm5 = vmand %vm163_vm2, %vm334_vm4  ;;  %v354_v19 = vld [vmem:[#allocation2 + $0x24] sm:$0x7]  ;;  %s2080_s4 = smov 48   ;;  %s2081_s5 = smov 80  }
   0xf   :  { %v698_v31 = vrot.slane %v632_v29, 7  ;;  %v1937_v33 = vld.sshfl [vmem:[#allocation2 + $0x18] sm:$0x12 pattern:$0x76325410]  ;;  %vm368_vm1 = vcmask 123904  }
  0x10   :  { %v664_v35 = vcombine.high %v1937_v33, %v1937_v33  ;;  %v1945_v39 = vrot.slane %v1937_v33, 9  ;;  %v467_v42 = vrot.slane %v465_v37, 6  ;;  %v470_v43 = vrot.slane %v468_v38, 7  ;;  %v364_v36 = vld [vmem:[#allocation2 + $0x18] sm:$0x3]  ;;  %s2083_s20 = smov 24  }
  0x11   :  { %v699_v34 = vsel %vm2185_vm9, %v1941_v30, %v698_v31  ;;  %v474_v46 = vshll.u32 %v400_v41, 16  ;;  %v1929_v47 = vld.sshfl [vmem:[#allocation2 + $0x18] sm:$0x13 pattern:$0x76325410]  ;;  %vm752_vm2 = vcmask 386304  }
  0x12   :  { %728 = vrot.lane.b32.xlu0 %v699_v34, %s2075_s0  ;;  %v714_v40 = vrot.slane %v664_v35, 7  ;;  %v471_v45 = vor.u32 %v470_v43, %v467_v42  ;;  %v432_v51 = vcombine.high %v1929_v47, %v1929_v47  ;;  %v521_v52 = vshrl.u32 %v1929_v47, 16  ;;  %v1992_v54 = vld.sshfl [vmem:[#allocation2 + $0x14] sm:$0x13 pattern:$0x76325410] }
  0x13   :  { %v476_v50 = vrot.slane %v474_v46, 7  ;;  %v524_v53 = vshll.u32 %v1929_v47, 16  ;;  %v1984_v56 = vld.sshfl [vmem:[#allocation2 + $0x14] sm:$0x3 pattern:$0x76325410]  ;;  %v1389_v58 = vcombine.high %v1992_v54, %v1992_v54 }
  0x14   :  { %v715_v44 = vsel %vm2185_vm9, %v1945_v39, %v714_v40  ;;  %v472_v49 = vrot.slane %v471_v45, 2  ;;  %v523_v57 = vrot.slane %v521_v52, 6  ;;  %1315 = vrot.lane.b32.xlu1 %v1984_v56, %s2077_s2  ;;  %v530_v60 = vshll.u32 %v432_v51, 16  ;;  %v360_v35 = vld [vmem:[#allocation2] sm:$0x3] }
  0x15   :  { %v526_v59 = vrot.slane %v524_v53, 7  ;;  %v1465_v61 = vshrl.u32 %v1992_v54, 16  ;;  %v1468_v62 = vshll.u32 %v1992_v54, 16  ;;  %v1474_v63 = vshll.u32 %v1389_v58, 16  ;;  %369 = vst.msk [vmem:[#allocation3] sm:$0x3] %vm368_vm1, %v360_v35 }
  0x16   :  { %736 = vrot.lane.b32.xlu0 %v715_v44, %s2075_s0  ;;  %v477_v55 = vsel %vm2195_vm0, %v472_v49, %v476_v50  ;;  %v532_v1 = vrot.slane %v530_v60, 7  ;;  %373 = vst.msk [vmem:[#allocation3 + $0x10] sm:$0x3] %vm368_vm1, %v364_v36  ;;  %v184_v39 = vsub.s32 %v181_v26, %v183_v28  ;;  %vm857_vm6 = vcmask 517504  }
  0x17   :  { %v527_v0 = vor.u32 %v526_v59, %v523_v57  ;;  %v1467_v3 = vrot.slane %v1465_v61, 6  ;;  %v1470_v5 = vrot.slane %v1468_v62, 7  ;;  %v1476_v8 = vrot.slane %v1474_v63, 7 }
  0x18   :  { %vm1082_vm7 = vcmask 648704   ;;  %vm1227_vm8 = vcmask 779904   ;;  %vm1558_vm10 = vcmask 1042304   ;;  %vm1821_vm11 = vcmask 130048  }
  0x19   :  { %v528_v6 = vrot.slane %v527_v0, 2  ;;  %v1471_v7 = vor.u32 %v1470_v5, %v1467_v3  ;;  %vm1877_vm12 = vcmask 191488   ;;  %vm1906_vm13 = vcmask 257216  }
  0x1a   :  { %576 = vrot.lane.b32.xlu0 %v477_v55, %s2076_s1  ;;  %1878 = vst.msk [vmem:[%s2523_s7] sm:$0xf] %vm1877_vm12, %v2133_v2  ;;  %1879 = vst.msk [vmem:[%s2523_s7 + $0x4] sm:$0xf] %vm1877_vm12, %v2138_v4 }
  0x1b   :  { %v533_v11 = vsel %vm2195_vm0, %v528_v6, %v532_v1  ;;  %v1472_v12 = vrot.slane %v1471_v7, 2  ;;  %1880 = vst.msk [vmem:[%s2523_s7 + $0x8] sm:$0xf] %vm1877_vm12, %v2151_v9  ;;  %1881 = vst.msk [vmem:[%s2523_s7 + $0xc] sm:$0xf] %vm1877_vm12, %v2156_v10 }
  0x1d   :  { %v1477_v13 = vsel %vm2195_vm0, %v1472_v12, %v1476_v8 }
  0x1e   :  { %584 = vrot.lane.b32.xlu0 %v533_v11, %s2076_s1  ;;  %1540 = vrot.lane.b32.xlu1 %v1477_v13, %s2078_s16  ;;  %v348_v13 = vld [vmem:[#allocation2 + $0x1c] sm:$0x7] }
  0x84   :  { %v2215_v34 = vpop.permute.xlu0 %728 }
  0x88   :  { %v2219_v45 = vpop.permute.xlu0 %736 }
  0x8c   :  { %v577_v57 = vpop.permute.xlu0 %576 }
  0x8d   :  { %601 = vst.msk [vmem:[#allocation3] sm:$0x3] %vm600_vm3, %v577_v57  ;;  %v345_v57 = vld [vmem:[#allocation2 + $0x10] sm:$0x7] }
  0x8e   :  { %753 = vst.msk [vmem:[#allocation3] sm:$0x3] %vm752_vm2, %v2215_v34 }
  0xce   :  { %v2042_v15 = vpop.f32.mrf.mxu0 }
  0xcf   :  { %v144_v16 = vmul.f32 %v2042_v15, %v1921_v14 }
  0xd0   :  { %v120_v21 = vpop.f32.mrf.mxu0 }
  0xd1   :  { %v142_v22 = vmul.f32 %v1921_v14, %v120_v21  ;;  %v155_v24 = vadd.f32 %v1922_v20, %v144_v16 }
  0xd2   :  { %v2043_v23 = vpop.f32.mrf.mxu0 }
  0xd3   :  { %v145_v25 = vmul.f32 %v2043_v23, %v1921_v14  ;;  %v153_v30 = vadd.f32 %v1922_v20, %v142_v22  ;;  %v159_v37 = vmax.f32 %v155_v24, 0.0  ;;  %v351_v22 = vld [vmem:[#allocation2 + $0x20] sm:$0x7]  ;;  %v357_v23 = vld [vmem:[#allocation2 + $0x28] sm:$0x7] }
  0xd4   :  { %v123_v29 = vpop.f32.mrf.mxu0 }
  0xd5   :  { %v156_v31 = vadd.f32 %v1922_v20, %v145_v25  ;;  %v143_v33 = vmul.f32 %v1921_v14, %v123_v29  ;;  %v157_v41 = vmax.f32 %v153_v30, 0.0 }
  0xd7   :  { %v160_v38 = vmax.f32 %v156_v31, 0.0  ;;  %v154_v40 = vadd.f32 %v1922_v20, %v143_v33 }
  0xd9   :  { %v162_v42 = vpack.c.bf16 %v160_v38, %v159_v37  ;;  %v1924_v43 = vpack.c.bf16 %v160_v38, %v160_v38  ;;  %v158_v44 = vmax.f32 %v154_v40, 0.0  ;;  %v585_v37 = vpop.permute.xlu0 %584 }
  0xda   :  { %605 = vst.msk [vmem:[#allocation3 + $0x10] sm:$0x3] %vm600_vm3, %v585_v37 }
  0xdb   :  { %v202_v46 = vrot.slane %v162_v42, %v184_v39  ;;  %v209_v47 = vrot.slane %v1924_v43, %v184_v39  ;;  %v161_v49 = vpack.c.bf16 %v158_v44, %v157_v41  ;;  %v1923_v50 = vpack.c.bf16 %v158_v44, %v158_v44  ;;  %v336_v42 = vld [vmem:[#allocation2 + $0x4] sm:$0x7]  ;;  %757 = vst.msk [vmem:[#allocation3 + $0x10] sm:$0x3] %vm752_vm2, %v2219_v45 }
  0xdd   :  { %v210_v51 = vcombine.high %v202_v46, %v202_v46  ;;  %v211_v52 = vcombine.high %v209_v47, %v209_v47  ;;  %v246_v53 = vrot.slane %v202_v46, %v184_v39  ;;  %v260_v54 = vrot.slane %v209_v47, %v184_v39 }
  0xde   :  { %v185_v55 = vrot.slane %v161_v49, %v184_v39  ;;  %v192_v56 = vrot.slane %v1923_v50, %v184_v39  ;;  %v339_v49 = vld [vmem:[#allocation2 + $0x8] sm:$0x7] }
  0xdf   :  { %v253_v58 = vrot.slane %v210_v51, %v184_v39  ;;  %v267_v59 = vrot.slane %v211_v52, %v184_v39  ;;  %v297_v60 = vshrl.u32 %v246_v53, 16  ;;  %v300_v61 = vshll.u32 %v246_v53, 16  ;;  %v342_v51 = vld [vmem:[#allocation2 + $0xc] sm:$0x7] }
  0xe0   :  { %v311_v62 = vshrl.u32 %v260_v54, 16  ;;  %v314_v63 = vshll.u32 %v260_v54, 16  ;;  %v193_v0 = vcombine.high %v185_v55, %v185_v55  ;;  %v194_v1 = vcombine.high %v192_v56, %v192_v56 }
  0xe1   :  { %v299_v3 = vrot.slane %v297_v60, 7  ;;  %v304_v5 = vshrl.u32 %v253_v58, 16  ;;  %v307_v6 = vshll.u32 %v253_v58, 16  ;;  %v318_v7 = vshrl.u32 %v267_v59, 16 }
  0xe2   :  { %v313_v8 = vrot.slane %v311_v62, 7  ;;  %v321_v11 = vshll.u32 %v267_v59, 16  ;;  %v218_v14 = vrot.slane %v185_v55, %v184_v39  ;;  %v225_v15 = vrot.slane %v193_v0, %v184_v39 }
  0xe3   :  { %v302_v16 = vor.u32 %v300_v61, %v299_v3  ;;  %v306_v17 = vrot.slane %v304_v5, 7  ;;  %v320_v18 = vrot.slane %v318_v7, 7  ;;  %v232_v20 = vrot.slane %v192_v56, %v184_v39 }
  0xe4   :  { %v316_v21 = vor.u32 %v314_v63, %v313_v8  ;;  %v239_v24 = vrot.slane %v194_v1, %v184_v39  ;;  %v269_v25 = vshrl.u32 %v218_v14, 16  ;;  %v276_v30 = vshrl.u32 %v225_v15, 16 }
  0xe5   :  { %v309_v26 = vor.u32 %v307_v6, %v306_v17  ;;  %v323_v28 = vor.u32 %v321_v11, %v320_v18  ;;  %v349_v29 = vsel %vm2224_vm5, %v302_v16, %v348_v13  ;;  %v272_v35 = vshll.u32 %v218_v14, 16 }
  0xe6   :  { %350 = vst [vmem:[#allocation2 + $0x1c] sm:$0x7] %v349_v29  ;;  %v355_v31 = vsel %vm2224_vm5, %v316_v21, %v354_v19  ;;  %v271_v33 = vrot.slane %v269_v25, 7  ;;  %v283_v36 = vshrl.u32 %v232_v20, 16  ;;  %v278_v40 = vrot.slane %v276_v30, 7 }
  0xe7   :  { %v352_v38 = vsel %vm2224_vm5, %v309_v26, %v351_v22  ;;  %356 = vst [vmem:[#allocation2 + $0x24] sm:$0x7] %v355_v31  ;;  %v358_v39 = vsel %vm2224_vm5, %v323_v28, %v357_v23  ;;  %v279_v41 = vshll.u32 %v225_v15, 16  ;;  %v286_v46 = vshll.u32 %v232_v20, 16 }
  0xe8   :  { %353 = vst [vmem:[#allocation2 + $0x20] sm:$0x7] %v352_v38  ;;  %359 = vst [vmem:[#allocation2 + $0x28] sm:$0x7] %v358_v39  ;;  %v274_v43 = vor.u32 %v272_v35, %v271_v33  ;;  %v285_v44 = vrot.slane %v283_v36, 7  ;;  %v290_v47 = vshrl.u32 %v239_v24, 16 }
  0xe9   :  { %v281_v50 = vor.u32 %v279_v41, %v278_v40  ;;  %v293_v54 = vshll.u32 %v239_v24, 16 }
  0xea   :  { %v288_v52 = vor.u32 %v286_v46, %v285_v44  ;;  %v292_v53 = vrot.slane %v290_v47, 7  ;;  %v337_v55 = vsel %vm2224_vm5, %v274_v43, %v336_v42 }
  0xeb   :  { %338 = vst [vmem:[#allocation2 + $0x4] sm:$0x7] %v337_v55  ;;  %v340_v56 = vsel %vm2224_vm5, %v281_v50, %v339_v49 }
  0xec   :  { %v295_v58 = vor.u32 %v293_v54, %v292_v53  ;;  %341 = vst [vmem:[#allocation2 + $0x8] sm:$0x7] %v340_v56  ;;  %v343_v59 = vsel %vm2224_vm5, %v288_v52, %v342_v51 }
  0xed   :  { %344 = vst [vmem:[#allocation2 + $0xc] sm:$0x7] %v343_v59  ;;  %v1953_v60 = vld.sshfl [vmem:[#allocation2 + $0x1c] sm:$0x3 pattern:$0x76325410] }
  0xee   :  { %v365_v61 = vld [vmem:[#allocation2 + $0x1c] sm:$0x3]  ;;  %v346_v62 = vsel %vm2224_vm5, %v295_v58, %v345_v57  ;;  %v1986_v45 = vld.sshfl [vmem:[#allocation2 + $0x24] sm:$0x3 pattern:$0x76325410]  ;;  %841 = vrot.lane.b32.xlu0 %v1953_v60, %s2080_s4 }
  0xef   :  { %374 = vst.msk [vmem:[#allocation3 + $0x14] sm:$0x3] %vm368_vm1, %v365_v61  ;;  %v367_v34 = vld [vmem:[#allocation2 + $0x24] sm:$0x3]  ;;  %347 = vst [vmem:[#allocation2 + $0x10] sm:$0x7] %v346_v62  ;;  %1319 = vrot.lane.b32.xlu1 %v1986_v45, %s2077_s2 }
  0xf0   :  { %376 = vst.msk [vmem:[#allocation3 + $0x1c] sm:$0x3] %vm368_vm1, %v367_v34  ;;  %v366_v63 = vld [vmem:[#allocation2 + $0x20] sm:$0x3] }
  0xf1   :  { %375 = vst.msk [vmem:[#allocation3 + $0x18] sm:$0x3] %vm368_vm1, %v366_v63  ;;  %v1954_v6 = vld.sshfl [vmem:[#allocation2 + $0x20] sm:$0x3 pattern:$0x76325410] }
  0xf2   :  { %845 = vrot.lane.b32.xlu0 %v1986_v45, %s2080_s4  ;;  %v361_v0 = vld [vmem:[#allocation2 + $0x4] sm:$0x3]  ;;  %v1956_v12 = vld.sshfl [vmem:[#allocation2 + $0x28] sm:$0x3 pattern:$0x76325410] }
  0xf3   :  { %370 = vst.msk [vmem:[#allocation3 + $0x4] sm:$0x3] %vm368_vm1, %v361_v0  ;;  %v1949_v3 = vld.sshfl [vmem:[#allocation2 + $0x4] sm:$0x3 pattern:$0x76325410] }
  0xf4   :  { %v1982_v1 = vld.sshfl [vmem:[#allocation2 + $0xc] sm:$0x3 pattern:$0x76325410]  ;;  %v362_v7 = vld [vmem:[#allocation2 + $0x8] sm:$0x3] }
  0xf5   :  { %1311 = vrot.lane.b32.xlu1 %v1982_v1, %s2077_s2  ;;  %v363_v5 = vld [vmem:[#allocation2 + $0xc] sm:$0x3]  ;;  %371 = vst.msk [vmem:[#allocation3 + $0x8] sm:$0x3] %vm368_vm1, %v362_v7 }
  0xf6   :  { %833 = vrot.lane.b32.xlu0 %v1949_v3, %s2080_s4  ;;  %372 = vst.msk [vmem:[#allocation3 + $0xc] sm:$0x3] %vm368_vm1, %v363_v5  ;;  %v1936_v8 = vld.sshfl [vmem:[#allocation2 + $0xc] sm:$0x12 pattern:$0x76325410] }
  0xf7   :  { %v656_v11 = vcombine.high %v1936_v8, %v1936_v8  ;;  %v1944_v13 = vrot.slane %v1936_v8, 9  ;;  %v1966_v15 = vld.sshfl [vmem:[#allocation2 + $0x8] sm:$0x12 pattern:$0x76325410] }
  0xf8   :  { %v1122_v16 = vcombine.high %v1966_v15, %v1966_v15  ;;  %v1968_v17 = vld.sshfl [vmem:[#allocation2 + $0x10] sm:$0x12 pattern:$0x76325410]  ;;  %v1974_v21 = vrot.slane %v1966_v15, 9 }
  0xf9   :  { %843 = vrot.lane.b32.xlu1 %v1954_v6, %s2080_s4  ;;  %v710_v14 = vrot.slane %v656_v11, 7  ;;  %v1938_v18 = vld.sshfl [vmem:[#allocation2 + $0x1c] sm:$0x12 pattern:$0x76325410]  ;;  %v1138_v20 = vcombine.high %v1968_v17, %v1968_v17  ;;  %v1976_v23 = vrot.slane %v1968_v17, 9 }
  0xfa   :  { %837 = vrot.lane.b32.xlu0 %v1982_v1, %s2080_s4  ;;  %v1177_v22 = vrot.slane %v1122_v16, 7  ;;  %v1950_v25 = vld.sshfl [vmem:[#allocation2 + $0x8] sm:$0x3 pattern:$0x76325410]  ;;  %v672_v26 = vcombine.high %v1938_v18, %v1938_v18  ;;  %v1946_v37 = vrot.slane %v1938_v18, 9 }
  0xfb   :  { %v2265_v19 = vsel %vm2185_vm9, %v1944_v13, %v710_v14  ;;  %v1185_v24 = vrot.slane %v1138_v20, 7  ;;  %v1940_v29 = vld.sshfl [vmem:[#allocation2 + $0x24] sm:$0x12 pattern:$0x76325410] }
  0xfc   :  { %1688 = vst.msk [vmem:[#allocation3 + $0x6] sm:$0x3] %vm368_vm1, %v2265_v19  ;;  %v2272_v28 = vsel %vm2185_vm9, %v1974_v21, %v1177_v22  ;;  %v1952_v31 = vld.sshfl [vmem:[#allocation2 + $0x10] sm:$0x3 pattern:$0x76325410]  ;;  %v688_v35 = vcombine.high %v1940_v29, %v1940_v29 }
  0xfd   :  { %847 = vrot.lane.b32.xlu1 %v1956_v12, %s2080_s4  ;;  %v2277_v30 = vsel %vm2185_vm9, %v1976_v23, %v1185_v24  ;;  %1687 = vst.msk [vmem:[#allocation3 + $0x2] sm:$0x3] %vm368_vm1, %v2272_v28  ;;  %v718_v33 = vrot.slane %v672_v26, 7  ;;  %v1948_v41 = vrot.slane %v1940_v29, 9 }
  0xfe   :  { %1317 = vrot.lane.b32.xlu0 %v1954_v6, %s2077_s2  ;;  %1689 = vst.msk [vmem:[#allocation3 + $0xa] sm:$0x3] %vm368_vm1, %v2277_v30  ;;  %v1934_v36 = vld.sshfl [vmem:[#allocation2 + $0x4] sm:$0x12 pattern:$0x76325410] }
  0xff   :  { %v719_v38 = vsel %vm2185_vm9, %v1946_v37, %v718_v33  ;;  %v726_v39 = vrot.slane %v688_v35, 7  ;;  %v640_v40 = vcombine.high %v1934_v36, %v1934_v36  ;;  %v1970_v44 = vld.sshfl [vmem:[#allocation2 + $0x20] sm:$0x12 pattern:$0x76325410]  ;;  %v1942_v46 = vrot.slane %v1934_v36, 9 }
 0x100   :  { %v1972_v47 = vld.sshfl [vmem:[#allocation2 + $0x28] sm:$0x12 pattern:$0x76325410]  ;;  %v1154_v51 = vcombine.high %v1970_v44, %v1970_v44  ;;  %v1978_v1 = vrot.slane %v1970_v44, 9 }
 0x101   :  { %835 = vrot.lane.b32.xlu1 %v1950_v25, %s2080_s4  ;;  %v727_v42 = vsel %vm2185_vm9, %v1948_v41, %v726_v39  ;;  %v702_v43 = vrot.slane %v640_v40, 7  ;;  %v2001_v49 = vld.sshfl [vmem:[#allocation2 + $0x20] sm:$0x12 pattern:$0x76325410]  ;;  %v1170_v53 = vcombine.high %v1972_v47, %v1972_v47  ;;  %v2011_v63 = vrot.slane %v1972_v47, 9 }
 0x102   :  { %1321 = vrot.lane.b32.xlu0 %v1956_v12, %s2077_s2  ;;  %v1930_v52 = vld.sshfl [vmem:[#allocation2 + $0x1c] sm:$0x13 pattern:$0x76325410]  ;;  %v1622_v55 = vcombine.high %v2001_v49, %v2001_v49  ;;  %v2009_v57 = vrot.slane %v2001_v49, 9  ;;  %v1193_v59 = vrot.slane %v1154_v51, 7 }
 0x103   :  { %v703_v50 = vsel %vm2185_vm9, %v1942_v46, %v702_v43  ;;  %v2002_v54 = vld.sshfl [vmem:[#allocation2 + $0x24] sm:$0x12 pattern:$0x76325410]  ;;  %v535_v60 = vshrl.u32 %v1930_v52, 16  ;;  %v538_v45 = vshll.u32 %v1930_v52, 16  ;;  %v440_v16 = vcombine.high %v1930_v52, %v1930_v52 }
 0x104   :  { %v1630_v56 = vcombine.high %v2002_v54, %v2002_v54  ;;  %v1665_v58 = vrot.slane %v1622_v55, 7  ;;  %v2010_v61 = vrot.slane %v2002_v54, 9  ;;  %v1673_v0 = vrot.slane %v1170_v53, 7 }
 0x105   :  { %839 = vrot.lane.b32.xlu1 %v1952_v31, %s2080_s4  ;;  %v1932_v3 = vld.sshfl [vmem:[#allocation2 + $0x24] sm:$0x13 pattern:$0x76325410]  ;;  %v1194_v8 = vsel %vm2185_vm9, %v1978_v1, %v1193_v59  ;;  %v537_v12 = vrot.slane %v535_v60, 6  ;;  %v540_v13 = vrot.slane %v538_v45, 7 }
 0x106   :  { %1309 = vrot.lane.b32.xlu0 %v1950_v25, %s2077_s2  ;;  %v1669_v62 = vrot.slane %v1630_v56, 7  ;;  %v1666_v34 = vsel %vm2185_vm9, %v2009_v57, %v1665_v58  ;;  %v1928_v6 = vld.sshfl [vmem:[#allocation2 + $0xc] sm:$0x13 pattern:$0x76325410]  ;;  %v1674_v7 = vsel %vm2185_vm9, %v2011_v63, %v1673_v0  ;;  %v563_v14 = vshrl.u32 %v1932_v3, 16 }
 0x107   :  { %1691 = vst.msk [vmem:[#allocation3 + $0x12] sm:$0x3] %vm368_vm1, %v1666_v34  ;;  %v1926_v11 = vld.sshfl [vmem:[#allocation2 + $0x4] sm:$0x13 pattern:$0x76325410]  ;;  %v541_v22 = vor.u32 %v540_v13, %v537_v12  ;;  %v456_v23 = vcombine.high %v1932_v3, %v1932_v3  ;;  %v424_v40 = vcombine.high %v1928_v6, %v1928_v6 }
 0x108   :  { %v1670_v5 = vsel %vm2185_vm9, %v2010_v61, %v1669_v62  ;;  %1693 = vst.msk [vmem:[#allocation3 + $0x1a] sm:$0x3] %vm368_vm1, %v1674_v7  ;;  %v566_v15 = vshll.u32 %v1932_v3, 16  ;;  %v507_v17 = vshrl.u32 %v1928_v6, 16  ;;  %v510_v18 = vshll.u32 %v1928_v6, 16  ;;  %v2058_v0 = vld [vmem:[%s2522_s6 + $0x30] sm:$0xff]  }
 0x109   :  { %738 = vrot.lane.b32.xlu1 %v719_v38, %s2075_s0  ;;  %1692 = vst.msk [vmem:[#allocation3 + $0x16] sm:$0x3] %vm368_vm1, %v1670_v5  ;;  %v479_v20 = vshrl.u32 %v1926_v11, 16  ;;  %v482_v21 = vshll.u32 %v1926_v11, 16  ;;  %v565_v24 = vrot.slane %v563_v14, 6  ;;  %v544_v26 = vshll.u32 %v440_v16, 16 }
 0x10a   :  { %1313 = vrot.lane.b32.xlu0 %v1952_v31, %s2077_s2  ;;  %v568_v25 = vrot.slane %v566_v15, 7  ;;  %v509_v29 = vrot.slane %v507_v17, 6  ;;  %v512_v31 = vrot.slane %v510_v18, 7  ;;  %v408_v33 = vcombine.high %v1926_v11, %v1926_v11  ;;  %v2059_v15 = vld [vmem:[%s2522_s6 + $0x28] sm:$0xff]  }
 0x10b   :  { %v481_v35 = vrot.slane %v479_v20, 6  ;;  %v484_v36 = vrot.slane %v482_v21, 7  ;;  %v542_v37 = vrot.slane %v541_v22, 2  ;;  %v572_v39 = vshll.u32 %v456_v23, 16 }
 0x10c   :  { %v513_v41 = vor.u32 %v512_v31, %v509_v29  ;;  %v546_v44 = vrot.slane %v544_v26, 7  ;;  %v1964_v49 = vld.sshfl [vmem:[#allocation2 + $0x28] sm:$0x13 pattern:$0x76325410]  ;;  %v516_v54 = vshll.u32 %v424_v40, 16 }
 0x10d   :  { %742 = vrot.lane.b32.xlu1 %v727_v42, %s2075_s0  ;;  %v485_v46 = vor.u32 %v484_v36, %v481_v35  ;;  %v574_v52 = vrot.slane %v572_v39, 7  ;;  %v1989_v53 = vld.sshfl [vmem:[#allocation2 + $0x8] sm:$0x13 pattern:$0x76325410]  ;;  %v1045_v59 = vshrl.u32 %v1964_v49, 16  ;;  %v945_v17 = vcombine.high %v1964_v49, %v1964_v49 }
 0x10e   :  { %1211 = vrot.lane.b32.xlu0 %v719_v38, %s2081_s5  ;;  %v569_v38 = vor.u32 %v568_v25, %v565_v24  ;;  %v1048_v60 = vshll.u32 %v1964_v49, 16  ;;  %v1423_v61 = vshrl.u32 %v1989_v53, 16  ;;  %v1991_v45 = vld.sshfl [vmem:[#allocation2 + $0x10] sm:$0x13 pattern:$0x76325410]  ;;  %v1365_v18 = vcombine.high %v1989_v53, %v1989_v53 }
 0x10f   :  { %v486_v57 = vrot.slane %v485_v46, 2  ;;  %v1426_v63 = vshll.u32 %v1989_v53, 16  ;;  %v518_v1 = vrot.slane %v516_v54, 7  ;;  %v1451_v13 = vshrl.u32 %v1991_v45, 16  ;;  %v2060_v36 = vld [vmem:[%s2522_s6 + $0x20] sm:$0xff]   ;;  %v2062_v49 = vld [vmem:[%s2522_s6 + $0x10] sm:$0xff]  }
 0x110   :  { %v570_v51 = vrot.slane %v569_v38, 2  ;;  %v1425_v11 = vrot.slane %v1423_v61, 6  ;;  %v1454_v14 = vshll.u32 %v1991_v45, 16  ;;  %v1054_v26 = vshll.u32 %v945_v17, 16  ;;  %v2063_v53 = vld [vmem:[%s2522_s6 + $0x8] sm:$0xff]  }
 0x111   :  { %730 = vrot.lane.b32.xlu1 %v703_v50, %s2075_s0  ;;  %v1428_v12 = vrot.slane %v1426_v63, 7  ;;  %v1453_v23 = vrot.slane %v1451_v13, 6  ;;  %v1432_v29 = vshll.u32 %v1365_v18, 16  ;;  %v1381_v31 = vcombine.high %v1991_v45, %v1991_v45  ;;  %v2065_v45 = vld [vmem:[%s2522_s6 + $0x40] sm:$0xff]  }
 0x112   :  { %1215 = vrot.lane.b32.xlu0 %v727_v42, %s2081_s5  ;;  %v488_v42 = vshll.u32 %v408_v33, 16  ;;  %v2332_v62 = vsel %vm2195_vm0, %v570_v51, %v574_v52  ;;  %v1456_v24 = vrot.slane %v1454_v14, 7  ;;  %v1056_v38 = vrot.slane %v1054_v26, 7 }
 0x113   :  { %v1429_v22 = vor.u32 %v1428_v12, %v1425_v11  ;;  %v1434_v39 = vrot.slane %v1432_v29, 7  ;;  %v1460_v40 = vshll.u32 %v1381_v31, 16  ;;  %v2409_v11 = vpop.permute.xlu1 %1315 }
 0x114   :  { %v490_v55 = vrot.slane %v488_v42, 7 }
 0x115   :  { %734 = vrot.lane.b32.xlu1 %v2265_v19, %s2075_s0  ;;  %v1462_v46 = vrot.slane %v1460_v40, 7 }
 0x116   :  { %1203 = vrot.lane.b32.xlu0 %v703_v50, %s2081_s5  ;;  %v547_v50 = vsel %vm2195_vm0, %v542_v37, %v546_v44  ;;  %v491_v34 = vsel %vm2195_vm0, %v486_v57, %v490_v55  ;;  %v1457_v37 = vor.u32 %v1456_v24, %v1453_v23  ;;  %v2000_v57 = vld.sshfl [vmem:[#allocation2 + $0x14] sm:$0x12 pattern:$0x76325410] }
 0x117   :  { %v2411_v12 = vpop.permute.xlu1 %1540 }
 0x118   :  { %v1458_v44 = vrot.slane %v1457_v37, 2 }
 0x119   :  { %1213 = vrot.lane.b32.xlu1 %v1194_v8, %s2081_s5 }
 0x11a   :  { %1207 = vrot.lane.b32.xlu0 %v2265_v19, %s2081_s5  ;;  %v1962_v19 = vld.sshfl [vmem:[#allocation2 + $0x20] sm:$0x13 pattern:$0x76325410] }
 0x11b   :  { %v1017_v43 = vshrl.u32 %v1962_v19, 16  ;;  %v1020_v47 = vshll.u32 %v1962_v19, 16  ;;  %v929_v3 = vcombine.high %v1962_v19, %v1962_v19  ;;  %v1430_v19 = vrot.slane %v1429_v22, 2 }
 0x11d   :  { %1217 = vrot.lane.b32.xlu1 %v1674_v7, %s2081_s5  ;;  %v1019_v56 = vrot.slane %v1017_v43, 6  ;;  %v1022_v58 = vrot.slane %v1020_v47, 7  ;;  %v1047_v7 = vrot.slane %v1045_v59, 6  ;;  %v1026_v16 = vshll.u32 %v929_v3, 16 }
 0x11e   :  { %740 = vrot.lane.b32.xlu0 %v1194_v8, %s2075_s0  ;;  %v1050_v8 = vrot.slane %v1048_v60, 7  ;;  %v1435_v43 = vsel %vm2195_vm0, %v1430_v19, %v1434_v39  ;;  %v1996_v47 = vld.sshfl [vmem:[#allocation2 + $0x2c] sm:$0x13 pattern:$0x76325410]  ;;  %v2008_v59 = vrot.slane %v2000_v57, 9 }
 0x11f   :  { %v1023_v6 = vor.u32 %v1022_v58, %v1019_v56  ;;  %v1028_v25 = vrot.slane %v1026_v16, 7  ;;  %v1521_v51 = vshrl.u32 %v1996_v47, 16  ;;  %v1524_v52 = vshll.u32 %v1996_v47, 16  ;;  %v2064_v56 = vld [vmem:[%s2522_s6] sm:$0xff]  }
 0x120   :  { %v1051_v21 = vor.u32 %v1050_v8, %v1047_v7  ;;  %v1614_v58 = vcombine.high %v2000_v57, %v2000_v57  ;;  %v1988_v60 = vld.sshfl [vmem:[#allocation2 + $0x2c] sm:$0x3 pattern:$0x76325410] }
 0x121   :  { %1205 = vrot.lane.b32.xlu1 %v2272_v28, %s2081_s5  ;;  %v1024_v20 = vrot.slane %v1023_v6, 2  ;;  %v1523_v54 = vrot.slane %v1521_v51, 6  ;;  %v1526_v55 = vrot.slane %v1524_v52, 7 }
 0x122   :  { %732 = vrot.lane.b32.xlu0 %v2272_v28, %s2075_s0  ;;  %v514_v28 = vrot.slane %v513_v41, 2  ;;  %v1052_v35 = vrot.slane %v1051_v21, 2  ;;  %v2061_v41 = vld [vmem:[%s2522_s6 + $0x18] sm:$0xff]  }
 0x123   :  { %v1029_v33 = vsel %vm2195_vm0, %v1024_v20, %v1028_v25  ;;  %v1527_v61 = vor.u32 %v1526_v55, %v1523_v54 }
 0x124   :  { %v519_v5 = vsel %vm2195_vm0, %v514_v28, %v518_v1  ;;  %v1057_v42 = vsel %vm2195_vm0, %v1052_v35, %v1056_v38  ;;  %v1421_v28 = vcombine.high %v1996_v47, %v1996_v47 }
 0x125   :  { %1209 = vrot.lane.b32.xlu1 %v2277_v30, %s2081_s5  ;;  %v2057_v30 = vld [vmem:[%s2522_s6 + $0x38] sm:$0xff]   ;;  %v1528_v1 = vrot.slane %v1527_v61, 2 }
 0x126   :  { %1066 = vrot.lane.b32.xlu0 %v547_v50, %s2082_s21  ;;  %1829 = vmatpush1.bf16.msra.mxu1 %v2057_v30  ;;  %v1530_v30 = vshll.u32 %v1421_v28, 16 }
 0x127   :  { %1830 = vmatprep.subr.bf16.mxu1 %v2074_v27 }
 0x128   :  { %v1532_v3 = vrot.slane %v1530_v30, 7 }
 0x129   :  { %586 = vrot.lane.b32.xlu1 %v547_v50, %s2076_s1  ;;  %v1463_v50 = vsel %vm2195_vm0, %v1458_v44, %v1462_v46 }
 0x12a   :  { %1070 = vrot.lane.b32.xlu0 %v2332_v62, %s2082_s21  ;;  %1831 = vmatpush1.bf16.msra.mxu1 %v2058_v0  ;;  %v2004_v0 = vld.sshfl [vmem:[#allocation2 + $0x2c] sm:$0x12 pattern:$0x76325410] }
 0x12b   :  { %1832 = vmatprep.subr.bf16.mxu1 %v2074_v27  ;;  %v2012_v6 = vrot.slane %v2004_v0, 9 }
 0x12d   :  { %590 = vrot.lane.b32.xlu1 %v2332_v62, %s2076_s1 }
 0x12e   :  { %578 = vrot.lane.b32.xlu0 %v491_v34, %s2076_s1  ;;  %1833 = vmatpush1.bf16.msra.mxu1 %v2059_v15 }
 0x12f   :  { %1834 = vmatprep.subr.bf16.mxu1 %v2074_v27 }
 0x131   :  { %582 = vrot.lane.b32.xlu1 %v519_v5, %s2076_s1 }
 0x132   :  { %1058 = vrot.lane.b32.xlu0 %v491_v34, %s2082_s21  ;;  %1835 = vmatpush1.bf16.msra.mxu1 %v2060_v36  ;;  %v1661_v34 = vrot.slane %v1614_v58, 7 }
 0x133   :  { %1836 = vmatprep.subr.bf16.mxu1 %v2074_v27 }
 0x134   :  { %v1662_v63 = vsel %vm2185_vm9, %v2008_v59, %v1661_v34 }
 0x135   :  { %1536 = vrot.lane.b32.xlu1 %v519_v5, %s2078_s16  ;;  %1690 = vst.msk [vmem:[#allocation3 + $0xe] sm:$0x3] %vm368_vm1, %v1662_v63 }
 0x136   :  { %1062 = vrot.lane.b32.xlu0 %v519_v5, %s2082_s21  ;;  %1837 = vmatpush1.bf16.msra.mxu1 %v2061_v41  ;;  %v1646_v5 = vcombine.high %v2004_v0, %v2004_v0 }
 0x137   :  { %1838 = vmatprep.subr.bf16.mxu1 %v2074_v27 }
 0x138   :  { %v1677_v7 = vrot.slane %v1646_v5, 7 }
 0x139   :  { %1068 = vrot.lane.b32.xlu1 %v1029_v33, %s2082_s21 }
 0x13a   :  { %588 = vrot.lane.b32.xlu0 %v1029_v33, %s2076_s1  ;;  %1839 = vmatpush1.bf16.msra.mxu1 %v2062_v49  ;;  %v1678_v8 = vsel %vm2185_vm9, %v2012_v6, %v1677_v7  ;;  %vm1333_vm9 = vcmask 911104  }
 0x13b   :  { %1840 = vmatprep.subr.bf16.mxu1 %v2074_v27  ;;  %1694 = vst.msk [vmem:[#allocation3 + $0x1e] sm:$0x3] %vm368_vm1, %v1678_v8 }
 0x13d   :  { %1072 = vrot.lane.b32.xlu1 %v1057_v42, %s2082_s21 }
 0x13e   :  { %1534 = vrot.lane.b32.xlu0 %v1435_v43, %s2078_s16  ;;  %1841 = vmatpush1.bf16.msra.mxu1 %v2063_v53 }
 0x13f   :  { %1842 = vmatprep.subr.bf16.mxu1 %v2074_v27 }
 0x141   :  { %580 = vrot.lane.b32.xlu1 %v1435_v43, %s2076_s1 }
 0x142   :  { %1538 = vrot.lane.b32.xlu0 %v1463_v50, %s2078_s16  ;;  %1843 = vmatpush1.bf16.msra.mxu1 %v2064_v56 }
 0x143   :  { %1858 = vmatprep.subr.bf16.mxu1 %v2074_v27  ;;  %v1533_v27 = vsel %vm2195_vm0, %v1528_v1, %v1532_v3 }
 0x145   :  { %1060 = vrot.lane.b32.xlu1 %v1435_v43, %s2082_s21 }
 0x146   :  { %1542 = vrot.lane.b32.xlu0 %v1029_v33, %s2078_s16  ;;  %1859 = vmatpush2.bf16.msra.mxu1 %v2065_v45 }
 0x149   :  { %1064 = vrot.lane.b32.xlu1 %v1463_v50, %s2082_s21 }
 0x14a   :  { %1546 = vrot.lane.b32.xlu0 %v1057_v42, %s2078_s16 }
 0x14d   :  { %1323 = vrot.lane.b32.xlu1 %v1988_v60, %s2077_s2 }
 0x151   :  { %1544 = vrot.lane.b32.xlu1 %v2332_v62, %s2078_s16 }
 0x155   :  { %1548 = vrot.lane.b32.xlu1 %v1533_v27, %s2078_s16 }
 0x160   :  { %v842_v13 = vpop.permute.xlu0 %841 }
 0x161   :  { %v2413_v14 = vpop.permute.xlu1 %1319  ;;  %862 = vst.msk [vmem:[#allocation3 + $0x10] sm:$0x3] %vm857_vm6, %v842_v13 }
 0x164   :  { %v2416_v62 = vpop.permute.xlu0 %845 }
 0x167   :  { %v2418_v48 = vpop.permute.xlu1 %1311 }
 0x168   :  { %v834_v32 = vpop.permute.xlu0 %833 }
 0x169   :  { %858 = vst.msk [vmem:[#allocation3] sm:$0x3] %vm857_vm6, %v834_v32 }
 0x16b   :  { %v844_v15 = vpop.permute.xlu1 %843 }
 0x16c   :  { %v2421_v16 = vpop.permute.xlu0 %837 }
 0x16f   :  { %v848_v17 = vpop.permute.xlu1 %847 }
 0x170   :  { %v1318_v18 = vpop.permute.xlu0 %1317 }
 0x173   :  { %v836_v20 = vpop.permute.xlu1 %835 }
 0x174   :  { %v2423_v21 = vpop.permute.xlu0 %1321 }
 0x177   :  { %v840_v22 = vpop.permute.xlu1 %839 }
 0x178   :  { %v1310_v23 = vpop.permute.xlu0 %1309 }
 0x17b   :  { %v739_v24 = vpop.permute.xlu1 %738 }
 0x17c   :  { %v2425_v25 = vpop.permute.xlu0 %1313 }
 0x17f   :  { %v743_v26 = vpop.permute.xlu1 %742 }
 0x180   :  { %v1212_v29 = vpop.permute.xlu0 %1211 }
 0x183   :  { %v731_v31 = vpop.permute.xlu1 %730 }
 0x184   :  { %v1216_v33 = vpop.permute.xlu0 %1215 }
 0x187   :  { %v735_v35 = vpop.permute.xlu1 %734 }
 0x188   :  { %v1204_v36 = vpop.permute.xlu0 %1203 }
 0x18b   :  { %v1214_v19 = vpop.permute.xlu1 %1213 }
 0x18c   :  { %v1208_v37 = vpop.permute.xlu0 %1207 }
 0x18f   :  { %v1218_v38 = vpop.permute.xlu1 %1217 }
 0x190   :  { %v741_v39 = vpop.permute.xlu0 %740 }
 0x193   :  { %v1206_v40 = vpop.permute.xlu1 %1205 }
 0x194   :  { %v733_v41 = vpop.permute.xlu0 %732 }
 0x197   :  { %v2427_v42 = vpop.permute.xlu1 %1209 }
 0x198   :  { %v1067_v43 = vpop.permute.xlu0 %1066 }
 0x199   :  { %1087 = vst.msk [vmem:[#allocation3 + $0x10] sm:$0x3] %vm1082_vm7, %v1067_v43 }
 0x19a   :  { %1232 = vst.msk [vmem:[#allocation3 + $0x10] sm:$0x3] %vm1227_vm8, %v1212_v29 }
 0x19b   :  { %v587_v44 = vpop.permute.xlu1 %586  ;;  %1338 = vst.msk [vmem:[#allocation3 + $0x10] sm:$0x3] %vm1333_vm9, %v1318_v18 }
 0x19c   :  { %606 = vst.msk [vmem:[#allocation3 + $0x14] sm:$0x3] %vm600_vm3, %v587_v44  ;;  %v1071_v46 = vpop.permute.xlu0 %1070 }
 0x19d   :  { %758 = vst.msk [vmem:[#allocation3 + $0x14] sm:$0x3] %vm752_vm2, %v739_v24 }
 0x19e   :  { %863 = vst.msk [vmem:[#allocation3 + $0x14] sm:$0x3] %vm857_vm6, %v844_v15 }
 0x19f   :  { %v591_v47 = vpop.permute.xlu1 %590 }
 0x1a0   :  { %608 = vst.msk [vmem:[#allocation3 + $0x1c] sm:$0x3] %vm600_vm3, %v591_v47  ;;  %v579_v49 = vpop.permute.xlu0 %578 }
 0x1a1   :  { %760 = vst.msk [vmem:[#allocation3 + $0x1c] sm:$0x3] %vm752_vm2, %v743_v26 }
 0x1a2   :  { %602 = vst.msk [vmem:[#allocation3 + $0x4] sm:$0x3] %vm600_vm3, %v579_v49 }
 0x1a3   :  { %865 = vst.msk [vmem:[#allocation3 + $0x1c] sm:$0x3] %vm857_vm6, %v848_v17  ;;  %v583_v50 = vpop.permute.xlu1 %582 }
 0x1a4   :  { %754 = vst.msk [vmem:[#allocation3 + $0x4] sm:$0x3] %vm752_vm2, %v731_v31  ;;  %v1059_v51 = vpop.permute.xlu0 %1058 }
 0x1a5   :  { %859 = vst.msk [vmem:[#allocation3 + $0x4] sm:$0x3] %vm857_vm6, %v836_v20 }
 0x1a6   :  { %604 = vst.msk [vmem:[#allocation3 + $0xc] sm:$0x3] %vm600_vm3, %v583_v50 }
 0x1a7   :  { %756 = vst.msk [vmem:[#allocation3 + $0xc] sm:$0x3] %vm752_vm2, %v735_v35  ;;  %v1537_v52 = vpop.permute.xlu1 %1536 }
 0x1a8   :  { %1083 = vst.msk [vmem:[#allocation3] sm:$0x3] %vm1082_vm7, %v1059_v51  ;;  %v1063_v53 = vpop.permute.xlu0 %1062 }
 0x1a9   :  { %861 = vst.msk [vmem:[#allocation3 + $0xc] sm:$0x3] %vm857_vm6, %v840_v22 }
 0x1aa   :  { %1228 = vst.msk [vmem:[#allocation3] sm:$0x3] %vm1227_vm8, %v1204_v36 }
 0x1ab   :  { %1334 = vst.msk [vmem:[#allocation3] sm:$0x3] %vm1333_vm9, %v1310_v23  ;;  %v1069_v28 = vpop.permute.xlu1 %1068 }
 0x1ac   :  { %1088 = vst.msk [vmem:[#allocation3 + $0x14] sm:$0x3] %vm1082_vm7, %v1069_v28  ;;  %v589_v54 = vpop.permute.xlu0 %588 }
 0x1ad   :  { %1233 = vst.msk [vmem:[#allocation3 + $0x14] sm:$0x3] %vm1227_vm8, %v1214_v19 }
 0x1ae   :  { %607 = vst.msk [vmem:[#allocation3 + $0x18] sm:$0x3] %vm600_vm3, %v589_v54 }
 0x1af   :  { %759 = vst.msk [vmem:[#allocation3 + $0x18] sm:$0x3] %vm752_vm2, %v741_v39  ;;  %v1073_v55 = vpop.permute.xlu1 %1072 }
 0x1b0   :  { %1339 = vst.msk [vmem:[#allocation3 + $0x14] sm:$0x3] %vm1333_vm9, %v2413_v14  ;;  %v1535_v56 = vpop.permute.xlu0 %1534 }
 0x1b1   :  { %864 = vst.msk [vmem:[#allocation3 + $0x18] sm:$0x3] %vm857_vm6, %v2416_v62 }
 0x1b2   :  { %1090 = vst.msk [vmem:[#allocation3 + $0x1c] sm:$0x3] %vm1082_vm7, %v1073_v55  ;;  %1089 = vst.msk [vmem:[#allocation3 + $0x18] sm:$0x3] %vm1082_vm7, %v1071_v46 }
 0x1b3   :  { %1235 = vst.msk [vmem:[#allocation3 + $0x1c] sm:$0x3] %vm1227_vm8, %v1218_v38  ;;  %1234 = vst.msk [vmem:[#allocation3 + $0x18] sm:$0x3] %vm1227_vm8, %v1216_v33  ;;  %v581_v57 = vpop.permute.xlu1 %580 }
 0x1b4   :  { %1559 = vst.msk [vmem:[#allocation3] sm:$0x3] %vm1558_vm10, %v1535_v56  ;;  %v1539_v58 = vpop.permute.xlu0 %1538 }
 0x1b5   :  { %1340 = vst.msk [vmem:[#allocation3 + $0x18] sm:$0x3] %vm1333_vm9, %v2423_v21 }
 0x1b6   :  { %603 = vst.msk [vmem:[#allocation3 + $0x8] sm:$0x3] %vm600_vm3, %v581_v57 }
 0x1b7   :  { %755 = vst.msk [vmem:[#allocation3 + $0x8] sm:$0x3] %vm752_vm2, %v733_v41  ;;  %v1061_v59 = vpop.permute.xlu1 %1060 }
 0x1b8   :  { %860 = vst.msk [vmem:[#allocation3 + $0x8] sm:$0x3] %vm857_vm6, %v2421_v16  ;;  %v1543_v60 = vpop.permute.xlu0 %1542 }
 0x1b9   :  { %1085 = vst.msk [vmem:[#allocation3 + $0x8] sm:$0x3] %vm1082_vm7, %v1063_v53  ;;  %1084 = vst.msk [vmem:[#allocation3 + $0x4] sm:$0x3] %vm1082_vm7, %v1061_v59 }
 0x1ba   :  { %1230 = vst.msk [vmem:[#allocation3 + $0x8] sm:$0x3] %vm1227_vm8, %v1208_v37  ;;  %1229 = vst.msk [vmem:[#allocation3 + $0x4] sm:$0x3] %vm1227_vm8, %v1206_v40 }
 0x1bb   :  { %1336 = vst.msk [vmem:[#allocation3 + $0x8] sm:$0x3] %vm1333_vm9, %v2425_v25  ;;  %1335 = vst.msk [vmem:[#allocation3 + $0x4] sm:$0x3] %vm1333_vm9, %v2418_v48  ;;  %v1065_v61 = vpop.permute.xlu1 %1064 }
 0x1bc   :  { %1563 = vst.msk [vmem:[#allocation3 + $0x10] sm:$0x3] %vm1558_vm10, %v1543_v60  ;;  %1561 = vst.msk [vmem:[#allocation3 + $0x8] sm:$0x3] %vm1558_vm10, %v1539_v58  ;;  %v1547_v30 = vpop.permute.xlu0 %1546 }
 0x1bd   :  { %1560 = vst.msk [vmem:[#allocation3 + $0x4] sm:$0x3] %vm1558_vm10, %v1537_v52  ;;  %1565 = vst.msk [vmem:[#allocation3 + $0x18] sm:$0x3] %vm1558_vm10, %v1547_v30 }
 0x1be   :  { %1086 = vst.msk [vmem:[#allocation3 + $0xc] sm:$0x3] %vm1082_vm7, %v1065_v61 }
 0x1bf   :  { %1231 = vst.msk [vmem:[#allocation3 + $0xc] sm:$0x3] %vm1227_vm8, %v2427_v42  ;;  %v1324_v45 = vpop.permute.xlu1 %1323 }
 0x1c0   :  { %1337 = vst.msk [vmem:[#allocation3 + $0xc] sm:$0x3] %vm1333_vm9, %v2409_v11  ;;  %1341 = vst.msk [vmem:[#allocation3 + $0x1c] sm:$0x3] %vm1333_vm9, %v1324_v45 }
 0x1c1   :  { %1562 = vst.msk [vmem:[#allocation3 + $0xc] sm:$0x3] %vm1558_vm10, %v2411_v12 }
 0x1c3   :  { %v1545_v34 = vpop.permute.xlu1 %1544 }
 0x1c4   :  { %1564 = vst.msk [vmem:[#allocation3 + $0x14] sm:$0x3] %vm1558_vm10, %v1545_v34  ;;  %v2070_v63 = vld.sshfl [vmem:[#allocation3] sm:$0xff pattern:$0x76325410] }
 0x1c7   :  { %v1549_v1 = vpop.permute.xlu1 %1548 }
 0x1c8   :  { %v2071_v0 = vld.sshfl [vmem:[#allocation3 + $0x8] sm:$0xff pattern:$0x76325410]  ;;  %1566 = vst.msk [vmem:[#allocation3 + $0x1c] sm:$0x3] %vm1558_vm10, %v1549_v1 }
 0x1c9   :  { %v1746_v3 = vcombine.high %v2070_v63, %v2071_v0  ;;  %v1745_v5 = vcombine.low %v2070_v63, %v2071_v0 }
 0x1cb   :  { %2022 = vmatprep.mubr.msk.bf16.mxu1 %vm1821_vm11, %v1746_v3  ;;  %v2072_v6 = vld.sshfl [vmem:[#allocation3 + $0x10] sm:$0xff pattern:$0x76325410] }
 0x1cc   :  { %1861 = vmatmul.mubr.bf16.vlgmr.msra.gmra.mxu1 %v1745_v5 }
 0x1cf   :  { %v2073_v7 = vld.sshfl [vmem:[#allocation3 + $0x18] sm:$0xff pattern:$0x76325410] }
 0x1d0   :  { %v1764_v27 = vcombine.high %v2072_v6, %v2073_v7  ;;  %v1763_v8 = vcombine.low %v2072_v6, %v2073_v7 }
 0x1d2   :  { %2023 = vmatprep.mubr.msk.bf16.mxu1 %vm1821_vm11, %v1764_v27 }
 0x1d4   :  { %1869 = vmatmul.mubr.bf16.gmra.mxu1 %v1763_v8 }
 0x28c   :  { %v1862_v11 = vpop.f32.mrf.mxu1 }
 0x28d   :  { %v2028_v12 = vpack.c.bf16 %v1862_v11, %v1862_v11 }
 0x28e   :  { %v1864_v13 = vpop.f32.mrf.mxu1 }
 0x28f   :  { %1894 = vrot.lane.b32.xlu0 %v2028_v12, %s2083_s20 }
 0x290   :  { %v1865_v2 = vpop.f32.mrf.mxu1 }
 0x291   :  { %v2029_v14 = vpack.c.bf16 %v1865_v2, %v1865_v2 }
 0x292   :  { %v1867_v62 = vpop.f32.mrf.mxu1 }
 0x293   :  { %1896 = vrot.lane.b32.xlu1 %v2029_v14, %s2083_s20 }
 0x294   :  { %v1870_v4 = vpop.f32.mrf.mxu1 }
 0x295   :  { %v2030_v48 = vpack.c.bf16 %v1870_v4, %v1870_v4 }
 0x296   :  { %v1872_v32 = vpop.f32.mrf.mxu1 }
 0x297   :  { %1898 = vrot.lane.b32.xlu0 %v2030_v48, %s2083_s20 }
 0x298   :  { %v1873_v15 = vpop.f32.mrf.mxu1 }
 0x299   :  { %v2031_v9 = vpack.c.bf16 %v1873_v15, %v1873_v15 }
 0x29a   :  { %v1875_v16 = vpop.f32.mrf.mxu1 }
 0x29b   :  { %1900 = vrot.lane.b32.xlu1 %v2031_v9, %s2083_s20 }
 0x301   :  { %v1895_v17 = vpop.permute.xlu0 %1894 }
 0x302   :  { %1907 = vst.msk [vmem:[%s2523_s7] sm:$0xf] %vm1906_vm13, %v1895_v17 }
 0x305   :  { %v1897_v10 = vpop.permute.xlu1 %1896 }
 0x306   :  { %1908 = vst.msk [vmem:[%s2523_s7 + $0x4] sm:$0xf] %vm1906_vm13, %v1897_v10 }
 0x309   :  { %v1899_v18 = vpop.permute.xlu0 %1898 }
 0x30a   :  { %1909 = vst.msk [vmem:[%s2523_s7 + $0x8] sm:$0xf] %vm1906_vm13, %v1899_v18 }
 0x30d   :  { %v1901_v20 = vpop.permute.xlu1 %1900 }
 0x30e   :  { %1910 = vst.msk [vmem:[%s2523_s7 + $0xc] sm:$0xf] %vm1906_vm13, %v1901_v20 }

// kernel: densenet_forward.13
= control target key start
LH: loop header
LB: loop body
LE: loop exit
PB: predicated region body
PF: predicated region fallthrough
CT: control target
= control target key end

     0   :  { %v221_v1 = vmov 0.0   ;;  %vm222_vm0 = vmmov 0   ;;  %s283_s0 = inlined_call_operand.vmem [shape: bf16[2,16,32], index: 0, kind: input, shape index: {}]   ;;  %s284_s1 = inlined_call_operand.vmem [shape: f32[1,32], index: 1, kind: input, shape index: {}]   ;;  %s285_s2 = inlined_call_operand.vmem [shape: f32[1,32], index: 2, kind: input, shape index: {}]   ;;  %s286_s3 = inlined_call_operand.vmem [shape: bf16[32,10], index: 3, kind: input, shape index: {}]   ;;  %s287_s4 = inlined_call_operand.vmem [shape: f32[1,10], index: 4, kind: input, shape index: {}]   ;;  %s288_s5 = inlined_call_operand.hbm [shape: f32[2,10], index: 5, kind: output, shape index: {}]  }
   0x1   :  { %v197_v0 = vld [vmem:[%s286_s3 + $0x8] sm:$0xff]   ;;  %186 = vmatprep.subr.bf16.mxu0 %v221_v1  ;;  %v198_v2 = vld [vmem:[%s286_s3] sm:$0xff]   ;;  %190 = vmatprep.mubr.msk.bf16.mxu0 %vm222_vm0, %v221_v1 }
   0x2   :  { %187 = vmatpush3.bf16.msra.mxu0 %v197_v0  ;;  %v175_v3 = vld [vmem:[%s283_s0] sm:$0xff]   ;;  %v182_v4 = vld [vmem:[%s283_s0 + $0x8] sm:$0xff]  }
   0x3   :  { %v168_v5 = vld [vmem:[%s284_s1] ss:$0 sm:$0xff]  ;;  %188 = vmatprep.subr.bf16.mxu0 %v221_v1  ;;  %v176_v6 = vunpack.c.l.bf16 %v175_v3  ;;  %v177_v7 = vunpack.c.h.bf16 %v175_v3  ;;  %v180_v8 = vunpack.c.l.bf16 %v182_v4  ;;  %v181_v9 = vunpack.c.h.bf16 %v182_v4 }
   0x4   :  { %10 = vsyncpa [#allocation3], 0  ;;  %v169_v10 = vld [vmem:[%s285_s2] ss:$0 sm:$0xff]  ;;  %vm56_vm1 = vcmask 261120   ;;  %vm94_vm2 = vcmask 1041409  }
   0x5   :  { %v37_v11 = vmul.f32 %v176_v6, %v168_v5  ;;  %v38_v12 = vmul.f32 %v177_v7, %v168_v5  ;;  %v39_v13 = vmul.f32 %v180_v8, %v168_v5  ;;  %v40_v14 = vmul.f32 %v181_v9, %v168_v5  ;;  %v170_v49 = vld [vmem:[%s287_s4] ss:$0 sm:$0xff]  ;;  %s223_s2 = smov [#allocation2]  }
   0x6   :  { %189 = vmatpush3.bf16.msra.mxu0 %v198_v2  ;;  %s160_s29 = sshll.u32 %s223_s2, 4  ;;  %vm152_vm3 = vcmask 74752   ;;  %s161_s29 = int_to_ptr.vmem [resolvable:$true] %s160_s29 }
   0x7   :  { %v48_v15 = vadd.f32 %v169_v10, %v37_v11  ;;  %v49_v16 = vadd.f32 %v169_v10, %v38_v12  ;;  %v50_v17 = vadd.f32 %v169_v10, %v39_v13  ;;  %v51_v18 = vadd.f32 %v169_v10, %v40_v14  ;;  %s199_s30 = scalar_lea.vmem %s161_s29, 32  ;;  %p204_p1 = scmp.lt.s32.totalorder %s161_s29, %s161_s29 }
   0x8   :  { %p200_p0 = scmp.ne.s32.totalorder %s161_s29, %s199_s30  ;;  %p205_p2 = scmp.lt.s32.totalorder %s199_s30, %s199_s30 }
   0x9   :  { %v52_v19 = vmax.f32 %v48_v15, 0.0  ;;  %v53_v20 = vmax.f32 %v49_v16, 0.0  ;;  %v54_v21 = vmax.f32 %v50_v17, 0.0  ;;  %v55_v22 = vmax.f32 %v51_v18, 0.0 }
   0xa   :  { %p206_p3 = por %p205_p2, %p204_p1 }
   0xb   :  { %v57_v23 = vsel %vm56_vm1, %v52_v19, 0.0  ;;  %v58_v24 = vsel %vm56_vm1, %v53_v20, 0.0  ;;  %v66_v25 = vsel %vm56_vm1, %v54_v21, 0.0  ;;  %v67_v26 = vsel %vm56_vm1, %v55_v22, 0.0 }
   0xc   :  { %v59_v27 = vadd.f32 %v58_v24, %v57_v23  ;;  %v68_v28 = vadd.f32 %v67_v26, %v66_v25  ;;  %p207_p4 = pnand %p206_p3, %p200_p0 }
   0xe   :  { %v60_v29 = vrot.slane %v59_v27, 4  ;;  %v69_v30 = vrot.slane %v68_v28, 4 }
  0x10   :  { %v61_v31 = vadd.f32 %v60_v29, %v59_v27  ;;  %v70_v32 = vadd.f32 %v69_v30, %v68_v28 }
  0x12   :  { %v62_v33 = vrot.slane %v61_v31, 2  ;;  %v71_v34 = vrot.slane %v70_v32, 2 }
  0x14   :  { %v63_v35 = vadd.f32 %v62_v33, %v61_v31  ;;  %v72_v36 = vadd.f32 %v71_v34, %v70_v32 }
  0x16   :  { %v64_v37 = vrot.slane %v63_v35, 1  ;;  %v73_v38 = vrot.slane %v72_v36, 1 }
  0x18   :  { %v65_v39 = vadd.f32 %v64_v37, %v63_v35  ;;  %v74_v40 = vadd.f32 %v73_v38, %v72_v36 }
  0x1a   :  { %v75_v41 = vmul.f32 0.0625, %v65_v39  ;;  %v76_v42 = vmul.f32 0.0625, %v74_v40 }
  0x1c   :  { %v77_v43 = vpack.c.bf16 %v75_v41, %v75_v41  ;;  %v78_v44 = vpack.c.bf16 %v76_v42, %v76_v42 }
  0x1e   :  { %v92_v45 = vunpack.c.l.b16 %v77_v43  ;;  %v93_v46 = vunpack.c.l.b16 %v78_v44 }
  0x20   :  { %v95_v47 = vsel %vm94_vm2, %v93_v46, %v92_v45 }
  0x21   :  { %v96_v48 = vpack.c.b16 %v95_v47, %v95_v47 }
  0x23   :  { %191 = vmatmul.mubr.msk.bf16.vlgmr.msra.gmra.mxu0 %vm56_vm1, %v96_v48 }
  0xe3   :  { %v146_v50 = vpop.f32.mrf.mxu0 }
  0xe4   :  { %v147_v51 = vadd.f32 %v170_v49, %v146_v50 }
  0xe5   :  { %v192_v52 = vpop.f32.mrf.mxu0 }
  0xe6   :  { %153 = vst.msk [vmem:[#allocation2] sm:$0x3] %vm152_vm3, %v147_v51 }
  0xe7   :  { %v149_v53 = vpop.f32.mrf.mxu0 }
  0xe8   :  { %210 = shalt.err (!%p207_p4)
}
  0xe9   :  { %163 = dma.vmem_to_hbm [thread:$0]  %s161_s29, 32, %s288_s5, [#allocation3]   ;;  %v193_v54 = vpop.f32.mrf.mxu0 }
  0xea   :  { %219 = dma.done.wait [#allocation3], 32  }
  0xeb   :  { %220 = vsyncadd [#allocation3], 4294967264 }
  0xec   :  { %167 = vsyncpa [#allocation3], 1 }

</bundles_post_ra>
